<compile_context>
chip_gen: v7x
topology: tpu7x:2x2x1
jax: 0.10.0
libtpu: 0.0.40
codegen_flags: <defaults>
</compile_context>

<pallas_src>
import jax
import jax.numpy as jnp
from jax.experimental import pallas as pl
from jax.experimental.pallas import tpu as pltpu

NEG = 0.01       # LeakyReLU negative slope
BN_EPS = 1e-5


def _leaky(x):
    return jnp.where(x >= 0, x, NEG * x)


def _round_up(v, m):
    return (v + m - 1) // m * m


# ----------------------------- Pallas kernel --------------------------------
def edgeblock_kernel(ee_ref, wf_ref, bf_ref, w2_ref, b2_ref, wout_ref, bout_ref,
                     out_ref):
    # block shapes (static python ints)
    k = ee_ref.shape[1]
    tn = ee_ref.shape[2]
    c2 = ee_ref.shape[3]            # 2 * Fin
    fhp = w2_ref.shape[0]           # padded hidden width (multiple of 128)
    fop = w2_ref.shape[1]           # padded Fout        (multiple of 128)

    # bf16 edge features; merging the leading k dim into the sublane dim is a free
    # view (tn is a multiple of 16, lane dim unchanged).
    e3 = ee_ref[0]                              # [k, tn, 2Fin]  bf16
    e2 = e3.reshape(k * tn, c2)                 # [k*tn, 2Fin]   (free view)

    # Fused (conv_w layer-1 | conv_x) + folded BN + LeakyReLU: one bf16 MXU matmul
    # with shared LHS, f32 accumulation.
    z = _leaky(jnp.dot(e2, wf_ref[...], preferred_element_type=jnp.float32)
               + bf_ref[...])                   # [k*tn, Fhp + Fop]  f32
    h = z[:, :fhp].astype(jnp.bfloat16)         # conv_w hidden    (lane slice @128)
    xh2 = z[:, fhp:]                            # conv_x features  (lane slice @128)

    # conv_w layer-2 (+ folded BN + LeakyReLU)  -- bf16 MXU matmul, f32 accumulate
    logits2 = _leaky(jnp.dot(h, w2_ref[...], preferred_element_type=jnp.float32)
                     + b2_ref[...])             # [k*tn, Fop]  f32

    # split sublanes back into the leading k axis (free views)
    logits3 = logits2.reshape(k, tn, fop)       # [k, tn, Fop]
    xh3 = xh2.reshape(k, tn, fop)               # [k, tn, Fop]

    # softmax over the k neighbours.  k is the *leading* axis, so both reductions are
    # plain per-vreg VPU ops (no XLU cross-lane reductions).
    m = jnp.max(logits3, axis=0)                # [tn, Fop]
    p3 = jnp.exp(logits3 - m)                   # [k, tn, Fop]
    s = jnp.sum(p3, axis=0)                     # [tn, Fop]
    inv = pl.reciprocal(s, approx=True)         # EUP slot; normalization ~free
    g3 = (xh3 * (p3 * inv)).astype(jnp.bfloat16)  # gated conv_x features, bf16 for MXU

    # conv_out: Conv2d(Fout, Fout, [1, k]) == contraction over (k, channels).
    # Single batched dot_general (same dimension_numbers as 'kqc,kco->kqo'), then a
    # cheap leading-axis reduction of the k partials.
    partial = jax.lax.dot_general(
        g3, wout_ref[...],
        dimension_numbers=(((2,), (1,)), ((0,), (0,))),
        preferred_element_type=jnp.float32)     # [k, tn, Fop]
    acc = jnp.sum(partial, axis=0)              # [tn, Fop]

    # lane-dense store: Fop is a multiple of 128
    out_ref[0] = (acc + bout_ref[...]).astype(out_ref.dtype)


# ------------------------------ JAX glue -------------------------------------
def edge_features(x, k):
    """x: [B, C, N] -> [B, 2C, N, k] (same semantics as get_edge_features)."""
    B, C, N = x.shape
    xt = jnp.transpose(x, (0, 2, 1))                                   # [B, N, C]
    dist = -2.0 * jnp.einsum('bnc,bcm->bnm', xt, x,
                             precision=jax.lax.Precision.HIGHEST)
    xs = jnp.sum(xt * xt, axis=2, keepdims=True)                       # [B, N, 1]
    dist = dist + xs + jnp.transpose(xs, (0, 2, 1))
    idx = jnp.argsort(dist, axis=2)[:, :, 1:k + 1]                     # [B, N, k]
    neighbors = jnp.take_along_axis(x[:, :, None, :],
                                    idx[:, None, :, :], axis=3)        # [B, C, N, k]
    central = jnp.broadcast_to(x[:, :, :, None], (B, C, N, k))
    return jnp.concatenate([central, neighbors - central], axis=1)     # [B, 2C, N, k]


def fold_conv_bn(W, b, gamma, beta, mean, var):
    """Fold eval-mode BN into a 1x1 conv; return right-matmul form."""
    s = gamma / jnp.sqrt(var + BN_EPS)
    Wf = W[:, :, 0, 0] * s[:, None]          # [Co, Ci]
    bf = (b - mean) * s + beta               # [Co]
    return Wf.T, bf[None, :]                 # [Ci, Co], [1, Co]


def init_params(key, Fin, Fout, k):
    Fh = Fout // 2
    ks = jax.random.split(key, 11)

    def bn_init(kk, c):
        k1, k2, k3, k4 = jax.random.split(kk, 4)
        gamma = 1.0 + 0.1 * jax.random.normal(k1, (c,), jnp.float32)
        beta = 0.1 * jax.random.normal(k2, (c,), jnp.float32)
        mean = 0.1 * jax.random.normal(k3, (c,), jnp.float32)
        var = 0.5 + jnp.abs(jax.random.normal(k4, (c,), jnp.float32))
        return gamma, beta, mean, var

    raw = {
        'w1_conv': 0.1 * jax.random.normal(ks[0], (Fh, Fin, 1, 1), jnp.float32),
        'b1_conv': 0.1 * jax.random.normal(ks[1], (Fh,), jnp.float32),
        'bn1': bn_init(ks[2], Fh),
        'w2_conv': 0.1 * jax.random.normal(ks[3], (Fout, Fh, 1, 1), jnp.float32),
        'b2_conv': 0.1 * jax.random.normal(ks[4], (Fout,), jnp.float32),
        'bn2': bn_init(ks[5], Fout),
        'wx_conv': 0.1 * jax.random.normal(ks[6], (Fout, 2 * Fin, 1, 1), jnp.float32),
        'bx_conv': 0.1 * jax.random.normal(ks[7], (Fout,), jnp.float32),
        'bnx': bn_init(ks[8], Fout),
        'wout_conv': 0.1 * jax.random.normal(ks[9], (Fout, Fout, 1, k), jnp.float32),
        'bout_conv': 0.1 * jax.random.normal(ks[10], (Fout,), jnp.float32),
    }
    return raw


def prepare_kernel_params(raw, Fin, Fout, k):
    """Fold BN, fuse w1|wx, lane-pad channel dims to 128, cast weights to bf16."""
    Fh = Fout // 2
    w1, b1 = fold_conv_bn(raw['w1_conv'], raw['b1_conv'], *raw['bn1'])   # [Fin, Fh]
    w2, b2 = fold_conv_bn(raw['w2_conv'], raw['b2_conv'], *raw['bn2'])   # [Fh, Fout]
    wx, bx = fold_conv_bn(raw['wx_conv'], raw['bx_conv'], *raw['bnx'])   # [2Fin, Fout]
    # conv_out weight [Co, Ci, 1, k] -> [k, Ci, Co]
    wout = jnp.transpose(raw['wout_conv'][:, :, 0, :], (2, 1, 0))
    bout = raw['bout_conv']

    Fhp = _round_up(Fh, 128)
    Fop = _round_up(Fout, 128)

    # Fused first-stage weight: cols [0, Fhp) = conv_w layer-1 (reads only the
    # neighbor-diff half of ee -> zero rows for the central half), cols
    # [Fhp, Fhp+Fop) = conv_x (reads the full edge feature).
    wf = jnp.zeros((2 * Fin, Fhp + Fop), jnp.float32)
    wf = wf.at[Fin:, :Fh].set(w1)
    wf = wf.at[:, Fhp:Fhp + Fout].set(wx)
    bf = jnp.zeros((1, Fhp + Fop), jnp.float32)
    bf = bf.at[:, :Fh].set(b1)
    bf = bf.at[:, Fhp:Fhp + Fout].set(bx)

    w2p = jnp.zeros((Fhp, Fop), jnp.float32).at[:Fh, :Fout].set(w2)
    b2p = jnp.zeros((1, Fop), jnp.float32).at[:, :Fout].set(b2)
    woutp = jnp.zeros((k, Fop, Fop), jnp.float32).at[:, :Fout, :Fout].set(wout)
    boutp = jnp.zeros((1, Fop), jnp.float32).at[0, :Fout].set(bout)

    return dict(wf=wf.astype(jnp.bfloat16), bf=bf,
                w2=w2p.astype(jnp.bfloat16), b2=b2p,
                wout=woutp.astype(jnp.bfloat16), bout=boutp,
                Fhp=Fhp, Fop=Fop)


def edgeblock_pallas(x, kp, k, Fout, tn=128):
    """x: [B, Fin, N] -> [B, Fout, N]."""
    B, Fin, N = x.shape
    Fop = kp['Fop']
    # the grid would silently drop a tail tile otherwise
    assert N % tn == 0 and tn % 8 == 0, (N, tn)

    ee = edge_features(x, k)                                        # [B, 2Fin, N, k] f32
    # k-major / channels-last, bf16 in HBM: in-kernel reshapes stay free views and the
    # edge-feature DMA traffic is halved.
    ee_k = jnp.transpose(ee, (0, 3, 2, 1)).astype(jnp.bfloat16)     # [B, k, N, 2Fin]

    grid = (B, N // tn)

    in_specs = [
        pl.BlockSpec((1, k, tn, 2 * Fin), lambda b, i: (b, 0, i, 0)),
        pl.BlockSpec(kp['wf'].shape, lambda b, i: (0, 0)),
        pl.BlockSpec(kp['bf'].shape, lambda b, i: (0, 0)),
        pl.BlockSpec(kp['w2'].shape, lambda b, i: (0, 0)),
        pl.BlockSpec(kp['b2'].shape, lambda b, i: (0, 0)),
        pl.BlockSpec(kp['wout'].shape, lambda b, i: (0, 0, 0)),
        pl.BlockSpec(kp['bout'].shape, lambda b, i: (0, 0)),
    ]

    out = pl.pallas_call(
        edgeblock_kernel,
        out_shape=jax.ShapeDtypeStruct((B, N, Fop), jnp.float32),
        grid=grid,
        in_specs=in_specs,
        out_specs=pl.BlockSpec((1, tn, Fop), lambda b, i: (b, i, 0)),
        compiler_params=pltpu.CompilerParams(
            dimension_semantics=("parallel", "parallel"),
            # safe on every chip (v7x has only 64 MiB physical VMEM per TC)
            vmem_limit_bytes=32 * 1024 * 1024),
    )(ee_k, kp['wf'], kp['bf'], kp['w2'], kp['b2'], kp['wout'], kp['bout'])

    # drop the lane padding, return in the PyTorch [B, Fout, N] layout
    return jnp.transpose(out[..., :Fout], (0, 2, 1))


# ------------------------- pure-JAX reference --------------------------------
def reference_forward(x, raw, k):
    B, Fin, N = x.shape
    ee = edge_features(x, k)                          # [B, 2Fin, N, k]
    diff = ee[:, Fin:, :, :]

    def conv1x1(h, W, b):
        return (jnp.einsum('bcnk,oc->bonk', h, W[:, :, 0, 0],
                           precision=jax.lax.Precision.HIGHEST)
                + b[None, :, None, None])

    def bn(h, p):
        g, bt, m, v = p
        inv = g / jnp.sqrt(v + BN_EPS)
        return (h - m[None, :, None, None]) * inv[None, :, None, None] \
            + bt[None, :, None, None]

    w = _leaky(bn(conv1x1(diff, raw['w1_conv'], raw['b1_conv']), raw['bn1']))
    w = _leaky(bn(conv1x1(w, raw['w2_conv'], raw['b2_conv']), raw['bn2']))
    w = jax.nn.softmax(w, axis=-1)
    h = _leaky(bn(conv1x1(ee, raw['wx_conv'], raw['bx_conv']), raw['bnx']))
    h = h * w
    y = (jnp.einsum('bcnk,ock->bon', h, raw['wout_conv'][:, :, 0, :],
                    precision=jax.lax.Precision.HIGHEST)
         + raw['bout_conv'][None, :, None])
    return y


# --------------------------------- main ---------------------------------------
if __name__ == "__main__":
    # EdgeConv1 of SPGANGenerator: EdgeBlock(Fin=add_dim=3, Fout=64, k=nk=10),
    # at a small point count N=256.
    B, Fin, Fout, N, k, tn = 2, 3, 64, 256, 10, 128
    key = jax.random.PRNGKey(0)
    kx, kp_key = jax.random.split(key)
    x = jax.random.normal(kx, (B, Fin, N), jnp.float32)

    raw = init_params(kp_key, Fin, Fout, k)
    kparams = prepare_kernel_params(raw, Fin, Fout, k)

    y = edgeblock_pallas(x, kparams, k, Fout, tn=tn)
    y = jax.block_until_ready(y)
    assert y.shape == (B, Fout, N), y.shape

    y_ref = reference_forward(x, raw, k)
    err = float(jnp.max(jnp.abs(y - y_ref)))
    scale = float(jnp.max(jnp.abs(y_ref)))
    # tolerance accounts for bf16 edge features / weights + approx softmax reciprocal
    if not err <= 3e-2 * (1.0 + scale):
        raise AssertionError(
            f"Pallas vs reference mismatch: max abs err = {err} (ref max {scale})")

    print("KERNEL_OK")
</pallas_src>

<mosaic_0001>
module attributes {stable_mosaic.version = 11 : i64} {
  func.func @edgeblock_kernel(%arg0: i32, %arg1: i32, %arg2: memref<1x10x128x6xbf16, #tpu.memory_space<vmem>>, %arg3: memref<6x256xbf16, #tpu.memory_space<vmem>>, %arg4: memref<1x256xf32, #tpu.memory_space<vmem>>, %arg5: memref<128x128xbf16, #tpu.memory_space<vmem>>, %arg6: memref<1x128xf32, #tpu.memory_space<vmem>>, %arg7: memref<10x128x128xbf16, #tpu.memory_space<vmem>>, %arg8: memref<1x128xf32, #tpu.memory_space<vmem>>, %arg9: memref<1x128x128xf32, #tpu.memory_space<vmem>>) attributes {dimension_semantics = [#tpu.dimension_semantics<parallel>, #tpu.dimension_semantics<parallel>], iteration_bounds = array<i64: 2, 2>, scalar_prefetch = 0 : i64, scratch_operands = 0 : i64, tpu.core_type = #tpu.core_type<tc>, window_params = [{transform_indices = @transform_0, window_bounds = array<i64: 1, 10, 128, 6>}, {pipeline_mode = #tpu.pipeline_mode<synchronous>, transform_indices = @transform_1, window_bounds = array<i64: 6, 256>}, {pipeline_mode = #tpu.pipeline_mode<synchronous>, transform_indices = @transform_2, window_bounds = array<i64: 1, 256>}, {pipeline_mode = #tpu.pipeline_mode<synchronous>, transform_indices = @transform_3, window_bounds = array<i64: 128, 128>}, {pipeline_mode = #tpu.pipeline_mode<synchronous>, transform_indices = @transform_4, window_bounds = array<i64: 1, 128>}, {pipeline_mode = #tpu.pipeline_mode<synchronous>, transform_indices = @transform_5, window_bounds = array<i64: 10, 128, 128>}, {pipeline_mode = #tpu.pipeline_mode<synchronous>, transform_indices = @transform_6, window_bounds = array<i64: 1, 128>}, {transform_indices = @transform_7, window_bounds = array<i64: 1, 128, 128>}]} {
    %c0 = arith.constant 0 : index
    %c0_0 = arith.constant 0 : index
    %c0_1 = arith.constant 0 : index
    %c0_2 = arith.constant 0 : index
    %0 = vector.load %arg2[%c0, %c0_0, %c0_1, %c0_2] : memref<1x10x128x6xbf16, #tpu.memory_space<vmem>>, vector<1x10x128x6xbf16>
    %1 = vector.shape_cast %0 : vector<1x10x128x6xbf16> to vector<10x128x6xbf16>
    %2 = vector.shape_cast %1 : vector<10x128x6xbf16> to vector<1280x6xbf16>
    %c0_3 = arith.constant 0 : index
    %c0_4 = arith.constant 0 : index
    %3 = vector.load %arg3[%c0_3, %c0_4] : memref<6x256xbf16, #tpu.memory_space<vmem>>, vector<6x256xbf16>
    %cst = arith.constant dense<0.000000e+00> : vector<1280x256xf32>
    %4 = tpu.matmul %2, %3, %cst {dimension_numbers = #tpu.dot_dimension_numbers<[1], [0], [0], [1], [0, 0, 1, 1], [], []>} : vector<1280x6xbf16>, vector<6x256xbf16>, vector<1280x256xf32> -> vector<1280x256xf32>
    %c0_5 = arith.constant 0 : index
    %c0_6 = arith.constant 0 : index
    %5 = vector.load %arg4[%c0_5, %c0_6] : memref<1x256xf32, #tpu.memory_space<vmem>>, vector<1x256xf32>
    %6 = vector.broadcast %5 : vector<1x256xf32> to vector<1280x256xf32>
    %7 = arith.addf %4, %6 : vector<1280x256xf32>
    %cst_7 = arith.constant 0.000000e+00 : f32
    %8 = vector.broadcast %cst_7 : f32 to vector<1280x256xf32>
    %9 = arith.cmpf oge, %7, %8 : vector<1280x256xf32>
    %cst_8 = arith.constant 0.00999999977 : f32
    %10 = vector.broadcast %cst_8 : f32 to vector<1280x256xf32>
    %11 = arith.mulf %10, %7 : vector<1280x256xf32>
    %12 = arith.select %9, %7, %11 : vector<1280x256xi1>, vector<1280x256xf32>
    %13 = vector.extract_strided_slice %12 {offsets = [0, 0], sizes = [1280, 128], strides = [1, 1]} : vector<1280x256xf32> to vector<1280x128xf32>
    %14 = arith.truncf %13 : vector<1280x128xf32> to vector<1280x128xbf16>
    %15 = vector.extract_strided_slice %12 {offsets = [0, 128], sizes = [1280, 128], strides = [1, 1]} : vector<1280x256xf32> to vector<1280x128xf32>
    %c0_9 = arith.constant 0 : index
    %c0_10 = arith.constant 0 : index
    %16 = vector.load %arg5[%c0_9, %c0_10] : memref<128x128xbf16, #tpu.memory_space<vmem>>, vector<128x128xbf16>
    %cst_11 = arith.constant dense<0.000000e+00> : vector<1280x128xf32>
    %17 = tpu.matmul %14, %16, %cst_11 {dimension_numbers = #tpu.dot_dimension_numbers<[1], [0], [0], [1], [0, 0, 1, 1], [], []>} : vector<1280x128xbf16>, vector<128x128xbf16>, vector<1280x128xf32> -> vector<1280x128xf32>
    %c0_12 = arith.constant 0 : index
    %c0_13 = arith.constant 0 : index
    %18 = vector.load %arg6[%c0_12, %c0_13] : memref<1x128xf32, #tpu.memory_space<vmem>>, vector<1x128xf32>
    %19 = vector.broadcast %18 : vector<1x128xf32> to vector<1280x128xf32>
    %20 = arith.addf %17, %19 : vector<1280x128xf32>
    %cst_14 = arith.constant 0.000000e+00 : f32
    %21 = vector.broadcast %cst_14 : f32 to vector<1280x128xf32>
    %22 = arith.cmpf oge, %20, %21 : vector<1280x128xf32>
    %cst_15 = arith.constant 0.00999999977 : f32
    %23 = vector.broadcast %cst_15 : f32 to vector<1280x128xf32>
    %24 = arith.mulf %23, %20 : vector<1280x128xf32>
    %25 = arith.select %22, %20, %24 : vector<1280x128xi1>, vector<1280x128xf32>
    %26 = vector.shape_cast %25 : vector<1280x128xf32> to vector<10x128x128xf32>
    %27 = vector.shape_cast %15 : vector<1280x128xf32> to vector<10x128x128xf32>
    %cst_16 = arith.constant dense<0xFF800000> : vector<128x128xf32>
    %28 = vector.multi_reduction <maximumf>, %26, %cst_16 [0] : vector<10x128x128xf32> to vector<128x128xf32>
    %29 = vector.shape_cast %28 : vector<128x128xf32> to vector<1x128x128xf32>
    %30 = vector.broadcast %29 : vector<1x128x128xf32> to vector<10x128x128xf32>
    %31 = arith.subf %26, %30 : vector<10x128x128xf32>
    %32 = math.exp %31 : vector<10x128x128xf32>
    %cst_17 = arith.constant dense<0.000000e+00> : vector<128x128xf32>
    %33 = vector.multi_reduction <add>, %32, %cst_17 [0] : vector<10x128x128xf32> to vector<128x128xf32>
    %34 = tpu.reciprocal %33 {approx = true} : vector<128x128xf32> -> vector<128x128xf32>
    %35 = vector.shape_cast %34 : vector<128x128xf32> to vector<1x128x128xf32>
    %36 = vector.broadcast %35 : vector<1x128x128xf32> to vector<10x128x128xf32>
    %37 = arith.mulf %32, %36 : vector<10x128x128xf32>
    %38 = arith.mulf %27, %37 : vector<10x128x128xf32>
    %39 = arith.truncf %38 : vector<10x128x128xf32> to vector<10x128x128xbf16>
    %c0_18 = arith.constant 0 : index
    %c0_19 = arith.constant 0 : index
    %c0_20 = arith.constant 0 : index
    %40 = vector.load %arg7[%c0_18, %c0_19, %c0_20] : memref<10x128x128xbf16, #tpu.memory_space<vmem>>, vector<10x128x128xbf16>
    %cst_21 = arith.constant dense<0.000000e+00> : vector<10x128x128xf32>
    %41 = tpu.matmul %39, %40, %cst_21 {dimension_numbers = #tpu.dot_dimension_numbers<[2], [1], [1], [2], [0, 0, 0, 1, 1, 2], [0], [0]>} : vector<10x128x128xbf16>, vector<10x128x128xbf16>, vector<10x128x128xf32> -> vector<10x128x128xf32>
    %cst_22 = arith.constant dense<0.000000e+00> : vector<128x128xf32>
    %42 = vector.multi_reduction <add>, %41, %cst_22 [0] : vector<10x128x128xf32> to vector<128x128xf32>
    %c0_23 = arith.constant 0 : index
    %c0_24 = arith.constant 0 : index
    %43 = vector.load %arg8[%c0_23, %c0_24] : memref<1x128xf32, #tpu.memory_space<vmem>>, vector<1x128xf32>
    %44 = vector.broadcast %43 : vector<1x128xf32> to vector<128x128xf32>
    %45 = arith.addf %42, %44 : vector<128x128xf32>
    %c0_25 = arith.constant 0 : index
    %c0_26 = arith.constant 0 : index
    %c0_27 = arith.constant 0 : index
    %46 = vector.load %arg9[%c0_25, %c0_26, %c0_27] : memref<1x128x128xf32, #tpu.memory_space<vmem>>, vector<1x128x128xf32>
    %47 = vector.shape_cast %46 : vector<1x128x128xf32> to vector<128x128xf32>
    %48 = vector.shape_cast %45 : vector<128x128xf32> to vector<1x128x128xf32>
    tpu.vector_store %arg9[%c0_25, %c0_26, %c0_27], %48 {strides = array<i32>} : memref<1x128x128xf32, #tpu.memory_space<vmem>>, vector<1x128x128xf32>,
    return
  }
  func.func @transform_0(%arg0: i32, %arg1: i32) -> (i32, i32, i32, i32) {
    %c0_i32 = arith.constant 0 : i32
    %c0_i32_0 = arith.constant 0 : i32
    %c0_i32_1 = arith.constant 0 : i32
    return %arg0, %c0_i32, %arg1, %c0_i32_0 : i32, i32, i32, i32
  }
  func.func @transform_1(%arg0: i32, %arg1: i32) -> (i32, i32) {
    %c0_i32 = arith.constant 0 : i32
    %c0_i32_0 = arith.constant 0 : i32
    %c0_i32_1 = arith.constant 0 : i32
    return %c0_i32, %c0_i32_0 : i32, i32
  }
  func.func @transform_2(%arg0: i32, %arg1: i32) -> (i32, i32) {
    %c0_i32 = arith.constant 0 : i32
    %c0_i32_0 = arith.constant 0 : i32
    %c0_i32_1 = arith.constant 0 : i32
    return %c0_i32, %c0_i32_0 : i32, i32
  }
  func.func @transform_3(%arg0: i32, %arg1: i32) -> (i32, i32) {
    %c0_i32 = arith.constant 0 : i32
    %c0_i32_0 = arith.constant 0 : i32
    %c0_i32_1 = arith.constant 0 : i32
    return %c0_i32, %c0_i32_0 : i32, i32
  }
  func.func @transform_4(%arg0: i32, %arg1: i32) -> (i32, i32) {
    %c0_i32 = arith.constant 0 : i32
    %c0_i32_0 = arith.constant 0 : i32
    %c0_i32_1 = arith.constant 0 : i32
    return %c0_i32, %c0_i32_0 : i32, i32
  }
  func.func @transform_5(%arg0: i32, %arg1: i32) -> (i32, i32, i32) {
    %c0_i32 = arith.constant 0 : i32
    %c0_i32_0 = arith.constant 0 : i32
    %c0_i32_1 = arith.constant 0 : i32
    %c0_i32_2 = arith.constant 0 : i32
    return %c0_i32, %c0_i32_0, %c0_i32_1 : i32, i32, i32
  }
  func.func @transform_6(%arg0: i32, %arg1: i32) -> (i32, i32) {
    %c0_i32 = arith.constant 0 : i32
    %c0_i32_0 = arith.constant 0 : i32
    %c0_i32_1 = arith.constant 0 : i32
    return %c0_i32, %c0_i32_0 : i32, i32
  }
  func.func @transform_7(%arg0: i32, %arg1: i32) -> (i32, i32, i32) {
    %c0_i32 = arith.constant 0 : i32
    %c0_i32_0 = arith.constant 0 : i32
    return %arg0, %arg1, %c0_i32 : i32, i32, i32
  }
}

</mosaic_0001>

<bundles_post_ra>
// kernel: tpu_custom_call.1
= control target key start
LH: loop header
LB: loop body
LE: loop exit
PB: predicated region body
PF: predicated region fallthrough
CT: control target
= control target key end

     0   :  { %12 = vsyncpa [#allocation4], 0  ;;  %s15374_s0 = inlined_call_operand.vmem [shape: bf16[2,10,256,6], index: 0, kind: input, shape index: {}]   ;;  %s15375_s1 = inlined_call_operand.vmem [shape: bf16[6,256], index: 1, kind: input, shape index: {}]   ;;  %s15376_s2 = inlined_call_operand.vmem [shape: f32[1,256], index: 2, kind: input, shape index: {}]   ;;  %s15377_s3 = inlined_call_operand.vmem [shape: bf16[128,128], index: 3, kind: input, shape index: {}]   ;;  %s15378_s4 = inlined_call_operand.vmem [shape: f32[1,128], index: 4, kind: input, shape index: {}]   ;;  %s15379_s5 = inlined_call_operand.vmem [shape: bf16[10,128,128], index: 5, kind: input, shape index: {}]   ;;  %s15380_s6 = inlined_call_operand.vmem [shape: f32[1,128], index: 6, kind: input, shape index: {}]   ;;  %s15381_s7 = inlined_call_operand.hbm [shape: f32[2,256,128], index: 7, kind: output, shape index: {}]  }
   0x1   :  { %14 = vsyncpa [#allocation4 + $0x1], 0  ;;  %s9893_s24 = smov 0   ;;  %s9895_s25 = smov 0  }
   0x2   :  { %s9897_s26 = smov 0   ;;  %s9899_s27 = smov 0  }
   0x3   :  { %s9901_s28 = smov 0   ;;  %s9903_s29 = smov 0  }
   0x4   :  { %s9905_s30 = smov 0   ;;  %s9907_s8 = smov 0  }
   0x5 LB: > { %s7977_s9 = sadd.s32 4294967295, %s9847_s8   ;;  %s7978_s10 = sadd.s32 4294967294, %s9847_s8   ;;  %s9847_s8 = sphi %s9907_s8, %s20_s8   ;;  %s9843_s30 = sphi %s9905_s30, %s17199_s30   ;;  %s9839_s29 = sphi %s9903_s29, %s17198_s29   ;;  %s9835_s28 = sphi %s9901_s28, %s17197_s28   ;;  %s9831_s27 = sphi %s9899_s27, %s17196_s27   ;;  %s9827_s26 = sphi %s9897_s26, %s17195_s26   ;;  %s9823_s25 = sphi %s9895_s25, %s17194_s25   ;;  %s9819_s24 = sphi %s9893_s24, %s17193_s24  }
   0x6   : > { %s29_s11 = sadd.s32 1, %s9839_s29  ;;  %s32_s12 = sadd.s32 1, %s9843_s30 }
   0x7   : > { %p30_p0 = scmp.ge.s32.totalorder %s29_s11, 2  ;;  %p48_p1 = scmp.ne.s32.totalorder %s9827_s26, %s9823_s25 }
   0x8   : > { %p49_p2 = scmp.eq.s32.totalorder %s9847_s8, 0  ;;  %p206_p5 = scmp.eq.s32.totalorder %s7977_s9, 3 }
   0x9   : > { %s17201_s11 = smov (%p30_p0, %s29_s11), 0  ;;  %s17203_s12 = smov (!%p30_p0, %s32_s12), %s9843_s30 }
   0xa   : > { %s37_s13 = ssub.s32 %s9839_s29, %s17201_s11  ;;  %p9945_p3 = por %p49_p2, %p48_p1 }
   0xb   : > { %p34_p4 = scmp.ge.s32.totalorder %s17203_s12, 2  ;;  %p211_p6 = scmp.ne.s32.totalorder %s9823_s25, %s9819_s24 }
   0xc   : > { %p212_p7 = scmp.eq.s32.totalorder %s7978_s10, 3  ;;  %p9953_p8 = por %p206_p5, %p48_p1 }
   0xd   : > { %s17205_s12 = smov (%p34_p4, %s17203_s12), 0  ;;  %s41_s19 = sadd.s32 1, %s9827_s26 }
   0xe   : > { %15729 = sst [smem:[#allocation6_spill]] %s17205_s12  ;;  %p9957_p9 = por %p212_p7, %p211_p6 }
   0xf   : > { %s36_s17 = ssub.s32 %s9843_s30, %s17205_s12  ;;  %p7980_p11 = scmp.ge.s32.totalorder %s9847_s8, 4 }
  0x10   : > { %s38_s18 = sor.u32 %s37_s13, %s36_s17 }
  0x11   : > { %p39_p10 = scmp.eq.s32.totalorder %s38_s18, 0  ;;  %246 = sbr.rel (%p7980_p11) target bundleno = 72 (0x48), region = 40 }
  0x13   : > { %s9965_s20 = scalar_select %p39_p10, %s9827_s26, %s41_s19  }
  0x18   : > { %249 = sbr.rel (!%p9945_p3) target bundleno = 72 (0x48), region = 44  ;;  %s251_s21 = sand.u32 (%p9945_p3), 1, %s9827_s26  }
  0x19   : > { %s9148_s22 = smul.u32 (%p9945_p3), 640, %s251_s21  ;;  %s7981_s23 = sshll.u32 (%p9945_p3), %s9839_s29, 4 }
  0x1a   : > { %s9149_s9 = smul.u32 (%p9945_p3), 320, %s9843_s30 }
  0x1b   : > { %s9981_s14 = scalar_lea.vmem (%p9945_p3), [#allocation2], %s9148_s22 }
  0x1c   : > { %s256_s10 = sadd.s32 (%p9945_p3), %s9149_s9, %s7981_s23 }
  0x1d   : > { %s7982_s12 = sshll.u32 (%p9945_p3), %s256_s10, 2 }
  0x1e   : > { %s9976_s18 = scalar_lea.vmem (%p9945_p3), %s15374_s0, %s7982_s12 }
  0x1f   : > { %v274_v0 = vld [vmem:[%s9976_s18] sm:$0xff]   ;;  %v278_v1 = vld [vmem:[%s9976_s18 + $0x8] sm:$0xff]   ;;  %v282_v2 = vld [vmem:[%s9976_s18 + $0x10] sm:$0xff]  }
  0x20   : > { %275 = vst [vmem:[%s9981_s14] sm:$0xff] %v274_v0   ;;  %279 = vst [vmem:[%s9981_s14 + $0x8] sm:$0xff] %v278_v1   ;;  %v286_v3 = vld [vmem:[%s9976_s18 + $0x18] sm:$0xff]   ;;  %v290_v4 = vld [vmem:[%s9976_s18 + $0x20] sm:$0xff]  }
  0x21   : > { %283 = vst [vmem:[%s9981_s14 + $0x10] sm:$0xff] %v282_v2   ;;  %v294_v5 = vld [vmem:[%s9976_s18 + $0x28] sm:$0xff]   ;;  %287 = vst [vmem:[%s9981_s14 + $0x18] sm:$0xff] %v286_v3   ;;  %v298_v6 = vld [vmem:[%s9976_s18 + $0x30] sm:$0xff]  }
  0x22   : > { %291 = vst [vmem:[%s9981_s14 + $0x20] sm:$0xff] %v290_v4   ;;  %295 = vst [vmem:[%s9981_s14 + $0x28] sm:$0xff] %v294_v5   ;;  %v302_v7 = vld [vmem:[%s9976_s18 + $0x38] sm:$0xff]   ;;  %v306_v8 = vld [vmem:[%s9976_s18 + $0x80] sm:$0xff]  }
  0x23   : > { %299 = vst [vmem:[%s9981_s14 + $0x30] sm:$0xff] %v298_v6   ;;  %303 = vst [vmem:[%s9981_s14 + $0x38] sm:$0xff] %v302_v7   ;;  %v310_v9 = vld [vmem:[%s9976_s18 + $0x88] sm:$0xff]   ;;  %v314_v10 = vld [vmem:[%s9976_s18 + $0x90] sm:$0xff]  }
  0x24   : > { %307 = vst [vmem:[%s9981_s14 + $0x40] sm:$0xff] %v306_v8   ;;  %v318_v11 = vld [vmem:[%s9976_s18 + $0x98] sm:$0xff]   ;;  %311 = vst [vmem:[%s9981_s14 + $0x48] sm:$0xff] %v310_v9   ;;  %v322_v12 = vld [vmem:[%s9976_s18 + $0xa0] sm:$0xff]  }
  0x25   : > { %315 = vst [vmem:[%s9981_s14 + $0x50] sm:$0xff] %v314_v10   ;;  %319 = vst [vmem:[%s9981_s14 + $0x58] sm:$0xff] %v318_v11   ;;  %v326_v13 = vld [vmem:[%s9976_s18 + $0xa8] sm:$0xff]   ;;  %v330_v14 = vld [vmem:[%s9976_s18 + $0xb0] sm:$0xff]  }
  0x26   : > { %323 = vst [vmem:[%s9981_s14 + $0x60] sm:$0xff] %v322_v12   ;;  %327 = vst [vmem:[%s9981_s14 + $0x68] sm:$0xff] %v326_v13   ;;  %v334_v15 = vld [vmem:[%s9976_s18 + $0xb8] sm:$0xff]   ;;  %v338_v16 = vld [vmem:[%s9976_s18 + $0x100] sm:$0xff]  }
  0x27   : > { %331 = vst [vmem:[%s9981_s14 + $0x70] sm:$0xff] %v330_v14   ;;  %v342_v17 = vld [vmem:[%s9976_s18 + $0x108] sm:$0xff]   ;;  %335 = vst [vmem:[%s9981_s14 + $0x78] sm:$0xff] %v334_v15   ;;  %v346_v18 = vld [vmem:[%s9976_s18 + $0x110] sm:$0xff]  }
  0x28   : > { %339 = vst [vmem:[%s9981_s14 + $0x80] sm:$0xff] %v338_v16   ;;  %343 = vst [vmem:[%s9981_s14 + $0x88] sm:$0xff] %v342_v17   ;;  %v350_v19 = vld [vmem:[%s9976_s18 + $0x118] sm:$0xff]   ;;  %v354_v20 = vld [vmem:[%s9976_s18 + $0x120] sm:$0xff]  }
  0x29   : > { %347 = vst [vmem:[%s9981_s14 + $0x90] sm:$0xff] %v346_v18   ;;  %351 = vst [vmem:[%s9981_s14 + $0x98] sm:$0xff] %v350_v19   ;;  %v358_v21 = vld [vmem:[%s9976_s18 + $0x128] sm:$0xff]   ;;  %v362_v22 = vld [vmem:[%s9976_s18 + $0x130] sm:$0xff]  }
  0x2a   : > { %355 = vst [vmem:[%s9981_s14 + $0xa0] sm:$0xff] %v354_v20   ;;  %v366_v23 = vld [vmem:[%s9976_s18 + $0x138] sm:$0xff]   ;;  %359 = vst [vmem:[%s9981_s14 + $0xa8] sm:$0xff] %v358_v21   ;;  %v370_v24 = vld [vmem:[%s9976_s18 + $0x180] sm:$0xff]  }
  0x2b   : > { %363 = vst [vmem:[%s9981_s14 + $0xb0] sm:$0xff] %v362_v22   ;;  %367 = vst [vmem:[%s9981_s14 + $0xb8] sm:$0xff] %v366_v23   ;;  %v374_v25 = vld [vmem:[%s9976_s18 + $0x188] sm:$0xff]   ;;  %v378_v26 = vld [vmem:[%s9976_s18 + $0x190] sm:$0xff]  }
  0x2c   : > { %371 = vst [vmem:[%s9981_s14 + $0xc0] sm:$0xff] %v370_v24   ;;  %375 = vst [vmem:[%s9981_s14 + $0xc8] sm:$0xff] %v374_v25   ;;  %v382_v27 = vld [vmem:[%s9976_s18 + $0x198] sm:$0xff]   ;;  %v386_v28 = vld [vmem:[%s9976_s18 + $0x1a0] sm:$0xff]  }
  0x2d   : > { %379 = vst [vmem:[%s9981_s14 + $0xd0] sm:$0xff] %v378_v26   ;;  %v390_v29 = vld [vmem:[%s9976_s18 + $0x1a8] sm:$0xff]   ;;  %383 = vst [vmem:[%s9981_s14 + $0xd8] sm:$0xff] %v382_v27   ;;  %v394_v30 = vld [vmem:[%s9976_s18 + $0x1b0] sm:$0xff]  }
  0x2e   : > { %387 = vst [vmem:[%s9981_s14 + $0xe0] sm:$0xff] %v386_v28   ;;  %391 = vst [vmem:[%s9981_s14 + $0xe8] sm:$0xff] %v390_v29   ;;  %v398_v31 = vld [vmem:[%s9976_s18 + $0x1b8] sm:$0xff]   ;;  %v402_v32 = vld [vmem:[%s9976_s18 + $0x200] sm:$0xff]  }
  0x2f   : > { %395 = vst [vmem:[%s9981_s14 + $0xf0] sm:$0xff] %v394_v30   ;;  %399 = vst [vmem:[%s9981_s14 + $0xf8] sm:$0xff] %v398_v31   ;;  %v406_v33 = vld [vmem:[%s9976_s18 + $0x208] sm:$0xff]   ;;  %v410_v34 = vld [vmem:[%s9976_s18 + $0x210] sm:$0xff]  }
  0x30   : > { %403 = vst [vmem:[%s9981_s14 + $0x100] sm:$0xff] %v402_v32   ;;  %v414_v35 = vld [vmem:[%s9976_s18 + $0x218] sm:$0xff]   ;;  %407 = vst [vmem:[%s9981_s14 + $0x108] sm:$0xff] %v406_v33   ;;  %v418_v36 = vld [vmem:[%s9976_s18 + $0x220] sm:$0xff]  }
  0x31   : > { %411 = vst [vmem:[%s9981_s14 + $0x110] sm:$0xff] %v410_v34   ;;  %415 = vst [vmem:[%s9981_s14 + $0x118] sm:$0xff] %v414_v35   ;;  %v422_v37 = vld [vmem:[%s9976_s18 + $0x228] sm:$0xff]   ;;  %v426_v38 = vld [vmem:[%s9976_s18 + $0x230] sm:$0xff]  }
  0x32   : > { %419 = vst [vmem:[%s9981_s14 + $0x120] sm:$0xff] %v418_v36   ;;  %423 = vst [vmem:[%s9981_s14 + $0x128] sm:$0xff] %v422_v37   ;;  %v430_v39 = vld [vmem:[%s9976_s18 + $0x238] sm:$0xff]   ;;  %v434_v40 = vld [vmem:[%s9976_s18 + $0x280] sm:$0xff]  }
  0x33   : > { %427 = vst [vmem:[%s9981_s14 + $0x130] sm:$0xff] %v426_v38   ;;  %v438_v41 = vld [vmem:[%s9976_s18 + $0x288] sm:$0xff]   ;;  %431 = vst [vmem:[%s9981_s14 + $0x138] sm:$0xff] %v430_v39   ;;  %v442_v42 = vld [vmem:[%s9976_s18 + $0x290] sm:$0xff]  }
  0x34   : > { %435 = vst [vmem:[%s9981_s14 + $0x140] sm:$0xff] %v434_v40   ;;  %439 = vst [vmem:[%s9981_s14 + $0x148] sm:$0xff] %v438_v41   ;;  %v446_v43 = vld [vmem:[%s9976_s18 + $0x298] sm:$0xff]   ;;  %v450_v44 = vld [vmem:[%s9976_s18 + $0x2a0] sm:$0xff]  }
  0x35   : > { %443 = vst [vmem:[%s9981_s14 + $0x150] sm:$0xff] %v442_v42   ;;  %447 = vst [vmem:[%s9981_s14 + $0x158] sm:$0xff] %v446_v43   ;;  %v454_v45 = vld [vmem:[%s9976_s18 + $0x2a8] sm:$0xff]   ;;  %v458_v46 = vld [vmem:[%s9976_s18 + $0x2b0] sm:$0xff]  }
  0x36   : > { %451 = vst [vmem:[%s9981_s14 + $0x160] sm:$0xff] %v450_v44   ;;  %v462_v47 = vld [vmem:[%s9976_s18 + $0x2b8] sm:$0xff]   ;;  %455 = vst [vmem:[%s9981_s14 + $0x168] sm:$0xff] %v454_v45   ;;  %v466_v48 = vld [vmem:[%s9976_s18 + $0x300] sm:$0xff]  }
  0x37   : > { %459 = vst [vmem:[%s9981_s14 + $0x170] sm:$0xff] %v458_v46   ;;  %463 = vst [vmem:[%s9981_s14 + $0x178] sm:$0xff] %v462_v47   ;;  %v470_v49 = vld [vmem:[%s9976_s18 + $0x308] sm:$0xff]   ;;  %v474_v50 = vld [vmem:[%s9976_s18 + $0x310] sm:$0xff]  }
  0x38   : > { %467 = vst [vmem:[%s9981_s14 + $0x180] sm:$0xff] %v466_v48   ;;  %471 = vst [vmem:[%s9981_s14 + $0x188] sm:$0xff] %v470_v49   ;;  %v478_v51 = vld [vmem:[%s9976_s18 + $0x318] sm:$0xff]   ;;  %v482_v52 = vld [vmem:[%s9976_s18 + $0x320] sm:$0xff]  }
  0x39   : > { %475 = vst [vmem:[%s9981_s14 + $0x190] sm:$0xff] %v474_v50   ;;  %v486_v53 = vld [vmem:[%s9976_s18 + $0x328] sm:$0xff]   ;;  %479 = vst [vmem:[%s9981_s14 + $0x198] sm:$0xff] %v478_v51   ;;  %v490_v54 = vld [vmem:[%s9976_s18 + $0x330] sm:$0xff]  }
  0x3a   : > { %483 = vst [vmem:[%s9981_s14 + $0x1a0] sm:$0xff] %v482_v52   ;;  %487 = vst [vmem:[%s9981_s14 + $0x1a8] sm:$0xff] %v486_v53   ;;  %v494_v55 = vld [vmem:[%s9976_s18 + $0x338] sm:$0xff]   ;;  %v498_v56 = vld [vmem:[%s9976_s18 + $0x380] sm:$0xff]  }
  0x3b   : > { %491 = vst [vmem:[%s9981_s14 + $0x1b0] sm:$0xff] %v490_v54   ;;  %495 = vst [vmem:[%s9981_s14 + $0x1b8] sm:$0xff] %v494_v55   ;;  %v502_v57 = vld [vmem:[%s9976_s18 + $0x388] sm:$0xff]   ;;  %v506_v58 = vld [vmem:[%s9976_s18 + $0x390] sm:$0xff]  }
  0x3c   : > { %499 = vst [vmem:[%s9981_s14 + $0x1c0] sm:$0xff] %v498_v56   ;;  %v510_v59 = vld [vmem:[%s9976_s18 + $0x398] sm:$0xff]   ;;  %503 = vst [vmem:[%s9981_s14 + $0x1c8] sm:$0xff] %v502_v57   ;;  %v514_v60 = vld [vmem:[%s9976_s18 + $0x3a0] sm:$0xff]  }
  0x3d   : > { %507 = vst [vmem:[%s9981_s14 + $0x1d0] sm:$0xff] %v506_v58   ;;  %511 = vst [vmem:[%s9981_s14 + $0x1d8] sm:$0xff] %v510_v59   ;;  %v518_v61 = vld [vmem:[%s9976_s18 + $0x3a8] sm:$0xff]   ;;  %v522_v62 = vld [vmem:[%s9976_s18 + $0x3b0] sm:$0xff]  }
  0x3e   : > { %515 = vst [vmem:[%s9981_s14 + $0x1e0] sm:$0xff] %v514_v60   ;;  %519 = vst [vmem:[%s9981_s14 + $0x1e8] sm:$0xff] %v518_v61   ;;  %v526_v63 = vld [vmem:[%s9976_s18 + $0x3b8] sm:$0xff]   ;;  %v530_v0 = vld [vmem:[%s9976_s18 + $0x400] sm:$0xff]  }
  0x3f   : > { %523 = vst [vmem:[%s9981_s14 + $0x1f0] sm:$0xff] %v522_v62   ;;  %v534_v1 = vld [vmem:[%s9976_s18 + $0x408] sm:$0xff]   ;;  %527 = vst [vmem:[%s9981_s14 + $0x1f8] sm:$0xff] %v526_v63   ;;  %v538_v2 = vld [vmem:[%s9976_s18 + $0x410] sm:$0xff]  }
  0x40   : > { %531 = vst [vmem:[%s9981_s14 + $0x200] sm:$0xff] %v530_v0   ;;  %535 = vst [vmem:[%s9981_s14 + $0x208] sm:$0xff] %v534_v1   ;;  %v542_v3 = vld [vmem:[%s9976_s18 + $0x418] sm:$0xff]   ;;  %v546_v4 = vld [vmem:[%s9976_s18 + $0x420] sm:$0xff]  }
  0x41   : > { %539 = vst [vmem:[%s9981_s14 + $0x210] sm:$0xff] %v538_v2   ;;  %543 = vst [vmem:[%s9981_s14 + $0x218] sm:$0xff] %v542_v3   ;;  %v550_v5 = vld [vmem:[%s9976_s18 + $0x428] sm:$0xff]   ;;  %v554_v6 = vld [vmem:[%s9976_s18 + $0x430] sm:$0xff]  }
  0x42   : > { %547 = vst [vmem:[%s9981_s14 + $0x220] sm:$0xff] %v546_v4   ;;  %v558_v7 = vld [vmem:[%s9976_s18 + $0x438] sm:$0xff]   ;;  %551 = vst [vmem:[%s9981_s14 + $0x228] sm:$0xff] %v550_v5   ;;  %v562_v8 = vld [vmem:[%s9976_s18 + $0x480] sm:$0xff]  }
  0x43   : > { %555 = vst [vmem:[%s9981_s14 + $0x230] sm:$0xff] %v554_v6   ;;  %559 = vst [vmem:[%s9981_s14 + $0x238] sm:$0xff] %v558_v7   ;;  %v566_v9 = vld [vmem:[%s9976_s18 + $0x488] sm:$0xff]   ;;  %v570_v10 = vld [vmem:[%s9976_s18 + $0x490] sm:$0xff]  }
  0x44   : > { %563 = vst [vmem:[%s9981_s14 + $0x240] sm:$0xff] %v562_v8   ;;  %567 = vst [vmem:[%s9981_s14 + $0x248] sm:$0xff] %v566_v9   ;;  %v574_v11 = vld [vmem:[%s9976_s18 + $0x498] sm:$0xff]   ;;  %v578_v12 = vld [vmem:[%s9976_s18 + $0x4a0] sm:$0xff]  }
  0x45   : > { %571 = vst [vmem:[%s9981_s14 + $0x250] sm:$0xff] %v570_v10   ;;  %v582_v13 = vld [vmem:[%s9976_s18 + $0x4a8] sm:$0xff]   ;;  %575 = vst [vmem:[%s9981_s14 + $0x258] sm:$0xff] %v574_v11   ;;  %v586_v14 = vld [vmem:[%s9976_s18 + $0x4b0] sm:$0xff]  }
  0x46   : > { %579 = vst [vmem:[%s9981_s14 + $0x260] sm:$0xff] %v578_v12   ;;  %583 = vst [vmem:[%s9981_s14 + $0x268] sm:$0xff] %v582_v13   ;;  %v590_v15 = vld [vmem:[%s9976_s18 + $0x4b8] sm:$0xff]  }
  0x47   : > { %587 = vst [vmem:[%s9981_s14 + $0x270] sm:$0xff] %v586_v14   ;;  %591 = vst [vmem:[%s9981_s14 + $0x278] sm:$0xff] %v590_v15  }
  0x48 PF: > { %p7983_p12 = scmp.ge.s32.totalorder %s9847_s8, 1  ;;  %p935_p13 = scmp.lt.s32.totalorder %s9847_s8, 5 }
  0x4a   : > { %p936_p0 = pnand %p7983_p12, %p935_p13 }
  0x4c   : > { %939 = sbr.rel (%p936_p0) target bundleno = 1882 (0x75a), region = 85 }
  0x53   : > { %v1136_v16 = vld [vmem:[%s15375_s1] sm:$0x77]  ;;  %vm1795_vm0 = vcmask 1042432   ;;  %s10146_s21 = sand.u32 1, %s9823_s25   ;;  %v15383_v19 = vmov 0   ;;  %vm1554_vm1 = vcmask 48128   ;;  %v1139_v33 = vlaneseq }
  0x54   : > { %v8066_v17 = vcombine.high %v1136_v16, %v1136_v16  ;;  %v8065_v18 = vcombine.low %v1136_v16, %v1136_v16  ;;  %1834 = vmatprep.mubr.bf16.mxu0 %v15383_v19  ;;  %s9150_s22 = smul.u32 640, %s10146_s21  ;;  %v9249_v27 = vld [vmem:[%s15377_s3] sm:$0xff]   ;;  %v9256_v39 = vld [vmem:[%s15377_s3 + $0x8] sm:$0xff]   ;;  %v9257_v41 = vld [vmem:[%s15377_s3 + $0x10] sm:$0xff]   ;;  %s7984_s17 = sshll.u32 %s10146_s21, 7 }
  0x55   : > { %8988 = vmatprep.subr.bf16.mxu1 %v9249_v27  ;;  %v10186_v34 = vshrl.u32 %v1139_v33, 7  ;;  %v10192_v35 = vld [vmem:[%s15376_s2] sm:$0x3]  ;;  %v9259_v42 = vld [vmem:[%s15377_s3 + $0x18] sm:$0xff]   ;;  %v9262_v45 = vld [vmem:[%s15377_s3 + $0x28] sm:$0xff]   ;;  %s15294_s12 = scalar_lea.vmem [#allocation3], %s7984_s17 }
  0x56   : > { %8067 = vmatprep.subr.msk.bf16.mxu0 %vm1795_vm0, %v8066_v17  ;;  %v1797_v20 = vsel %vm1795_vm0, %v8065_v18, 0  ;;  %s10150_s23 = scalar_lea.vmem [#allocation2], %s9150_s22  ;;  %8996 = vmatpush3.bf16.msra.mxu1 %v9249_v27  ;;  %v9260_v44 = vld [vmem:[%s15377_s3 + $0x20] sm:$0xff]   ;;  %v9263_v47 = vld [vmem:[%s15377_s3 + $0x30] sm:$0xff]   ;;  %v9265_v48 = vld [vmem:[%s15377_s3 + $0x38] sm:$0xff]   ;;  %s8239_s19 = sshll.u32 %s9831_s27, 4 }
  0x57   : > { %1803 = vmatpush1.bf16.msra.mxu0 %v1797_v20  ;;  %v9227_v21 = vld [vmem:[%s10150_s23] sm:$0xff]   ;;  %v9228_v22 = vld [vmem:[%s10150_s23 + $0x8] sm:$0xff]   ;;  %v9229_v23 = vld [vmem:[%s10150_s23 + $0x10] sm:$0xff]   ;;  %v1145_v36 = vsub.s32 1, %v10186_v34  ;;  %8989 = vmatprep.subr.bf16.mxu1 %v9256_v39  ;;  %v1141_v61 = vsub.s32 0, %v10186_v34  ;;  %s8240_s22 = sshll.u32 %s9835_s28, 5 }
  0x58   : > { %v9230_v24 = vld [vmem:[%s10150_s23 + $0x18] sm:$0xff]   ;;  %v9231_v25 = vld [vmem:[%s10150_s23 + $0x20] sm:$0xff]   ;;  %v9232_v26 = vld [vmem:[%s10150_s23 + $0x28] sm:$0xff]   ;;  %8492 = vmatprep.subr.bf16.mxu0 %v9249_v27  ;;  %s7889_s9 = sadd.s32 %s8240_s22, %s8239_s19  ;;  %s7892_s10 = sshll.u32 %s15294_s12, 4  ;;  %s15312_s10 = int_to_ptr.vmem [resolvable:$true] %s7892_s10 }
  0x59   : > { %v9233_v28 = vld [vmem:[%s10150_s23 + $0x30] sm:$0xff]   ;;  %v9234_v29 = vld [vmem:[%s10150_s23 + $0x38] sm:$0xff]   ;;  %v9235_v30 = vld [vmem:[%s10150_s23 + $0x40] sm:$0xff]   ;;  %v10198_v38 = vrot.slane %v10192_v35, %v1145_v36  ;;  %v10269_v62 = vrot.slane %v10192_v35, %v1141_v61  ;;  %s7877_s17 = scalar_lea.sflag [#allocation4], %s10146_s21  ;;  %s9753_s18 = scalar_lea.vmem %s15312_s10, 2048 }
  0x5a   : > { %8068 = vmatmul.mubr.msk.bf16.vlgmr.msra.gmra.mrb[0].mxu0 %vm1554_vm1, %v9227_v21  ;;  %v9236_v31 = vld [vmem:[%s10150_s23 + $0x48] sm:$0xff]   ;;  %v9237_v32 = vld [vmem:[%s10150_s23 + $0x50] sm:$0xff]   ;;  %v9238_v37 = vld [vmem:[%s10150_s23 + $0x58] sm:$0xff]   ;;  %8997 = vmatpush3.bf16.msra.mxu1 %v9256_v39  ;;  %p9754_p1 = scmp.ne.s32.totalorder %s15312_s10, %s9753_s18  ;;  %s9850_s14 = smov [#allocation3]  }
  0x5b   : > { %1844 = vmatprep.mubr.bf16.mxu0 %v15383_v19  ;;  %8493 = vmatpush3.bf16.msra.mxu0 %v9249_v27  ;;  %v9239_v40 = vld [vmem:[%s10150_s23 + $0x60] sm:$0xff]   ;;  %v9240_v43 = vld [vmem:[%s10150_s23 + $0x68] sm:$0xff]   ;;  %v9241_v46 = vld [vmem:[%s10150_s23 + $0x70] sm:$0xff]   ;;  %s9757_s19 = sshll.u32 %s9850_s14, 4  ;;  %s9758_s19 = int_to_ptr.vmem [resolvable:$false] %s9757_s19 }
  0x5c   : > { %8494 = vmatprep.subr.bf16.mxu0 %v9256_v39  ;;  %8990 = vmatprep.subr.bf16.mxu1 %v9257_v41  ;;  %v9242_v49 = vld [vmem:[%s10150_s23 + $0x78] sm:$0xff]   ;;  %v9243_v50 = vld [vmem:[%s10150_s23 + $0x80] sm:$0xff]   ;;  %v9244_v51 = vld [vmem:[%s10150_s23 + $0x88] sm:$0xff]   ;;  %p9755_p2 = pnand %p9754_p1, %p9953_p8  ;;  %s9759_s22 = scalar_lea.vmem %s9758_s19, 4096 }
  0x5d   : > { %v9245_v52 = vld [vmem:[%s10150_s23 + $0x90] sm:$0xff]   ;;  %v9246_v53 = vld [vmem:[%s10150_s23 + $0x98] sm:$0xff]   ;;  %v9247_v54 = vld [vmem:[%s10150_s23 + $0xa0] sm:$0xff]   ;;  %p9760_p4 = scmp.lt.s32.totalorder %s15312_s10, %s9758_s19  ;;  %p9761_p5 = scmp.lt.s32.totalorder %s9759_s22, %s9753_s18 }
  0x5e   : > { %8998 = vmatpush3.bf16.msra.mxu1 %v9257_v41  ;;  %v9248_v55 = vld [vmem:[%s10150_s23 + $0xa8] sm:$0xff]   ;;  %v9250_v56 = vld [vmem:[%s10150_s23 + $0xb0] sm:$0xff]   ;;  %v9251_v57 = vld [vmem:[%s10150_s23 + $0xb8] sm:$0xff]   ;;  %p9756_p3 = pneg %p9755_p2 }
  0x5f   : > { %8495 = vmatpush3.bf16.msra.mxu0 %v9256_v39  ;;  %8991 = vmatprep.subr.bf16.mxu1 %v9259_v42  ;;  %v9252_v58 = vld [vmem:[%s10150_s23 + $0xc0] sm:$0xff]   ;;  %v9253_v59 = vld [vmem:[%s10150_s23 + $0xc8] sm:$0xff]   ;;  %v9254_v60 = vld [vmem:[%s10150_s23 + $0xd0] sm:$0xff]   ;;  %p9762_p6 = por %p9761_p5, %p9760_p4 }
  0x60   : > { %8496 = vmatprep.subr.bf16.mxu0 %v9257_v41  ;;  %v9255_v2 = vld [vmem:[%s10150_s23 + $0xd8] sm:$0xff]   ;;  %v9258_v14 = vld [vmem:[%s10150_s23 + $0xe0] sm:$0xff]   ;;  %v9261_v27 = vld [vmem:[%s10150_s23 + $0xe8] sm:$0xff]  }
  0x61   : > { %p9763_p7 = pnand %p9762_p6, %p9756_p3 }
  0x62   : > { %8069 = vmatmul.mubr.msk.bf16.gmra.mrb[4].mxu0 %vm1554_vm1, %v9228_v22  ;;  %8999 = vmatpush3.bf16.msra.mxu1 %v9259_v42 }
  0x63   : > { %1854 = vmatprep.mubr.bf16.mxu0 %v15383_v19  ;;  %8497 = vmatpush3.bf16.msra.mxu0 %v9257_v41 }
  0x64   : > { %8498 = vmatprep.subr.bf16.mxu0 %v9259_v42  ;;  %8992 = vmatprep.subr.bf16.mxu1 %v9260_v44 }
  0x66   : > { %9000 = vmatpush3.bf16.msra.mxu1 %v9260_v44 }
  0x67   : > { %8499 = vmatpush3.bf16.msra.mxu0 %v9259_v42  ;;  %8993 = vmatprep.subr.bf16.mxu1 %v9262_v45 }
  0x68   : > { %8500 = vmatprep.subr.bf16.mxu0 %v9260_v44 }
  0x6a   : > { %8070 = vmatmul.mubr.msk.bf16.gmra.mrb[8].mxu0 %vm1554_vm1, %v9229_v23  ;;  %9001 = vmatpush3.bf16.msra.mxu1 %v9262_v45 }
  0x6b   : > { %1864 = vmatprep.mubr.bf16.mxu0 %v15383_v19  ;;  %8501 = vmatpush3.bf16.msra.mxu0 %v9260_v44 }
  0x6c   : > { %8502 = vmatprep.subr.bf16.mxu0 %v9262_v45  ;;  %8994 = vmatprep.subr.bf16.mxu1 %v9263_v47 }
  0x6e   : > { %9002 = vmatpush3.bf16.msra.mxu1 %v9263_v47 }
  0x6f   : > { %8503 = vmatpush3.bf16.msra.mxu0 %v9262_v45  ;;  %8995 = vmatprep.subr.bf16.mxu1 %v9265_v48 }
  0x70   : > { %8504 = vmatprep.subr.bf16.mxu0 %v9263_v47 }
  0x72   : > { %8071 = vmatmul.mubr.msk.bf16.gmra.mrb[12].mxu0 %vm1554_vm1, %v9230_v24  ;;  %9003 = vmatpush3.bf16.msra.mxu1 %v9265_v48 }
  0x73   : > { %1874 = vmatprep.mubr.bf16.mxu0 %v15383_v19  ;;  %8505 = vmatpush3.bf16.msra.mxu0 %v9263_v47 }
  0x74   : > { %8506 = vmatprep.subr.bf16.mxu0 %v9265_v48 }
  0x77   : > { %8507 = vmatpush3.bf16.msra.mxu0 %v9265_v48 }
  0x7a   : > { %8072 = vmatmul.mubr.msk.bf16.gmra.mrb[16].mxu0 %vm1554_vm1, %v9231_v25 }
  0x7b   : > { %1884 = vmatprep.mubr.bf16.mxu0 %v15383_v19 }
  0x82   : > { %8073 = vmatmul.mubr.msk.bf16.gmra.mrb[20].mxu0 %vm1554_vm1, %v9232_v26 }
  0x83   : > { %1894 = vmatprep.mubr.bf16.mxu0 %v15383_v19 }
  0x8a   : > { %8074 = vmatmul.mubr.msk.bf16.gmra.mrb[24].mxu0 %vm1554_vm1, %v9233_v28 }
  0x8b   : > { %1904 = vmatprep.mubr.bf16.mxu0 %v15383_v19 }
  0x92   : > { %8075 = vmatmul.mubr.msk.bf16.gmra.mrb[28].mxu0 %vm1554_vm1, %v9234_v29 }
  0x93   : > { %1914 = vmatprep.mubr.bf16.mxu0 %v15383_v19 }
  0x9a   : > { %8076 = vmatmul.mubr.msk.bf16.gmra.mrb[32].mxu0 %vm1554_vm1, %v9235_v30 }
  0x9b   : > { %1924 = vmatprep.mubr.bf16.mxu0 %v15383_v19 }
  0xa2   : > { %8077 = vmatmul.mubr.msk.bf16.gmra.mrb[36].mxu0 %vm1554_vm1, %v9236_v31 }
  0xa3   : > { %1934 = vmatprep.mubr.bf16.mxu0 %v15383_v19 }
  0xaa   : > { %8078 = vmatmul.mubr.msk.bf16.gmra.mrb[40].mxu0 %vm1554_vm1, %v9237_v32 }
  0xab   : > { %1944 = vmatprep.mubr.bf16.mxu0 %v15383_v19 }
  0xb2   : > { %8079 = vmatmul.mubr.msk.bf16.gmra.mrb[44].mxu0 %vm1554_vm1, %v9238_v37 }
  0xb3   : > { %1954 = vmatprep.mubr.bf16.mxu0 %v15383_v19 }
  0xba   : > { %8080 = vmatmul.mubr.msk.bf16.gmra.mrb[48].mxu0 %vm1554_vm1, %v9239_v40  ;;  %v9264_v40 = vld [vmem:[%s10150_s23 + $0xf0] sm:$0xff]  }
  0xbb   : > { %1964 = vmatprep.mubr.bf16.mxu0 %v15383_v19 }
  0xc2   : > { %8081 = vmatmul.mubr.msk.bf16.gmra.mrb[52].mxu0 %vm1554_vm1, %v9240_v43 }
  0xc3   : > { %1974 = vmatprep.mubr.bf16.mxu0 %v15383_v19 }
  0xca   : > { %8082 = vmatmul.mubr.msk.bf16.gmra.mrb[56].mxu0 %vm1554_vm1, %v9241_v46 }
  0xcb   : > { %1984 = vmatprep.mubr.bf16.mxu0 %v15383_v19 }
  0xd2   : > { %8083 = vmatmul.mubr.msk.bf16.gmra.mrb[60].mxu0 %vm1554_vm1, %v9242_v49 }
  0xd3   : > { %1994 = vmatprep.mubr.bf16.mxu0 %v15383_v19 }
  0xda   : > { %8084 = vmatmul.mubr.msk.bf16.gmra.mrb[64].mxu0 %vm1554_vm1, %v9243_v50 }
  0xdb   : > { %2004 = vmatprep.mubr.bf16.mxu0 %v15383_v19 }
  0xe2   : > { %8085 = vmatmul.mubr.msk.bf16.gmra.mrb[68].mxu0 %vm1554_vm1, %v9244_v51 }
  0xe3   : > { %2014 = vmatprep.mubr.bf16.mxu0 %v15383_v19 }
  0xea   : > { %8086 = vmatmul.mubr.msk.bf16.gmra.mrb[72].mxu0 %vm1554_vm1, %v9245_v52  ;;  %v9266_v52 = vld [vmem:[%s10150_s23 + $0xf8] sm:$0xff]  }
  0xeb   : > { %2024 = vmatprep.mubr.bf16.mxu0 %v15383_v19 }
  0xf2   : > { %8087 = vmatmul.mubr.msk.bf16.gmra.mrb[76].mxu0 %vm1554_vm1, %v9246_v53 }
  0xf3   : > { %2034 = vmatprep.mubr.bf16.mxu0 %v15383_v19 }
  0xfa   : > { %8088 = vmatmul.mubr.msk.bf16.gmra.mrb[80].mxu0 %vm1554_vm1, %v9247_v54 }
  0xfb   : > { %2044 = vmatprep.mubr.bf16.mxu0 %v15383_v19 }
 0x102   : > { %8089 = vmatmul.mubr.msk.bf16.gmra.mrb[84].mxu0 %vm1554_vm1, %v9248_v55 }
 0x103   : > { %2054 = vmatprep.mubr.bf16.mxu0 %v15383_v19 }
 0x10a   : > { %8090 = vmatmul.mubr.msk.bf16.gmra.mrb[88].mxu0 %vm1554_vm1, %v9250_v56 }
 0x10b   : > { %2064 = vmatprep.mubr.bf16.mxu0 %v15383_v19 }
 0x112   : > { %8091 = vmatmul.mubr.msk.bf16.gmra.mrb[92].mxu0 %vm1554_vm1, %v9251_v57 }
 0x113   : > { %2074 = vmatprep.mubr.bf16.mxu0 %v15383_v19 }
 0x11a   : > { %8092 = vmatmul.mubr.msk.bf16.gmra.mrb[96].mxu0 %vm1554_vm1, %v9252_v58 }
 0x11b   : > { %2084 = vmatprep.mubr.bf16.mxu0 %v15383_v19 }
 0x122   : > { %8093 = vmatmul.mubr.msk.bf16.gmra.mrb[100].mxu0 %vm1554_vm1, %v9253_v59 }
 0x123   : > { %2094 = vmatprep.mubr.bf16.mxu0 %v15383_v19 }
 0x12a   : > { %8094 = vmatmul.mubr.msk.bf16.gmra.mrb[104].mxu0 %vm1554_vm1, %v9254_v60 }
 0x12b   : > { %2104 = vmatprep.mubr.bf16.mxu0 %v15383_v19 }
 0x12d   : > { %v1836_v63 = vpop.f32.mrb[0].mxu0 }
 0x12e   : > { %v1837_v0 = vadd.f32 %v1836_v63, %v10269_v62  ;;  %v10273_v1 = vpop.f32.mrb[1].mxu0 }
 0x12f   : > { %v1840_v3 = vpop.f32.mrb[2].mxu0 }
 0x130   : > { %v2955_v4 = vmul.f32 0.01, %v1837_v0  ;;  %v1841_v5 = vadd.f32 %v1840_v3, %v10269_v62  ;;  %v10277_v6 = vpop.f32.mrb[3].mxu0  ;;  %vm2635_vm2 = vcmp.ge.f32.partialorder %v1837_v0, 0.0 }
 0x132   : > { %v2957_v7 = vmul.f32 0.01, %v1841_v5  ;;  %8095 = vmatmul.mubr.msk.bf16.gmra.mrb[108].mxu0 %vm1554_vm1, %v9255_v2  ;;  %vm2637_vm3 = vcmp.ge.f32.partialorder %v1841_v5, 0.0  ;;  %v10281_v8 = vsel %vm2635_vm2, %v1837_v0, %v2955_v4  ;;  %v9267_v2 = vld [vmem:[%s10150_s23 + $0x100] sm:$0xff]  }
 0x133   : > { %2114 = vmatprep.mubr.bf16.mxu0 %v15383_v19 }
 0x134   : > { %v10283_v9 = vsel %vm2637_vm3, %v1841_v5, %v2957_v7 }
 0x135   : > { %v1846_v10 = vpop.f32.mrb[4].mxu0 }
 0x136   : > { %v1847_v12 = vadd.f32 %v1846_v10, %v10269_v62  ;;  %v10288_v13 = vpop.f32.mrb[5].mxu0 }
 0x137   : > { %15732 = vst [vmem:[#allocation7_spill] sm:$0xff] %v10288_v13  ;;  %v1850_v15 = vpop.f32.mrb[6].mxu0 }
 0x138   : > { %v2959_v16 = vmul.f32 0.01, %v1847_v12  ;;  %v1851_v17 = vadd.f32 %v1850_v15, %v10269_v62  ;;  %v10292_v18 = vpop.f32.mrb[7].mxu0  ;;  %vm2639_vm4 = vcmp.ge.f32.partialorder %v1847_v12, 0.0 }
 0x139   : > { %15733 = vst [vmem:[#allocation8_spill] sm:$0xff] %v10292_v18 }
 0x13a   : > { %vm2641_vm5 = vcmp.ge.f32.partialorder %v1851_v17, 0.0  ;;  %v2961_v20 = vmul.f32 0.01, %v1851_v17  ;;  %8096 = vmatmul.mubr.msk.bf16.gmra.mrb[112].mxu0 %vm1554_vm1, %v9258_v14  ;;  %v10296_v21 = vsel %vm2639_vm4, %v1847_v12, %v2959_v16 }
 0x13b   : > { %2124 = vmatprep.mubr.bf16.mxu0 %v15383_v19 }
 0x13c   : > { %v10298_v22 = vsel %vm2641_vm5, %v1851_v17, %v2961_v20 }
 0x13d   : > { %v1856_v24 = vpop.f32.mrb[8].mxu0 }
 0x13e   : > { %v1857_v25 = vadd.f32 %v1856_v24, %v10269_v62  ;;  %v10303_v26 = vpop.f32.mrb[9].mxu0  ;;  %v9268_v24 = vld [vmem:[%s10150_s23 + $0x108] sm:$0xff]  }
 0x13f   : > { %15734 = vst [vmem:[#allocation9_spill] sm:$0xff] %v10303_v26  ;;  %v1860_v28 = vpop.f32.mrb[10].mxu0 }
 0x140   : > { %v1861_v29 = vadd.f32 %v1860_v28, %v10269_v62  ;;  %v10307_v30 = vpop.f32.mrb[11].mxu0  ;;  %v2963_v31 = vmul.f32 0.01, %v1857_v25  ;;  %vm2643_vm6 = vcmp.ge.f32.partialorder %v1857_v25, 0.0 }
 0x141   : > { %15735 = vst [vmem:[#allocation10_spill] sm:$0xff] %v10307_v30 }
 0x142   : > { %8097 = vmatmul.mubr.msk.bf16.gmra.mrb[116].mxu0 %vm1554_vm1, %v9261_v27  ;;  %vm2645_vm7 = vcmp.ge.f32.partialorder %v1861_v29, 0.0  ;;  %v2965_v32 = vmul.f32 0.01, %v1861_v29  ;;  %v3283_v33 = vsel %vm2643_vm6, %v1857_v25, %v2963_v31 }
 0x143   : > { %2134 = vmatprep.mubr.bf16.mxu0 %v15383_v19 }
 0x144   : > { %v3285_v34 = vsel %vm2645_vm7, %v1861_v29, %v2965_v32 }
 0x145   : > { %v1866_v35 = vpop.f32.mrb[12].mxu0  ;;  %v3597_v36 = vpack.c.bf16 %v3285_v34, %v3283_v33 }
 0x146   : > { %v1867_v37 = vadd.f32 %v1866_v35, %v10269_v62  ;;  %v10312_v39 = vpop.f32.mrb[13].mxu0 }
 0x147   : > { %15736 = vst [vmem:[#allocation11_spill] sm:$0xff] %v10312_v39  ;;  %v1870_v41 = vpop.f32.mrb[14].mxu0  ;;  %8512 = vmatprep.mubr.bf16.mxu1 %v3597_v36 }
 0x148   : > { %v2967_v42 = vmul.f32 0.01, %v1867_v37  ;;  %v1871_v43 = vadd.f32 %v1870_v41, %v10269_v62  ;;  %v10316_v44 = vpop.f32.mrb[15].mxu0  ;;  %vm2647_vm8 = vcmp.ge.f32.partialorder %v1867_v37, 0.0 }
 0x149   : > { %15737 = vst [vmem:[#allocation12_spill] sm:$0xff] %v10316_v44 }
 0x14a   : > { %v2969_v45 = vmul.f32 0.01, %v1871_v43  ;;  %8098 = vmatmul.mubr.msk.bf16.gmra.mrb[120].mxu0 %vm1554_vm1, %v9264_v40  ;;  %vm2649_vm9 = vcmp.ge.f32.partialorder %v1871_v43, 0.0  ;;  %v3287_v46 = vsel %vm2647_vm8, %v1867_v37, %v2967_v42  ;;  %v9269_v40 = vld [vmem:[%s10150_s23 + $0x110] sm:$0xff]  }
 0x14b   : > { %2144 = vmatprep.mubr.bf16.mxu0 %v15383_v19 }
 0x14c   : > { %v3289_v47 = vsel %vm2649_vm9, %v1871_v43, %v2969_v45 }
 0x14d   : > { %v1876_v48 = vpop.f32.mrb[16].mxu0  ;;  %v3598_v49 = vpack.c.bf16 %v3289_v47, %v3287_v46 }
 0x14e   : > { %v1877_v50 = vadd.f32 %v1876_v48, %v10269_v62  ;;  %v10321_v51 = vpop.f32.mrb[17].mxu0 }
 0x14f   : > { %15738 = vst [vmem:[#allocation13_spill] sm:$0xff] %v10321_v51  ;;  %v1880_v53 = vpop.f32.mrb[18].mxu0  ;;  %8513 = vmatmul.mubr.bf16.vlgmr.msra.gmra.mrb[0].mxu1 %v3598_v49 }
 0x150   : > { %v2971_v54 = vmul.f32 0.01, %v1877_v50  ;;  %v1881_v55 = vadd.f32 %v1880_v53, %v10269_v62  ;;  %v10325_v56 = vpop.f32.mrb[19].mxu0  ;;  %vm2651_vm10 = vcmp.ge.f32.partialorder %v1877_v50, 0.0 }
 0x151   : > { %15739 = vst [vmem:[#allocation14_spill] sm:$0xff] %v10325_v56 }
 0x152   : > { %v2973_v57 = vmul.f32 0.01, %v1881_v55  ;;  %8099 = vmatmul.mubr.msk.bf16.gmra.mrb[124].mxu0 %vm1554_vm1, %v9266_v52  ;;  %vm2653_vm11 = vcmp.ge.f32.partialorder %v1881_v55, 0.0  ;;  %v3291_v58 = vsel %vm2651_vm10, %v1877_v50, %v2971_v54  ;;  %v9270_v54 = vld [vmem:[%s10150_s23 + $0x118] sm:$0xff]  }
 0x153   : > { %2154 = vmatprep.mubr.bf16.mxu0 %v15383_v19 }
 0x154   : > { %v3293_v59 = vsel %vm2653_vm11, %v1881_v55, %v2973_v57 }
 0x155   : > { %v1886_v60 = vpop.f32.mrb[20].mxu0  ;;  %v3599_v61 = vpack.c.bf16 %v3293_v59, %v3291_v58 }
 0x156   : > { %v1887_v63 = vadd.f32 %v1886_v60, %v10269_v62  ;;  %v10330_v0 = vpop.f32.mrb[21].mxu0 }
 0x157   : > { %15740 = vst [vmem:[#allocation15_spill] sm:$0xff] %v10330_v0  ;;  %v1890_v3 = vpop.f32.mrb[22].mxu0  ;;  %8516 = vmatprep.mubr.bf16.mxu1 %v3599_v61 }
 0x158   : > { %v2975_v4 = vmul.f32 0.01, %v1887_v63  ;;  %v1891_v5 = vadd.f32 %v1890_v3, %v10269_v62  ;;  %v10334_v7 = vpop.f32.mrb[23].mxu0  ;;  %vm2655_vm12 = vcmp.ge.f32.partialorder %v1887_v63, 0.0 }
 0x159   : > { %15741 = vst [vmem:[#allocation16_spill] sm:$0xff] %v10334_v7 }
 0x15a   : > { %v2977_v10 = vmul.f32 0.01, %v1891_v5  ;;  %8100 = vmatmul.mubr.msk.bf16.gmra.mrb[128].mxu0 %vm1554_vm1, %v9267_v2  ;;  %vm2657_vm13 = vcmp.ge.f32.partialorder %v1891_v5, 0.0  ;;  %v3295_v12 = vsel %vm2655_vm12, %v1887_v63, %v2975_v4 }
 0x15b   : > { %2164 = vmatprep.mubr.bf16.mxu0 %v15383_v19 }
 0x15c   : > { %v3297_v14 = vsel %vm2657_vm13, %v1891_v5, %v2977_v10  ;;  %v9271_v10 = vld [vmem:[%s10150_s23 + $0x120] sm:$0xff]  }
 0x15d   : > { %v1896_v15 = vpop.f32.mrb[24].mxu0  ;;  %v3600_v16 = vpack.c.bf16 %v3297_v14, %v3295_v12 }
 0x15e   : > { %v1897_v17 = vadd.f32 %v1896_v15, %v10269_v62  ;;  %v10339_v20 = vpop.f32.mrb[25].mxu0 }
 0x15f   : > { %15742 = vst [vmem:[#allocation17_spill] sm:$0xff] %v10339_v20  ;;  %v1900_v25 = vpop.f32.mrb[26].mxu0  ;;  %8517 = vmatmul.mubr.bf16.gmra.mrb[4].mxu1 %v3600_v16 }
 0x160   : > { %v2979_v27 = vmul.f32 0.01, %v1897_v17  ;;  %v1901_v28 = vadd.f32 %v1900_v25, %v10269_v62  ;;  %v10343_v29 = vpop.f32.mrb[27].mxu0  ;;  %vm2659_vm14 = vcmp.ge.f32.partialorder %v1897_v17, 0.0 }
 0x161   : > { %15743 = vst [vmem:[#allocation18_spill] sm:$0xff] %v10343_v29 }
 0x162   : > { %v2981_v31 = vmul.f32 0.01, %v1901_v28  ;;  %8101 = vmatmul.mubr.msk.bf16.gmra.mrb[132].mxu0 %vm1554_vm1, %v9268_v24  ;;  %vm2661_vm15 = vcmp.ge.f32.partialorder %v1901_v28, 0.0  ;;  %v3299_v32 = vsel %vm2659_vm14, %v1897_v17, %v2979_v27 }
 0x163   : > { %2174 = vmatprep.mubr.bf16.mxu0 %v15383_v19 }
 0x164   : > { %v3301_v33 = vsel %vm2661_vm15, %v1901_v28, %v2981_v31 }
 0x165   : > { %v1906_v34 = vpop.f32.mrb[28].mxu0  ;;  %v3601_v35 = vpack.c.bf16 %v3301_v33, %v3299_v32  ;;  %v9272_v33 = vld [vmem:[%s10150_s23 + $0x128] sm:$0xff]  }
 0x166   : > { %v1907_v36 = vadd.f32 %v1906_v34, %v10269_v62  ;;  %v10348_v37 = vpop.f32.mrb[29].mxu0 }
 0x167   : > { %15744 = vst [vmem:[#allocation19_spill] sm:$0xff] %v10348_v37  ;;  %v1910_v41 = vpop.f32.mrb[30].mxu0  ;;  %8520 = vmatprep.mubr.bf16.mxu1 %v3601_v35 }
 0x168   : > { %v2983_v42 = vmul.f32 0.01, %v1907_v36  ;;  %v1911_v43 = vadd.f32 %v1910_v41, %v10269_v62  ;;  %v10352_v45 = vpop.f32.mrb[31].mxu0  ;;  %vm2663_vm0 = vcmp.ge.f32.partialorder %v1907_v36, 0.0 }
 0x169   : > { %15745 = vst [vmem:[#allocation20_spill] sm:$0xff] %v10352_v45 }
 0x16a   : > { %v2985_v46 = vmul.f32 0.01, %v1911_v43  ;;  %8102 = vmatmul.mubr.msk.bf16.gmra.mrb[136].mxu0 %vm1554_vm1, %v9269_v40  ;;  %vm2665_vm2 = vcmp.ge.f32.partialorder %v1911_v43, 0.0  ;;  %v3303_v47 = vsel %vm2663_vm0, %v1907_v36, %v2983_v42 }
 0x16b   : > { %2184 = vmatprep.mubr.bf16.mxu0 %v15383_v19 }
 0x16c   : > { %v3305_v48 = vsel %vm2665_vm2, %v1911_v43, %v2985_v46 }
 0x16d   : > { %v1916_v49 = vpop.f32.mrb[32].mxu0  ;;  %v3602_v50 = vpack.c.bf16 %v3305_v48, %v3303_v47 }
 0x16e   : > { %v1917_v52 = vadd.f32 %v1916_v49, %v10269_v62  ;;  %v10357_v53 = vpop.f32.mrb[33].mxu0 }
 0x16f   : > { %15746 = vst [vmem:[#allocation21_spill] sm:$0xff] %v10357_v53  ;;  %v1920_v55 = vpop.f32.mrb[34].mxu0  ;;  %8521 = vmatmul.mubr.bf16.gmra.mrb[8].mxu1 %v3602_v50  ;;  %v9273_v50 = vld [vmem:[%s10150_s23 + $0x130] sm:$0xff]  }
 0x170   : > { %v2987_v57 = vmul.f32 0.01, %v1917_v52  ;;  %v1921_v58 = vadd.f32 %v1920_v55, %v10269_v62  ;;  %v10361_v59 = vpop.f32.mrb[35].mxu0  ;;  %vm2667_vm3 = vcmp.ge.f32.partialorder %v1917_v52, 0.0 }
 0x171   : > { %15747 = vst [vmem:[#allocation22_spill] sm:$0xff] %v10361_v59 }
 0x172   : > { %v2989_v60 = vmul.f32 0.01, %v1921_v58  ;;  %8103 = vmatmul.mubr.msk.bf16.gmra.mrb[140].mxu0 %vm1554_vm1, %v9270_v54  ;;  %vm2669_vm4 = vcmp.ge.f32.partialorder %v1921_v58, 0.0  ;;  %v3307_v61 = vsel %vm2667_vm3, %v1917_v52, %v2987_v57 }
 0x173   : > { %2194 = vmatprep.mubr.bf16.mxu0 %v15383_v19 }
 0x174   : > { %v3309_v63 = vsel %vm2669_vm4, %v1921_v58, %v2989_v60 }
 0x175   : > { %v1926_v2 = vpop.f32.mrb[36].mxu0  ;;  %v3603_v3 = vpack.c.bf16 %v3309_v63, %v3307_v61 }
 0x176   : > { %v1927_v4 = vadd.f32 %v1926_v2, %v10269_v62  ;;  %v10366_v5 = vpop.f32.mrb[37].mxu0 }
 0x177   : > { %15748 = vst [vmem:[#allocation23_spill] sm:$0xff] %v10366_v5  ;;  %v1930_v12 = vpop.f32.mrb[38].mxu0  ;;  %8524 = vmatprep.mubr.bf16.mxu1 %v3603_v3 }
 0x178   : > { %v2991_v14 = vmul.f32 0.01, %v1927_v4  ;;  %v1931_v15 = vadd.f32 %v1930_v12, %v10269_v62  ;;  %v10370_v16 = vpop.f32.mrb[39].mxu0  ;;  %vm2671_vm5 = vcmp.ge.f32.partialorder %v1927_v4, 0.0 }
 0x179   : > { %15749 = vst [vmem:[#allocation24_spill] sm:$0xff] %v10370_v16 }
 0x17a   : > { %v2993_v17 = vmul.f32 0.01, %v1931_v15  ;;  %8104 = vmatmul.mubr.msk.bf16.gmra.mrb[144].mxu0 %vm1554_vm1, %v9271_v10  ;;  %vm2673_vm6 = vcmp.ge.f32.partialorder %v1931_v15, 0.0  ;;  %v3311_v24 = vsel %vm2671_vm5, %v1927_v4, %v2991_v14  ;;  %v9274_v10 = vld [vmem:[%s10150_s23 + $0x138] sm:$0xff]  }
 0x17b   : > { %2204 = vmatprep.mubr.bf16.mxu0 %v15383_v19 }
 0x17c   : > { %v3313_v25 = vsel %vm2673_vm6, %v1931_v15, %v2993_v17 }
 0x17d   : > { %v1936_v27 = vpop.f32.mrb[40].mxu0  ;;  %v3604_v28 = vpack.c.bf16 %v3313_v25, %v3311_v24 }
 0x17e   : > { %v1937_v31 = vadd.f32 %v1936_v27, %v10269_v62  ;;  %v10375_v32 = vpop.f32.mrb[41].mxu0 }
 0x17f   : > { %15750 = vst [vmem:[#allocation25_spill] sm:$0xff] %v10375_v32  ;;  %v1940_v34 = vpop.f32.mrb[42].mxu0  ;;  %8525 = vmatmul.mubr.bf16.gmra.mrb[12].mxu1 %v3604_v28 }
 0x180   : > { %v2995_v35 = vmul.f32 0.01, %v1937_v31  ;;  %v1941_v36 = vadd.f32 %v1940_v34, %v10269_v62  ;;  %v10379_v40 = vpop.f32.mrb[43].mxu0  ;;  %vm2675_vm7 = vcmp.ge.f32.partialorder %v1937_v31, 0.0 }
 0x181   : > { %15751 = vst [vmem:[#allocation26_spill] sm:$0xff] %v10379_v40 }
 0x182   : > { %v2997_v41 = vmul.f32 0.01, %v1941_v36  ;;  %8105 = vmatmul.mubr.msk.bf16.gmra.mrb[148].mxu0 %vm1554_vm1, %v9272_v33  ;;  %vm2677_vm8 = vcmp.ge.f32.partialorder %v1941_v36, 0.0  ;;  %v3315_v42 = vsel %vm2675_vm7, %v1937_v31, %v2995_v35  ;;  %v9275_v35 = vld [vmem:[%s10150_s23 + $0x140] sm:$0xff]  }
 0x183   : > { %2214 = vmatprep.mubr.bf16.mxu0 %v15383_v19 }
 0x184   : > { %v3317_v43 = vsel %vm2677_vm8, %v1941_v36, %v2997_v41 }
 0x185   : > { %v1946_v46 = vpop.f32.mrb[44].mxu0  ;;  %v3605_v47 = vpack.c.bf16 %v3317_v43, %v3315_v42 }
 0x186   : > { %v1947_v48 = vadd.f32 %v1946_v46, %v10269_v62  ;;  %v10384_v49 = vpop.f32.mrb[45].mxu0 }
 0x187   : > { %15752 = vst [vmem:[#allocation27_spill] sm:$0xff] %v10384_v49  ;;  %v1950_v52 = vpop.f32.mrb[46].mxu0  ;;  %8528 = vmatprep.mubr.bf16.mxu1 %v3605_v47 }
 0x188   : > { %v2999_v54 = vmul.f32 0.01, %v1947_v48  ;;  %v1951_v55 = vadd.f32 %v1950_v52, %v10269_v62  ;;  %v10388_v57 = vpop.f32.mrb[47].mxu0  ;;  %vm2679_vm9 = vcmp.ge.f32.partialorder %v1947_v48, 0.0 }
 0x189   : > { %15753 = vst [vmem:[#allocation28_spill] sm:$0xff] %v10388_v57 }
 0x18a   : > { %v3001_v58 = vmul.f32 0.01, %v1951_v55  ;;  %8106 = vmatmul.mubr.msk.bf16.gmra.mrb[152].mxu0 %vm1554_vm1, %v9273_v50  ;;  %vm2681_vm10 = vcmp.ge.f32.partialorder %v1951_v55, 0.0  ;;  %v3319_v60 = vsel %vm2679_vm9, %v1947_v48, %v2999_v54 }
 0x18b   : > { %2224 = vmatprep.mubr.bf16.mxu0 %v15383_v19 }
 0x18c   : > { %v3321_v61 = vsel %vm2681_vm10, %v1951_v55, %v3001_v58  ;;  %v9276_v58 = vld [vmem:[%s10150_s23 + $0x148] sm:$0xff]  }
 0x18d   : > { %v1956_v63 = vpop.f32.mrb[48].mxu0  ;;  %v3606_v2 = vpack.c.bf16 %v3321_v61, %v3319_v60 }
 0x18e   : > { %v1957_v3 = vadd.f32 %v1956_v63, %v10269_v62  ;;  %v10393_v4 = vpop.f32.mrb[49].mxu0 }
 0x18f   : > { %15754 = vst [vmem:[#allocation29_spill] sm:$0xff] %v10393_v4  ;;  %v1960_v12 = vpop.f32.mrb[50].mxu0  ;;  %8529 = vmatmul.mubr.bf16.gmra.mrb[16].mxu1 %v3606_v2 }
 0x190   : > { %v3003_v14 = vmul.f32 0.01, %v1957_v3  ;;  %v1961_v15 = vadd.f32 %v1960_v12, %v10269_v62  ;;  %v10397_v17 = vpop.f32.mrb[51].mxu0  ;;  %vm2683_vm11 = vcmp.ge.f32.partialorder %v1957_v3, 0.0 }
 0x191   : > { %15755 = vst [vmem:[#allocation30_spill] sm:$0xff] %v10397_v17 }
 0x192   : > { %v3005_v24 = vmul.f32 0.01, %v1961_v15  ;;  %8107 = vmatmul.mubr.msk.bf16.gmra.mrb[156].mxu0 %vm1554_vm1, %v9274_v10  ;;  %vm2685_vm12 = vcmp.ge.f32.partialorder %v1961_v15, 0.0  ;;  %v3323_v25 = vsel %vm2683_vm11, %v1957_v3, %v3003_v14 }
 0x193   : > { %2234 = vmatprep.mubr.bf16.mxu0 %v15383_v19 }
 0x194   : > { %v3325_v27 = vsel %vm2685_vm12, %v1961_v15, %v3005_v24 }
 0x195   : > { %v1966_v28 = vpop.f32.mrb[52].mxu0  ;;  %v3607_v31 = vpack.c.bf16 %v3325_v27, %v3323_v25  ;;  %v9277_v27 = vld [vmem:[%s10150_s23 + $0x150] sm:$0xff]  }
 0x196   : > { %v1967_v33 = vadd.f32 %v1966_v28, %v10269_v62  ;;  %v10402_v34 = vpop.f32.mrb[53].mxu0 }
 0x197   : > { %15756 = vst [vmem:[#allocation31_spill] sm:$0xff] %v10402_v34  ;;  %v1970_v36 = vpop.f32.mrb[54].mxu0  ;;  %8532 = vmatprep.mubr.bf16.mxu1 %v3607_v31 }
 0x198   : > { %v3007_v41 = vmul.f32 0.01, %v1967_v33  ;;  %v1971_v42 = vadd.f32 %v1970_v36, %v10269_v62  ;;  %v10406_v43 = vpop.f32.mrb[55].mxu0  ;;  %vm2687_vm13 = vcmp.ge.f32.partialorder %v1967_v33, 0.0 }
 0x199   : > { %15757 = vst [vmem:[#allocation32_spill] sm:$0xff] %v10406_v43 }
 0x19a   : > { %v3009_v46 = vmul.f32 0.01, %v1971_v42  ;;  %8108 = vmatmul.mubr.msk.bf16.gmra.mrb[160].mxu0 %vm1554_vm1, %v9275_v35  ;;  %vm2689_vm14 = vcmp.ge.f32.partialorder %v1971_v42, 0.0  ;;  %v3327_v47 = vsel %vm2687_vm13, %v1967_v33, %v3007_v41 }
 0x19b   : > { %2244 = vmatprep.mubr.bf16.mxu0 %v15383_v19 }
 0x19c   : > { %v3329_v48 = vsel %vm2689_vm14, %v1971_v42, %v3009_v46 }
 0x19d   : > { %v1976_v50 = vpop.f32.mrb[56].mxu0  ;;  %v3608_v52 = vpack.c.bf16 %v3329_v48, %v3327_v47 }
 0x19e   : > { %v1977_v54 = vadd.f32 %v1976_v50, %v10269_v62  ;;  %v10411_v55 = vpop.f32.mrb[57].mxu0 }
 0x19f   : > { %15758 = vst [vmem:[#allocation33_spill] sm:$0xff] %v10411_v55  ;;  %v1980_v60 = vpop.f32.mrb[58].mxu0  ;;  %8533 = vmatmul.mubr.bf16.gmra.mrb[20].mxu1 %v3608_v52  ;;  %v9278_v52 = vld [vmem:[%s10150_s23 + $0x158] sm:$0xff]  }
 0x1a0   : > { %v3011_v61 = vmul.f32 0.01, %v1977_v54  ;;  %v1981_v63 = vadd.f32 %v1980_v60, %v10269_v62  ;;  %v10415_v2 = vpop.f32.mrb[59].mxu0  ;;  %vm2691_vm15 = vcmp.ge.f32.partialorder %v1977_v54, 0.0  ;;  %v9298_v55 = vld [vmem:[%s10150_s23 + $0x1f8] sm:$0xff]  }
 0x1a1   : > { %15759 = vst [vmem:[#allocation34_spill] sm:$0xff] %v10415_v2 }
 0x1a2   : > { %v3013_v3 = vmul.f32 0.01, %v1981_v63  ;;  %8109 = vmatmul.mubr.msk.bf16.gmra.mrb[164].mxu0 %vm1554_vm1, %v9276_v58  ;;  %vm2693_vm0 = vcmp.ge.f32.partialorder %v1981_v63, 0.0  ;;  %v3331_v10 = vsel %vm2691_vm15, %v1977_v54, %v3011_v61 }
 0x1a3   : > { %2254 = vmatprep.mubr.bf16.mxu0 %v15383_v19 }
 0x1a4   : > { %v3333_v12 = vsel %vm2693_vm0, %v1981_v63, %v3013_v3 }
 0x1a5   : > { %v1986_v14 = vpop.f32.mrb[60].mxu0  ;;  %v3609_v15 = vpack.c.bf16 %v3333_v12, %v3331_v10 }
 0x1a6   : > { %v1987_v24 = vadd.f32 %v1986_v14, %v10269_v62  ;;  %v10420_v25 = vpop.f32.mrb[61].mxu0 }
 0x1a7   : > { %15760 = vst [vmem:[#allocation35_spill] sm:$0xff] %v10420_v25  ;;  %v1990_v28 = vpop.f32.mrb[62].mxu0  ;;  %8536 = vmatprep.mubr.bf16.mxu1 %v3609_v15 }
 0x1a8   : > { %v3015_v31 = vmul.f32 0.01, %v1987_v24  ;;  %v1991_v33 = vadd.f32 %v1990_v28, %v10269_v62  ;;  %v10424_v35 = vpop.f32.mrb[63].mxu0  ;;  %vm2695_vm2 = vcmp.ge.f32.partialorder %v1987_v24, 0.0 }
 0x1a9   : > { %15761 = vst [vmem:[#allocation36_spill] sm:$0xff] %v10424_v35 }
 0x1aa   : > { %v3017_v36 = vmul.f32 0.01, %v1991_v33  ;;  %8110 = vmatmul.mubr.msk.bf16.gmra.mrb[168].mxu0 %vm1554_vm1, %v9277_v27  ;;  %vm2697_vm3 = vcmp.ge.f32.partialorder %v1991_v33, 0.0  ;;  %v3335_v41 = vsel %vm2695_vm2, %v1987_v24, %v3015_v31  ;;  %v9279_v27 = vld [vmem:[%s10150_s23 + $0x160] sm:$0xff]  }
 0x1ab   : > { %2264 = vmatprep.mubr.bf16.mxu0 %v15383_v19 }
 0x1ac   : > { %v3337_v42 = vsel %vm2697_vm3, %v1991_v33, %v3017_v36 }
 0x1ad   : > { %v1996_v46 = vpop.f32.mrb[64].mxu0  ;;  %v3610_v47 = vpack.c.bf16 %v3337_v42, %v3335_v41 }
 0x1ae   : > { %v1997_v48 = vadd.f32 %v1996_v46, %v10269_v62  ;;  %v10429_v50 = vpop.f32.mrb[65].mxu0 }
 0x1af   : > { %15762 = vst [vmem:[#allocation37_spill] sm:$0xff] %v10429_v50  ;;  %v2000_v54 = vpop.f32.mrb[66].mxu0  ;;  %8537 = vmatmul.mubr.bf16.gmra.mrb[24].mxu1 %v3610_v47  ;;  %v9296_v50 = vld [vmem:[%s10150_s23 + $0x1e8] sm:$0xff]  }
 0x1b0   : > { %v3019_v58 = vmul.f32 0.01, %v1997_v48  ;;  %v2001_v60 = vadd.f32 %v2000_v54, %v10269_v62  ;;  %v10433_v61 = vpop.f32.mrb[67].mxu0  ;;  %vm2699_vm4 = vcmp.ge.f32.partialorder %v1997_v48, 0.0 }
 0x1b1   : > { %15763 = vst [vmem:[#allocation38_spill] sm:$0xff] %v10433_v61 }
 0x1b2   : > { %v3021_v63 = vmul.f32 0.01, %v2001_v60  ;;  %8111 = vmatmul.mubr.msk.bf16.gmra.mrb[172].mxu0 %vm1554_vm1, %v9278_v52  ;;  %vm2701_vm5 = vcmp.ge.f32.partialorder %v2001_v60, 0.0  ;;  %v3339_v3 = vsel %vm2699_vm4, %v1997_v48, %v3019_v58  ;;  %v9280_v58 = vld [vmem:[%s10150_s23 + $0x168] sm:$0xff]  }
 0x1b3   : > { %2274 = vmatprep.mubr.bf16.mxu0 %v15383_v19 }
 0x1b4   : > { %v3341_v10 = vsel %vm2701_vm5, %v2001_v60, %v3021_v63 }
 0x1b5   : > { %v2006_v12 = vpop.f32.mrb[68].mxu0  ;;  %v3611_v14 = vpack.c.bf16 %v3341_v10, %v3339_v3 }
 0x1b6   : > { %v2007_v15 = vadd.f32 %v2006_v12, %v10269_v62  ;;  %v10438_v24 = vpop.f32.mrb[69].mxu0 }
 0x1b7   : > { %15764 = vst [vmem:[#allocation39_spill] sm:$0xff] %v10438_v24  ;;  %v2010_v28 = vpop.f32.mrb[70].mxu0  ;;  %8540 = vmatprep.mubr.bf16.mxu1 %v3611_v14 }
 0x1b8   : > { %v3023_v31 = vmul.f32 0.01, %v2007_v15  ;;  %v2011_v33 = vadd.f32 %v2010_v28, %v10269_v62  ;;  %v10442_v36 = vpop.f32.mrb[71].mxu0  ;;  %vm2703_vm6 = vcmp.ge.f32.partialorder %v2007_v15, 0.0 }
 0x1b9   : > { %15765 = vst [vmem:[#allocation40_spill] sm:$0xff] %v10442_v36 }
 0x1ba   : > { %vm2705_vm7 = vcmp.ge.f32.partialorder %v2011_v33, 0.0  ;;  %v3025_v41 = vmul.f32 0.01, %v2011_v33  ;;  %8112 = vmatmul.mubr.msk.bf16.gmra.mrb[176].mxu0 %vm1554_vm1, %v9279_v27  ;;  %v3343_v42 = vsel %vm2703_vm6, %v2007_v15, %v3023_v31 }
 0x1bb   : > { %2284 = vmatprep.mubr.bf16.mxu0 %v15383_v19 }
 0x1bc   : > { %v3345_v46 = vsel %vm2705_vm7, %v2011_v33, %v3025_v41  ;;  %v9281_v41 = vld [vmem:[%s10150_s23 + $0x170] sm:$0xff]  }
 0x1bd   : > { %v2016_v47 = vpop.f32.mrb[72].mxu0  ;;  %v3612_v48 = vpack.c.bf16 %v3345_v46, %v3343_v42 }
 0x1be   : > { %v2017_v52 = vadd.f32 %v2016_v47, %v10269_v62  ;;  %v10447_v54 = vpop.f32.mrb[73].mxu0 }
 0x1bf   : > { %15766 = vst [vmem:[#allocation41_spill] sm:$0xff] %v10447_v54  ;;  %v2020_v60 = vpop.f32.mrb[74].mxu0  ;;  %8541 = vmatmul.mubr.bf16.gmra.mrb[28].mxu1 %v3612_v48  ;;  %v9294_v54 = vld [vmem:[%s10150_s23 + $0x1d8] sm:$0xff]  }
 0x1c0   : > { %v3027_v63 = vmul.f32 0.01, %v2017_v52  ;;  %v2021_v3 = vadd.f32 %v2020_v60, %v10269_v62  ;;  %v10451_v10 = vpop.f32.mrb[75].mxu0  ;;  %vm2707_vm8 = vcmp.ge.f32.partialorder %v2017_v52, 0.0 }
 0x1c1   : > { %15767 = vst [vmem:[#allocation42_spill] sm:$0xff] %v10451_v10 }
 0x1c2   : > { %vm2709_vm9 = vcmp.ge.f32.partialorder %v2021_v3, 0.0  ;;  %v3029_v12 = vmul.f32 0.01, %v2021_v3  ;;  %8113 = vmatmul.mubr.msk.bf16.gmra.mrb[180].mxu0 %vm1554_vm1, %v9280_v58  ;;  %v3347_v14 = vsel %vm2707_vm8, %v2017_v52, %v3027_v63 }
 0x1c3   : > { %2294 = vmatprep.mubr.bf16.mxu0 %v15383_v19 }
 0x1c4   : > { %v3349_v15 = vsel %vm2709_vm9, %v2021_v3, %v3029_v12 }
 0x1c5   : > { %v2026_v27 = vpop.f32.mrb[76].mxu0  ;;  %v3613_v28 = vpack.c.bf16 %v3349_v15, %v3347_v14  ;;  %v9282_v15 = vld [vmem:[%s10150_s23 + $0x178] sm:$0xff]  }
 0x1c6   : > { %v2027_v31 = vadd.f32 %v2026_v27, %v10269_v62  ;;  %v10456_v33 = vpop.f32.mrb[77].mxu0 }
 0x1c7   : > { %15768 = vst [vmem:[#allocation43_spill] sm:$0xff] %v10456_v33  ;;  %v2030_v42 = vpop.f32.mrb[78].mxu0  ;;  %8544 = vmatprep.mubr.bf16.mxu1 %v3613_v28  ;;  %v15794_v33 = vmov 0  }
 0x1c8   : > { %v3031_v46 = vmul.f32 0.01, %v2027_v31  ;;  %v2031_v47 = vadd.f32 %v2030_v42, %v10269_v62  ;;  %v10460_v48 = vpop.f32.mrb[79].mxu0  ;;  %vm2711_vm10 = vcmp.ge.f32.partialorder %v2027_v31, 0.0 }
 0x1c9   : > { %15769 = vst [vmem:[#allocation44_spill] sm:$0xff] %v10460_v48 }
 0x1ca   : > { %vm2713_vm11 = vcmp.ge.f32.partialorder %v2031_v47, 0.0  ;;  %v3033_v58 = vmul.f32 0.01, %v2031_v47  ;;  %8114 = vmatmul.mubr.msk.bf16.gmra.mrb[184].mxu0 %vm1554_vm1, %v9281_v41  ;;  %v3351_v52 = vsel %vm2711_vm10, %v2027_v31, %v3031_v46 }
 0x1cb   : > { %2304 = vmatprep.mubr.bf16.mxu0 %v15383_v19 }
 0x1cc   : > { %v3353_v60 = vsel %vm2713_vm11, %v2031_v47, %v3033_v58 }
 0x1cd   : > { %v2036_v63 = vpop.f32.mrb[80].mxu0  ;;  %v3614_v3 = vpack.c.bf16 %v3353_v60, %v3351_v52 }
 0x1ce   : > { %v2037_v12 = vadd.f32 %v2036_v63, %v10269_v62  ;;  %v10465_v14 = vpop.f32.mrb[81].mxu0  ;;  %v9283_v63 = vld [vmem:[%s10150_s23 + $0x180] sm:$0xff]  }
 0x1cf   : > { %15770 = vst [vmem:[#allocation45_spill] sm:$0xff] %v10465_v14  ;;  %v2040_v27 = vpop.f32.mrb[82].mxu0  ;;  %8545 = vmatmul.mubr.bf16.gmra.mrb[32].mxu1 %v3614_v3 }
 0x1d0   : > { %v3035_v28 = vmul.f32 0.01, %v2037_v12  ;;  %v2041_v42 = vadd.f32 %v2040_v27, %v10269_v62  ;;  %v10469_v23 = vpop.f32.mrb[83].mxu0  ;;  %vm2715_vm12 = vcmp.ge.f32.partialorder %v2037_v12, 0.0 }
 0x1d1   : > { %15771 = vst [vmem:[#allocation46_spill] sm:$0xff] %v10469_v23 }
 0x1d2   : > { %vm2717_vm13 = vcmp.ge.f32.partialorder %v2041_v42, 0.0  ;;  %v3037_v41 = vmul.f32 0.01, %v2041_v42  ;;  %8115 = vmatmul.mubr.msk.bf16.gmra.mrb[188].mxu0 %vm1554_vm1, %v9282_v15  ;;  %v3355_v31 = vsel %vm2715_vm12, %v2037_v12, %v3035_v28 }
 0x1d3   : > { %2314 = vmatprep.mubr.bf16.mxu0 %v15383_v19 }
 0x1d4   : > { %v3357_v46 = vsel %vm2717_vm13, %v2041_v42, %v3037_v41 }
 0x1d5   : > { %v2046_v47 = vpop.f32.mrb[84].mxu0  ;;  %v3615_v58 = vpack.c.bf16 %v3357_v46, %v3355_v31 }
 0x1d6   : > { %v2047_v52 = vadd.f32 %v2046_v47, %v10269_v62  ;;  %v10474_v60 = vpop.f32.mrb[85].mxu0  ;;  %v9284_v47 = vld [vmem:[%s10150_s23 + $0x188] sm:$0xff]  }
 0x1d7   : > { %15772 = vst [vmem:[#allocation47_spill] sm:$0xff] %v10474_v60  ;;  %v2050_v3 = vpop.f32.mrb[86].mxu0  ;;  %8548 = vmatprep.mubr.bf16.mxu1 %v3615_v58 }
 0x1d8   : > { %v3039_v27 = vmul.f32 0.01, %v2047_v52  ;;  %v2051_v11 = vadd.f32 %v2050_v3, %v10269_v62  ;;  %v10478_v23 = vpop.f32.mrb[87].mxu0  ;;  %vm2719_vm14 = vcmp.ge.f32.partialorder %v2047_v52, 0.0 }
 0x1d9   : > { %15773 = vst [vmem:[#allocation48_spill] sm:$0xff] %v10478_v23 }
 0x1da   : > { %vm2721_vm15 = vcmp.ge.f32.partialorder %v2051_v11, 0.0  ;;  %v3041_v15 = vmul.f32 0.01, %v2051_v11  ;;  %8116 = vmatmul.mubr.msk.bf16.gmra.mrb[192].mxu0 %vm1554_vm1, %v9283_v63  ;;  %v3359_v12 = vsel %vm2719_vm14, %v2047_v52, %v3039_v27 }
 0x1db   : > { %2324 = vmatprep.mubr.bf16.mxu0 %v15383_v19 }
 0x1dc   : > { %v3361_v28 = vsel %vm2721_vm15, %v2051_v11, %v3041_v15 }
 0x1dd   : > { %v2056_v42 = vpop.f32.mrb[88].mxu0  ;;  %v3616_v41 = vpack.c.bf16 %v3361_v28, %v3359_v12 }
 0x1de   : > { %v2057_v31 = vadd.f32 %v2056_v42, %v10269_v62  ;;  %v10483_v46 = vpop.f32.mrb[89].mxu0  ;;  %v9285_v42 = vld [vmem:[%s10150_s23 + $0x190] sm:$0xff]  }
 0x1df   : > { %15774 = vst [vmem:[#allocation49_spill] sm:$0xff] %v10483_v46  ;;  %v2060_v58 = vpop.f32.mrb[90].mxu0  ;;  %8549 = vmatmul.mubr.bf16.gmra.mrb[36].mxu1 %v3616_v41 }
 0x1e0   : > { %v3043_v3 = vmul.f32 0.01, %v2057_v31  ;;  %v2061_v23 = vadd.f32 %v2060_v58, %v10269_v62  ;;  %v10487_v60 = vpop.f32.mrb[91].mxu0  ;;  %vm2723_vm0 = vcmp.ge.f32.partialorder %v2057_v31, 0.0 }
 0x1e1   : > { %15775 = vst [vmem:[#allocation50_spill] sm:$0xff] %v10487_v60 }
 0x1e2   : > { %vm2725_vm2 = vcmp.ge.f32.partialorder %v2061_v23, 0.0  ;;  %v3045_v63 = vmul.f32 0.01, %v2061_v23  ;;  %8117 = vmatmul.mubr.msk.bf16.gmra.mrb[196].mxu0 %vm1554_vm1, %v9284_v47  ;;  %v3363_v11 = vsel %vm2723_vm0, %v2057_v31, %v3043_v3 }
 0x1e3   : > { %2334 = vmatprep.mubr.bf16.mxu0 %v15383_v19 }
 0x1e4   : > { %v3365_v52 = vsel %vm2725_vm2, %v2061_v23, %v3045_v63 }
 0x1e5   : > { %v2066_v27 = vpop.f32.mrb[92].mxu0  ;;  %v3617_v15 = vpack.c.bf16 %v3365_v52, %v3363_v11 }
 0x1e6   : > { %v2067_v12 = vadd.f32 %v2066_v27, %v10269_v62  ;;  %v10492_v28 = vpop.f32.mrb[93].mxu0  ;;  %v9286_v27 = vld [vmem:[%s10150_s23 + $0x198] sm:$0xff]  }
 0x1e7   : > { %15776 = vst [vmem:[#allocation51_spill] sm:$0xff] %v10492_v28  ;;  %v2070_v41 = vpop.f32.mrb[94].mxu0  ;;  %8552 = vmatprep.mubr.bf16.mxu1 %v3617_v15 }
 0x1e8   : > { %v3047_v58 = vmul.f32 0.01, %v2067_v12  ;;  %v2071_v60 = vadd.f32 %v2070_v41, %v10269_v62  ;;  %v10496_v46 = vpop.f32.mrb[95].mxu0  ;;  %vm2727_vm3 = vcmp.ge.f32.partialorder %v2067_v12, 0.0 }
 0x1e9   : > { %15777 = vst [vmem:[#allocation52_spill] sm:$0xff] %v10496_v46 }
 0x1ea   : > { %vm2729_vm4 = vcmp.ge.f32.partialorder %v2071_v60, 0.0  ;;  %v3049_v47 = vmul.f32 0.01, %v2071_v60  ;;  %8118 = vmatmul.mubr.msk.bf16.gmra.mrb[200].mxu0 %vm1554_vm1, %v9285_v42  ;;  %v3367_v23 = vsel %vm2727_vm3, %v2067_v12, %v3047_v58 }
 0x1eb   : > { %2344 = vmatprep.mubr.bf16.mxu0 %v15383_v19 }
 0x1ec   : > { %v3369_v31 = vsel %vm2729_vm4, %v2071_v60, %v3049_v47 }
 0x1ed   : > { %v2076_v3 = vpop.f32.mrb[96].mxu0  ;;  %v3618_v63 = vpack.c.bf16 %v3369_v31, %v3367_v23 }
 0x1ee   : > { %v2077_v11 = vadd.f32 %v2076_v3, %v10269_v62  ;;  %v10501_v52 = vpop.f32.mrb[97].mxu0  ;;  %v9287_v3 = vld [vmem:[%s10150_s23 + $0x1a0] sm:$0xff]  }
 0x1ef   : > { %15778 = vst [vmem:[#allocation53_spill] sm:$0xff] %v10501_v52  ;;  %v2080_v15 = vpop.f32.mrb[98].mxu0  ;;  %8553 = vmatmul.mubr.bf16.gmra.mrb[40].mxu1 %v3618_v63 }
 0x1f0   : > { %v3051_v41 = vmul.f32 0.01, %v2077_v11  ;;  %v2081_v46 = vadd.f32 %v2080_v15, %v10269_v62  ;;  %v10505_v28 = vpop.f32.mrb[99].mxu0  ;;  %vm2731_vm5 = vcmp.ge.f32.partialorder %v2077_v11, 0.0 }
 0x1f1   : > { %15779 = vst [vmem:[#allocation54_spill] sm:$0xff] %v10505_v28 }
 0x1f2   : > { %vm2733_vm6 = vcmp.ge.f32.partialorder %v2081_v46, 0.0  ;;  %v3053_v42 = vmul.f32 0.01, %v2081_v46  ;;  %8119 = vmatmul.mubr.msk.bf16.gmra.mrb[204].mxu0 %vm1554_vm1, %v9286_v27  ;;  %v3371_v60 = vsel %vm2731_vm5, %v2077_v11, %v3051_v41 }
 0x1f3   : > { %2354 = vmatprep.mubr.bf16.mxu0 %v15383_v19 }
 0x1f4   : > { %v3373_v12 = vsel %vm2733_vm6, %v2081_v46, %v3053_v42 }
 0x1f5   : > { %v2086_v58 = vpop.f32.mrb[100].mxu0  ;;  %v3619_v47 = vpack.c.bf16 %v3373_v12, %v3371_v60 }
 0x1f6   : > { %v2087_v23 = vadd.f32 %v2086_v58, %v10269_v62  ;;  %v10510_v31 = vpop.f32.mrb[101].mxu0  ;;  %v9288_v58 = vld [vmem:[%s10150_s23 + $0x1a8] sm:$0xff]  }
 0x1f7   : > { %15780 = vst [vmem:[#allocation55_spill] sm:$0xff] %v10510_v31  ;;  %v2090_v63 = vpop.f32.mrb[102].mxu0  ;;  %8556 = vmatprep.mubr.bf16.mxu1 %v3619_v47 }
 0x1f8   : > { %v3055_v15 = vmul.f32 0.01, %v2087_v23  ;;  %v2091_v28 = vadd.f32 %v2090_v63, %v10269_v62  ;;  %v10514_v52 = vpop.f32.mrb[103].mxu0  ;;  %vm2735_vm7 = vcmp.ge.f32.partialorder %v2087_v23, 0.0 }
 0x1f9   : > { %15781 = vst [vmem:[#allocation56_spill] sm:$0xff] %v10514_v52 }
 0x1fa   : > { %vm2737_vm8 = vcmp.ge.f32.partialorder %v2091_v28, 0.0  ;;  %v3057_v27 = vmul.f32 0.01, %v2091_v28  ;;  %8120 = vmatmul.mubr.msk.bf16.gmra.mrb[208].mxu0 %vm1554_vm1, %v9287_v3  ;;  %v3375_v46 = vsel %vm2735_vm7, %v2087_v23, %v3055_v15 }
 0x1fb   : > { %2364 = vmatprep.mubr.bf16.mxu0 %v15383_v19 }
 0x1fc   : > { %v3377_v11 = vsel %vm2737_vm8, %v2091_v28, %v3057_v27 }
 0x1fd   : > { %v2096_v41 = vpop.f32.mrb[104].mxu0  ;;  %v3620_v42 = vpack.c.bf16 %v3377_v11, %v3375_v46 }
 0x1fe   : > { %v2097_v60 = vadd.f32 %v2096_v41, %v10269_v62  ;;  %v10519_v12 = vpop.f32.mrb[105].mxu0  ;;  %v9289_v41 = vld [vmem:[%s10150_s23 + $0x1b0] sm:$0xff]  }
 0x1ff   : > { %15782 = vst [vmem:[#allocation57_spill] sm:$0xff] %v10519_v12  ;;  %v2100_v47 = vpop.f32.mrb[106].mxu0  ;;  %8557 = vmatmul.mubr.bf16.gmra.mrb[44].mxu1 %v3620_v42 }
 0x200   : > { %v3059_v63 = vmul.f32 0.01, %v2097_v60  ;;  %v2101_v52 = vadd.f32 %v2100_v47, %v10269_v62  ;;  %v10523_v31 = vpop.f32.mrb[107].mxu0  ;;  %vm2739_vm9 = vcmp.ge.f32.partialorder %v2097_v60, 0.0 }
 0x201   : > { %15783 = vst [vmem:[#allocation58_spill] sm:$0xff] %v10523_v31 }
 0x202   : > { %vm2741_vm10 = vcmp.ge.f32.partialorder %v2101_v52, 0.0  ;;  %v3061_v3 = vmul.f32 0.01, %v2101_v52  ;;  %8121 = vmatmul.mubr.msk.bf16.gmra.mrb[212].mxu0 %vm1554_vm1, %v9288_v58  ;;  %v3379_v28 = vsel %vm2739_vm9, %v2097_v60, %v3059_v63 }
 0x203   : > { %2374 = vmatprep.mubr.bf16.mxu0 %v15383_v19 }
 0x204   : > { %v3381_v23 = vsel %vm2741_vm10, %v2101_v52, %v3061_v3 }
 0x205   : > { %v2106_v15 = vpop.f32.mrb[108].mxu0  ;;  %v3621_v27 = vpack.c.bf16 %v3381_v23, %v3379_v28 }
 0x206   : > { %v2107_v46 = vadd.f32 %v2106_v15, %v10269_v62  ;;  %v10528_v11 = vpop.f32.mrb[109].mxu0  ;;  %v9290_v15 = vld [vmem:[%s10150_s23 + $0x1b8] sm:$0xff]  }
 0x207   : > { %15784 = vst [vmem:[#allocation59_spill] sm:$0xff] %v10528_v11  ;;  %v2110_v42 = vpop.f32.mrb[110].mxu0  ;;  %8560 = vmatprep.mubr.bf16.mxu1 %v3621_v27 }
 0x208   : > { %v3063_v47 = vmul.f32 0.01, %v2107_v46  ;;  %v2111_v31 = vadd.f32 %v2110_v42, %v10269_v62  ;;  %v10532_v12 = vpop.f32.mrb[111].mxu0  ;;  %vm2743_vm11 = vcmp.ge.f32.partialorder %v2107_v46, 0.0 }
 0x209   : > { %15785 = vst [vmem:[#allocation60_spill] sm:$0xff] %v10532_v12 }
 0x20a   : > { %vm2745_vm12 = vcmp.ge.f32.partialorder %v2111_v31, 0.0  ;;  %v3065_v58 = vmul.f32 0.01, %v2111_v31  ;;  %8122 = vmatmul.mubr.msk.bf16.gmra.mrb[216].mxu0 %vm1554_vm1, %v9289_v41  ;;  %v3383_v52 = vsel %vm2743_vm11, %v2107_v46, %v3063_v47 }
 0x20b   : > { %2384 = vmatprep.mubr.bf16.mxu0 %v15383_v19 }
 0x20c   : > { %v3385_v60 = vsel %vm2745_vm12, %v2111_v31, %v3065_v58 }
 0x20d   : > { %v2116_v63 = vpop.f32.mrb[112].mxu0  ;;  %v3622_v3 = vpack.c.bf16 %v3385_v60, %v3383_v52 }
 0x20e   : > { %v2117_v28 = vadd.f32 %v2116_v63, %v10269_v62  ;;  %v10537_v23 = vpop.f32.mrb[113].mxu0  ;;  %v9291_v63 = vld [vmem:[%s10150_s23 + $0x1c0] sm:$0xff]  }
 0x20f   : > { %15786 = vst [vmem:[#allocation61_spill] sm:$0xff] %v10537_v23  ;;  %v2120_v27 = vpop.f32.mrb[114].mxu0  ;;  %8561 = vmatmul.mubr.bf16.gmra.mrb[48].mxu1 %v3622_v3 }
 0x210   : > { %v3067_v42 = vmul.f32 0.01, %v2117_v28  ;;  %v2121_v12 = vadd.f32 %v2120_v27, %v10269_v62  ;;  %v10541_v11 = vpop.f32.mrb[115].mxu0  ;;  %vm2747_vm13 = vcmp.ge.f32.partialorder %v2117_v28, 0.0 }
 0x211   : > { %15787 = vst [vmem:[#allocation62_spill] sm:$0xff] %v10541_v11 }
 0x212   : > { %vm2749_vm14 = vcmp.ge.f32.partialorder %v2121_v12, 0.0  ;;  %v3069_v41 = vmul.f32 0.01, %v2121_v12  ;;  %8123 = vmatmul.mubr.msk.bf16.gmra.mrb[220].mxu0 %vm1554_vm1, %v9290_v15  ;;  %v3387_v31 = vsel %vm2747_vm13, %v2117_v28, %v3067_v42 }
 0x213   : > { %2394 = vmatprep.mubr.bf16.mxu0 %v15383_v19 }
 0x214   : > { %v3389_v46 = vsel %vm2749_vm14, %v2121_v12, %v3069_v41 }
 0x215   : > { %v2126_v47 = vpop.f32.mrb[116].mxu0  ;;  %v3623_v58 = vpack.c.bf16 %v3389_v46, %v3387_v31  ;;  %v9292_v46 = vld [vmem:[%s10150_s23 + $0x1c8] sm:$0xff]  }
 0x216   : > { %v2127_v52 = vadd.f32 %v2126_v47, %v10269_v62  ;;  %v10546_v60 = vpop.f32.mrb[117].mxu0 }
 0x217   : > { %15788 = vst [vmem:[#allocation63_spill] sm:$0xff] %v10546_v60  ;;  %v2130_v3 = vpop.f32.mrb[118].mxu0  ;;  %8564 = vmatprep.mubr.bf16.mxu1 %v3623_v58 }
 0x218   : > { %v3071_v27 = vmul.f32 0.01, %v2127_v52  ;;  %v2131_v11 = vadd.f32 %v2130_v3, %v10269_v62  ;;  %v10550_v23 = vpop.f32.mrb[119].mxu0  ;;  %vm2751_vm15 = vcmp.ge.f32.partialorder %v2127_v52, 0.0 }
 0x219   : > { %15789 = vst [vmem:[#allocation64_spill] sm:$0xff] %v10550_v23 }
 0x21a   : > { %vm2753_vm0 = vcmp.ge.f32.partialorder %v2131_v11, 0.0  ;;  %v3073_v15 = vmul.f32 0.01, %v2131_v11  ;;  %8124 = vmatmul.mubr.msk.bf16.gmra.mrb[224].mxu0 %vm1554_vm1, %v9291_v63  ;;  %v3391_v12 = vsel %vm2751_vm15, %v2127_v52, %v3071_v27 }
 0x21b   : > { %2404 = vmatprep.mubr.bf16.mxu0 %v15383_v19 }
 0x21c   : > { %v3393_v28 = vsel %vm2753_vm0, %v2131_v11, %v3073_v15 }
 0x21d   : > { %v2136_v42 = vpop.f32.mrb[120].mxu0  ;;  %v3624_v41 = vpack.c.bf16 %v3393_v28, %v3391_v12 }
 0x21e   : > { %v10554_v31 = vpop.f32.mrb[121].mxu0  ;;  %v2137_v23 = vadd.f32 %v2136_v42, %v10269_v62 }
 0x21f   : > { %15790 = vst [vmem:[#allocation65_spill] sm:$0xff] %v10554_v31  ;;  %v2140_v47 = vpop.f32.mrb[122].mxu0  ;;  %8565 = vmatmul.mubr.bf16.gmra.mrb[52].mxu1 %v3624_v41 }
 0x220   : > { %v2141_v58 = vadd.f32 %v2140_v47, %v10269_v62  ;;  %v10558_v3 = vpop.f32.mrb[123].mxu0  ;;  %v3075_v15 = vmul.f32 0.01, %v2137_v23  ;;  %vm2755_vm3 = vcmp.ge.f32.partialorder %v2137_v23, 0.0 }
 0x221   : > { %15791 = vst [vmem:[#allocation66_spill] sm:$0xff] %v10558_v3 }
 0x222   : > { %8125 = vmatmul.mubr.msk.bf16.gmra.mrb[228].mxu0 %vm1554_vm1, %v9292_v46  ;;  %v10562_v63 = vpop.f32.mrb[0].mxu1  ;;  %v3077_v52 = vmul.f32 0.01, %v2141_v58  ;;  %vm2757_vm2 = vcmp.ge.f32.partialorder %v2141_v58, 0.0  ;;  %v9293_v46 = vld [vmem:[%s10150_s23 + $0x1d0] sm:$0xff]   ;;  %v3395_v60 = vsel %vm2755_vm3, %v2137_v23, %v3075_v15 }
 0x223   : > { %v10564_v11 = vpop.f32.mrb[1].mxu1  ;;  %2414 = vmatprep.mubr.bf16.mxu0 %v15383_v19 }
 0x224   : > { %v10567_v27 = vpop.f32.mrb[2].mxu1  ;;  %v3397_v3 = vsel %vm2757_vm2, %v2141_v58, %v3077_v52 }
 0x225   : > { %v2146_v12 = vpop.f32.mrb[124].mxu0  ;;  %v10569_v28 = vpop.f32.mrb[3].mxu1  ;;  %v3625_v48 = vpack.c.bf16 %v3397_v3, %v3395_v60 }
 0x226   : > { %v2147_v41 = vadd.f32 %v2146_v12, %v10269_v62  ;;  %v10572_v42 = vpop.f32.mrb[125].mxu0 }
 0x227   : > { %15792 = vst [vmem:[#allocation67_spill] sm:$0xff] %v10572_v42  ;;  %v2150_v47 = vpop.f32.mrb[126].mxu0  ;;  %8568 = vmatprep.mubr.bf16.mxu1 %v3625_v48 }
 0x228   : > { %v10575_v31 = vpop.f32.mrb[127].mxu0  ;;  %v3079_v19 = vmul.f32 0.01, %v2147_v41  ;;  %v2151_v14 = vadd.f32 %v2150_v47, %v10269_v62  ;;  %vm2759_vm4 = vcmp.ge.f32.partialorder %v2147_v41, 0.0 }
 0x229   : > { %15793 = vst [vmem:[#allocation68_spill] sm:$0xff] %v10575_v31 }
 0x22a   : > { %8126 = vmatmul.mubr.msk.bf16.gmra.mrb[232].mxu0 %vm1554_vm1, %v9293_v46  ;;  %vm2761_vm5 = vcmp.ge.f32.partialorder %v2151_v14, 0.0  ;;  %v3081_v12 = vmul.f32 0.01, %v2151_v14  ;;  %v3399_v58 = vsel %vm2759_vm4, %v2147_v41, %v3079_v19 }
 0x22b   : > { %2424 = vmatprep.mubr.bf16.mxu0 %v15794_v33 }
 0x22c   : > { %v3401_v52 = vsel %vm2761_vm5, %v2151_v14, %v3081_v12 }
 0x22d   : > { %v2156_v42 = vpop.f32.mrb[128].mxu0  ;;  %v3626_v23 = vpack.c.bf16 %v3401_v52, %v3399_v58 }
 0x22e   : > { %v10580_v10 = vpop.f32.mrb[129].mxu0  ;;  %v2157_v60 = vadd.f32 %v2156_v42, %v10269_v62 }
 0x22f   : > { %15795 = vst [vmem:[#allocation69_spill] sm:$0xff] %v10580_v10  ;;  %v2160_v31 = vpop.f32.mrb[130].mxu0  ;;  %8569 = vmatmul.mubr.bf16.gmra.mrb[56].mxu1 %v3626_v23 }
 0x230   : > { %v2161_v15 = vadd.f32 %v2160_v31, %v10269_v62  ;;  %v10584_v47 = vpop.f32.mrb[131].mxu0  ;;  %v3083_v14 = vmul.f32 0.01, %v2157_v60  ;;  %vm2763_vm7 = vcmp.ge.f32.partialorder %v2157_v60, 0.0 }
 0x231   : > { %15796 = vst [vmem:[#allocation70_spill] sm:$0xff] %v10584_v47 }
 0x232   : > { %8127 = vmatmul.mubr.msk.bf16.gmra.mrb[236].mxu0 %vm1554_vm1, %v9294_v54  ;;  %v10588_v3 = vpop.f32.mrb[4].mxu1  ;;  %v3085_v48 = vmul.f32 0.01, %v2161_v15  ;;  %vm2765_vm6 = vcmp.ge.f32.partialorder %v2161_v15, 0.0  ;;  %v9295_v54 = vld [vmem:[%s10150_s23 + $0x1e0] sm:$0xff]   ;;  %v3403_v47 = vsel %vm2763_vm7, %v2157_v60, %v3083_v14 }
 0x233   : > { %v10590_v46 = vpop.f32.mrb[5].mxu1  ;;  %2434 = vmatprep.mubr.bf16.mxu0 %v15794_v33 }
 0x234   : > { %v10593_v19 = vpop.f32.mrb[6].mxu1  ;;  %v3405_v52 = vsel %vm2765_vm6, %v2161_v15, %v3085_v48 }
 0x235   : > { %v2166_v31 = vpop.f32.mrb[132].mxu0  ;;  %v10595_v41 = vpop.f32.mrb[7].mxu1  ;;  %v3627_v24 = vpack.c.bf16 %v3405_v52, %v3403_v47 }
 0x236   : > { %v2167_v42 = vadd.f32 %v2166_v31, %v10269_v62  ;;  %v10598_v12 = vpop.f32.mrb[133].mxu0 }
 0x237   : > { %15797 = vst [vmem:[#allocation71_spill] sm:$0xff] %v10598_v12  ;;  %v2170_v58 = vpop.f32.mrb[134].mxu0  ;;  %8572 = vmatprep.mubr.bf16.mxu1 %v3627_v24 }
 0x238   : > { %v10601_v23 = vpop.f32.mrb[135].mxu0  ;;  %v3087_v10 = vmul.f32 0.01, %v2167_v42  ;;  %v2171_v36 = vadd.f32 %v2170_v58, %v10269_v62  ;;  %vm2767_vm8 = vcmp.ge.f32.partialorder %v2167_v42, 0.0 }
 0x239   : > { %15798 = vst [vmem:[#allocation72_spill] sm:$0xff] %v10601_v23 }
 0x23a   : > { %8128 = vmatmul.mubr.msk.bf16.gmra.mrb[240].mxu0 %vm1554_vm1, %v9295_v54  ;;  %vm2769_vm9 = vcmp.ge.f32.partialorder %v2171_v36, 0.0  ;;  %v3089_v31 = vmul.f32 0.01, %v2171_v36  ;;  %v3407_v15 = vsel %vm2767_vm8, %v2167_v42, %v3087_v10 }
 0x23b   : > { %2444 = vmatprep.mubr.bf16.mxu0 %v15794_v33 }
 0x23c   : > { %v3409_v48 = vsel %vm2769_vm9, %v2171_v36, %v3089_v31 }
 0x23d   : > { %v2176_v12 = vpop.f32.mrb[136].mxu0  ;;  %v3628_v60 = vpack.c.bf16 %v3409_v48, %v3407_v15 }
 0x23e   : > { %v10606_v61 = vpop.f32.mrb[137].mxu0  ;;  %v2177_v47 = vadd.f32 %v2176_v12, %v10269_v62 }
 0x23f   : > { %15799 = vst [vmem:[#allocation73_spill] sm:$0xff] %v10606_v61  ;;  %v2180_v23 = vpop.f32.mrb[138].mxu0  ;;  %8573 = vmatmul.mubr.bf16.gmra.mrb[60].mxu1 %v3628_v60 }
 0x240   : > { %v2181_v14 = vadd.f32 %v2180_v23, %v10269_v62  ;;  %v10610_v58 = vpop.f32.mrb[139].mxu0  ;;  %v3091_v10 = vmul.f32 0.01, %v2177_v47  ;;  %vm2771_vm11 = vcmp.ge.f32.partialorder %v2177_v47, 0.0 }
 0x241   : > { %15800 = vst [vmem:[#allocation74_spill] sm:$0xff] %v10610_v58 }
 0x242   : > { %8129 = vmatmul.mubr.msk.bf16.gmra.mrb[244].mxu0 %vm1554_vm1, %v9296_v50  ;;  %v10614_v54 = vpop.f32.mrb[8].mxu1  ;;  %v3093_v24 = vmul.f32 0.01, %v2181_v14  ;;  %vm2773_vm10 = vcmp.ge.f32.partialorder %v2181_v14, 0.0  ;;  %v9297_v50 = vld [vmem:[%s10150_s23 + $0x1f0] sm:$0xff]   ;;  %v3411_v58 = vsel %vm2771_vm11, %v2177_v47, %v3091_v10 }
 0x243   : > { %v10616_v52 = vpop.f32.mrb[9].mxu1  ;;  %2454 = vmatprep.mubr.bf16.mxu0 %v15794_v33 }
 0x244   : > { %v10619_v36 = vpop.f32.mrb[10].mxu1  ;;  %v3413_v48 = vsel %vm2773_vm10, %v2181_v14, %v3093_v24 }
 0x245   : > { %v2186_v42 = vpop.f32.mrb[140].mxu0  ;;  %v10621_v23 = vpop.f32.mrb[11].mxu1  ;;  %v3629_v25 = vpack.c.bf16 %v3413_v48, %v3411_v58 }
 0x246   : > { %v2187_v12 = vadd.f32 %v2186_v42, %v10269_v62  ;;  %v10624_v31 = vpop.f32.mrb[141].mxu0 }
 0x247   : > { %15801 = vst [vmem:[#allocation75_spill] sm:$0xff] %v10624_v31  ;;  %v2190_v15 = vpop.f32.mrb[142].mxu0  ;;  %8576 = vmatprep.mubr.bf16.mxu1 %v3629_v25 }
 0x248   : > { %v10627_v60 = vpop.f32.mrb[143].mxu0  ;;  %v3095_v61 = vmul.f32 0.01, %v2187_v12  ;;  %v2191_v35 = vadd.f32 %v2190_v15, %v10269_v62  ;;  %vm2775_vm12 = vcmp.ge.f32.partialorder %v2187_v12, 0.0 }
 0x249   : > { %15802 = vst [vmem:[#allocation76_spill] sm:$0xff] %v10627_v60 }
 0x24a   : > { %8130 = vmatmul.mubr.msk.bf16.gmra.mrb[248].mxu0 %vm1554_vm1, %v9297_v50  ;;  %vm2777_vm13 = vcmp.ge.f32.partialorder %v2191_v35, 0.0  ;;  %v3097_v42 = vmul.f32 0.01, %v2191_v35  ;;  %v3415_v14 = vsel %vm2775_vm12, %v2187_v12, %v3095_v61 }
 0x24b   : > { %2464 = vmatprep.mubr.bf16.mxu0 %v15794_v33 }
 0x24c   : > { %v3417_v24 = vsel %vm2777_vm13, %v2191_v35, %v3097_v42 }
 0x24d   : > { %v2196_v31 = vpop.f32.mrb[144].mxu0  ;;  %v3630_v47 = vpack.c.bf16 %v3417_v24, %v3415_v14  ;;  %v9299_v14 = vld [vmem:[%s10150_s23 + $0x200] sm:$0xff]  }
 0x24e   : > { %v10632_v2 = vpop.f32.mrb[145].mxu0  ;;  %v2197_v58 = vadd.f32 %v2196_v31, %v10269_v62  ;;  %v10652_v31 = vld [vmem:[%s15378_s4] ss:$0 sm:$0xff] }
 0x24f   : > { %15803 = vst [vmem:[#allocation77_spill] sm:$0xff] %v10632_v2  ;;  %v2200_v60 = vpop.f32.mrb[146].mxu0  ;;  %8577 = vmatmul.mubr.bf16.gmra.mrb[64].mxu1 %v3630_v47  ;;  %v3805_v2 = vadd.f32 %v10562_v63, %v10652_v31  ;;  %v3797_v34 = vadd.f32 %v10652_v31, %v10564_v11 }
 0x250   : > { %v2201_v10 = vadd.f32 %v2200_v60, %v10269_v62  ;;  %v10636_v15 = vpop.f32.mrb[147].mxu0  ;;  %v3099_v61 = vmul.f32 0.01, %v2197_v58  ;;  %vm2779_vm15 = vcmp.ge.f32.partialorder %v2197_v58, 0.0 }
 0x251   : > { %15804 = vst [vmem:[#allocation78_spill] sm:$0xff] %v10636_v15  ;;  %vm4425_vm3 = vcmp.ge.f32.partialorder %v3805_v2, 0.0  ;;  %vm4423_vm4 = vcmp.ge.f32.partialorder %v3797_v34, 0.0 }
 0x252   : > { %8131 = vmatmul.mubr.msk.bf16.gmra.mrb[252].mxu0 %vm1554_vm1, %v9298_v55  ;;  %v10640_v50 = vpop.f32.mrb[12].mxu1  ;;  %v3101_v25 = vmul.f32 0.01, %v2201_v10  ;;  %vm2781_vm14 = vcmp.ge.f32.partialorder %v2201_v10, 0.0  ;;  %v3419_v43 = vsel %vm2779_vm15, %v2197_v58, %v3099_v61  ;;  %v4585_v58 = vmul.f32 0.01, %v3805_v2 }
 0x253   : > { %v10642_v48 = vpop.f32.mrb[13].mxu1  ;;  %2474 = vmatprep.mubr.bf16.mxu0 %v15794_v33 }
 0x254   : > { %v10645_v35 = vpop.f32.mrb[14].mxu1  ;;  %v3421_v47 = vsel %vm2781_vm14, %v2201_v10, %v3101_v25  ;;  %v3800_v10 = vadd.f32 %v10652_v31, %v10569_v28  ;;  %v4583_v25 = vmul.f32 0.01, %v3797_v34  ;;  %v10679_v40 = vsel %vm4425_vm3, %v3805_v2, %v4585_v58 }
 0x255   : > { %v2206_v12 = vpop.f32.mrb[148].mxu0  ;;  %v10647_v60 = vpop.f32.mrb[15].mxu1  ;;  %v3631_v57 = vpack.c.bf16 %v3421_v47, %v3419_v43  ;;  %15809 = vst [vmem:[#allocation83_spill] sm:$0xff] %v10679_v40 }
 0x256   : > { %v2207_v55 = vadd.f32 %v2206_v12, %v10269_v62  ;;  %v10655_v42 = vpop.f32.mrb[149].mxu0  ;;  %v3808_v12 = vadd.f32 %v10567_v27, %v10652_v31  ;;  %v4584_v47 = vmul.f32 0.01, %v3800_v10  ;;  %vm4424_vm6 = vcmp.ge.f32.partialorder %v3800_v10, 0.0 }
 0x257   : > { %15805 = vst [vmem:[#allocation79_spill] sm:$0xff] %v10655_v42  ;;  %v2210_v24 = vpop.f32.mrb[150].mxu0  ;;  %8580 = vmatprep.mubr.bf16.mxu1 %v3631_v57 }
 0x258   : > { %v10658_v15 = vpop.f32.mrb[151].mxu0  ;;  %v3103_v17 = vmul.f32 0.01, %v2207_v55  ;;  %v2211_v4 = vadd.f32 %v2210_v24, %v10269_v62  ;;  %vm2783_vm0 = vcmp.ge.f32.partialorder %v2207_v55, 0.0  ;;  %v9300_v24 = vld [vmem:[%s10150_s23 + $0x208] sm:$0xff]   ;;  %vm4426_vm5 = vcmp.ge.f32.partialorder %v3808_v12, 0.0 }
 0x259   : > { %15806 = vst [vmem:[#allocation80_spill] sm:$0xff] %v10658_v15  ;;  %v4586_v27 = vmul.f32 0.01, %v3808_v12 }
 0x25a   : > { %8132 = vmatmul.mubr.msk.bf16.gmra.mrb[0].mxu0 %vm1554_vm1, %v9299_v14  ;;  %vm2785_vm2 = vcmp.ge.f32.partialorder %v2211_v4, 0.0  ;;  %v3105_v63 = vmul.f32 0.01, %v2211_v4  ;;  %v3423_v61 = vsel %vm2783_vm0, %v2207_v55, %v3103_v17  ;;  %v10681_v17 = vsel %vm4423_vm4, %v3797_v34, %v4583_v25 }
 0x25b   : > { %2484 = vmatprep.mubr.bf16.mxu0 %v15794_v33  ;;  %15810 = vst [vmem:[#allocation84_spill] sm:$0xff] %v10681_v17  ;;  %v10684_v55 = vsel %vm4426_vm5, %v3808_v12, %v4586_v27  ;;  %v10696_v34 = vadd.f32 %v10652_v31, %v10590_v46 }
 0x25c   : > { %v3425_v14 = vsel %vm2785_vm2, %v2211_v4, %v3105_v63  ;;  %15811 = vst [vmem:[#allocation85_spill] sm:$0xff] %v10684_v55  ;;  %v10686_v63 = vsel %vm4424_vm6, %v3800_v10, %v4584_v47 }
 0x25d   : > { %v2216_v11 = vpop.f32.mrb[152].mxu0  ;;  %v3632_v28 = vpack.c.bf16 %v3425_v14, %v3423_v61  ;;  %15812 = vst [vmem:[#allocation86_spill] sm:$0xff] %v10686_v63  ;;  %vm4427_vm0 = vcmp.ge.f32.partialorder %v10696_v34, 0.0 }
 0x25e   : > { %v10671_v43 = vpop.f32.mrb[153].mxu0  ;;  %v2217_v42 = vadd.f32 %v2216_v11, %v10269_v62  ;;  %v10690_v11 = vadd.f32 %v10588_v3, %v10652_v31 }
 0x25f   : > { %15807 = vst [vmem:[#allocation81_spill] sm:$0xff] %v10671_v43  ;;  %v2220_v15 = vpop.f32.mrb[154].mxu0  ;;  %8581 = vmatmul.mubr.bf16.gmra.mrb[68].mxu1 %v3632_v28 }
 0x260   : > { %v2221_v57 = vadd.f32 %v2220_v15, %v10269_v62  ;;  %v10676_v49 = vpop.f32.mrb[155].mxu0  ;;  %v3107_v2 = vmul.f32 0.01, %v2217_v42  ;;  %vm2787_vm10 = vcmp.ge.f32.partialorder %v2217_v42, 0.0  ;;  %vm4429_vm15 = vcmp.ge.f32.partialorder %v10690_v11, 0.0 }
 0x261   : > { %15808 = vst [vmem:[#allocation82_spill] sm:$0xff] %v10676_v49 }
 0x262   : > { %8133 = vmatmul.mubr.msk.bf16.gmra.mrb[4].mxu0 %vm1554_vm1, %v9300_v24  ;;  %v8530_v4 = vpop.f32.mrb[16].mxu1  ;;  %v3109_v58 = vmul.f32 0.01, %v2221_v57  ;;  %vm2789_vm7 = vcmp.ge.f32.partialorder %v2221_v57, 0.0 }
 0x263   : > { %v3869_v15 = vadd.f32 %v8530_v4, %v10652_v31  ;;  %v3860_v61 = vpop.f32.mrb[17].mxu1  ;;  %2494 = vmatprep.mubr.bf16.mxu0 %v15794_v33  ;;  %v9301_v4 = vld [vmem:[%s10150_s23 + $0x210] sm:$0xff]  }
 0x264   : > { %v3861_v12 = vadd.f32 %v10652_v31, %v3860_v61  ;;  %v8531_v10 = vpop.f32.mrb[18].mxu1 }
 0x265   : > { %vm4441_vm8 = vcmp.ge.f32.partialorder %v3869_v15, 0.0  ;;  %v4601_v25 = vmul.f32 0.01, %v3869_v15  ;;  %v3872_v3 = vadd.f32 %v8531_v10, %v10652_v31  ;;  %v2226_v14 = vpop.f32.mrb[156].mxu0  ;;  %v3863_v24 = vpop.f32.mrb[19].mxu1  ;;  %v3824_v10 = vadd.f32 %v10593_v19, %v10652_v31 }
 0x266   : > { %vm4439_vm9 = vcmp.ge.f32.partialorder %v3861_v12, 0.0  ;;  %v4599_v27 = vmul.f32 0.01, %v3861_v12  ;;  %v2227_v47 = vadd.f32 %v2226_v14, %v10269_v62  ;;  %v3864_v46 = vadd.f32 %v10652_v31, %v3863_v24  ;;  %v10702_v28 = vpop.f32.mrb[157].mxu0 }
 0x267   : > { %15813 = vst [vmem:[#allocation87_spill] sm:$0xff] %v10702_v28  ;;  %v10705_v49 = vsel %vm4441_vm8, %v3869_v15, %v4601_v25  ;;  %vm4442_vm11 = vcmp.ge.f32.partialorder %v3872_v3, 0.0  ;;  %v4602_v61 = vmul.f32 0.01, %v3872_v3  ;;  %v2230_v43 = vpop.f32.mrb[158].mxu0  ;;  %v3429_v14 = vsel %vm2789_vm7, %v2221_v57, %v3109_v58 }
 0x268   : > { %15814 = vst [vmem:[#allocation88_spill] sm:$0xff] %v10705_v49  ;;  %v10711_v16 = vsel %vm4439_vm9, %v3861_v12, %v4599_v27  ;;  %v10714_v24 = vpop.f32.mrb[159].mxu0  ;;  %vm4440_vm12 = vcmp.ge.f32.partialorder %v3864_v46, 0.0  ;;  %v4600_v25 = vmul.f32 0.01, %v3864_v46  ;;  %v2231_v59 = vadd.f32 %v2230_v43, %v10269_v62 }
 0x269   : > { %15815 = vst [vmem:[#allocation89_spill] sm:$0xff] %v10711_v16  ;;  %15816 = vst [vmem:[#allocation90_spill] sm:$0xff] %v10714_v24  ;;  %v10718_v15 = vsel %vm4442_vm11, %v3872_v3, %v4602_v61  ;;  %v3111_v19 = vmul.f32 0.01, %v2227_v47  ;;  %v3427_v12 = vsel %vm2787_vm10, %v2217_v42, %v3107_v2  ;;  %v3816_v57 = vadd.f32 %v10652_v31, %v10595_v41 }
 0x26a   : > { %15817 = vst [vmem:[#allocation91_spill] sm:$0xff] %v10718_v15  ;;  %8134 = vmatmul.mubr.msk.bf16.gmra.mrb[8].mxu0 %vm1554_vm1, %v9301_v4  ;;  %vm2791_vm13 = vcmp.ge.f32.partialorder %v2227_v47, 0.0  ;;  %v10727_v58 = vsel %vm4440_vm12, %v3864_v46, %v4600_v25  ;;  %v3633_v3 = vpack.c.bf16 %v3429_v14, %v3427_v12  ;;  %vm2793_vm14 = vcmp.ge.f32.partialorder %v2231_v59, 0.0  ;;  %v9302_v14 = vld [vmem:[%s10150_s23 + $0x218] sm:$0xff]  }
 0x26b   : > { %15818 = vst [vmem:[#allocation92_spill] sm:$0xff] %v10727_v58  ;;  %2504 = vmatprep.mubr.bf16.mxu0 %v15794_v33  ;;  %v3113_v61 = vmul.f32 0.01, %v2231_v59  ;;  %v4589_v43 = vmul.f32 0.01, %v10690_v11  ;;  %v3431_v46 = vsel %vm2791_vm13, %v2227_v47, %v3111_v19  ;;  %vm4430_vm2 = vcmp.ge.f32.partialorder %v3824_v10, 0.0 }
 0x26c   : > { %8584 = vmatprep.mubr.bf16.mxu1 %v3633_v3  ;;  %v4587_v41 = vmul.f32 0.01, %v10696_v34  ;;  %v4590_v25 = vmul.f32 0.01, %v3824_v10  ;;  %v4588_v12 = vmul.f32 0.01, %v3816_v57 }
 0x26d   : > { %v2236_v42 = vpop.f32.mrb[160].mxu0  ;;  %v3433_v4 = vsel %vm2793_vm14, %v2231_v59, %v3113_v61  ;;  %vm4428_vm3 = vcmp.ge.f32.partialorder %v3816_v57, 0.0  ;;  %v10746_v59 = vsel %vm4429_vm15, %v10690_v11, %v4589_v43 }
 0x26e   : > { %v10735_v2 = vpop.f32.mrb[161].mxu0  ;;  %v3634_v5 = vpack.c.bf16 %v3433_v4, %v3431_v46  ;;  %v2237_v3 = vadd.f32 %v2236_v42, %v10269_v62  ;;  %15821 = vst [vmem:[#allocation95_spill] sm:$0xff] %v10746_v59  ;;  %v10750_v19 = vsel %vm4427_vm0, %v10696_v34, %v4587_v41  ;;  %v10752_v61 = vsel %vm4430_vm2, %v3824_v10, %v4590_v25 }
 0x26f   : > { %15819 = vst [vmem:[#allocation93_spill] sm:$0xff] %v10735_v2  ;;  %v2240_v27 = vpop.f32.mrb[162].mxu0  ;;  %15822 = vst [vmem:[#allocation96_spill] sm:$0xff] %v10750_v19  ;;  %v10754_v46 = vsel %vm4428_vm3, %v3816_v57, %v4588_v12 }
 0x270   : > { %v2241_v28 = vadd.f32 %v2240_v27, %v10269_v62  ;;  %v10741_v32 = vpop.f32.mrb[163].mxu0  ;;  %8585 = vmatmul.mubr.bf16.gmra.mrb[72].mxu1 %v3634_v5  ;;  %15823 = vst [vmem:[#allocation97_spill] sm:$0xff] %v10752_v61  ;;  %15824 = vst [vmem:[#allocation98_spill] sm:$0xff] %v10754_v46  ;;  %v10760_v5 = vadd.f32 %v10614_v54, %v10652_v31  ;;  %v3115_v11 = vmul.f32 0.01, %v2237_v3  ;;  %vm2795_vm7 = vcmp.ge.f32.partialorder %v2237_v3, 0.0 }
 0x271   : > { %15820 = vst [vmem:[#allocation94_spill] sm:$0xff] %v10741_v32  ;;  %v9303_v32 = vld [vmem:[%s10150_s23 + $0x220] sm:$0xff]  }
 0x272   : > { %8135 = vmatmul.mubr.msk.bf16.gmra.mrb[12].mxu0 %vm1554_vm1, %v9302_v14  ;;  %v8534_v47 = vpop.f32.mrb[20].mxu1  ;;  %v3117_v43 = vmul.f32 0.01, %v2241_v28  ;;  %vm2797_vm4 = vcmp.ge.f32.partialorder %v2241_v28, 0.0  ;;  %vm4433_vm12 = vcmp.ge.f32.partialorder %v10760_v5, 0.0 }
 0x273   : > { %v3885_v27 = vadd.f32 %v8534_v47, %v10652_v31  ;;  %v3876_v42 = vpop.f32.mrb[21].mxu1  ;;  %2514 = vmatprep.mubr.bf16.mxu0 %v15794_v33 }
 0x274   : > { %v3877_v4 = vadd.f32 %v10652_v31, %v3876_v42  ;;  %v8535_v34 = vpop.f32.mrb[22].mxu1 }
 0x275   : > { %vm4445_vm5 = vcmp.ge.f32.partialorder %v3885_v27, 0.0  ;;  %v4605_v10 = vmul.f32 0.01, %v3885_v27  ;;  %v3888_v57 = vadd.f32 %v8535_v34, %v10652_v31  ;;  %v2246_v41 = vpop.f32.mrb[164].mxu0  ;;  %v3879_v14 = vpop.f32.mrb[23].mxu1  ;;  %v3829_v34 = vadd.f32 %v10652_v31, %v10616_v52 }
 0x276   : > { %vm4443_vm6 = vcmp.ge.f32.partialorder %v3877_v4, 0.0  ;;  %v4603_v25 = vmul.f32 0.01, %v3877_v4  ;;  %v2247_v12 = vadd.f32 %v2246_v41, %v10269_v62  ;;  %v3880_v54 = vadd.f32 %v10652_v31, %v3879_v14  ;;  %v10766_v47 = vpop.f32.mrb[165].mxu0 }
 0x277   : > { %15825 = vst [vmem:[#allocation99_spill] sm:$0xff] %v10766_v47  ;;  %v10769_v2 = vsel %vm4445_vm5, %v3885_v27, %v4605_v10  ;;  %vm4446_vm8 = vcmp.ge.f32.partialorder %v3888_v57, 0.0  ;;  %v4606_v42 = vmul.f32 0.01, %v3888_v57  ;;  %v2250_v24 = vpop.f32.mrb[166].mxu0  ;;  %v3437_v41 = vsel %vm2797_vm4, %v2241_v28, %v3117_v43 }
 0x278   : > { %15826 = vst [vmem:[#allocation100_spill] sm:$0xff] %v10769_v2  ;;  %v10775_v45 = vsel %vm4443_vm6, %v3877_v4, %v4603_v25  ;;  %v10778_v14 = vpop.f32.mrb[167].mxu0  ;;  %vm4444_vm9 = vcmp.ge.f32.partialorder %v3880_v54, 0.0  ;;  %v4604_v10 = vmul.f32 0.01, %v3880_v54  ;;  %v2251_v29 = vadd.f32 %v2250_v24, %v10269_v62 }
 0x279   : > { %15827 = vst [vmem:[#allocation101_spill] sm:$0xff] %v10775_v45  ;;  %15828 = vst [vmem:[#allocation102_spill] sm:$0xff] %v10778_v14  ;;  %v10782_v27 = vsel %vm4446_vm8, %v3888_v57, %v4606_v42  ;;  %v3119_v52 = vmul.f32 0.01, %v2247_v12  ;;  %v3435_v4 = vsel %vm2795_vm7, %v2237_v3, %v3115_v11  ;;  %v3840_v28 = vadd.f32 %v10619_v36, %v10652_v31 }
 0x27a   : > { %15829 = vst [vmem:[#allocation103_spill] sm:$0xff] %v10782_v27  ;;  %8136 = vmatmul.mubr.msk.bf16.gmra.mrb[16].mxu0 %vm1554_vm1, %v9303_v32  ;;  %vm2799_vm10 = vcmp.ge.f32.partialorder %v2247_v12, 0.0  ;;  %v10791_v43 = vsel %vm4444_vm9, %v3880_v54, %v4604_v10  ;;  %v3635_v57 = vpack.c.bf16 %v3437_v41, %v3435_v4  ;;  %v3832_v25 = vadd.f32 %v10652_v31, %v10621_v23  ;;  %v9304_v41 = vld [vmem:[%s10150_s23 + $0x228] sm:$0xff]  }
 0x27b   : > { %15830 = vst [vmem:[#allocation104_spill] sm:$0xff] %v10791_v43  ;;  %2524 = vmatprep.mubr.bf16.mxu0 %v15794_v33  ;;  %vm2801_vm11 = vcmp.ge.f32.partialorder %v2251_v29, 0.0  ;;  %v3121_v3 = vmul.f32 0.01, %v2251_v29  ;;  %v4593_v36 = vmul.f32 0.01, %v10760_v5  ;;  %v3439_v54 = vsel %vm2799_vm10, %v2247_v12, %v3119_v52 }
 0x27c   : > { %8588 = vmatprep.mubr.bf16.mxu1 %v3635_v57  ;;  %vm4431_vm13 = vcmp.ge.f32.partialorder %v3829_v34, 0.0  ;;  %v4591_v10 = vmul.f32 0.01, %v3829_v34  ;;  %v4594_v4 = vmul.f32 0.01, %v3840_v28  ;;  %vm4434_vm14 = vcmp.ge.f32.partialorder %v3840_v28, 0.0 }
 0x27d   : > { %v2256_v32 = vpop.f32.mrb[168].mxu0  ;;  %v3441_v42 = vsel %vm2801_vm11, %v2251_v29, %v3121_v3  ;;  %v4592_v24 = vmul.f32 0.01, %v3832_v25  ;;  %vm4432_vm15 = vcmp.ge.f32.partialorder %v3832_v25, 0.0  ;;  %v10811_v29 = vsel %vm4433_vm12, %v10760_v5, %v4593_v36 }
 0x27e   : > { %v10800_v11 = vpop.f32.mrb[169].mxu0  ;;  %v3636_v37 = vpack.c.bf16 %v3441_v42, %v3439_v54  ;;  %v2257_v47 = vadd.f32 %v2256_v32, %v10269_v62  ;;  %15833 = vst [vmem:[#allocation107_spill] sm:$0xff] %v10811_v29  ;;  %v10813_v52 = vsel %vm4431_vm13, %v3829_v34, %v4591_v10  ;;  %v10815_v3 = vsel %vm4434_vm14, %v3840_v28, %v4594_v4 }
 0x27f   : > { %15831 = vst [vmem:[#allocation105_spill] sm:$0xff] %v10800_v11  ;;  %v2260_v23 = vpop.f32.mrb[170].mxu0  ;;  %15834 = vst [vmem:[#allocation108_spill] sm:$0xff] %v10813_v52  ;;  %v10819_v42 = vsel %vm4432_vm15, %v3832_v25, %v4592_v24 }
 0x280   : > { %v2261_v57 = vadd.f32 %v2260_v23, %v10269_v62  ;;  %v10805_v53 = vpop.f32.mrb[171].mxu0  ;;  %8589 = vmatmul.mubr.bf16.gmra.mrb[76].mxu1 %v3636_v37  ;;  %15835 = vst [vmem:[#allocation109_spill] sm:$0xff] %v10815_v3  ;;  %15836 = vst [vmem:[#allocation110_spill] sm:$0xff] %v10819_v42  ;;  %v3123_v37 = vmul.f32 0.01, %v2257_v47  ;;  %vm2803_vm4 = vcmp.ge.f32.partialorder %v2257_v47, 0.0 }
 0x281   : > { %15832 = vst [vmem:[#allocation106_spill] sm:$0xff] %v10805_v53 }
 0x282   : > { %8137 = vmatmul.mubr.msk.bf16.gmra.mrb[20].mxu0 %vm1554_vm1, %v9304_v41  ;;  %v8538_v12 = vpop.f32.mrb[24].mxu1  ;;  %v3125_v41 = vmul.f32 0.01, %v2261_v57  ;;  %vm2805_vm0 = vcmp.ge.f32.partialorder %v2261_v57, 0.0 }
 0x283   : > { %v3901_v32 = vadd.f32 %v8538_v12, %v10652_v31  ;;  %v3892_v54 = vpop.f32.mrb[25].mxu1  ;;  %2534 = vmatprep.mubr.bf16.mxu0 %v15794_v33  ;;  %v9305_v12 = vld [vmem:[%s10150_s23 + $0x230] sm:$0xff]  }
 0x284   : > { %v3893_v23 = vadd.f32 %v10652_v31, %v3892_v54  ;;  %v8539_v53 = vpop.f32.mrb[26].mxu1 }
 0x285   : > { %vm4449_vm2 = vcmp.ge.f32.partialorder %v3901_v32, 0.0  ;;  %v4609_v5 = vmul.f32 0.01, %v3901_v32  ;;  %v3904_v34 = vadd.f32 %v8539_v53, %v10652_v31  ;;  %v2266_v28 = vpop.f32.mrb[172].mxu0  ;;  %v3895_v36 = vpop.f32.mrb[27].mxu1  ;;  %v3853_v53 = vadd.f32 %v10640_v50, %v10652_v31 }
 0x286   : > { %vm4447_vm3 = vcmp.ge.f32.partialorder %v3893_v23, 0.0  ;;  %v4607_v10 = vmul.f32 0.01, %v3893_v23  ;;  %v2267_v4 = vadd.f32 %v2266_v28, %v10269_v62  ;;  %v3896_v25 = vadd.f32 %v10652_v31, %v3895_v36  ;;  %v10825_v24 = vpop.f32.mrb[173].mxu0 }
 0x287   : > { %15837 = vst [vmem:[#allocation111_spill] sm:$0xff] %v10825_v24  ;;  %v10828_v11 = vsel %vm4449_vm2, %v3901_v32, %v4609_v5  ;;  %vm4450_vm5 = vcmp.ge.f32.partialorder %v3904_v34, 0.0  ;;  %v4610_v54 = vmul.f32 0.01, %v3904_v34  ;;  %v2270_v14 = vpop.f32.mrb[174].mxu0  ;;  %v3445_v28 = vsel %vm2805_vm0, %v2261_v57, %v3125_v41 }
 0x288   : > { %15838 = vst [vmem:[#allocation112_spill] sm:$0xff] %v10828_v11  ;;  %v10834_v7 = vsel %vm4447_vm3, %v3893_v23, %v4607_v10  ;;  %v10837_v36 = vpop.f32.mrb[175].mxu0  ;;  %vm4448_vm6 = vcmp.ge.f32.partialorder %v3896_v25, 0.0  ;;  %v4608_v5 = vmul.f32 0.01, %v3896_v25  ;;  %v2271_v56 = vadd.f32 %v2270_v14, %v10269_v62 }
 0x289   : > { %15839 = vst [vmem:[#allocation113_spill] sm:$0xff] %v10834_v7  ;;  %15840 = vst [vmem:[#allocation114_spill] sm:$0xff] %v10837_v36  ;;  %v10841_v32 = vsel %vm4450_vm5, %v3904_v34, %v4610_v54  ;;  %v3127_v50 = vmul.f32 0.01, %v2267_v4  ;;  %v3443_v23 = vsel %vm2803_vm4, %v2257_v47, %v3123_v37  ;;  %v3845_v57 = vadd.f32 %v10652_v31, %v10642_v48  ;;  %v9307_v36 = vld [vmem:[%s10150_s23 + $0x240] sm:$0xff]  }
 0x28a   : > { %15841 = vst [vmem:[#allocation115_spill] sm:$0xff] %v10841_v32  ;;  %8138 = vmatmul.mubr.msk.bf16.gmra.mrb[24].mxu0 %vm1554_vm1, %v9305_v12  ;;  %vm2807_vm7 = vcmp.ge.f32.partialorder %v2267_v4, 0.0  ;;  %v10850_v41 = vsel %vm4448_vm6, %v3896_v25, %v4608_v5  ;;  %v3637_v34 = vpack.c.bf16 %v3445_v28, %v3443_v23  ;;  %vm2809_vm8 = vcmp.ge.f32.partialorder %v2271_v56, 0.0  ;;  %v9306_v25 = vld [vmem:[%s10150_s23 + $0x238] sm:$0xff]  }
 0x28b   : > { %15842 = vst [vmem:[#allocation116_spill] sm:$0xff] %v10850_v41  ;;  %2544 = vmatprep.mubr.bf16.mxu0 %v15794_v33  ;;  %v3129_v54 = vmul.f32 0.01, %v2271_v56  ;;  %v4597_v47 = vmul.f32 0.01, %v3853_v53  ;;  %v3856_v37 = vadd.f32 %v10645_v35, %v10652_v31  ;;  %v3447_v48 = vsel %vm2807_vm7, %v2267_v4, %v3127_v50 }
 0x28c   : > { %8592 = vmatprep.mubr.bf16.mxu1 %v3637_v34  ;;  %vm4437_vm9 = vcmp.ge.f32.partialorder %v3853_v53, 0.0  ;;  %v4595_v28 = vmul.f32 0.01, %v3845_v57  ;;  %v3848_v5 = vadd.f32 %v10652_v31, %v10647_v60  ;;  %vm4435_vm10 = vcmp.ge.f32.partialorder %v3845_v57, 0.0 }
 0x28d   : > { %v2276_v14 = vpop.f32.mrb[176].mxu0  ;;  %v3449_v0 = vsel %vm2809_vm8, %v2271_v56, %v3129_v54  ;;  %v10866_v35 = vsel %vm4437_vm9, %v3853_v53, %v4597_v47  ;;  %vm4438_vm11 = vcmp.ge.f32.partialorder %v3856_v37, 0.0  ;;  %v4598_v50 = vmul.f32 0.01, %v3856_v37 }
 0x28e   : > { %v10857_v12 = vpop.f32.mrb[177].mxu0  ;;  %v3638_v10 = vpack.c.bf16 %v3449_v0, %v3447_v48  ;;  %v2277_v34 = vadd.f32 %v2276_v14, %v10269_v62  ;;  %15845 = vst [vmem:[#allocation119_spill] sm:$0xff] %v10866_v35  ;;  %v10869_v4 = vsel %vm4435_vm10, %v3845_v57, %v4595_v28  ;;  %v4596_v60 = vmul.f32 0.01, %v3848_v5 }
 0x28f   : > { %15843 = vst [vmem:[#allocation117_spill] sm:$0xff] %v10857_v12  ;;  %v2280_v23 = vpop.f32.mrb[178].mxu0  ;;  %15846 = vst [vmem:[#allocation120_spill] sm:$0xff] %v10869_v4  ;;  %vm4436_vm12 = vcmp.ge.f32.partialorder %v3848_v5, 0.0  ;;  %v10883_v39 = vsel %vm4438_vm11, %v3856_v37, %v4598_v50 }
 0x290   : > { %v2281_v24 = vadd.f32 %v2280_v23, %v10269_v62  ;;  %v10864_v20 = vpop.f32.mrb[179].mxu0  ;;  %8593 = vmatmul.mubr.bf16.gmra.mrb[80].mxu1 %v3638_v10  ;;  %v3131_v14 = vmul.f32 0.01, %v2277_v34  ;;  %vm2811_vm0 = vcmp.ge.f32.partialorder %v2277_v34, 0.0  ;;  %15849 = vst [vmem:[#allocation123_spill] sm:$0xff] %v10883_v39 }
 0x291   : > { %15844 = vst [vmem:[#allocation118_spill] sm:$0xff] %v10864_v20 }
 0x292   : > { %8139 = vmatmul.mubr.msk.bf16.gmra.mrb[28].mxu0 %vm1554_vm1, %v9306_v25  ;;  %v8542_v56 = vpop.f32.mrb[28].mxu1  ;;  %v3133_v48 = vmul.f32 0.01, %v2281_v24  ;;  %vm2813_vm13 = vcmp.ge.f32.partialorder %v2281_v24, 0.0 }
 0x293   : > { %v3917_v0 = vadd.f32 %v8542_v56, %v10652_v31  ;;  %v3908_v54 = vpop.f32.mrb[29].mxu1  ;;  %2554 = vmatprep.mubr.bf16.mxu0 %v15794_v33 }
 0x294   : > { %v3909_v53 = vadd.f32 %v10652_v31, %v3908_v54  ;;  %v8543_v10 = vpop.f32.mrb[30].mxu1 }
 0x295   : > { %vm4453_vm14 = vcmp.ge.f32.partialorder %v3917_v0, 0.0  ;;  %v4613_v47 = vmul.f32 0.01, %v3917_v0  ;;  %v3920_v57 = vadd.f32 %v8543_v10, %v10652_v31  ;;  %v2286_v25 = vpop.f32.mrb[180].mxu0  ;;  %v3911_v28 = vpop.f32.mrb[31].mxu1  ;;  %v9309_v10 = vld [vmem:[%s10150_s23 + $0x250] sm:$0xff]  }
 0x296   : > { %vm4451_vm15 = vcmp.ge.f32.partialorder %v3909_v53, 0.0  ;;  %v4611_v23 = vmul.f32 0.01, %v3909_v53  ;;  %v2287_v56 = vadd.f32 %v2286_v25, %v10269_v62  ;;  %v3912_v20 = vadd.f32 %v10652_v31, %v3911_v28  ;;  %v10877_v12 = vpop.f32.mrb[181].mxu0 }
 0x297   : > { %15847 = vst [vmem:[#allocation121_spill] sm:$0xff] %v10877_v12  ;;  %v10880_v51 = vsel %vm4453_vm14, %v3917_v0, %v4613_v47  ;;  %vm4454_vm2 = vcmp.ge.f32.partialorder %v3920_v57, 0.0  ;;  %v4614_v54 = vmul.f32 0.01, %v3920_v57  ;;  %v2290_v44 = vpop.f32.mrb[182].mxu0  ;;  %v3453_v25 = vsel %vm2813_vm13, %v2281_v24, %v3133_v48 }
 0x298   : > { %15848 = vst [vmem:[#allocation122_spill] sm:$0xff] %v10880_v51  ;;  %v10887_v30 = vsel %vm4451_vm15, %v3909_v53, %v4611_v23  ;;  %v10890_v28 = vpop.f32.mrb[183].mxu0  ;;  %vm4452_vm3 = vcmp.ge.f32.partialorder %v3912_v20, 0.0  ;;  %v4612_v47 = vmul.f32 0.01, %v3912_v20  ;;  %v2291_v26 = vadd.f32 %v2290_v44, %v10269_v62 }
 0x299   : > { %15850 = vst [vmem:[#allocation124_spill] sm:$0xff] %v10887_v30  ;;  %15851 = vst [vmem:[#allocation125_spill] sm:$0xff] %v10890_v28  ;;  %v10894_v0 = vsel %vm4454_vm2, %v3920_v57, %v4614_v54  ;;  %v3135_v50 = vmul.f32 0.01, %v2287_v56  ;;  %v3451_v53 = vsel %vm2811_vm0, %v2277_v34, %v3131_v14  ;;  %v10902_v24 = vsel %vm4436_vm12, %v3848_v5, %v4596_v60  ;;  %v9308_v14 = vld [vmem:[%s10150_s23 + $0x248] sm:$0xff]  }
 0x29a   : > { %15852 = vst [vmem:[#allocation126_spill] sm:$0xff] %v10894_v0  ;;  %8140 = vmatmul.mubr.msk.bf16.gmra.mrb[32].mxu0 %vm1554_vm1, %v9307_v36  ;;  %15853 = vst [vmem:[#allocation127_spill] sm:$0xff] %v10902_v24  ;;  %vm2815_vm4 = vcmp.ge.f32.partialorder %v2287_v56, 0.0  ;;  %v10904_v48 = vsel %vm4452_vm3, %v3912_v20, %v4612_v47  ;;  %v3639_v57 = vpack.c.bf16 %v3453_v25, %v3451_v53  ;;  %vm2817_vm5 = vcmp.ge.f32.partialorder %v2291_v26, 0.0 }
 0x29b   : > { %15854 = vst [vmem:[#allocation128_spill] sm:$0xff] %v10904_v48  ;;  %2564 = vmatprep.mubr.bf16.mxu0 %v15794_v33  ;;  %v3137_v54 = vmul.f32 0.01, %v2291_v26  ;;  %v3455_v34 = vsel %vm2815_vm4, %v2287_v56, %v3135_v50 }
 0x29c   : > { %8596 = vmatprep.mubr.bf16.mxu1 %v3639_v57 }
 0x29d   : > { %v2296_v44 = vpop.f32.mrb[184].mxu0  ;;  %v3457_v36 = vsel %vm2817_vm5, %v2291_v26, %v3137_v54 }
 0x29e   : > { %v10909_v37 = vpop.f32.mrb[185].mxu0  ;;  %v3640_v60 = vpack.c.bf16 %v3457_v36, %v3455_v34  ;;  %v2297_v20 = vadd.f32 %v2296_v44, %v10269_v62 }
 0x29f   : > { %15855 = vst [vmem:[#allocation129_spill] sm:$0xff] %v10909_v37  ;;  %v2300_v5 = vpop.f32.mrb[186].mxu0 }
 0x2a0   : > { %v2301_v25 = vadd.f32 %v2300_v5, %v10269_v62  ;;  %v10914_v47 = vpop.f32.mrb[187].mxu0  ;;  %8597 = vmatmul.mubr.bf16.gmra.mrb[84].mxu1 %v3640_v60  ;;  %v3139_v26 = vmul.f32 0.01, %v2297_v20  ;;  %vm2819_vm9 = vcmp.ge.f32.partialorder %v2297_v20, 0.0 }
 0x2a1   : > { %15856 = vst [vmem:[#allocation130_spill] sm:$0xff] %v10914_v47 }
 0x2a2   : > { %8141 = vmatmul.mubr.msk.bf16.gmra.mrb[36].mxu0 %vm1554_vm1, %v9308_v14  ;;  %v8546_v53 = vpop.f32.mrb[32].mxu1  ;;  %v3141_v56 = vmul.f32 0.01, %v2301_v25  ;;  %vm2821_vm6 = vcmp.ge.f32.partialorder %v2301_v25, 0.0 }
 0x2a3   : > { %v3933_v57 = vadd.f32 %v8546_v53, %v10652_v31  ;;  %v3924_v23 = vpop.f32.mrb[33].mxu1  ;;  %2574 = vmatprep.mubr.bf16.mxu0 %v15794_v33 }
 0x2a4   : > { %v3925_v50 = vadd.f32 %v10652_v31, %v3924_v23  ;;  %v8547_v54 = vpop.f32.mrb[34].mxu1 }
 0x2a5   : > { %vm4457_vm7 = vcmp.ge.f32.partialorder %v3933_v57, 0.0  ;;  %v4617_v44 = vmul.f32 0.01, %v3933_v57  ;;  %v3936_v34 = vadd.f32 %v8547_v54, %v10652_v31  ;;  %v2306_v36 = vpop.f32.mrb[188].mxu0  ;;  %v3927_v5 = vpop.f32.mrb[35].mxu1  ;;  %v15859_v54 = vmax.f32 %v10679_v40, %v10705_v49 }
 0x2a6   : > { %vm4455_vm8 = vcmp.ge.f32.partialorder %v3925_v50, 0.0  ;;  %v4615_v14 = vmul.f32 0.01, %v3925_v50  ;;  %v2307_v60 = vadd.f32 %v2306_v36, %v10269_v62  ;;  %v3928_v53 = vadd.f32 %v10652_v31, %v3927_v5  ;;  %v10923_v12 = vpop.f32.mrb[189].mxu0 }
 0x2a7   : > { %15857 = vst [vmem:[#allocation131_spill] sm:$0xff] %v10923_v12  ;;  %v10926_v47 = vsel %vm4457_vm7, %v3933_v57, %v4617_v44  ;;  %vm4458_vm10 = vcmp.ge.f32.partialorder %v3936_v34, 0.0  ;;  %v4618_v23 = vmul.f32 0.01, %v3936_v34  ;;  %v2310_v37 = vpop.f32.mrb[190].mxu0  ;;  %v3461_v36 = vsel %vm2821_vm6, %v2301_v25, %v3141_v56 }
 0x2a8   : > { %15858 = vst [vmem:[#allocation132_spill] sm:$0xff] %v10926_v47  ;;  %v10932_v28 = vmax.f32 %v15859_v54, %v10926_v47  ;;  %v10934_v18 = vsel %vm4455_vm8, %v3925_v50, %v4615_v14  ;;  %v10937_v5 = vpop.f32.mrb[191].mxu0  ;;  %v15862_v57 = vmax.f32 %v10681_v17, %v10711_v16  ;;  %vm4456_vm11 = vcmp.ge.f32.partialorder %v3928_v53, 0.0 }
 0x2a9   : > { %15860 = vst [vmem:[#allocation133_spill] sm:$0xff] %v10934_v18  ;;  %15861 = vst [vmem:[#allocation134_spill] sm:$0xff] %v10937_v5  ;;  %v10945_v12 = vsel %vm4458_vm10, %v3936_v34, %v4618_v23  ;;  %v4616_v13 = vmul.f32 0.01, %v3928_v53  ;;  %v15864_v54 = vmax.f32 %v10684_v55, %v10718_v15  ;;  %v3143_v14 = vmul.f32 0.01, %v2307_v60 }
 0x2aa   : > { %v10943_v44 = vmax.f32 %v15862_v57, %v10934_v18  ;;  %15863 = vst [vmem:[#allocation135_spill] sm:$0xff] %v10945_v12  ;;  %v2311_v25 = vadd.f32 %v2310_v37, %v10269_v62  ;;  %v3459_v56 = vsel %vm2819_vm9, %v2297_v20, %v3139_v26  ;;  %8142 = vmatmul.mubr.msk.bf16.gmra.mrb[40].mxu0 %vm1554_vm1, %v9309_v10  ;;  %vm2823_vm12 = vcmp.ge.f32.partialorder %v2307_v60, 0.0  ;;  %v9310_v26 = vld [vmem:[%s10150_s23 + $0x258] sm:$0xff]  }
 0x2ab   : > { %v10951_v50 = vmax.f32 %v15864_v54, %v10945_v12  ;;  %v10956_v57 = vsel %vm4456_vm11, %v3928_v53, %v4616_v13  ;;  %v3641_v34 = vpack.c.bf16 %v3461_v36, %v3459_v56  ;;  %2584 = vmatprep.mubr.bf16.mxu0 %v15794_v33  ;;  %v15866_v23 = vmax.f32 %v10686_v63, %v10727_v58  ;;  %v9311_v63 = vld [vmem:[%s10150_s23 + $0x260] sm:$0xff]  }
 0x2ac   : > { %15865 = vst [vmem:[#allocation136_spill] sm:$0xff] %v10956_v57  ;;  %vm2825_vm13 = vcmp.ge.f32.partialorder %v2311_v25, 0.0  ;;  %v3145_v12 = vmul.f32 0.01, %v2311_v25  ;;  %v3463_v20 = vsel %vm2823_vm12, %v2307_v60, %v3143_v14 }
 0x2ad   : > { %v10963_v54 = vmax.f32 %v15866_v23, %v10956_v57  ;;  %8600 = vmatprep.mubr.bf16.mxu1 %v3641_v34  ;;  %v2316_v37 = vpop.f32.mrb[192].mxu0 }
 0x2ae   : > { %v10965_v15 = vpop.f32.mrb[193].mxu0  ;;  %v3465_v10 = vsel %vm2825_vm13, %v2311_v25, %v3145_v12  ;;  %v2317_v36 = vadd.f32 %v2316_v37, %v10269_v62 }
 0x2af   : > { %15867 = vst [vmem:[#allocation137_spill] sm:$0xff] %v10965_v15  ;;  %v2320_v13 = vpop.f32.mrb[194].mxu0  ;;  %v3642_v53 = vpack.c.bf16 %v3465_v10, %v3463_v20 }
 0x2b0   : > { %v2321_v56 = vadd.f32 %v2320_v13, %v10269_v62  ;;  %v10970_v55 = vpop.f32.mrb[195].mxu0  ;;  %v3147_v12 = vmul.f32 0.01, %v2317_v36  ;;  %vm2827_vm2 = vcmp.ge.f32.partialorder %v2317_v36, 0.0 }
 0x2b1   : > { %15868 = vst [vmem:[#allocation138_spill] sm:$0xff] %v10970_v55  ;;  %8601 = vmatmul.mubr.bf16.gmra.mrb[88].mxu1 %v3642_v53 }
 0x2b2   : > { %8143 = vmatmul.mubr.msk.bf16.gmra.mrb[44].mxu0 %vm1554_vm1, %v9310_v26  ;;  %v8550_v23 = vpop.f32.mrb[36].mxu1  ;;  %v3149_v60 = vmul.f32 0.01, %v2321_v56  ;;  %vm2829_vm14 = vcmp.ge.f32.partialorder %v2321_v56, 0.0 }
 0x2b3   : > { %v3949_v34 = vadd.f32 %v8550_v23, %v10652_v31  ;;  %v3940_v57 = vpop.f32.mrb[37].mxu1  ;;  %2594 = vmatprep.mubr.bf16.mxu0 %v15794_v33 }
 0x2b4   : > { %v3941_v14 = vadd.f32 %v10652_v31, %v3940_v57  ;;  %v8551_v25 = vpop.f32.mrb[38].mxu1 }
 0x2b5   : > { %vm4461_vm15 = vcmp.ge.f32.partialorder %v3949_v34, 0.0  ;;  %v4621_v37 = vmul.f32 0.01, %v3949_v34  ;;  %v3952_v20 = vadd.f32 %v8551_v25, %v10652_v31  ;;  %v2326_v10 = vpop.f32.mrb[196].mxu0  ;;  %v3943_v13 = vpop.f32.mrb[39].mxu1  ;;  %v15871_v25 = vmax.f32 %v10746_v59, %v10769_v2 }
 0x2b6   : > { %vm4459_vm0 = vcmp.ge.f32.partialorder %v3941_v14, 0.0  ;;  %v4619_v26 = vmul.f32 0.01, %v3941_v14  ;;  %v2327_v53 = vadd.f32 %v2326_v10, %v10269_v62  ;;  %v3944_v23 = vadd.f32 %v10652_v31, %v3943_v13  ;;  %v10979_v58 = vpop.f32.mrb[197].mxu0 }
 0x2b7   : > { %15869 = vst [vmem:[#allocation139_spill] sm:$0xff] %v10979_v58  ;;  %v10982_v18 = vsel %vm4461_vm15, %v3949_v34, %v4621_v37  ;;  %vm4462_vm3 = vcmp.ge.f32.partialorder %v3952_v20, 0.0  ;;  %v4622_v57 = vmul.f32 0.01, %v3952_v20  ;;  %v2330_v16 = vpop.f32.mrb[198].mxu0  ;;  %v3469_v10 = vsel %vm2829_vm14, %v2321_v56, %v3149_v60  ;;  %v16081_v58 = vld [vmem:[#allocation41_spill] sm:$0xff] }
 0x2b8   : > { %15870 = vst [vmem:[#allocation140_spill] sm:$0xff] %v10982_v18  ;;  %v10988_v17 = vmax.f32 %v15871_v25, %v10982_v18  ;;  %v10990_v47 = vsel %vm4459_vm0, %v3941_v14, %v4619_v26  ;;  %v10993_v13 = vpop.f32.mrb[199].mxu0  ;;  %v15874_v34 = vmax.f32 %v10750_v19, %v10775_v45  ;;  %vm4460_vm4 = vcmp.ge.f32.partialorder %v3944_v23, 0.0 }
 0x2b9   : > { %15872 = vst [vmem:[#allocation141_spill] sm:$0xff] %v10990_v47  ;;  %15873 = vst [vmem:[#allocation142_spill] sm:$0xff] %v10993_v13  ;;  %v11001_v49 = vsel %vm4462_vm3, %v3952_v20, %v4622_v57  ;;  %v4620_v40 = vmul.f32 0.01, %v3944_v23  ;;  %v15876_v25 = vmax.f32 %v10752_v61, %v10782_v27  ;;  %v3151_v26 = vmul.f32 0.01, %v2327_v53 }
 0x2ba   : > { %v10999_v37 = vmax.f32 %v15874_v34, %v10990_v47  ;;  %15875 = vst [vmem:[#allocation143_spill] sm:$0xff] %v11001_v49  ;;  %v2331_v56 = vadd.f32 %v2330_v16, %v10269_v62  ;;  %v3467_v60 = vsel %vm2827_vm2, %v2317_v36, %v3147_v12  ;;  %8144 = vmatmul.mubr.msk.bf16.gmra.mrb[48].mxu0 %vm1554_vm1, %v9311_v63  ;;  %vm2831_vm5 = vcmp.ge.f32.partialorder %v2327_v53, 0.0  ;;  %v9312_v12 = vld [vmem:[%s10150_s23 + $0x268] sm:$0xff]  }
 0x2bb   : > { %v11007_v14 = vmax.f32 %v15876_v25, %v11001_v49  ;;  %v11012_v34 = vsel %vm4460_vm4, %v3944_v23, %v4620_v40  ;;  %v3643_v20 = vpack.c.bf16 %v3469_v10, %v3467_v60  ;;  %2604 = vmatprep.mubr.bf16.mxu0 %v15794_v33  ;;  %v15878_v57 = vmax.f32 %v10754_v46, %v10791_v43  ;;  %v9313_v46 = vld [vmem:[%s10150_s23 + $0x270] sm:$0xff]  }
 0x2bc   : > { %15877 = vst [vmem:[#allocation144_spill] sm:$0xff] %v11012_v34  ;;  %vm2833_vm6 = vcmp.ge.f32.partialorder %v2331_v56, 0.0  ;;  %v3153_v49 = vmul.f32 0.01, %v2331_v56  ;;  %v3471_v36 = vsel %vm2831_vm5, %v2327_v53, %v3151_v26  ;;  %v2019_v55 = vadd.f32 %v16081_v58, %v10198_v38  ;;  %v16084_v58 = vld [vmem:[#allocation43_spill] sm:$0xff] }
 0x2bd   : > { %v11019_v25 = vmax.f32 %v15878_v57, %v11012_v34  ;;  %8604 = vmatprep.mubr.bf16.mxu1 %v3643_v20  ;;  %v2336_v16 = vpop.f32.mrb[200].mxu0 }
 0x2be   : > { %v11021_v27 = vpop.f32.mrb[201].mxu0  ;;  %v3473_v63 = vsel %vm2833_vm6, %v2331_v56, %v3153_v49  ;;  %v2337_v10 = vadd.f32 %v2336_v16, %v10269_v62 }
 0x2bf   : > { %15879 = vst [vmem:[#allocation145_spill] sm:$0xff] %v11021_v27  ;;  %v2340_v40 = vpop.f32.mrb[202].mxu0  ;;  %v3644_v23 = vpack.c.bf16 %v3473_v63, %v3471_v36 }
 0x2c0   : > { %v2341_v60 = vadd.f32 %v2340_v40, %v10269_v62  ;;  %v11026_v61 = vpop.f32.mrb[203].mxu0  ;;  %v3155_v49 = vmul.f32 0.01, %v2337_v10  ;;  %vm2835_vm10 = vcmp.ge.f32.partialorder %v2337_v10, 0.0 }
 0x2c1   : > { %15880 = vst [vmem:[#allocation146_spill] sm:$0xff] %v11026_v61  ;;  %8605 = vmatmul.mubr.bf16.gmra.mrb[92].mxu1 %v3644_v23 }
 0x2c2   : > { %8145 = vmatmul.mubr.msk.bf16.gmra.mrb[52].mxu0 %vm1554_vm1, %v9312_v12  ;;  %v8554_v57 = vpop.f32.mrb[40].mxu1  ;;  %v3157_v53 = vmul.f32 0.01, %v2341_v60  ;;  %vm2837_vm7 = vcmp.ge.f32.partialorder %v2341_v60, 0.0 }
 0x2c3   : > { %v3965_v20 = vadd.f32 %v8554_v57, %v10652_v31  ;;  %v3956_v34 = vpop.f32.mrb[41].mxu1  ;;  %2614 = vmatprep.mubr.bf16.mxu0 %v15794_v33 }
 0x2c4   : > { %v3957_v26 = vadd.f32 %v10652_v31, %v3956_v34  ;;  %v8555_v56 = vpop.f32.mrb[42].mxu1 }
 0x2c5   : > { %vm4465_vm8 = vcmp.ge.f32.partialorder %v3965_v20, 0.0  ;;  %v4625_v16 = vmul.f32 0.01, %v3965_v20  ;;  %v3968_v36 = vadd.f32 %v8555_v56, %v10652_v31  ;;  %v2346_v63 = vpop.f32.mrb[204].mxu0  ;;  %v3959_v40 = vpop.f32.mrb[43].mxu1  ;;  %v15883_v56 = vmax.f32 %v10811_v29, %v10828_v11 }
 0x2c6   : > { %vm4463_vm9 = vcmp.ge.f32.partialorder %v3957_v26, 0.0  ;;  %v4623_v12 = vmul.f32 0.01, %v3957_v26  ;;  %v2347_v23 = vadd.f32 %v2346_v63, %v10269_v62  ;;  %v3960_v57 = vadd.f32 %v10652_v31, %v3959_v40  ;;  %v11035_v43 = vpop.f32.mrb[205].mxu0 }
 0x2c7   : > { %15881 = vst [vmem:[#allocation147_spill] sm:$0xff] %v11035_v43  ;;  %v11038_v47 = vsel %vm4465_vm8, %v3965_v20, %v4625_v16  ;;  %vm4466_vm11 = vcmp.ge.f32.partialorder %v3968_v36, 0.0  ;;  %v4626_v34 = vmul.f32 0.01, %v3968_v36  ;;  %v2350_v45 = vpop.f32.mrb[206].mxu0  ;;  %v3477_v63 = vsel %vm2837_vm7, %v2341_v60, %v3157_v53 }
 0x2c8   : > { %15882 = vst [vmem:[#allocation148_spill] sm:$0xff] %v11038_v47  ;;  %v11044_v19 = vmax.f32 %v15883_v56, %v11038_v47  ;;  %v11046_v18 = vsel %vm4463_vm9, %v3957_v26, %v4623_v12  ;;  %v11049_v40 = vpop.f32.mrb[207].mxu0  ;;  %v15886_v20 = vmax.f32 %v10813_v52, %v10834_v7  ;;  %vm4464_vm12 = vcmp.ge.f32.partialorder %v3960_v57, 0.0 }
 0x2c9   : > { %15884 = vst [vmem:[#allocation149_spill] sm:$0xff] %v11046_v18  ;;  %15885 = vst [vmem:[#allocation150_spill] sm:$0xff] %v11049_v40  ;;  %v11057_v2 = vsel %vm4466_vm11, %v3968_v36, %v4626_v34  ;;  %v4624_v59 = vmul.f32 0.01, %v3960_v57  ;;  %v15888_v56 = vmax.f32 %v10815_v3, %v10841_v32  ;;  %v3159_v12 = vmul.f32 0.01, %v2347_v23 }
 0x2ca   : > { %v11055_v16 = vmax.f32 %v15886_v20, %v11046_v18  ;;  %15887 = vst [vmem:[#allocation151_spill] sm:$0xff] %v11057_v2  ;;  %v2351_v60 = vadd.f32 %v2350_v45, %v10269_v62  ;;  %v3475_v53 = vsel %vm2835_vm10, %v2337_v10, %v3155_v49  ;;  %8146 = vmatmul.mubr.msk.bf16.gmra.mrb[56].mxu0 %vm1554_vm1, %v9313_v46  ;;  %vm2839_vm13 = vcmp.ge.f32.partialorder %v2347_v23, 0.0  ;;  %v9314_v49 = vld [vmem:[%s10150_s23 + $0x278] sm:$0xff]   ;;  %s8241_s23 = sshll.u32 %s7889_s9, 7 }
 0x2cb   : > { %v11063_v26 = vmax.f32 %v15888_v56, %v11057_v2  ;;  %v11068_v20 = vsel %vm4464_vm12, %v3960_v57, %v4624_v59  ;;  %v3645_v36 = vpack.c.bf16 %v3477_v63, %v3475_v53  ;;  %2624 = vmatprep.mubr.bf16.mxu0 %v15794_v33  ;;  %v15890_v34 = vmax.f32 %v10819_v42, %v10850_v41  ;;  %s15318_s13 = scalar_lea.hbm %s15381_s7, %s8241_s23 }
 0x2cc   : > { %15889 = vst [vmem:[#allocation152_spill] sm:$0xff] %v11068_v20  ;;  %vm2841_vm14 = vcmp.ge.f32.partialorder %v2351_v60, 0.0  ;;  %v3161_v2 = vmul.f32 0.01, %v2351_v60  ;;  %v3479_v10 = vsel %vm2839_vm13, %v2347_v23, %v3159_v12  ;;  %v15896_v41 = vmax.f32 %v10880_v51, %v10866_v35 }
 0x2cd   : > { %v11075_v56 = vmax.f32 %v15890_v34, %v11068_v20  ;;  %8608 = vmatprep.mubr.bf16.mxu1 %v3645_v36  ;;  %v2356_v45 = vpop.f32.mrb[208].mxu0  ;;  %v15893_v20 = vpack.c.bf16 %v10283_v9, %v10281_v8  ;;  %v11095_v8 = vld [vmem:[%s15378_s4] ss:$0 sm:$0xff]  ;;  %v15902_v52 = vpack.c.bf16 %v10298_v22, %v10296_v21 }
 0x2ce   : > { %v11077_v32 = vpop.f32.mrb[209].mxu0  ;;  %v3481_v46 = vsel %vm2841_vm14, %v2351_v60, %v3161_v2  ;;  %v2357_v63 = vadd.f32 %v2356_v45, %v10269_v62 }
 0x2cf   : > { %15891 = vst [vmem:[#allocation153_spill] sm:$0xff] %v11077_v32  ;;  %v2360_v59 = vpop.f32.mrb[210].mxu0  ;;  %v3646_v57 = vpack.c.bf16 %v3481_v46, %v3479_v10 }
 0x2d0   : > { %v2361_v33 = vadd.f32 %v2360_v59, %v10269_v62  ;;  %v11082_v53 = vpop.f32.mrb[211].mxu0  ;;  %v3163_v23 = vmul.f32 0.01, %v2357_v63  ;;  %vm2843_vm2 = vcmp.ge.f32.partialorder %v2357_v63, 0.0 }
 0x2d1   : > { %15892 = vst [vmem:[#allocation154_spill] sm:$0xff] %v11082_v53  ;;  %8609 = vmatmul.mubr.bf16.gmra.mrb[96].mxu1 %v3646_v57 }
 0x2d2   : > { %8147 = vmatmul.mubr.msk.bf16.gmra.mrb[60].mxu0 %vm1554_vm1, %v9314_v49  ;;  %v8558_v34 = vpop.f32.mrb[44].mxu1  ;;  %v3165_v12 = vmul.f32 0.01, %v2361_v33  ;;  %vm2845_vm15 = vcmp.ge.f32.partialorder %v2361_v33, 0.0 }
 0x2d3   : > { %v3981_v36 = vadd.f32 %v8558_v34, %v10652_v31  ;;  %8508 = vmatprep.mubr.bf16.mxu0 %v15893_v20  ;;  %v3972_v2 = vpop.f32.mrb[45].mxu1 }
 0x2d4   : > { %v3973_v60 = vadd.f32 %v10652_v31, %v3972_v2  ;;  %v8559_v45 = vpop.f32.mrb[46].mxu1  ;;  %v3485_v3 = vsel %vm2845_vm15, %v2361_v33, %v3165_v12  ;;  %v3483_v12 = vsel %vm2843_vm2, %v2357_v63, %v3163_v23 }
 0x2d5   : > { %vm4469_vm0 = vcmp.ge.f32.partialorder %v3981_v36, 0.0  ;;  %v4629_v10 = vmul.f32 0.01, %v3981_v36  ;;  %v3984_v46 = vadd.f32 %v8559_v45, %v10652_v31  ;;  %v2366_v59 = vpop.f32.mrb[212].mxu0  ;;  %v3975_v49 = vpop.f32.mrb[47].mxu1 }
 0x2d6   : > { %vm4467_vm1 = vcmp.ge.f32.partialorder %v3973_v60, 0.0  ;;  %v4627_v57 = vmul.f32 0.01, %v3973_v60  ;;  %v2367_v34 = vadd.f32 %v2366_v59, %v10269_v62  ;;  %v3976_v9 = vadd.f32 %v11095_v8, %v3975_v49  ;;  %v11098_v20 = vpop.f32.mrb[213].mxu0 }
 0x2d7   : > { %15894 = vst [vmem:[#allocation155_spill] sm:$0xff] %v11098_v20  ;;  %v11100_v2 = vsel %vm4469_vm0, %v3981_v36, %v4629_v10  ;;  %vm4470_vm3 = vcmp.ge.f32.partialorder %v3984_v46, 0.0  ;;  %v4630_v31 = vmul.f32 0.01, %v3984_v46  ;;  %v2370_v45 = vpop.f32.mrb[214].mxu0  ;;  %v15899_v36 = vmax.f32 %v10887_v30, %v10869_v4 }
 0x2d8   : > { %15895 = vst [vmem:[#allocation156_spill] sm:$0xff] %v11100_v2  ;;  %v11106_v59 = vmax.f32 %v15896_v41, %v11100_v2  ;;  %v11108_v42 = vsel %vm4467_vm1, %v3973_v60, %v4627_v57  ;;  %v11111_v18 = vpop.f32.mrb[215].mxu0  ;;  %vm4468_vm4 = vcmp.ge.f32.partialorder %v3976_v9, 0.0  ;;  %v4628_v7 = vmul.f32 0.01, %v3976_v9 }
 0x2d9   : > { %15897 = vst [vmem:[#allocation157_spill] sm:$0xff] %v11108_v42  ;;  %15898 = vst [vmem:[#allocation158_spill] sm:$0xff] %v11111_v18  ;;  %v11117_v10 = vmax.f32 %v15899_v36, %v11108_v42  ;;  %v11119_v49 = vsel %vm4470_vm3, %v3984_v46, %v4630_v31  ;;  %v15901_v41 = vmax.f32 %v10894_v0, %v10883_v39  ;;  %v3167_v57 = vmul.f32 0.01, %v2367_v34 }
 0x2da   : > { %15900 = vst [vmem:[#allocation159_spill] sm:$0xff] %v11119_v49  ;;  %v2371_v33 = vadd.f32 %v2370_v45, %v10269_v62  ;;  %8509 = vmatmul.mubr.bf16.vlgmr.msra.gmra.mrb[64].mxu0 %v15902_v52  ;;  %vm2847_vm5 = vcmp.ge.f32.partialorder %v2367_v34, 0.0  ;;  %v11132_v46 = vsel %vm4468_vm4, %v3976_v9, %v4628_v7  ;;  %v3647_v31 = vpack.c.bf16 %v3485_v3, %v3483_v12 }
 0x2db   : > { %v11125_v60 = vmax.f32 %v15901_v41, %v11119_v49  ;;  %15903 = vst [vmem:[#allocation160_spill] sm:$0xff] %v11132_v46  ;;  %v15904_v36 = vmax.f32 %v10904_v48, %v10902_v24  ;;  %v3487_v63 = vsel %vm2847_vm5, %v2367_v34, %v3167_v57 }
 0x2dc   : > { %vm2849_vm6 = vcmp.ge.f32.partialorder %v2371_v33, 0.0  ;;  %v3169_v41 = vmul.f32 0.01, %v2371_v33  ;;  %8612 = vmatprep.mubr.bf16.mxu1 %v3647_v31 }
 0x2dd   : > { %v11138_v47 = vmax.f32 %v15904_v36, %v11132_v46  ;;  %v2376_v45 = vpop.f32.mrb[216].mxu0 }
 0x2de   : > { %v11140_v11 = vpop.f32.mrb[217].mxu0  ;;  %v3489_v23 = vsel %vm2849_vm6, %v2371_v33, %v3169_v41  ;;  %v2377_v7 = vadd.f32 %v2376_v45, %v10269_v62 }
 0x2df   : > { %15905 = vst [vmem:[#allocation161_spill] sm:$0xff] %v11140_v11  ;;  %v2380_v21 = vpop.f32.mrb[218].mxu0  ;;  %v3648_v22 = vpack.c.bf16 %v3489_v23, %v3487_v63 }
 0x2e0   : > { %v2381_v52 = vadd.f32 %v2380_v21, %v10269_v62  ;;  %v11144_v3 = vpop.f32.mrb[219].mxu0  ;;  %v3171_v29 = vmul.f32 0.01, %v2377_v7  ;;  %vm2851_vm10 = vcmp.ge.f32.partialorder %v2377_v7, 0.0 }
 0x2e1   : > { %15906 = vst [vmem:[#allocation162_spill] sm:$0xff] %v11144_v3  ;;  %8613 = vmatmul.mubr.bf16.gmra.mrb[100].mxu1 %v3648_v22 }
 0x2e2   : > { %v8562_v9 = vpop.f32.mrb[48].mxu1  ;;  %v3173_v31 = vmul.f32 0.01, %v2381_v52  ;;  %vm2853_vm7 = vcmp.ge.f32.partialorder %v2381_v52, 0.0 }
 0x2e3   : > { %v3997_v12 = vadd.f32 %v11095_v8, %v8562_v9  ;;  %v3988_v36 = vpop.f32.mrb[49].mxu1 }
 0x2e4   : > { %v3989_v46 = vadd.f32 %v11095_v8, %v3988_v36  ;;  %v8563_v48 = vpop.f32.mrb[50].mxu1  ;;  %v3493_v49 = vsel %vm2853_vm7, %v2381_v52, %v3173_v31 }
 0x2e5   : > { %vm4473_vm8 = vcmp.ge.f32.partialorder %v3997_v12, 0.0  ;;  %v4633_v34 = vmul.f32 0.01, %v3997_v12  ;;  %v4000_v57 = vadd.f32 %v11095_v8, %v8563_v48  ;;  %v2386_v33 = vpop.f32.mrb[220].mxu0  ;;  %v3991_v41 = vpop.f32.mrb[51].mxu1 }
 0x2e6   : > { %vm4471_vm9 = vcmp.ge.f32.partialorder %v3989_v46, 0.0  ;;  %v4631_v45 = vmul.f32 0.01, %v3989_v46  ;;  %v2387_v63 = vadd.f32 %v2386_v33, %v10269_v62  ;;  %v3992_v23 = vadd.f32 %v11095_v8, %v3991_v41  ;;  %v11151_v21 = vpop.f32.mrb[221].mxu0 }
 0x2e7   : > { %15907 = vst [vmem:[#allocation163_spill] sm:$0xff] %v11151_v21  ;;  %v11153_v22 = vsel %vm4473_vm8, %v3997_v12, %v4633_v34  ;;  %vm4474_vm11 = vcmp.ge.f32.partialorder %v4000_v57, 0.0  ;;  %v4634_v9 = vmul.f32 0.01, %v4000_v57  ;;  %v2390_v36 = vpop.f32.mrb[222].mxu0 }
 0x2e8   : > { %15908 = vst [vmem:[#allocation164_spill] sm:$0xff] %v11153_v22  ;;  %v11157_v48 = vsel %vm4471_vm9, %v3989_v46, %v4631_v45  ;;  %v11160_v0 = vpop.f32.mrb[223].mxu0  ;;  %vm4472_vm12 = vcmp.ge.f32.partialorder %v3992_v23, 0.0  ;;  %v4632_v12 = vmul.f32 0.01, %v3992_v23  ;;  %v2391_v42 = vadd.f32 %v2390_v36, %v10269_v62 }
 0x2e9   : > { %15909 = vst [vmem:[#allocation165_spill] sm:$0xff] %v11157_v48  ;;  %15910 = vst [vmem:[#allocation166_spill] sm:$0xff] %v11160_v0  ;;  %v11164_v41 = vsel %vm4474_vm11, %v4000_v57, %v4634_v9  ;;  %v3175_v39 = vmul.f32 0.01, %v2387_v63  ;;  %v3491_v46 = vsel %vm2851_vm10, %v2377_v7, %v3171_v29  ;;  %vm2855_vm13 = vcmp.ge.f32.partialorder %v2387_v63, 0.0 }
 0x2ea   : > { %15911 = vst [vmem:[#allocation167_spill] sm:$0xff] %v11164_v41  ;;  %v11170_v45 = vsel %vm4472_vm12, %v3992_v23, %v4632_v12  ;;  %v3649_v52 = vpack.c.bf16 %v3493_v49, %v3491_v46  ;;  %vm2857_vm14 = vcmp.ge.f32.partialorder %v2391_v42, 0.0  ;;  %v3177_v57 = vmul.f32 0.01, %v2391_v42 }
 0x2eb   : > { %15912 = vst [vmem:[#allocation168_spill] sm:$0xff] %v11170_v45  ;;  %v3495_v24 = vsel %vm2855_vm13, %v2387_v63, %v3175_v39  ;;  %v9315_v39 = vld [vmem:[%s15379_s5] sm:$0xff]  }
 0x2ec   : > { %8616 = vmatprep.mubr.bf16.mxu1 %v3649_v52  ;;  %v3497_v34 = vsel %vm2857_vm14, %v2391_v42, %v3177_v57  ;;  %8668 = vmatprep.subr.bf16.mxu1 %v9315_v39 }
 0x2ed   : > { %v2396_v9 = vpop.f32.mrb[224].mxu0  ;;  %v3650_v4 = vpack.c.bf16 %v3497_v34, %v3495_v24  ;;  %8669 = vmatpush3.bf16.msra.mxu1 %v9315_v39 }
 0x2ee   : > { %v11174_v33 = vpop.f32.mrb[225].mxu0  ;;  %v2397_v36 = vadd.f32 %v2396_v9, %v10269_v62 }
 0x2ef   : > { %15913 = vst [vmem:[#allocation169_spill] sm:$0xff] %v11174_v33  ;;  %v2400_v30 = vpop.f32.mrb[226].mxu0  ;;  %8617 = vmatmul.mubr.bf16.gmra.mrb[104].mxu1 %v3650_v4 }
 0x2f0   : > { %v2401_v29 = vadd.f32 %v2400_v30, %v10269_v62  ;;  %v11178_v7 = vpop.f32.mrb[227].mxu0  ;;  %v3179_v46 = vmul.f32 0.01, %v2397_v36  ;;  %vm2859_vm2 = vcmp.ge.f32.partialorder %v2397_v36, 0.0 }
 0x2f1   : > { %15914 = vst [vmem:[#allocation170_spill] sm:$0xff] %v11178_v7 }
 0x2f2   : > { %v8566_v49 = vpop.f32.mrb[52].mxu1  ;;  %v3181_v52 = vmul.f32 0.01, %v2401_v29  ;;  %vm2861_vm15 = vcmp.ge.f32.partialorder %v2401_v29, 0.0 }
 0x2f3   : > { %v4013_v23 = vadd.f32 %v11095_v8, %v8566_v49  ;;  %v4004_v12 = vpop.f32.mrb[53].mxu1 }
 0x2f4   : > { %v4005_v31 = vadd.f32 %v11095_v8, %v4004_v12  ;;  %v8567_v2 = vpop.f32.mrb[54].mxu1  ;;  %v3501_v7 = vsel %vm2861_vm15, %v2401_v29, %v3181_v52 }
 0x2f5   : > { %vm4477_vm0 = vcmp.ge.f32.partialorder %v4013_v23, 0.0  ;;  %v4637_v42 = vmul.f32 0.01, %v4013_v23  ;;  %v4016_v30 = vadd.f32 %v11095_v8, %v8567_v2  ;;  %v2406_v24 = vpop.f32.mrb[228].mxu0  ;;  %v4007_v4 = vpop.f32.mrb[55].mxu1 }
 0x2f6   : > { %vm4475_vm1 = vcmp.ge.f32.partialorder %v4005_v31, 0.0  ;;  %v4635_v63 = vmul.f32 0.01, %v4005_v31  ;;  %v2407_v34 = vadd.f32 %v2406_v24, %v10269_v62  ;;  %v4008_v57 = vadd.f32 %v11095_v8, %v4007_v4  ;;  %v11188_v9 = vpop.f32.mrb[229].mxu0 }
 0x2f7   : > { %15915 = vst [vmem:[#allocation171_spill] sm:$0xff] %v11188_v9  ;;  %v11190_v49 = vsel %vm4477_vm0, %v4013_v23, %v4637_v42  ;;  %vm4478_vm3 = vcmp.ge.f32.partialorder %v4016_v30, 0.0  ;;  %v4638_v12 = vmul.f32 0.01, %v4016_v30  ;;  %v2410_v51 = vpop.f32.mrb[230].mxu0 }
 0x2f8   : > { %15916 = vst [vmem:[#allocation172_spill] sm:$0xff] %v11190_v49  ;;  %v11194_v35 = vsel %vm4475_vm1, %v4005_v31, %v4635_v63  ;;  %v11197_v24 = vpop.f32.mrb[231].mxu0  ;;  %vm4476_vm4 = vcmp.ge.f32.partialorder %v4008_v57, 0.0  ;;  %v4636_v23 = vmul.f32 0.01, %v4008_v57  ;;  %v2411_v33 = vadd.f32 %v2410_v51, %v10269_v62 }
 0x2f9   : > { %15917 = vst [vmem:[#allocation173_spill] sm:$0xff] %v11194_v35  ;;  %15918 = vst [vmem:[#allocation174_spill] sm:$0xff] %v11197_v24  ;;  %v11201_v9 = vsel %vm4478_vm3, %v4016_v30, %v4638_v12  ;;  %v3183_v39 = vmul.f32 0.01, %v2407_v34  ;;  %v3499_v31 = vsel %vm2859_vm2, %v2397_v36, %v3179_v46  ;;  %vm2863_vm5 = vcmp.ge.f32.partialorder %v2407_v34, 0.0 }
 0x2fa   : > { %15919 = vst [vmem:[#allocation175_spill] sm:$0xff] %v11201_v9  ;;  %v11207_v63 = vsel %vm4476_vm4, %v4008_v57, %v4636_v23  ;;  %v3651_v29 = vpack.c.bf16 %v3501_v7, %v3499_v31  ;;  %vm2865_vm6 = vcmp.ge.f32.partialorder %v2411_v33, 0.0  ;;  %v3185_v30 = vmul.f32 0.01, %v2411_v33 }
 0x2fb   : > { %15920 = vst [vmem:[#allocation176_spill] sm:$0xff] %v11207_v63  ;;  %v3503_v42 = vsel %vm2863_vm5, %v2407_v34, %v3183_v39 }
 0x2fc   : > { %8620 = vmatprep.mubr.bf16.mxu1 %v3651_v29  ;;  %v3505_v24 = vsel %vm2865_vm6, %v2411_v33, %v3185_v30 }
 0x2fd   : > { %v2416_v12 = vpop.f32.mrb[232].mxu0  ;;  %v3652_v0 = vpack.c.bf16 %v3505_v24, %v3503_v42 }
 0x2fe   : > { %v2417_v4 = vadd.f32 %v2416_v12, %v10269_v62  ;;  %v11212_v2 = vpop.f32.mrb[233].mxu0 }
 0x2ff   : > { %15921 = vst [vmem:[#allocation177_spill] sm:$0xff] %v11212_v2  ;;  %v2420_v51 = vpop.f32.mrb[234].mxu0  ;;  %8621 = vmatmul.mubr.bf16.gmra.mrb[108].mxu1 %v3652_v0 }
 0x300   : > { %v3187_v36 = vmul.f32 0.01, %v2417_v4  ;;  %v2421_v46 = vadd.f32 %v2420_v51, %v10269_v62  ;;  %v11215_v57 = vpop.f32.mrb[235].mxu0  ;;  %vm2867_vm7 = vcmp.ge.f32.partialorder %v2417_v4, 0.0 }
 0x301   : > { %15922 = vst [vmem:[#allocation178_spill] sm:$0xff] %v11215_v57 }
 0x302   : > { %vm2869_vm8 = vcmp.ge.f32.partialorder %v2421_v46, 0.0  ;;  %v3189_v7 = vmul.f32 0.01, %v2421_v46  ;;  %v8570_v23 = vpop.f32.mrb[56].mxu1  ;;  %v3507_v31 = vsel %vm2867_vm7, %v2417_v4, %v3187_v36 }
 0x303   : > { %v4029_v12 = vadd.f32 %v11095_v8, %v8570_v23  ;;  %v4020_v52 = vpop.f32.mrb[57].mxu1 }
 0x304   : > { %v3509_v29 = vsel %vm2869_vm8, %v2421_v46, %v3189_v7  ;;  %v4021_v33 = vadd.f32 %v11095_v8, %v4020_v52  ;;  %v8571_v24 = vpop.f32.mrb[58].mxu1 }
 0x305   : > { %v2426_v2 = vpop.f32.mrb[236].mxu0  ;;  %v3653_v34 = vpack.c.bf16 %v3509_v29, %v3507_v31  ;;  %vm4481_vm9 = vcmp.ge.f32.partialorder %v4029_v12, 0.0  ;;  %v4641_v39 = vmul.f32 0.01, %v4029_v12  ;;  %v4032_v30 = vadd.f32 %v11095_v8, %v8571_v24  ;;  %v4023_v0 = vpop.f32.mrb[59].mxu1 }
 0x306   : > { %v11219_v42 = vpop.f32.mrb[237].mxu0  ;;  %vm4479_vm10 = vcmp.ge.f32.partialorder %v4021_v33, 0.0  ;;  %v4639_v4 = vmul.f32 0.01, %v4021_v33  ;;  %v2427_v36 = vadd.f32 %v2426_v2, %v10269_v62  ;;  %v4024_v52 = vadd.f32 %v11095_v8, %v4023_v0 }
 0x307   : > { %15923 = vst [vmem:[#allocation179_spill] sm:$0xff] %v11219_v42  ;;  %v2430_v51 = vpop.f32.mrb[238].mxu0  ;;  %8624 = vmatprep.mubr.bf16.mxu1 %v3653_v34  ;;  %v11223_v46 = vsel %vm4481_vm9, %v4029_v12, %v4641_v39  ;;  %vm4482_vm11 = vcmp.ge.f32.partialorder %v4032_v30, 0.0  ;;  %v4642_v7 = vmul.f32 0.01, %v4032_v30 }
 0x308   : > { %15924 = vst [vmem:[#allocation180_spill] sm:$0xff] %v11223_v46  ;;  %v11226_v23 = vpop.f32.mrb[239].mxu0  ;;  %v11230_v29 = vsel %vm4479_vm10, %v4021_v33, %v4639_v4  ;;  %vm4480_vm12 = vcmp.ge.f32.partialorder %v4024_v52, 0.0  ;;  %v4640_v2 = vmul.f32 0.01, %v4024_v52  ;;  %v2431_v39 = vadd.f32 %v2430_v51, %v10269_v62 }
 0x309   : > { %15925 = vst [vmem:[#allocation181_spill] sm:$0xff] %v11226_v23  ;;  %15926 = vst [vmem:[#allocation182_spill] sm:$0xff] %v11230_v29  ;;  %v11234_v24 = vsel %vm4482_vm11, %v4032_v30, %v4642_v7  ;;  %v3191_v0 = vmul.f32 0.01, %v2427_v36  ;;  %vm2871_vm13 = vcmp.ge.f32.partialorder %v2427_v36, 0.0 }
 0x30a   : > { %15927 = vst [vmem:[#allocation183_spill] sm:$0xff] %v11234_v24  ;;  %v11239_v42 = vsel %vm4480_vm12, %v4024_v52, %v4640_v2  ;;  %vm2873_vm14 = vcmp.ge.f32.partialorder %v2431_v39, 0.0  ;;  %v3193_v4 = vmul.f32 0.01, %v2431_v39 }
 0x30b   : > { %15928 = vst [vmem:[#allocation184_spill] sm:$0xff] %v11239_v42  ;;  %v3511_v52 = vsel %vm2871_vm13, %v2427_v36, %v3191_v0 }
 0x30c   : > { %v3513_v12 = vsel %vm2873_vm14, %v2431_v39, %v3193_v4 }
 0x30d   : > { %v2436_v23 = vpop.f32.mrb[240].mxu0  ;;  %v3654_v21 = vpack.c.bf16 %v3513_v12, %v3511_v52 }
 0x30e   : > { %v11243_v34 = vpop.f32.mrb[241].mxu0  ;;  %v2437_v30 = vadd.f32 %v2436_v23, %v10269_v62 }
 0x30f   : > { %15929 = vst [vmem:[#allocation185_spill] sm:$0xff] %v11243_v34  ;;  %v2440_v7 = vpop.f32.mrb[242].mxu0  ;;  %8625 = vmatmul.mubr.bf16.gmra.mrb[112].mxu1 %v3654_v21 }
 0x310   : > { %v2441_v31 = vadd.f32 %v2440_v7, %v10269_v62  ;;  %v11247_v57 = vpop.f32.mrb[243].mxu0  ;;  %vm2875_vm15 = vcmp.ge.f32.partialorder %v2437_v30, 0.0  ;;  %v3195_v51 = vmul.f32 0.01, %v2437_v30 }
 0x311   : > { %15930 = vst [vmem:[#allocation186_spill] sm:$0xff] %v11247_v57 }
 0x312   : > { %vm2877_vm0 = vcmp.ge.f32.partialorder %v2441_v31, 0.0  ;;  %v3197_v2 = vmul.f32 0.01, %v2441_v31  ;;  %v8574_v33 = vpop.f32.mrb[60].mxu1  ;;  %v3515_v3 = vsel %vm2875_vm15, %v2437_v30, %v3195_v51 }
 0x313   : > { %v4045_v34 = vadd.f32 %v11095_v8, %v8574_v33  ;;  %v4036_v18 = vpop.f32.mrb[61].mxu1 }
 0x314   : > { %v3517_v11 = vsel %vm2877_vm0, %v2441_v31, %v3197_v2  ;;  %v4037_v7 = vadd.f32 %v11095_v8, %v4036_v18  ;;  %v8575_v39 = vpop.f32.mrb[62].mxu1 }
 0x315   : > { %v2446_v23 = vpop.f32.mrb[244].mxu0  ;;  %v3655_v20 = vpack.c.bf16 %v3517_v11, %v3515_v3  ;;  %vm4485_vm1 = vcmp.ge.f32.partialorder %v4045_v34, 0.0  ;;  %v4645_v36 = vmul.f32 0.01, %v4045_v34  ;;  %v4048_v12 = vadd.f32 %v11095_v8, %v8575_v39  ;;  %v4039_v21 = vpop.f32.mrb[63].mxu1 }
 0x316   : > { %v2447_v4 = vadd.f32 %v2446_v23, %v10269_v62  ;;  %v11252_v57 = vpop.f32.mrb[245].mxu0  ;;  %vm4483_vm2 = vcmp.ge.f32.partialorder %v4037_v7, 0.0  ;;  %v4643_v31 = vmul.f32 0.01, %v4037_v7  ;;  %v4040_v18 = vadd.f32 %v11095_v8, %v4039_v21 }
 0x317   : > { %15931 = vst [vmem:[#allocation187_spill] sm:$0xff] %v11252_v57  ;;  %v2450_v0 = vpop.f32.mrb[246].mxu0  ;;  %8628 = vmatprep.mubr.bf16.mxu1 %v3655_v20  ;;  %v11255_v33 = vsel %vm4485_vm1, %v4045_v34, %v4645_v36  ;;  %vm4486_vm3 = vcmp.ge.f32.partialorder %v4048_v12, 0.0  ;;  %v4646_v11 = vmul.f32 0.01, %v4048_v12 }
 0x318   : > { %15932 = vst [vmem:[#allocation188_spill] sm:$0xff] %v11255_v33  ;;  %v11258_v3 = vpop.f32.mrb[247].mxu0  ;;  %v11262_v51 = vsel %vm4483_vm2, %v4037_v7, %v4643_v31  ;;  %v3199_v52 = vmul.f32 0.01, %v2447_v4  ;;  %v2451_v2 = vadd.f32 %v2450_v0, %v10269_v62  ;;  %vm4484_vm4 = vcmp.ge.f32.partialorder %v4040_v18, 0.0 }
 0x319   : > { %15933 = vst [vmem:[#allocation189_spill] sm:$0xff] %v11258_v3  ;;  %15934 = vst [vmem:[#allocation190_spill] sm:$0xff] %v11262_v51  ;;  %v11267_v23 = vsel %vm4486_vm3, %v4048_v12, %v4646_v11  ;;  %v4644_v34 = vmul.f32 0.01, %v4040_v18  ;;  %vm2879_vm5 = vcmp.ge.f32.partialorder %v2447_v4, 0.0  ;;  %v9316_v12 = vld [vmem:[%s15379_s5 + $0x8] sm:$0xff]  }
 0x31a   : > { %15935 = vst [vmem:[#allocation191_spill] sm:$0xff] %v11267_v23  ;;  %vm2881_vm6 = vcmp.ge.f32.partialorder %v2451_v2, 0.0  ;;  %v3201_v21 = vmul.f32 0.01, %v2451_v2  ;;  %v3519_v20 = vsel %vm2879_vm5, %v2447_v4, %v3199_v52  ;;  %8670 = vmatprep.subr.bf16.mxu1 %v9316_v12 }
 0x31b   : > { %v11271_v36 = vsel %vm4484_vm4, %v4040_v18, %v4644_v34  ;;  %8671 = vmatpush3.bf16.msra.mxu1 %v9316_v12 }
 0x31c   : > { %15936 = vst [vmem:[#allocation192_spill] sm:$0xff] %v11271_v36  ;;  %v3521_v39 = vsel %vm2881_vm6, %v2451_v2, %v3201_v21 }
 0x31d   : > { %v2456_v7 = vpop.f32.mrb[248].mxu0  ;;  %v3656_v34 = vpack.c.bf16 %v3521_v39, %v3519_v20 }
 0x31e   : > { %v2457_v0 = vadd.f32 %v2456_v7, %v10269_v62  ;;  %v11276_v30 = vpop.f32.mrb[249].mxu0 }
 0x31f   : > { %15937 = vst [vmem:[#allocation193_spill] sm:$0xff] %v11276_v30  ;;  %v2460_v11 = vpop.f32.mrb[250].mxu0  ;;  %8629 = vmatmul.mubr.bf16.gmra.mrb[116].mxu1 %v3656_v34 }
 0x320   : > { %v3203_v3 = vmul.f32 0.01, %v2457_v0  ;;  %v2461_v18 = vadd.f32 %v2460_v11, %v10269_v62  ;;  %v11282_v57 = vpop.f32.mrb[251].mxu0  ;;  %vm2883_vm7 = vcmp.ge.f32.partialorder %v2457_v0, 0.0 }
 0x321   : > { %15938 = vst [vmem:[#allocation194_spill] sm:$0xff] %v11282_v57 }
 0x322   : > { %vm2885_vm8 = vcmp.ge.f32.partialorder %v2461_v18, 0.0  ;;  %v3205_v7 = vmul.f32 0.01, %v2461_v18  ;;  %v8578_v31 = vpop.f32.mrb[64].mxu1  ;;  %v3523_v30 = vsel %vm2883_vm7, %v2457_v0, %v3203_v3 }
 0x323   : > { %v4061_v32 = vadd.f32 %v11095_v8, %v8578_v31  ;;  %v4052_v40 = vpop.f32.mrb[65].mxu1 }
 0x324   : > { %v3525_v53 = vsel %vm2885_vm8, %v2461_v18, %v3205_v7  ;;  %v4053_v2 = vadd.f32 %v11095_v8, %v4052_v40  ;;  %v8579_v21 = vpop.f32.mrb[66].mxu1  ;;  %v15942_v18 = vmax.f32 %v10932_v28, %v11153_v22 }
 0x325   : > { %v2466_v4 = vpop.f32.mrb[252].mxu0  ;;  %v3657_v52 = vpack.c.bf16 %v3525_v53, %v3523_v30  ;;  %vm4489_vm9 = vcmp.ge.f32.partialorder %v4061_v32, 0.0  ;;  %v4649_v39 = vmul.f32 0.01, %v4061_v32  ;;  %v4064_v12 = vadd.f32 %v11095_v8, %v8579_v21  ;;  %v4055_v11 = vpop.f32.mrb[67].mxu1 }
 0x326   : > { %v11286_v20 = vpop.f32.mrb[253].mxu0  ;;  %vm4487_vm10 = vcmp.ge.f32.partialorder %v4053_v2, 0.0  ;;  %v4647_v3 = vmul.f32 0.01, %v4053_v2  ;;  %v2467_v0 = vadd.f32 %v2466_v4, %v10269_v62  ;;  %v4056_v40 = vadd.f32 %v11095_v8, %v4055_v11 }
 0x327   : > { %15939 = vst [vmem:[#allocation195_spill] sm:$0xff] %v11286_v20  ;;  %v2470_v57 = vpop.f32.mrb[254].mxu0  ;;  %8632 = vmatprep.mubr.bf16.mxu1 %v3657_v52  ;;  %v11290_v31 = vsel %vm4489_vm9, %v4061_v32, %v4649_v39  ;;  %vm4490_vm11 = vcmp.ge.f32.partialorder %v4064_v12, 0.0  ;;  %v4650_v53 = vmul.f32 0.01, %v4064_v12  ;;  %v15944_v4 = vmax.f32 %v10943_v44, %v11157_v48 }
 0x328   : > { %15940 = vst [vmem:[#allocation196_spill] sm:$0xff] %v11290_v31  ;;  %v11293_v30 = vpop.f32.mrb[255].mxu0  ;;  %v11299_v34 = vmax.f32 %v15942_v18, %v11290_v31  ;;  %v11301_v7 = vsel %vm4487_vm10, %v4053_v2, %v4647_v3  ;;  %vm4488_vm12 = vcmp.ge.f32.partialorder %v4056_v40, 0.0  ;;  %v4648_v21 = vmul.f32 0.01, %v4056_v40 }
 0x329   : > { %15941 = vst [vmem:[#allocation197_spill] sm:$0xff] %v11293_v30  ;;  %15943 = vst [vmem:[#allocation198_spill] sm:$0xff] %v11301_v7  ;;  %v11307_v32 = vmax.f32 %v15944_v4, %v11301_v7  ;;  %v11309_v52 = vsel %vm4490_vm11, %v4064_v12, %v4650_v53  ;;  %v15946_v39 = vmax.f32 %v10951_v50, %v11164_v41  ;;  %v3207_v2 = vmul.f32 0.01, %v2467_v0 }
 0x32a   : > { %15945 = vst [vmem:[#allocation199_spill] sm:$0xff] %v11309_v52  ;;  %v2471_v28 = vadd.f32 %v2470_v57, %v10269_v62  ;;  %v11318_v3 = vsel %vm4488_vm12, %v4056_v40, %v4648_v21  ;;  %vm2887_vm13 = vcmp.ge.f32.partialorder %v2467_v0, 0.0  ;;  %v15948_v44 = vmax.f32 %v10963_v54, %v11170_v45 }
 0x32b   : > { %v11315_v11 = vmax.f32 %v15946_v39, %v11309_v52  ;;  %15947 = vst [vmem:[#allocation200_spill] sm:$0xff] %v11318_v3  ;;  %v3527_v41 = vsel %vm2887_vm13, %v2467_v0, %v3207_v2 }
 0x32c   : > { %v11324_v12 = vmax.f32 %v15948_v44, %v11318_v3  ;;  %vm2889_vm14 = vcmp.ge.f32.partialorder %v2471_v28, 0.0  ;;  %v3209_v53 = vmul.f32 0.01, %v2471_v28 }
 0x32d   : > { %v2476_v18 = vpop.f32.mrb[0].mxu0 }
 0x32e   : > { %v11326_v4 = vpop.f32.mrb[1].mxu0  ;;  %v2477_v50 = vadd.f32 %v2476_v18, %v10269_v62  ;;  %v3529_v52 = vsel %vm2889_vm14, %v2471_v28, %v3209_v53 }
 0x32f   : > { %15949 = vst [vmem:[#allocation201_spill] sm:$0xff] %v11326_v4  ;;  %v2480_v39 = vpop.f32.mrb[2].mxu0  ;;  %v3658_v54 = vpack.c.bf16 %v3529_v52, %v3527_v41 }
 0x330   : > { %v2481_v57 = vadd.f32 %v2480_v39, %v10269_v62  ;;  %v11330_v40 = vpop.f32.mrb[3].mxu0  ;;  %vm2891_vm15 = vcmp.ge.f32.partialorder %v2477_v50, 0.0  ;;  %v3211_v21 = vmul.f32 0.01, %v2477_v50 }
 0x331   : > { %15950 = vst [vmem:[#allocation202_spill] sm:$0xff] %v11330_v40  ;;  %8633 = vmatmul.mubr.bf16.gmra.mrb[120].mxu1 %v3658_v54 }
 0x332   : > { %vm2893_vm0 = vcmp.ge.f32.partialorder %v2481_v57, 0.0  ;;  %v3213_v7 = vmul.f32 0.01, %v2481_v57  ;;  %v8582_v44 = vpop.f32.mrb[68].mxu1  ;;  %v3531_v3 = vsel %vm2891_vm15, %v2477_v50, %v3211_v21 }
 0x333   : > { %v4077_v48 = vadd.f32 %v11095_v8, %v8582_v44  ;;  %v4068_v31 = vpop.f32.mrb[69].mxu1 }
 0x334   : > { %v3533_v45 = vsel %vm2893_vm0, %v2481_v57, %v3213_v7  ;;  %v4069_v39 = vadd.f32 %v11095_v8, %v4068_v31  ;;  %v8583_v28 = vpop.f32.mrb[70].mxu1  ;;  %v15954_v57 = vmax.f32 %v10988_v17, %v11190_v49  ;;  %v15958_v17 = vmax.f32 %v11007_v14, %v11201_v9 }
 0x335   : > { %v2486_v18 = vpop.f32.mrb[4].mxu0  ;;  %v3659_v22 = vpack.c.bf16 %v3533_v45, %v3531_v3  ;;  %vm4493_vm1 = vcmp.ge.f32.partialorder %v4077_v48, 0.0  ;;  %v4653_v0 = vmul.f32 0.01, %v4077_v48  ;;  %v4080_v41 = vadd.f32 %v11095_v8, %v8583_v28  ;;  %v4071_v52 = vpop.f32.mrb[71].mxu1 }
 0x336   : > { %v2487_v53 = vadd.f32 %v2486_v18, %v10269_v62  ;;  %v11335_v40 = vpop.f32.mrb[5].mxu0  ;;  %vm4491_vm2 = vcmp.ge.f32.partialorder %v4069_v39, 0.0  ;;  %v4651_v7 = vmul.f32 0.01, %v4069_v39  ;;  %v4072_v31 = vadd.f32 %v11095_v8, %v4071_v52 }
 0x337   : > { %15951 = vst [vmem:[#allocation203_spill] sm:$0xff] %v11335_v40  ;;  %v2490_v2 = vpop.f32.mrb[6].mxu0  ;;  %8636 = vmatprep.mubr.bf16.mxu1 %v3659_v22  ;;  %v11338_v50 = vsel %vm4493_vm1, %v4077_v48, %v4653_v0  ;;  %vm4494_vm3 = vcmp.ge.f32.partialorder %v4080_v41, 0.0  ;;  %v4654_v45 = vmul.f32 0.01, %v4080_v41  ;;  %v15956_v48 = vmax.f32 %v10999_v37, %v11194_v35 }
 0x338   : > { %15952 = vst [vmem:[#allocation204_spill] sm:$0xff] %v11338_v50  ;;  %v11341_v3 = vpop.f32.mrb[7].mxu0  ;;  %v11347_v21 = vmax.f32 %v15954_v57, %v11338_v50  ;;  %v11349_v54 = vsel %vm4491_vm2, %v4069_v39, %v4651_v7  ;;  %v3215_v44 = vmul.f32 0.01, %v2487_v53  ;;  %v2491_v22 = vadd.f32 %v2490_v2, %v10269_v62 }
 0x339   : > { %15953 = vst [vmem:[#allocation205_spill] sm:$0xff] %v11341_v3  ;;  %15955 = vst [vmem:[#allocation206_spill] sm:$0xff] %v11349_v54  ;;  %v11356_v18 = vmax.f32 %v15956_v48, %v11349_v54  ;;  %v11358_v28 = vsel %vm4494_vm3, %v4080_v41, %v4654_v45  ;;  %vm4492_vm4 = vcmp.ge.f32.partialorder %v4072_v31, 0.0  ;;  %v4652_v0 = vmul.f32 0.01, %v4072_v31 }
 0x33a   : > { %15957 = vst [vmem:[#allocation207_spill] sm:$0xff] %v11358_v28  ;;  %v11364_v52 = vmax.f32 %v15958_v17, %v11358_v28  ;;  %vm2895_vm5 = vcmp.ge.f32.partialorder %v2487_v53, 0.0  ;;  %vm2897_vm6 = vcmp.ge.f32.partialorder %v2491_v22, 0.0  ;;  %v3217_v2 = vmul.f32 0.01, %v2491_v22 }
 0x33b   : > { %v11366_v39 = vsel %vm4492_vm4, %v4072_v31, %v4652_v0  ;;  %v15960_v37 = vmax.f32 %v11019_v25, %v11207_v63  ;;  %v3535_v14 = vsel %vm2895_vm5, %v2487_v53, %v3215_v44  ;;  %v9317_v31 = vld [vmem:[%s15379_s5 + $0x10] sm:$0xff]  }
 0x33c   : > { %15959 = vst [vmem:[#allocation208_spill] sm:$0xff] %v11366_v39  ;;  %v3537_v17 = vsel %vm2897_vm6, %v2491_v22, %v3217_v2  ;;  %8672 = vmatprep.subr.bf16.mxu1 %v9317_v31 }
 0x33d   : > { %v2496_v7 = vpop.f32.mrb[8].mxu0  ;;  %v11372_v41 = vmax.f32 %v15960_v37, %v11366_v39  ;;  %v3660_v9 = vpack.c.bf16 %v3537_v17, %v3535_v14  ;;  %8673 = vmatpush3.bf16.msra.mxu1 %v9317_v31 }
 0x33e   : > { %v2497_v45 = vadd.f32 %v2496_v7, %v10269_v62  ;;  %v11375_v57 = vpop.f32.mrb[9].mxu0 }
 0x33f   : > { %15961 = vst [vmem:[#allocation209_spill] sm:$0xff] %v11375_v57  ;;  %v2500_v48 = vpop.f32.mrb[10].mxu0  ;;  %8637 = vmatmul.mubr.bf16.gmra.mrb[124].mxu1 %v3660_v9 }
 0x340   : > { %v3219_v0 = vmul.f32 0.01, %v2497_v45  ;;  %v2501_v28 = vadd.f32 %v2500_v48, %v10269_v62  ;;  %v11381_v54 = vpop.f32.mrb[11].mxu0  ;;  %vm2899_vm7 = vcmp.ge.f32.partialorder %v2497_v45, 0.0 }
 0x341   : > { %15962 = vst [vmem:[#allocation210_spill] sm:$0xff] %v11381_v54 }
 0x342   : > { %vm2901_vm8 = vcmp.ge.f32.partialorder %v2501_v28, 0.0  ;;  %v3221_v25 = vmul.f32 0.01, %v2501_v28  ;;  %v3539_v37 = vsel %vm2899_vm7, %v2497_v45, %v3219_v0 }
 0x343   : > { %v8586_v7 = vpop.f32.mrb[72].mxu1 }
 0x344   : > { %v3541_v53 = vsel %vm2901_vm8, %v2501_v28, %v3221_v25  ;;  %v4093_v44 = vadd.f32 %v11095_v8, %v8586_v7  ;;  %v4084_v22 = vpop.f32.mrb[73].mxu1  ;;  %v1839_v28 = vadd.f32 %v10273_v1, %v10198_v38 }
 0x345   : > { %v2506_v2 = vpop.f32.mrb[12].mxu0  ;;  %v3661_v39 = vpack.c.bf16 %v3541_v53, %v3539_v37  ;;  %v4085_v63 = vadd.f32 %v11095_v8, %v4084_v22  ;;  %v8587_v48 = vpop.f32.mrb[74].mxu1  ;;  %v1843_v53 = vadd.f32 %v10277_v6, %v10198_v38  ;;  %v15970_v6 = vld [vmem:[#allocation7_spill] sm:$0xff] }
 0x346   : > { %v11385_v14 = vpop.f32.mrb[13].mxu0  ;;  %vm4497_vm9 = vcmp.ge.f32.partialorder %v4093_v44, 0.0  ;;  %v4657_v17 = vmul.f32 0.01, %v4093_v44  ;;  %v4096_v35 = vadd.f32 %v11095_v8, %v8587_v48  ;;  %v4087_v50 = vpop.f32.mrb[75].mxu1  ;;  %v2507_v31 = vadd.f32 %v2506_v2, %v10269_v62 }
 0x347   : > { %15963 = vst [vmem:[#allocation211_spill] sm:$0xff] %v11385_v14  ;;  %v2510_v9 = vpop.f32.mrb[14].mxu0  ;;  %8640 = vmatprep.mubr.bf16.mxu1 %v3661_v39  ;;  %vm4495_vm10 = vcmp.ge.f32.partialorder %v4085_v63, 0.0  ;;  %v4655_v45 = vmul.f32 0.01, %v4085_v63  ;;  %v4088_v7 = vadd.f32 %v11095_v8, %v4087_v50  ;;  %v15966_v39 = vmax.f32 %v11044_v19, %v11223_v46 }
 0x348   : > { %v11391_v0 = vsel %vm4497_vm9, %v4093_v44, %v4657_v17  ;;  %vm4498_vm11 = vcmp.ge.f32.partialorder %v4096_v35, 0.0  ;;  %v4658_v25 = vmul.f32 0.01, %v4096_v35  ;;  %v11394_v37 = vpop.f32.mrb[15].mxu0  ;;  %v15968_v44 = vmax.f32 %v11055_v16, %v11230_v29  ;;  %v15972_v16 = vld [vmem:[#allocation8_spill] sm:$0xff] }
 0x349   : > { %15964 = vst [vmem:[#allocation212_spill] sm:$0xff] %v11391_v0  ;;  %15965 = vst [vmem:[#allocation213_spill] sm:$0xff] %v11394_v37  ;;  %v11402_v1 = vmax.f32 %v15966_v39, %v11391_v0  ;;  %v11404_v22 = vsel %vm4495_vm10, %v4085_v63, %v4655_v45  ;;  %vm4496_vm12 = vcmp.ge.f32.partialorder %v4088_v7, 0.0  ;;  %v4656_v48 = vmul.f32 0.01, %v4088_v7 }
 0x34a   : > { %15967 = vst [vmem:[#allocation214_spill] sm:$0xff] %v11404_v22  ;;  %v11410_v2 = vmax.f32 %v15968_v44, %v11404_v22  ;;  %v11412_v50 = vsel %vm4498_vm11, %v4096_v35, %v4658_v25  ;;  %v1849_v17 = vadd.f32 %v15970_v6, %v10198_v38  ;;  %v15971_v19 = vmax.f32 %v11063_v26, %v11234_v24 }
 0x34b   : > { %15969 = vst [vmem:[#allocation215_spill] sm:$0xff] %v11412_v50  ;;  %v2511_v63 = vadd.f32 %v2510_v9, %v10269_v62  ;;  %vm2636_vm13 = vcmp.ge.f32.partialorder %v1839_v28, 0.0  ;;  %v1853_v45 = vadd.f32 %v15972_v16, %v10198_v38  ;;  %v3223_v44 = vmul.f32 0.01, %v2507_v31 }
 0x34c   : > { %v11420_v39 = vmax.f32 %v15971_v19, %v11412_v50  ;;  %v11425_v35 = vsel %vm4496_vm12, %v4088_v7, %v4656_v48  ;;  %vm2903_vm14 = vcmp.ge.f32.partialorder %v2507_v31, 0.0  ;;  %v15974_v6 = vmax.f32 %v11075_v56, %v11239_v42  ;;  %v15977_v42 = vld [vmem:[#allocation9_spill] sm:$0xff] }
 0x34d   : > { %15973 = vst [vmem:[#allocation7_spill] sm:$0xff] %v11425_v35  ;;  %v2516_v25 = vpop.f32.mrb[16].mxu0  ;;  %vm2905_vm15 = vcmp.ge.f32.partialorder %v2511_v63, 0.0  ;;  %v3225_v26 = vmul.f32 0.01, %v2511_v63  ;;  %vm2638_vm0 = vcmp.ge.f32.partialorder %v1843_v53, 0.0  ;;  %v11442_v46 = vadd.f32 %v15977_v42, %v10198_v38 }
 0x34e   : > { %v11431_v22 = vmax.f32 %v15974_v6, %v11425_v35  ;;  %v11433_v19 = vpop.f32.mrb[17].mxu0  ;;  %v2956_v9 = vmul.f32 0.01, %v1839_v28  ;;  %v2958_v50 = vmul.f32 0.01, %v1843_v53  ;;  %v2517_v16 = vadd.f32 %v2516_v25, %v10269_v62 }
 0x34f   : > { %15975 = vst [vmem:[#allocation8_spill] sm:$0xff] %v11433_v19  ;;  %v2520_v24 = vpop.f32.mrb[18].mxu0  ;;  %vm2640_vm1 = vcmp.ge.f32.partialorder %v1849_v17, 0.0  ;;  %v2960_v7 = vmul.f32 0.01, %v1849_v17  ;;  %v3545_v29 = vsel %vm2905_vm15, %v2511_v63, %v3225_v26  ;;  %v3543_v35 = vsel %vm2903_vm14, %v2507_v31, %v3223_v44 }
 0x350   : > { %v2521_v48 = vadd.f32 %v2520_v24, %v10269_v62  ;;  %v11437_v0 = vpop.f32.mrb[19].mxu0  ;;  %v2962_v56 = vmul.f32 0.01, %v1853_v45  ;;  %vm2907_vm2 = vcmp.ge.f32.partialorder %v2517_v16, 0.0  ;;  %v3227_v6 = vmul.f32 0.01, %v2517_v16 }
 0x351   : > { %15976 = vst [vmem:[#allocation216_spill] sm:$0xff] %v11437_v0  ;;  %v3662_v25 = vpack.c.bf16 %v3545_v29, %v3543_v35  ;;  %vm2642_vm4 = vcmp.ge.f32.partialorder %v1853_v45, 0.0  ;;  %v11445_v63 = vsel %vm2636_vm13, %v1839_v28, %v2956_v9  ;;  %v11448_v26 = vsel %vm2640_vm1, %v1849_v17, %v2960_v7  ;;  %v15984_v7 = vld [vmem:[#allocation11_spill] sm:$0xff] }
 0x352   : > { %vm2909_vm3 = vcmp.ge.f32.partialorder %v2521_v48, 0.0  ;;  %v3229_v49 = vmul.f32 0.01, %v2521_v48  ;;  %v3547_v37 = vsel %vm2907_vm2, %v2517_v16, %v3227_v6  ;;  %15978 = vst [vmem:[#allocation9_spill] sm:$0xff] %v11445_v63  ;;  %15979 = vst [vmem:[#allocation217_spill] sm:$0xff] %v11448_v26  ;;  %v11452_v14 = vsel %vm2638_vm0, %v1843_v53, %v2958_v50  ;;  %v15983_v50 = vld [vmem:[#allocation10_spill] sm:$0xff] }
 0x353   : > { %8641 = vmatmul.mubr.bf16.gmra.mrb[128].mxu1 %v3662_v25  ;;  %v8590_v19 = vpop.f32.mrb[76].mxu1  ;;  %15980 = vst [vmem:[#allocation218_spill] sm:$0xff] %v11452_v14  ;;  %v11454_v29 = vsel %vm2642_vm4, %v1853_v45, %v2962_v56  ;;  %v2964_v35 = vmul.f32 0.01, %v11442_v46  ;;  %vm2644_vm5 = vcmp.ge.f32.partialorder %v11442_v46, 0.0  ;;  %v1863_v45 = vadd.f32 %v15983_v50, %v10198_v38 }
 0x354   : > { %v3549_v24 = vsel %vm2909_vm3, %v2521_v48, %v3229_v49  ;;  %v4109_v31 = vadd.f32 %v11095_v8, %v8590_v19  ;;  %v4100_v44 = vpop.f32.mrb[77].mxu1  ;;  %15981 = vst [vmem:[#allocation219_spill] sm:$0xff] %v11454_v29  ;;  %v1869_v48 = vadd.f32 %v15984_v7, %v10198_v38 }
 0x355   : > { %v2526_v0 = vpop.f32.mrb[20].mxu0  ;;  %v3663_v42 = vpack.c.bf16 %v3549_v24, %v3547_v37  ;;  %v4101_v49 = vadd.f32 %v11095_v8, %v4100_v44  ;;  %v8591_v16 = vpop.f32.mrb[78].mxu1  ;;  %v15987_v44 = vmax.f32 %v11106_v59, %v11255_v33  ;;  %vm2646_vm10 = vcmp.ge.f32.partialorder %v1863_v45, 0.0 }
 0x356   : > { %v2527_v28 = vadd.f32 %v2526_v0, %v10269_v62  ;;  %v11459_v9 = vpop.f32.mrb[21].mxu0  ;;  %vm4501_vm6 = vcmp.ge.f32.partialorder %v4109_v31, 0.0  ;;  %v4661_v17 = vmul.f32 0.01, %v4109_v31  ;;  %v4112_v37 = vadd.f32 %v11095_v8, %v8591_v16  ;;  %v4103_v19 = vpop.f32.mrb[79].mxu1 }
 0x357   : > { %15982 = vst [vmem:[#allocation220_spill] sm:$0xff] %v11459_v9  ;;  %v2530_v53 = vpop.f32.mrb[22].mxu0  ;;  %8644 = vmatprep.mubr.bf16.mxu1 %v3663_v42  ;;  %vm4499_vm7 = vcmp.ge.f32.partialorder %v4101_v49, 0.0  ;;  %v4659_v56 = vmul.f32 0.01, %v4101_v49  ;;  %v4104_v25 = vadd.f32 %v11095_v8, %v4103_v19  ;;  %v15991_v59 = vmax.f32 %v11125_v60, %v11267_v23 }
 0x358   : > { %v11467_v0 = vsel %vm4501_vm6, %v4109_v31, %v4661_v17  ;;  %vm4502_vm8 = vcmp.ge.f32.partialorder %v4112_v37, 0.0  ;;  %v4662_v6 = vmul.f32 0.01, %v4112_v37  ;;  %v11470_v24 = vpop.f32.mrb[23].mxu0  ;;  %v3231_v50 = vmul.f32 0.01, %v2527_v28 }
 0x359   : > { %15985 = vst [vmem:[#allocation10_spill] sm:$0xff] %v11467_v0  ;;  %15986 = vst [vmem:[#allocation11_spill] sm:$0xff] %v11470_v24  ;;  %v11476_v42 = vmax.f32 %v15987_v44, %v11467_v0  ;;  %v11478_v16 = vsel %vm4499_vm7, %v4101_v49, %v4659_v56  ;;  %v2531_v7 = vadd.f32 %v2530_v53, %v10269_v62  ;;  %vm4500_vm9 = vcmp.ge.f32.partialorder %v4104_v25, 0.0  ;;  %v15992_v56 = vld [vmem:[#allocation12_spill] sm:$0xff] }
 0x35a   : > { %15988 = vst [vmem:[#allocation221_spill] sm:$0xff] %v11478_v16  ;;  %v15989_v31 = vmax.f32 %v11117_v10, %v11262_v51  ;;  %v11487_v19 = vsel %vm4502_vm8, %v4112_v37, %v4662_v6  ;;  %v4660_v29 = vmul.f32 0.01, %v4104_v25  ;;  %vm2911_vm11 = vcmp.ge.f32.partialorder %v2527_v28, 0.0  ;;  %v15994_v6 = vld [vmem:[#allocation13_spill] sm:$0xff]  ;;  %v15998_v51 = vld [vmem:[#allocation15_spill] sm:$0xff] }
 0x35b   : > { %15990 = vst [vmem:[#allocation222_spill] sm:$0xff] %v11487_v19  ;;  %v11493_v49 = vmax.f32 %v15991_v59, %v11487_v19  ;;  %vm2913_vm12 = vcmp.ge.f32.partialorder %v2531_v7, 0.0  ;;  %v2966_v53 = vmul.f32 0.01, %v1863_v45  ;;  %v1873_v44 = vadd.f32 %v15992_v56, %v10198_v38 }
 0x35c   : > { %v11485_v17 = vmax.f32 %v15989_v31, %v11478_v16  ;;  %v11497_v10 = vsel %vm4500_vm9, %v4104_v25, %v4660_v29  ;;  %v3233_v31 = vmul.f32 0.01, %v2531_v7  ;;  %vm2648_vm13 = vcmp.ge.f32.partialorder %v1869_v48, 0.0  ;;  %v15997_v29 = vld [vmem:[#allocation14_spill] sm:$0xff] }
 0x35d   : > { %15993 = vst [vmem:[#allocation12_spill] sm:$0xff] %v11497_v10  ;;  %v2536_v37 = vpop.f32.mrb[24].mxu0  ;;  %v1879_v26 = vadd.f32 %v15994_v6, %v10198_v38  ;;  %v15995_v60 = vmax.f32 %v11138_v47, %v11271_v36  ;;  %v2968_v19 = vmul.f32 0.01, %v1869_v48  ;;  %v1883_v25 = vadd.f32 %v15997_v29, %v10198_v38 }
 0x35e   : > { %v2537_v14 = vadd.f32 %v2536_v37, %v10269_v62  ;;  %v11508_v63 = vpop.f32.mrb[25].mxu0  ;;  %v3551_v23 = vsel %vm2911_vm11, %v2527_v28, %v3231_v50  ;;  %v3553_v16 = vsel %vm2913_vm12, %v2531_v7, %v3233_v31  ;;  %v1889_v6 = vadd.f32 %v15998_v51, %v10198_v38  ;;  %v16001_v28 = vld [vmem:[#allocation16_spill] sm:$0xff] }
 0x35f   : > { %v11505_v59 = vmax.f32 %v15995_v60, %v11497_v10  ;;  %15996 = vst [vmem:[#allocation13_spill] sm:$0xff] %v11508_v63  ;;  %v2540_v56 = vpop.f32.mrb[26].mxu0  ;;  %v3664_v47 = vpack.c.bf16 %v3553_v16, %v3551_v23  ;;  %vm2650_vm14 = vcmp.ge.f32.partialorder %v1873_v44, 0.0  ;;  %v2970_v37 = vmul.f32 0.01, %v1873_v44 }
 0x360   : > { %v3235_v0 = vmul.f32 0.01, %v2537_v14  ;;  %v2541_v33 = vadd.f32 %v2540_v56, %v10269_v62  ;;  %v11515_v60 = vpop.f32.mrb[27].mxu0  ;;  %vm2915_vm15 = vcmp.ge.f32.partialorder %v2537_v14, 0.0  ;;  %v11520_v10 = vsel %vm2644_vm5, %v11442_v46, %v2964_v35 }
 0x361   : > { %15999 = vst [vmem:[#allocation14_spill] sm:$0xff] %v11515_v60  ;;  %16000 = vst [vmem:[#allocation15_spill] sm:$0xff] %v11520_v10  ;;  %v2972_v29 = vmul.f32 0.01, %v1879_v26  ;;  %v11524_v50 = vadd.f32 %v16001_v28, %v10198_v38  ;;  %8645 = vmatmul.mubr.bf16.gmra.mrb[132].mxu1 %v3664_v47  ;;  %vm2652_vm1 = vcmp.ge.f32.partialorder %v1879_v26, 0.0  ;;  %v11527_v16 = vsel %vm2646_vm10, %v1863_v45, %v2966_v53 }
 0x362   : > { %vm2917_vm0 = vcmp.ge.f32.partialorder %v2541_v33, 0.0  ;;  %v3237_v51 = vmul.f32 0.01, %v2541_v33  ;;  %v2974_v23 = vmul.f32 0.01, %v1883_v25  ;;  %16002 = vst [vmem:[#allocation16_spill] sm:$0xff] %v11527_v16  ;;  %v11530_v7 = vsel %vm2648_vm13, %v1869_v48, %v2968_v19 }
 0x363   : > { %16003 = vst [vmem:[#allocation223_spill] sm:$0xff] %v11530_v7  ;;  %vm2654_vm2 = vcmp.ge.f32.partialorder %v1883_v25, 0.0  ;;  %v2976_v31 = vmul.f32 0.01, %v1889_v6  ;;  %v8594_v46 = vpop.f32.mrb[80].mxu1  ;;  %v3555_v35 = vsel %vm2915_vm15, %v2537_v14, %v3235_v0  ;;  %vm2656_vm3 = vcmp.ge.f32.partialorder %v1889_v6, 0.0 }
 0x364   : > { %v3557_v56 = vsel %vm2917_vm0, %v2541_v33, %v3237_v51  ;;  %v4125_v28 = vadd.f32 %v11095_v8, %v8594_v46  ;;  %v4116_v10 = vpop.f32.mrb[81].mxu1  ;;  %v11534_v47 = vsel %vm2650_vm14, %v1873_v44, %v2970_v37  ;;  %v11537_v45 = vmul.f32 0.01, %v11524_v50  ;;  %v16005_v48 = vld [vmem:[#allocation17_spill] sm:$0xff]  ;;  %v11546_v33 = vld [vmem:[%s15378_s4] ss:$0 sm:$0xff] }
 0x365   : > { %v2546_v36 = vpop.f32.mrb[28].mxu0  ;;  %v3665_v60 = vpack.c.bf16 %v3557_v56, %v3555_v35  ;;  %16004 = vst [vmem:[#allocation224_spill] sm:$0xff] %v11534_v47  ;;  %v11541_v19 = vadd.f32 %v16005_v48, %v10198_v38  ;;  %v4117_v8 = vadd.f32 %v11546_v33, %v4116_v10  ;;  %v8595_v14 = vpop.f32.mrb[82].mxu1  ;;  %v11552_v53 = vsel %vm2652_vm1, %v1879_v26, %v2972_v29 }
 0x366   : > { %v11549_v0 = vpop.f32.mrb[29].mxu0  ;;  %16007 = vst [vmem:[#allocation225_spill] sm:$0xff] %v11552_v53  ;;  %vm4505_vm4 = vcmp.ge.f32.partialorder %v4125_v28, 0.0  ;;  %v4665_v44 = vmul.f32 0.01, %v4125_v28  ;;  %v4128_v37 = vadd.f32 %v11546_v33, %v8595_v14  ;;  %v4119_v51 = vpop.f32.mrb[83].mxu1  ;;  %v11556_v35 = vsel %vm2654_vm2, %v1883_v25, %v2974_v23 }
 0x367   : > { %16006 = vst [vmem:[#allocation17_spill] sm:$0xff] %v11549_v0  ;;  %v2550_v46 = vpop.f32.mrb[30].mxu0  ;;  %8648 = vmatprep.mubr.bf16.mxu1 %v3665_v60  ;;  %16008 = vst [vmem:[#allocation226_spill] sm:$0xff] %v11556_v35  ;;  %vm2658_vm5 = vcmp.ge.f32.partialorder %v11524_v50, 0.0  ;;  %vm4503_vm6 = vcmp.ge.f32.partialorder %v4117_v8, 0.0  ;;  %v2547_v56 = vadd.f32 %v2546_v36, %v10269_v62  ;;  %v11561_v48 = vsel %vm2656_vm3, %v1889_v6, %v2976_v31  ;;  %v16012_v25 = vld [vmem:[#allocation18_spill] sm:$0xff] }
 0x368   : > { %v4663_v10 = vmul.f32 0.01, %v4117_v8  ;;  %16009 = vst [vmem:[#allocation227_spill] sm:$0xff] %v11561_v48  ;;  %v11563_v26 = vsel %vm4505_vm4, %v4125_v28, %v4665_v44  ;;  %vm4506_vm7 = vcmp.ge.f32.partialorder %v4128_v37, 0.0  ;;  %v4666_v29 = vmul.f32 0.01, %v4128_v37 }
 0x369   : > { %16010 = vst [vmem:[#allocation228_spill] sm:$0xff] %v11563_v26  ;;  %v4120_v14 = vadd.f32 %v11546_v33, %v4119_v51  ;;  %v11566_v53 = vpop.f32.mrb[31].mxu0  ;;  %vm2660_vm8 = vcmp.ge.f32.partialorder %v11541_v19, 0.0  ;;  %v1903_v60 = vadd.f32 %v16012_v25, %v10198_v38  ;;  %v2980_v44 = vmul.f32 0.01, %v11541_v19  ;;  %v16015_v51 = vld [vmem:[#allocation19_spill] sm:$0xff] }
 0x36a   : > { %16011 = vst [vmem:[#allocation229_spill] sm:$0xff] %v11566_v53  ;;  %v11573_v36 = vsel %vm4503_vm6, %v4117_v8, %v4663_v10  ;;  %v11577_v31 = vsel %vm4506_vm7, %v4128_v37, %v4666_v29  ;;  %v1909_v48 = vadd.f32 %v16015_v51, %v10198_v38  ;;  %v2551_v35 = vadd.f32 %v2550_v46, %v10269_v62  ;;  %v16016_v8 = vld [vmem:[#allocation20_spill] sm:$0xff]  ;;  %v16017_v23 = vld [vmem:[#allocation21_spill] sm:$0xff]  ;;  %v16020_v25 = vld [vmem:[#allocation22_spill] sm:$0xff] }
 0x36b   : > { %16013 = vst [vmem:[#allocation18_spill] sm:$0xff] %v11573_v36  ;;  %16014 = vst [vmem:[#allocation230_spill] sm:$0xff] %v11577_v31  ;;  %vm4504_vm9 = vcmp.ge.f32.partialorder %v4120_v14, 0.0  ;;  %v4664_v28 = vmul.f32 0.01, %v4120_v14  ;;  %v1913_v10 = vadd.f32 %v16016_v8, %v10198_v38  ;;  %v1919_v6 = vadd.f32 %v16017_v23, %v10198_v38 }
 0x36c   : > { %v3239_v37 = vmul.f32 0.01, %v2547_v56  ;;  %vm2919_vm10 = vcmp.ge.f32.partialorder %v2547_v56, 0.0  ;;  %vm2921_vm11 = vcmp.ge.f32.partialorder %v2551_v35, 0.0  ;;  %v3241_v51 = vmul.f32 0.01, %v2551_v35 }
 0x36d   : > { %v11589_v29 = vsel %vm4504_vm9, %v4120_v14, %v4664_v28  ;;  %v2556_v47 = vpop.f32.mrb[32].mxu0  ;;  %vm2662_vm12 = vcmp.ge.f32.partialorder %v1903_v60, 0.0  ;;  %v2982_v46 = vmul.f32 0.01, %v1903_v60  ;;  %v1923_v8 = vadd.f32 %v16020_v25, %v10198_v38  ;;  %v9318_v14 = vld [vmem:[%s15379_s5 + $0x18] sm:$0xff]  }
 0x36e   : > { %16018 = vst [vmem:[#allocation19_spill] sm:$0xff] %v11589_v29  ;;  %v11593_v16 = vpop.f32.mrb[33].mxu0  ;;  %v2557_v53 = vadd.f32 %v2556_v47, %v10269_v62  ;;  %vm2664_vm13 = vcmp.ge.f32.partialorder %v1909_v48, 0.0  ;;  %v2984_v28 = vmul.f32 0.01, %v1909_v48  ;;  %v3561_v0 = vsel %vm2921_vm11, %v2551_v35, %v3241_v51  ;;  %8674 = vmatprep.subr.bf16.mxu1 %v9318_v14 }
 0x36f   : > { %16019 = vst [vmem:[#allocation20_spill] sm:$0xff] %v11593_v16  ;;  %v2560_v23 = vpop.f32.mrb[34].mxu0  ;;  %v2986_v16 = vmul.f32 0.01, %v1913_v10  ;;  %v3559_v9 = vsel %vm2919_vm10, %v2547_v56, %v3239_v37  ;;  %v2988_v25 = vmul.f32 0.01, %v1919_v6  ;;  %8675 = vmatpush3.bf16.msra.mxu1 %v9318_v14  ;;  %v11609_v35 = vsel %vm2658_vm5, %v11524_v50, %v11537_v45 }
 0x370   : > { %v2561_v7 = vadd.f32 %v2560_v23, %v10269_v62  ;;  %v11602_v63 = vpop.f32.mrb[35].mxu0  ;;  %vm2923_vm14 = vcmp.ge.f32.partialorder %v2557_v53, 0.0  ;;  %v3243_v24 = vmul.f32 0.01, %v2557_v53  ;;  %v3666_v54 = vpack.c.bf16 %v3561_v0, %v3559_v9  ;;  %16022 = vst [vmem:[#allocation22_spill] sm:$0xff] %v11609_v35 }
 0x371   : > { %16021 = vst [vmem:[#allocation21_spill] sm:$0xff] %v11602_v63  ;;  %vm2666_vm0 = vcmp.ge.f32.partialorder %v1913_v10, 0.0  ;;  %vm2668_vm1 = vcmp.ge.f32.partialorder %v1919_v6, 0.0  ;;  %v2990_v57 = vmul.f32 0.01, %v1923_v8  ;;  %vm2670_vm2 = vcmp.ge.f32.partialorder %v1923_v8, 0.0 }
 0x372   : > { %vm2925_vm15 = vcmp.ge.f32.partialorder %v2561_v7, 0.0  ;;  %v3245_v47 = vmul.f32 0.01, %v2561_v7  ;;  %8649 = vmatmul.mubr.bf16.gmra.mrb[136].mxu1 %v3666_v54  ;;  %v3563_v56 = vsel %vm2923_vm14, %v2557_v53, %v3243_v24  ;;  %v11615_v9 = vsel %vm2660_vm8, %v11541_v19, %v2980_v44 }
 0x373   : > { %v8598_v51 = vpop.f32.mrb[84].mxu1  ;;  %16023 = vst [vmem:[#allocation231_spill] sm:$0xff] %v11615_v9  ;;  %v11619_v3 = vsel %vm2662_vm12, %v1903_v60, %v2982_v46  ;;  %v11622_v50 = vsel %vm2664_vm13, %v1909_v48, %v2984_v28  ;;  %v11629_v19 = vsel %vm2666_vm0, %v1913_v10, %v2986_v16  ;;  %v11632_v53 = vsel %vm2668_vm1, %v1919_v6, %v2988_v25  ;;  %v16040_v9 = vld [vmem:[#allocation27_spill] sm:$0xff] }
 0x374   : > { %v3565_v37 = vsel %vm2925_vm15, %v2561_v7, %v3245_v47  ;;  %v4141_v0 = vadd.f32 %v11546_v33, %v8598_v51  ;;  %v4132_v23 = vpop.f32.mrb[85].mxu1  ;;  %16024 = vst [vmem:[#allocation232_spill] sm:$0xff] %v11619_v3  ;;  %16025 = vst [vmem:[#allocation233_spill] sm:$0xff] %v11622_v50  ;;  %v11636_v28 = vsel %vm2670_vm2, %v1923_v8, %v2990_v57  ;;  %v16030_v47 = vld [vmem:[#allocation23_spill] sm:$0xff]  ;;  %v16041_v50 = vld [vmem:[#allocation28_spill] sm:$0xff] }
 0x375   : > { %v2566_v14 = vpop.f32.mrb[36].mxu0  ;;  %v3667_v63 = vpack.c.bf16 %v3565_v37, %v3563_v56  ;;  %v4133_v54 = vadd.f32 %v11546_v33, %v4132_v23  ;;  %v8599_v24 = vpop.f32.mrb[86].mxu1  ;;  %16027 = vst [vmem:[#allocation235_spill] sm:$0xff] %v11629_v19  ;;  %16028 = vst [vmem:[#allocation236_spill] sm:$0xff] %v11632_v53  ;;  %v1929_v51 = vadd.f32 %v16030_v47, %v10198_v38  ;;  %v16031_v56 = vld [vmem:[#allocation24_spill] sm:$0xff] }
 0x376   : > { %v2567_v7 = vadd.f32 %v2566_v14, %v10269_v62  ;;  %v11626_v45 = vpop.f32.mrb[37].mxu0  ;;  %vm4509_vm3 = vcmp.ge.f32.partialorder %v4141_v0, 0.0  ;;  %v4669_v44 = vmul.f32 0.01, %v4141_v0  ;;  %v4144_v60 = vadd.f32 %v11546_v33, %v8599_v24  ;;  %v4135_v46 = vpop.f32.mrb[87].mxu1  ;;  %16029 = vst [vmem:[#allocation237_spill] sm:$0xff] %v11636_v28 }
 0x377   : > { %16026 = vst [vmem:[#allocation234_spill] sm:$0xff] %v11626_v45  ;;  %v2570_v48 = vpop.f32.mrb[38].mxu0  ;;  %8652 = vmatprep.mubr.bf16.mxu1 %v3667_v63  ;;  %v1933_v16 = vadd.f32 %v16031_v56, %v10198_v38  ;;  %vm4507_vm4 = vcmp.ge.f32.partialorder %v4133_v54, 0.0  ;;  %v4667_v10 = vmul.f32 0.01, %v4133_v54  ;;  %v4136_v37 = vadd.f32 %v11546_v33, %v4135_v46  ;;  %v16039_v46 = vld [vmem:[#allocation26_spill] sm:$0xff] }
 0x378   : > { %v11642_v6 = vsel %vm4509_vm3, %v4141_v0, %v4669_v44  ;;  %vm4510_vm5 = vcmp.ge.f32.partialorder %v4144_v60, 0.0  ;;  %v4670_v25 = vmul.f32 0.01, %v4144_v60  ;;  %v11645_v23 = vpop.f32.mrb[39].mxu0  ;;  %v3247_v8 = vmul.f32 0.01, %v2567_v7 }
 0x379   : > { %16032 = vst [vmem:[#allocation23_spill] sm:$0xff] %v11642_v6  ;;  %16033 = vst [vmem:[#allocation24_spill] sm:$0xff] %v11645_v23  ;;  %v11649_v63 = vsel %vm4507_vm4, %v4133_v54, %v4667_v10  ;;  %v2571_v14 = vadd.f32 %v2570_v48, %v10269_v62  ;;  %vm4508_vm6 = vcmp.ge.f32.partialorder %v4136_v37, 0.0  ;;  %v4668_v0 = vmul.f32 0.01, %v4136_v37  ;;  %v16037_v48 = vld [vmem:[#allocation25_spill] sm:$0xff] }
 0x37a   : > { %16034 = vst [vmem:[#allocation238_spill] sm:$0xff] %v11649_v63  ;;  %v11654_v47 = vsel %vm4510_vm5, %v4144_v60, %v4670_v25  ;;  %v2992_v44 = vmul.f32 0.01, %v1929_v51  ;;  %vm2927_vm7 = vcmp.ge.f32.partialorder %v2567_v7, 0.0  ;;  %vm2672_vm9 = vcmp.ge.f32.partialorder %v1929_v51, 0.0 }
 0x37b   : > { %16035 = vst [vmem:[#allocation239_spill] sm:$0xff] %v11654_v47  ;;  %vm2929_vm8 = vcmp.ge.f32.partialorder %v2571_v14, 0.0  ;;  %v2994_v56 = vmul.f32 0.01, %v1933_v16  ;;  %v11658_v54 = vsel %vm4508_vm6, %v4136_v37, %v4668_v0  ;;  %v3249_v10 = vmul.f32 0.01, %v2571_v14 }
 0x37c   : > { %16036 = vst [vmem:[#allocation240_spill] sm:$0xff] %v11658_v54  ;;  %vm2674_vm10 = vcmp.ge.f32.partialorder %v1933_v16, 0.0  ;;  %v1939_v24 = vadd.f32 %v16037_v48, %v10198_v38  ;;  %v1943_v19 = vadd.f32 %v16039_v46, %v10198_v38  ;;  %v1949_v37 = vadd.f32 %v16040_v9, %v10198_v38  ;;  %v16045_v9 = vld [vmem:[#allocation29_spill] sm:$0xff] }
 0x37d   : > { %v2576_v57 = vpop.f32.mrb[40].mxu0  ;;  %v3567_v28 = vsel %vm2927_vm7, %v2567_v7, %v3247_v8  ;;  %v3569_v53 = vsel %vm2929_vm8, %v2571_v14, %v3249_v10  ;;  %v11673_v35 = vadd.f32 %v16041_v50, %v10198_v38  ;;  %v11682_v46 = vsel %vm2674_vm10, %v1933_v16, %v2994_v56  ;;  %v16046_v50 = vld [vmem:[#allocation30_spill] sm:$0xff] }
 0x37e   : > { %v2577_v25 = vadd.f32 %v2576_v57, %v10269_v62  ;;  %v11665_v3 = vpop.f32.mrb[41].mxu0  ;;  %v3668_v23 = vpack.c.bf16 %v3569_v53, %v3567_v28  ;;  %16044 = vst [vmem:[#allocation28_spill] sm:$0xff] %v11682_v46  ;;  %v11686_v7 = vadd.f32 %v16045_v9, %v10198_v38  ;;  %v2996_v8 = vmul.f32 0.01, %v1939_v24 }
 0x37f   : > { %16038 = vst [vmem:[#allocation25_spill] sm:$0xff] %v11665_v3  ;;  %v2580_v0 = vpop.f32.mrb[42].mxu0  ;;  %v11679_v3 = vsel %vm2672_vm9, %v1929_v51, %v2992_v44  ;;  %v11690_v14 = vadd.f32 %v16046_v50, %v10198_v38  ;;  %vm2676_vm13 = vcmp.ge.f32.partialorder %v1939_v24, 0.0  ;;  %vm2678_vm14 = vcmp.ge.f32.partialorder %v1943_v19, 0.0 }
 0x380   : > { %v3251_v48 = vmul.f32 0.01, %v2577_v25  ;;  %v2581_v60 = vadd.f32 %v2580_v0, %v10269_v62  ;;  %v11676_v57 = vpop.f32.mrb[43].mxu0  ;;  %16043 = vst [vmem:[#allocation27_spill] sm:$0xff] %v11679_v3  ;;  %vm2931_vm11 = vcmp.ge.f32.partialorder %v2577_v25, 0.0  ;;  %8653 = vmatmul.mubr.bf16.gmra.mrb[140].mxu1 %v3668_v23  ;;  %vm2680_vm15 = vcmp.ge.f32.partialorder %v1949_v37, 0.0 }
 0x381   : > { %16042 = vst [vmem:[#allocation26_spill] sm:$0xff] %v11676_v57  ;;  %v2998_v28 = vmul.f32 0.01, %v1943_v19  ;;  %v3000_v51 = vmul.f32 0.01, %v1949_v37  ;;  %vm2682_vm0 = vcmp.ge.f32.partialorder %v11673_v35, 0.0 }
 0x382   : > { %vm2933_vm12 = vcmp.ge.f32.partialorder %v2581_v60, 0.0  ;;  %v3253_v53 = vmul.f32 0.01, %v2581_v60  ;;  %v3571_v44 = vsel %vm2931_vm11, %v2577_v25, %v3251_v48  ;;  %v3002_v10 = vmul.f32 0.01, %v11673_v35 }
 0x383   : > { %vm2684_vm1 = vcmp.ge.f32.partialorder %v11686_v7, 0.0  ;;  %v3004_v23 = vmul.f32 0.01, %v11686_v7  ;;  %v11698_v3 = vmul.f32 0.01, %v11690_v14  ;;  %vm2686_vm3 = vcmp.ge.f32.partialorder %v11690_v14, 0.0 }
 0x384   : > { %v8602_v16 = vpop.f32.mrb[88].mxu1  ;;  %v3573_v56 = vsel %vm2933_vm12, %v2581_v60, %v3253_v53  ;;  %v11704_v60 = vsel %vm2676_vm13, %v1939_v24, %v2996_v8 }
 0x385   : > { %v4157_v0 = vadd.f32 %v11546_v33, %v8602_v16  ;;  %v4148_v9 = vpop.f32.mrb[89].mxu1  ;;  %v2586_v50 = vpop.f32.mrb[44].mxu0  ;;  %v3669_v46 = vpack.c.bf16 %v3573_v56, %v3571_v44  ;;  %16048 = vst [vmem:[#allocation30_spill] sm:$0xff] %v11704_v60  ;;  %v11708_v44 = vsel %vm2678_vm14, %v1943_v19, %v2998_v28  ;;  %v16050_v56 = vld [vmem:[#allocation31_spill] sm:$0xff]  ;;  %v16053_v19 = vld [vmem:[#allocation32_spill] sm:$0xff] }
 0x386   : > { %v4149_v57 = vadd.f32 %v11546_v33, %v4148_v9  ;;  %v8603_v45 = vpop.f32.mrb[90].mxu1  ;;  %v11701_v40 = vpop.f32.mrb[45].mxu0  ;;  %16049 = vst [vmem:[#allocation241_spill] sm:$0xff] %v11708_v44  ;;  %v1969_v9 = vadd.f32 %v16050_v56, %v10198_v38  ;;  %v2587_v24 = vadd.f32 %v2586_v50, %v10269_v62  ;;  %v11726_v56 = vsel %vm2680_vm15, %v1949_v37, %v3000_v51 }
 0x387   : > { %16047 = vst [vmem:[#allocation29_spill] sm:$0xff] %v11701_v40  ;;  %vm4513_vm2 = vcmp.ge.f32.partialorder %v4157_v0, 0.0  ;;  %v4673_v25 = vmul.f32 0.01, %v4157_v0  ;;  %v4160_v48 = vadd.f32 %v11546_v33, %v8603_v45  ;;  %v4151_v53 = vpop.f32.mrb[91].mxu1  ;;  %v2590_v16 = vpop.f32.mrb[46].mxu0  ;;  %8656 = vmatprep.mubr.bf16.mxu1 %v3669_v46  ;;  %v1973_v46 = vadd.f32 %v16053_v19, %v10198_v38 }
 0x388   : > { %vm4511_vm4 = vcmp.ge.f32.partialorder %v4149_v57, 0.0  ;;  %v4671_v40 = vmul.f32 0.01, %v4149_v57  ;;  %v4152_v45 = vadd.f32 %v11546_v33, %v4151_v53  ;;  %v11717_v4 = vpop.f32.mrb[47].mxu0  ;;  %16055 = vst [vmem:[#allocation243_spill] sm:$0xff] %v11726_v56  ;;  %vm2688_vm7 = vcmp.ge.f32.partialorder %v1969_v9, 0.0 }
 0x389   : > { %v11714_v8 = vsel %vm4513_vm2, %v4157_v0, %v4673_v25  ;;  %vm4514_vm5 = vcmp.ge.f32.partialorder %v4160_v48, 0.0  ;;  %v4674_v60 = vmul.f32 0.01, %v4160_v48  ;;  %16052 = vst [vmem:[#allocation242_spill] sm:$0xff] %v11717_v4  ;;  %v16057_v53 = vld [vmem:[#allocation33_spill] sm:$0xff]  ;;  %vm2935_vm8 = vcmp.ge.f32.partialorder %v2587_v24, 0.0 }
 0x38a   : > { %16051 = vst [vmem:[#allocation31_spill] sm:$0xff] %v11714_v8  ;;  %v11723_v44 = vsel %vm4511_vm4, %v4149_v57, %v4671_v40  ;;  %vm4512_vm6 = vcmp.ge.f32.partialorder %v4152_v45, 0.0  ;;  %v4672_v25 = vmul.f32 0.01, %v4152_v45  ;;  %v1979_v4 = vadd.f32 %v16057_v53, %v10198_v38  ;;  %v16061_v19 = vld [vmem:[#allocation34_spill] sm:$0xff] }
 0x38b   : > { %16054 = vst [vmem:[#allocation32_spill] sm:$0xff] %v11723_v44  ;;  %v11730_v50 = vsel %vm4514_vm5, %v4160_v48, %v4674_v60  ;;  %v2591_v40 = vadd.f32 %v2590_v16, %v10269_v62  ;;  %v3008_v57 = vmul.f32 0.01, %v1969_v9  ;;  %v3255_v28 = vmul.f32 0.01, %v2587_v24  ;;  %v9319_v48 = vld [vmem:[%s15379_s5 + $0x20] sm:$0xff]  }
 0x38c   : > { %16056 = vst [vmem:[#allocation244_spill] sm:$0xff] %v11730_v50  ;;  %v11737_v37 = vsel %vm4512_vm6, %v4152_v45, %v4672_v25  ;;  %v11742_v60 = vsel %vm2682_vm0, %v11673_v35, %v3002_v10  ;;  %vm2690_vm10 = vcmp.ge.f32.partialorder %v1973_v46, 0.0  ;;  %v3010_v16 = vmul.f32 0.01, %v1973_v46  ;;  %8676 = vmatprep.subr.bf16.mxu1 %v9319_v48 }
 0x38d   : > { %16058 = vst [vmem:[#allocation33_spill] sm:$0xff] %v11737_v37  ;;  %v2596_v51 = vpop.f32.mrb[48].mxu0  ;;  %16059 = vst [vmem:[#allocation245_spill] sm:$0xff] %v11742_v60  ;;  %vm2937_vm9 = vcmp.ge.f32.partialorder %v2591_v40, 0.0  ;;  %v3257_v53 = vmul.f32 0.01, %v2591_v40  ;;  %v11750_v45 = vadd.f32 %v16061_v19, %v10198_v38  ;;  %8677 = vmatpush3.bf16.msra.mxu1 %v9319_v48 }
 0x38e   : > { %v11746_v0 = vpop.f32.mrb[49].mxu0  ;;  %v2597_v25 = vadd.f32 %v2596_v51, %v10269_v62  ;;  %v3012_v30 = vmul.f32 0.01, %v1979_v4  ;;  %v16064_v19 = vld [vmem:[#allocation35_spill] sm:$0xff]  ;;  %vm2692_vm13 = vcmp.ge.f32.partialorder %v1979_v4, 0.0 }
 0x38f   : > { %16060 = vst [vmem:[#allocation246_spill] sm:$0xff] %v11746_v0  ;;  %v2600_v56 = vpop.f32.mrb[50].mxu0  ;;  %v3577_v10 = vsel %vm2937_vm9, %v2591_v40, %v3257_v53  ;;  %v11762_v0 = vsel %vm2684_vm1, %v11686_v7, %v3004_v23  ;;  %v11766_v20 = vadd.f32 %v16064_v19, %v10198_v38  ;;  %v16065_v40 = vld [vmem:[#allocation36_spill] sm:$0xff]  ;;  %vm2694_vm14 = vcmp.ge.f32.partialorder %v11750_v45, 0.0 }
 0x390   : > { %v2601_v35 = vadd.f32 %v2600_v56, %v10269_v62  ;;  %v11754_v60 = vpop.f32.mrb[51].mxu0  ;;  %16063 = vst [vmem:[#allocation247_spill] sm:$0xff] %v11762_v0  ;;  %vm2939_vm11 = vcmp.ge.f32.partialorder %v2597_v25, 0.0  ;;  %v3259_v51 = vmul.f32 0.01, %v2597_v25  ;;  %v3575_v56 = vsel %vm2935_vm8, %v2587_v24, %v3255_v28  ;;  %v16067_v24 = vld [vmem:[#allocation37_spill] sm:$0xff] }
 0x391   : > { %16062 = vst [vmem:[#allocation34_spill] sm:$0xff] %v11754_v60  ;;  %v11771_v53 = vadd.f32 %v16065_v40, %v10198_v38  ;;  %v3670_v43 = vpack.c.bf16 %v3577_v10, %v3575_v56  ;;  %v3014_v7 = vmul.f32 0.01, %v11750_v45  ;;  %v11779_v23 = vsel %vm2686_vm3, %v11690_v14, %v11698_v3 }
 0x392   : > { %vm2941_vm12 = vcmp.ge.f32.partialorder %v2601_v35, 0.0  ;;  %v3261_v60 = vmul.f32 0.01, %v2601_v35  ;;  %16066 = vst [vmem:[#allocation35_spill] sm:$0xff] %v11779_v23  ;;  %v11783_v28 = vadd.f32 %v16067_v24, %v10198_v38  ;;  %v3579_v10 = vsel %vm2939_vm11, %v2597_v25, %v3259_v51  ;;  %v16072_v51 = vld [vmem:[#allocation38_spill] sm:$0xff] }
 0x393   : > { %8657 = vmatmul.mubr.bf16.gmra.mrb[144].mxu1 %v3670_v43  ;;  %v11787_v40 = vsel %vm2688_vm7, %v1969_v9, %v3008_v57  ;;  %v11790_v48 = vmul.f32 0.01, %v11766_v20  ;;  %v11794_v23 = vsel %vm2690_vm10, %v1973_v46, %v3010_v16  ;;  %vm2696_vm15 = vcmp.ge.f32.partialorder %v11766_v20, 0.0 }
 0x394   : > { %v8606_v19 = vpop.f32.mrb[92].mxu1  ;;  %v3581_v56 = vsel %vm2941_vm12, %v2601_v35, %v3261_v60  ;;  %16068 = vst [vmem:[#allocation36_spill] sm:$0xff] %v11787_v40  ;;  %16069 = vst [vmem:[#allocation37_spill] sm:$0xff] %v11794_v23  ;;  %v11798_v43 = vmul.f32 0.01, %v11771_v53  ;;  %v11805_v35 = vsel %vm2692_vm13, %v1979_v4, %v3012_v30  ;;  %v11809_v24 = vadd.f32 %v16072_v51, %v10198_v38  ;;  %v16074_v30 = vld [vmem:[#allocation40_spill] sm:$0xff] }
 0x395   : > { %v4173_v0 = vadd.f32 %v11546_v33, %v8606_v19  ;;  %v4164_v61 = vpop.f32.mrb[93].mxu1  ;;  %v2606_v3 = vpop.f32.mrb[52].mxu0  ;;  %v3671_v14 = vpack.c.bf16 %v3581_v56, %v3579_v10  ;;  %16071 = vst [vmem:[#allocation249_spill] sm:$0xff] %v11805_v35  ;;  %vm2698_vm1 = vcmp.ge.f32.partialorder %v11771_v53, 0.0  ;;  %vm2700_vm2 = vcmp.ge.f32.partialorder %v11783_v28, 0.0 }
 0x396   : > { %v4165_v60 = vadd.f32 %v11546_v33, %v4164_v61  ;;  %v8607_v9 = vpop.f32.mrb[94].mxu1  ;;  %v2607_v57 = vadd.f32 %v2606_v3, %v10269_v62  ;;  %v11802_v25 = vpop.f32.mrb[53].mxu0  ;;  %v16073_v61 = vld [vmem:[#allocation39_spill] sm:$0xff]  ;;  %v2013_v4 = vadd.f32 %v16074_v30, %v10198_v38  ;;  %vm2702_vm8 = vcmp.ge.f32.partialorder %v11809_v24, 0.0 }
 0x397   : > { %16070 = vst [vmem:[#allocation248_spill] sm:$0xff] %v11802_v25  ;;  %vm4517_vm0 = vcmp.ge.f32.partialorder %v4173_v0, 0.0  ;;  %v4677_v46 = vmul.f32 0.01, %v4173_v0  ;;  %v4176_v16 = vadd.f32 %v11546_v33, %v8607_v9  ;;  %v4167_v19 = vpop.f32.mrb[95].mxu1  ;;  %v2610_v10 = vpop.f32.mrb[54].mxu0  ;;  %8660 = vmatprep.mubr.bf16.mxu1 %v3671_v14  ;;  %v2009_v56 = vadd.f32 %v16073_v61, %v10198_v38 }
 0x398   : > { %vm4515_vm3 = vcmp.ge.f32.partialorder %v4165_v60, 0.0  ;;  %v4675_v3 = vmul.f32 0.01, %v4165_v60  ;;  %v4168_v9 = vadd.f32 %v11546_v33, %v4167_v19  ;;  %v11821_v23 = vpop.f32.mrb[55].mxu0  ;;  %v3263_v25 = vmul.f32 0.01, %v2607_v57 }
 0x399   : > { %v11818_v51 = vsel %vm4517_vm0, %v4173_v0, %v4677_v46  ;;  %vm4518_vm4 = vcmp.ge.f32.partialorder %v4176_v16, 0.0  ;;  %v4678_v35 = vmul.f32 0.01, %v4176_v16  ;;  %16076 = vst [vmem:[#allocation39_spill] sm:$0xff] %v11821_v23  ;;  %v2611_v61 = vadd.f32 %v2610_v10, %v10269_v62 }
 0x39a   : > { %16075 = vst [vmem:[#allocation38_spill] sm:$0xff] %v11818_v51  ;;  %v11825_v40 = vsel %vm4515_vm3, %v4165_v60, %v4675_v3  ;;  %vm4516_vm5 = vcmp.ge.f32.partialorder %v4168_v9, 0.0  ;;  %v4676_v0 = vmul.f32 0.01, %v4168_v9  ;;  %v3020_v46 = vmul.f32 0.01, %v11783_v28 }
 0x39b   : > { %16077 = vst [vmem:[#allocation40_spill] sm:$0xff] %v11825_v40  ;;  %v11830_v27 = vsel %vm4518_vm4, %v4176_v16, %v4678_v35  ;;  %vm2943_vm6 = vcmp.ge.f32.partialorder %v2607_v57, 0.0  ;;  %vm2945_vm7 = vcmp.ge.f32.partialorder %v2611_v61, 0.0  ;;  %v3265_v3 = vmul.f32 0.01, %v2611_v61 }
 0x39c   : > { %16078 = vst [vmem:[#allocation250_spill] sm:$0xff] %v11830_v27  ;;  %v11836_v60 = vsel %vm4516_vm5, %v4168_v9, %v4676_v0  ;;  %v11841_v35 = vsel %vm2694_vm14, %v11750_v45, %v3014_v7  ;;  %vm2704_vm9 = vcmp.ge.f32.partialorder %v2009_v56, 0.0  ;;  %v3024_v16 = vmul.f32 0.01, %v2009_v56 }
 0x39d   : > { %16079 = vst [vmem:[#allocation251_spill] sm:$0xff] %v11836_v60  ;;  %v2616_v10 = vpop.f32.mrb[56].mxu0  ;;  %16080 = vst [vmem:[#allocation252_spill] sm:$0xff] %v11841_v35  ;;  %vm2706_vm10 = vcmp.ge.f32.partialorder %v2013_v4, 0.0  ;;  %v3026_v23 = vmul.f32 0.01, %v2013_v4  ;;  %v3583_v0 = vsel %vm2943_vm6, %v2607_v57, %v3263_v25  ;;  %v3585_v13 = vsel %vm2945_vm7, %v2611_v61, %v3265_v3 }
 0x39e   : > { %v2617_v19 = vadd.f32 %v2616_v10, %v10269_v62  ;;  %v11846_v14 = vpop.f32.mrb[57].mxu0  ;;  %v3672_v7 = vpack.c.bf16 %v3585_v13, %v3583_v0  ;;  %v3022_v30 = vmul.f32 0.01, %v11809_v24  ;;  %v16082_v10 = vld [vmem:[#allocation42_spill] sm:$0xff]  ;;  %v11860_v57 = vsel %vm2696_vm15, %v11766_v20, %v11790_v48  ;;  %v16085_v61 = vld [vmem:[#allocation44_spill] sm:$0xff] }
 0x39f   : > { %v2620_v9 = vpop.f32.mrb[58].mxu0  ;;  %v2023_v5 = vadd.f32 %v16082_v10, %v10198_v38  ;;  %16083 = vst [vmem:[#allocation41_spill] sm:$0xff] %v11860_v57  ;;  %v2029_v25 = vadd.f32 %v16084_v58, %v10198_v38  ;;  %v2033_v13 = vadd.f32 %v16085_v61, %v10198_v38  ;;  %v11870_v0 = vsel %vm2706_vm10, %v2013_v4, %v3026_v23 }
 0x3a0   : > { %v3267_v15 = vmul.f32 0.01, %v2617_v19  ;;  %v2621_v45 = vadd.f32 %v2620_v9, %v10269_v62  ;;  %v11851_v35 = vpop.f32.mrb[59].mxu0  ;;  %vm2947_vm11 = vcmp.ge.f32.partialorder %v2617_v19, 0.0  ;;  %8661 = vmatmul.mubr.bf16.gmra.mrb[148].mxu1 %v3672_v7  ;;  %v11867_v9 = vsel %vm2704_vm9, %v2009_v56, %v3024_v16  ;;  %16087 = vst [vmem:[#allocation43_spill] sm:$0xff] %v11870_v0 }
 0x3a1   : > { %16086 = vst [vmem:[#allocation42_spill] sm:$0xff] %v11867_v9  ;;  %v11876_v20 = vsel %vm2698_vm1, %v11771_v53, %v11798_v43  ;;  %v11881_v48 = vsel %vm2700_vm2, %v11783_v28, %v3020_v46  ;;  %vm2708_vm13 = vcmp.ge.f32.partialorder %v2019_v55, 0.0  ;;  %v3028_v10 = vmul.f32 0.01, %v2019_v55 }
 0x3a2   : > { %vm2949_vm12 = vcmp.ge.f32.partialorder %v2621_v45, 0.0  ;;  %v3269_v3 = vmul.f32 0.01, %v2621_v45  ;;  %16088 = vst [vmem:[#allocation44_spill] sm:$0xff] %v11876_v20  ;;  %16089 = vst [vmem:[#allocation253_spill] sm:$0xff] %v11881_v48  ;;  %v3587_v58 = vsel %vm2947_vm11, %v2617_v19, %v3267_v15  ;;  %vm2710_vm14 = vcmp.ge.f32.partialorder %v2023_v5, 0.0 }
 0x3a3   : > { %v3030_v16 = vmul.f32 0.01, %v2023_v5  ;;  %v3032_v9 = vmul.f32 0.01, %v2029_v25  ;;  %v3034_v53 = vmul.f32 0.01, %v2033_v13  ;;  %v11890_v28 = vsel %vm2702_vm8, %v11809_v24, %v3022_v30 }
 0x3a4   : > { %v8610_v7 = vpop.f32.mrb[96].mxu1  ;;  %v3589_v56 = vsel %vm2949_vm12, %v2621_v45, %v3269_v3  ;;  %16091 = vst [vmem:[#allocation255_spill] sm:$0xff] %v11890_v28  ;;  %vm2712_vm15 = vcmp.ge.f32.partialorder %v2029_v25, 0.0  ;;  %v16092_v3 = vld [vmem:[#allocation45_spill] sm:$0xff]  ;;  %vm2714_vm3 = vcmp.ge.f32.partialorder %v2033_v13, 0.0 }
 0x3a5   : > { %v4189_v23 = vadd.f32 %v11546_v33, %v8610_v7  ;;  %v4180_v4 = vpop.f32.mrb[97].mxu1  ;;  %v2626_v61 = vpop.f32.mrb[60].mxu0  ;;  %v3673_v0 = vpack.c.bf16 %v3589_v56, %v3587_v58  ;;  %v2039_v7 = vadd.f32 %v16092_v3, %v10198_v38 }
 0x3a6   : > { %v4181_v43 = vadd.f32 %v11546_v33, %v4180_v4  ;;  %v8611_v20 = vpop.f32.mrb[98].mxu1  ;;  %v11885_v57 = vpop.f32.mrb[61].mxu0  ;;  %v2627_v56 = vadd.f32 %v2626_v61, %v10269_v62 }
 0x3a7   : > { %16090 = vst [vmem:[#allocation254_spill] sm:$0xff] %v11885_v57  ;;  %vm4521_vm0 = vcmp.ge.f32.partialorder %v4189_v23, 0.0  ;;  %v4681_v15 = vmul.f32 0.01, %v4189_v23  ;;  %v4192_v46 = vadd.f32 %v11546_v33, %v8611_v20  ;;  %v4183_v19 = vpop.f32.mrb[99].mxu1  ;;  %v2630_v45 = vpop.f32.mrb[62].mxu0  ;;  %8664 = vmatprep.mubr.bf16.mxu1 %v3673_v0  ;;  %v11902_v20 = vsel %vm2708_vm13, %v2019_v55, %v3028_v10 }
 0x3a8   : > { %vm4519_vm1 = vcmp.ge.f32.partialorder %v4181_v43, 0.0  ;;  %v4679_v58 = vmul.f32 0.01, %v4181_v43  ;;  %v4184_v30 = vadd.f32 %v11546_v33, %v4183_v19  ;;  %v11899_v28 = vpop.f32.mrb[63].mxu0  ;;  %16095 = vst [vmem:[#allocation257_spill] sm:$0xff] %v11902_v20  ;;  %v16096_v0 = vmax.f32 %v11299_v34, %v11563_v26 }
 0x3a9   : > { %v11896_v4 = vsel %vm4521_vm0, %v4189_v23, %v4681_v15  ;;  %vm4522_vm2 = vcmp.ge.f32.partialorder %v4192_v46, 0.0  ;;  %v4682_v24 = vmul.f32 0.01, %v4192_v46  ;;  %16094 = vst [vmem:[#allocation256_spill] sm:$0xff] %v11899_v28  ;;  %v16098_v23 = vmax.f32 %v11307_v32, %v11573_v36 }
 0x3aa   : > { %16093 = vst [vmem:[#allocation45_spill] sm:$0xff] %v11896_v4  ;;  %v11908_v3 = vmax.f32 %v16096_v0, %v11896_v4  ;;  %v11910_v48 = vsel %vm4519_vm1, %v4181_v43, %v4679_v58  ;;  %vm4520_vm4 = vcmp.ge.f32.partialorder %v4184_v30, 0.0  ;;  %v4680_v55 = vmul.f32 0.01, %v4184_v30 }
 0x3ab   : > { %16097 = vst [vmem:[#allocation258_spill] sm:$0xff] %v11910_v48  ;;  %v11916_v61 = vmax.f32 %v16098_v23, %v11910_v48  ;;  %v11918_v15 = vsel %vm4522_vm2, %v4192_v46, %v4682_v24  ;;  %v11921_v10 = vsel %vm2710_vm14, %v2023_v5, %v3030_v16  ;;  %v11924_v19 = vsel %vm2712_vm15, %v2029_v25, %v3032_v9  ;;  %v16107_v23 = vld [vmem:[#allocation47_spill] sm:$0xff]  ;;  %v16123_v48 = vld [vmem:[#allocation54_spill] sm:$0xff] }
 0x3ac   : > { %16099 = vst [vmem:[#allocation259_spill] sm:$0xff] %v11918_v15  ;;  %16100 = vst [vmem:[#allocation260_spill] sm:$0xff] %v11921_v10  ;;  %v16102_v34 = vmax.f32 %v11315_v11, %v11577_v31  ;;  %v2631_v32 = vadd.f32 %v2630_v45, %v10269_v62  ;;  %v11933_v58 = vsel %vm2714_vm3, %v2033_v13, %v3034_v53  ;;  %vm2716_vm5 = vcmp.ge.f32.partialorder %v2039_v7, 0.0  ;;  %v16106_v62 = vld [vmem:[#allocation46_spill] sm:$0xff] }
 0x3ad   : > { %16101 = vst [vmem:[#allocation261_spill] sm:$0xff] %v11924_v19  ;;  %16103 = vst [vmem:[#allocation262_spill] sm:$0xff] %v11933_v58  ;;  %v3271_v46 = vmul.f32 0.01, %v2627_v56  ;;  %v11935_v24 = vsel %vm4520_vm4, %v4184_v30, %v4680_v55  ;;  %v8510_v0 = vpop.f32.mrb[64].mxu0  ;;  %vm2951_vm6 = vcmp.ge.f32.partialorder %v2627_v56, 0.0  ;;  %v16105_v5 = vmax.f32 %v11324_v12, %v11589_v29 }
 0x3ae   : > { %v11930_v43 = vmax.f32 %v16102_v34, %v11918_v15  ;;  %16104 = vst [vmem:[#allocation263_spill] sm:$0xff] %v11935_v24  ;;  %vm2953_vm7 = vcmp.ge.f32.partialorder %v2631_v32, 0.0  ;;  %v3273_v11 = vmul.f32 0.01, %v2631_v32  ;;  %v3780_v9 = vpop.f32.mrb[65].mxu0  ;;  %v11945_v13 = vadd.f32 %v16106_v62, %v10198_v38  ;;  %v16108_v12 = vld [vmem:[#allocation48_spill] sm:$0xff] }
 0x3af   : > { %v11941_v25 = vmax.f32 %v16105_v5, %v11935_v24  ;;  %v3036_v16 = vmul.f32 0.01, %v2039_v7  ;;  %v3789_v53 = vadd.f32 %v11546_v33, %v8510_v0  ;;  %v3781_v45 = vadd.f32 %v11546_v33, %v3780_v9  ;;  %v8511_v30 = vpop.f32.mrb[66].mxu0  ;;  %v16122_v15 = vld [vmem:[#allocation53_spill] sm:$0xff] }
 0x3b0   : > { %v11951_v55 = vadd.f32 %v16107_v23, %v10198_v38  ;;  %v11955_v34 = vadd.f32 %v16108_v12, %v10198_v38  ;;  %v3792_v5 = vadd.f32 %v11546_v33, %v8511_v30  ;;  %v3593_v58 = vsel %vm2953_vm7, %v2631_v32, %v3273_v11  ;;  %v3783_v19 = vpop.f32.mrb[67].mxu0  ;;  %v16111_v11 = vld [vmem:[#allocation49_spill] sm:$0xff] }
 0x3b1   : > { %vm4421_vm8 = vcmp.ge.f32.partialorder %v3789_v53, 0.0  ;;  %v4581_v62 = vmul.f32 0.01, %v3789_v53  ;;  %vm4419_vm9 = vcmp.ge.f32.partialorder %v3781_v45, 0.0  ;;  %v3591_v0 = vsel %vm2951_vm6, %v2627_v56, %v3271_v46 }
 0x3b2   : > { %v4579_v10 = vmul.f32 0.01, %v3781_v45  ;;  %vm4422_vm10 = vcmp.ge.f32.partialorder %v3792_v5, 0.0  ;;  %v4582_v9 = vmul.f32 0.01, %v3792_v5  ;;  %v3674_v20 = vpack.c.bf16 %v3593_v58, %v3591_v0 }
 0x3b3   : > { %v11960_v23 = vsel %vm2716_vm5, %v2039_v7, %v3036_v16  ;;  %v11963_v28 = vmul.f32 0.01, %v11945_v13  ;;  %v11965_v12 = vsel %vm4421_vm8, %v3789_v53, %v4581_v62  ;;  %v3784_v32 = vadd.f32 %v11546_v33, %v3783_v19 }
 0x3b4   : > { %16109 = vst [vmem:[#allocation46_spill] sm:$0xff] %v11960_v23  ;;  %16110 = vst [vmem:[#allocation47_spill] sm:$0xff] %v11965_v12  ;;  %v11970_v30 = vadd.f32 %v16111_v11, %v10198_v38  ;;  %v16112_v56 = vmax.f32 %v11476_v42, %v11818_v51  ;;  %v11978_v58 = vsel %vm4419_vm9, %v3781_v45, %v4579_v10  ;;  %8665 = vmatmul.mubr.bf16.gmra.mrb[152].mxu1 %v3674_v20  ;;  %v8614_v16 = vpop.f32.mrb[100].mxu1  ;;  %v16117_v11 = vld [vmem:[#allocation50_spill] sm:$0xff] }
 0x3b5   : > { %16113 = vst [vmem:[#allocation48_spill] sm:$0xff] %v11978_v58  ;;  %v11980_v7 = vsel %vm4422_vm10, %v3792_v5, %v4582_v9  ;;  %v16115_v19 = vmax.f32 %v11485_v17, %v11825_v40  ;;  %v16116_v62 = vmax.f32 %v11493_v49, %v11830_v27  ;;  %vm4420_vm11 = vcmp.ge.f32.partialorder %v3784_v32, 0.0  ;;  %v4196_v10 = vpop.f32.mrb[101].mxu1  ;;  %v16118_v49 = vld [vmem:[#allocation51_spill] sm:$0xff] }
 0x3b6   : > { %v11976_v46 = vmax.f32 %v16112_v56, %v11965_v12  ;;  %16114 = vst [vmem:[#allocation49_spill] sm:$0xff] %v11980_v7  ;;  %v4580_v42 = vmul.f32 0.01, %v3784_v32  ;;  %vm2718_vm12 = vcmp.ge.f32.partialorder %v11945_v13, 0.0  ;;  %v3040_v20 = vmul.f32 0.01, %v11951_v55 }
 0x3b7   : > { %v11986_v53 = vmax.f32 %v16115_v19, %v11978_v58  ;;  %v11992_v0 = vmax.f32 %v16116_v62, %v11980_v7  ;;  %v3042_v45 = vmul.f32 0.01, %v11955_v34  ;;  %v4205_v5 = vadd.f32 %v11546_v33, %v8614_v16  ;;  %v8615_v9 = vpop.f32.mrb[102].mxu1 }
 0x3b8   : > { %v4197_v17 = vadd.f32 %v11546_v33, %v4196_v10  ;;  %v2063_v56 = vadd.f32 %v16117_v11, %v10198_v38  ;;  %v2069_v19 = vadd.f32 %v16118_v49, %v10198_v38  ;;  %v12003_v62 = vsel %vm4420_vm11, %v3784_v32, %v4580_v42  ;;  %v4199_v24 = vpop.f32.mrb[103].mxu1  ;;  %v16121_v49 = vld [vmem:[#allocation52_spill] sm:$0xff] }
 0x3b9   : > { %16119 = vst [vmem:[#allocation50_spill] sm:$0xff] %v12003_v62  ;;  %v4208_v23 = vadd.f32 %v11546_v33, %v8615_v9  ;;  %vm2720_vm13 = vcmp.ge.f32.partialorder %v11951_v55, 0.0  ;;  %vm2722_vm14 = vcmp.ge.f32.partialorder %v11955_v34, 0.0  ;;  %vm2724_vm15 = vcmp.ge.f32.partialorder %v11970_v30, 0.0 }
 0x3ba   : > { %v16120_v16 = vmax.f32 %v11505_v59, %v11836_v60  ;;  %vm4525_vm0 = vcmp.ge.f32.partialorder %v4205_v5, 0.0  ;;  %v4685_v11 = vmul.f32 0.01, %v4205_v5  ;;  %vm4523_vm1 = vcmp.ge.f32.partialorder %v4197_v17, 0.0 }
 0x3bb   : > { %v4683_v32 = vmul.f32 0.01, %v4197_v17  ;;  %vm4526_vm2 = vcmp.ge.f32.partialorder %v4208_v23, 0.0  ;;  %v4686_v42 = vmul.f32 0.01, %v4208_v23  ;;  %v4200_v9 = vadd.f32 %v11546_v33, %v4199_v24 }
 0x3bc   : > { %v12013_v10 = vmax.f32 %v16120_v16, %v12003_v62  ;;  %v2073_v29 = vadd.f32 %v16121_v49, %v10198_v38  ;;  %v2079_v31 = vadd.f32 %v16122_v15, %v10198_v38  ;;  %v2083_v36 = vadd.f32 %v16123_v48, %v10198_v38  ;;  %v9320_v15 = vld [vmem:[%s15379_s5 + $0x28] sm:$0xff]   ;;  %v16128_v49 = vld [vmem:[#allocation55_spill] sm:$0xff] }
 0x3bd   : > { %v12022_v59 = vsel %vm4525_vm0, %v4205_v5, %v4685_v11  ;;  %v16125_v16 = vmax.f32 %v11347_v21, %v11642_v6  ;;  %v12030_v26 = vsel %vm4523_vm1, %v4197_v17, %v4683_v32  ;;  %v12032_v24 = vsel %vm4526_vm2, %v4208_v23, %v4686_v42  ;;  %v16131_v42 = vld [vmem:[#allocation56_spill] sm:$0xff]  ;;  %8678 = vmatprep.subr.bf16.mxu1 %v9320_v15  ;;  %v16223_v6 = vld [vmem:[#allocation118_spill] sm:$0xff]  ;;  %v16245_v62 = vld [vmem:[#allocation147_spill] sm:$0xff] }
 0x3be   : > { %16124 = vst [vmem:[#allocation51_spill] sm:$0xff] %v12022_v59  ;;  %16126 = vst [vmem:[#allocation52_spill] sm:$0xff] %v12030_v26  ;;  %vm4524_vm3 = vcmp.ge.f32.partialorder %v4200_v9, 0.0  ;;  %v2089_v48 = vadd.f32 %v16128_v49, %v10198_v38  ;;  %v16129_v5 = vmax.f32 %v11356_v18, %v11649_v63  ;;  %v16130_v21 = vmax.f32 %v11364_v52, %v11654_v47  ;;  %v16132_v49 = vld [vmem:[#allocation57_spill] sm:$0xff]  ;;  %v16136_v63 = vld [vmem:[#allocation58_spill] sm:$0xff] }
 0x3bf   : > { %v12028_v4 = vmax.f32 %v16125_v16, %v12022_v59  ;;  %16127 = vst [vmem:[#allocation53_spill] sm:$0xff] %v12032_v24  ;;  %v4684_v17 = vmul.f32 0.01, %v4200_v9  ;;  %v3044_v32 = vmul.f32 0.01, %v11970_v30  ;;  %vm2726_vm4 = vcmp.ge.f32.partialorder %v2063_v56, 0.0  ;;  %8679 = vmatpush3.bf16.msra.mxu1 %v9320_v15 }
 0x3c0   : > { %v12043_v11 = vmax.f32 %v16129_v5, %v12030_v26  ;;  %v12049_v23 = vmax.f32 %v16130_v21, %v12032_v24  ;;  %v2093_v16 = vadd.f32 %v16131_v42, %v10198_v38  ;;  %v2099_v59 = vadd.f32 %v16132_v49, %v10198_v38 }
 0x3c1   : > { %v3046_v18 = vmul.f32 0.01, %v2063_v56  ;;  %vm2728_vm5 = vcmp.ge.f32.partialorder %v2069_v19, 0.0  ;;  %v3048_v5 = vmul.f32 0.01, %v2069_v19  ;;  %v12056_v26 = vsel %vm4524_vm3, %v4200_v9, %v4684_v17 }
 0x3c2   : > { %16133 = vst [vmem:[#allocation54_spill] sm:$0xff] %v12056_v26  ;;  %vm2730_vm6 = vcmp.ge.f32.partialorder %v2073_v29, 0.0  ;;  %v3050_v52 = vmul.f32 0.01, %v2073_v29  ;;  %vm2732_vm7 = vcmp.ge.f32.partialorder %v2079_v31, 0.0  ;;  %v16134_v21 = vmax.f32 %v11372_v41, %v11658_v54 }
 0x3c3   : > { %v3052_v42 = vmul.f32 0.01, %v2079_v31  ;;  %vm2734_vm8 = vcmp.ge.f32.partialorder %v2083_v36, 0.0  ;;  %v3054_v47 = vmul.f32 0.01, %v2083_v36  ;;  %vm2736_vm9 = vcmp.ge.f32.partialorder %v2089_v48, 0.0 }
 0x3c4   : > { %v12062_v24 = vmax.f32 %v16134_v21, %v12056_v26  ;;  %v12068_v9 = vsel %vm2718_vm12, %v11945_v13, %v11963_v28  ;;  %v3056_v15 = vmul.f32 0.01, %v2089_v48  ;;  %v3058_v17 = vmul.f32 0.01, %v2093_v16  ;;  %v16137_v21 = vld [vmem:[#allocation59_spill] sm:$0xff] }
 0x3c5   : > { %16135 = vst [vmem:[#allocation55_spill] sm:$0xff] %v12068_v9  ;;  %v3060_v49 = vmul.f32 0.01, %v2099_v59  ;;  %vm2738_vm10 = vcmp.ge.f32.partialorder %v2093_v16, 0.0  ;;  %vm2740_vm11 = vcmp.ge.f32.partialorder %v2099_v59, 0.0  ;;  %v12072_v41 = vadd.f32 %v16136_v63, %v10198_v38 }
 0x3c6   : > { %v12076_v26 = vadd.f32 %v16137_v21, %v10198_v38  ;;  %v12081_v54 = vsel %vm2720_vm13, %v11951_v55, %v3040_v20  ;;  %v12086_v28 = vsel %vm2722_vm14, %v11955_v34, %v3042_v45  ;;  %v12091_v13 = vsel %vm2724_vm15, %v11970_v30, %v3044_v32  ;;  %v8618_v20 = vpop.f32.mrb[104].mxu1 }
 0x3c7   : > { %16138 = vst [vmem:[#allocation56_spill] sm:$0xff] %v12081_v54  ;;  %16139 = vst [vmem:[#allocation57_spill] sm:$0xff] %v12086_v28  ;;  %v12094_v63 = vsel %vm2726_vm4, %v2063_v56, %v3046_v18  ;;  %v12097_v21 = vsel %vm2728_vm5, %v2069_v19, %v3048_v5  ;;  %v12100_v9 = vsel %vm2730_vm6, %v2073_v29, %v3050_v52  ;;  %v4212_v32 = vpop.f32.mrb[105].mxu1  ;;  %vm2742_vm12 = vcmp.ge.f32.partialorder %v12072_v41, 0.0  ;;  %v16149_v18 = vld [vmem:[#allocation60_spill] sm:$0xff]  ;;  %v16150_v52 = vld [vmem:[#allocation61_spill] sm:$0xff] }
 0x3c8   : > { %16140 = vst [vmem:[#allocation58_spill] sm:$0xff] %v12091_v13  ;;  %16141 = vst [vmem:[#allocation59_spill] sm:$0xff] %v12094_v63  ;;  %v12103_v55 = vsel %vm2732_vm7, %v2079_v31, %v3052_v42  ;;  %v12106_v34 = vsel %vm2734_vm8, %v2083_v36, %v3054_v47  ;;  %v12109_v45 = vsel %vm2736_vm9, %v2089_v48, %v3056_v15  ;;  %v3062_v29 = vmul.f32 0.01, %v12072_v41  ;;  %v8619_v47 = vpop.f32.mrb[106].mxu1  ;;  %v16168_v28 = vld [vmem:[#allocation70_spill] sm:$0xff] }
 0x3c9   : > { %16142 = vst [vmem:[#allocation264_spill] sm:$0xff] %v12097_v21  ;;  %16143 = vst [vmem:[#allocation265_spill] sm:$0xff] %v12100_v9  ;;  %v12111_v30 = vsel %vm2738_vm10, %v2093_v16, %v3058_v17  ;;  %v12113_v56 = vsel %vm2740_vm11, %v2099_v59, %v3060_v49  ;;  %v4221_v19 = vadd.f32 %v11546_v33, %v8618_v20  ;;  %v3064_v31 = vmul.f32 0.01, %v12076_v26  ;;  %v4215_v5 = vpop.f32.mrb[107].mxu1  ;;  %v16151_v49 = vld [vmem:[#allocation62_spill] sm:$0xff] }
 0x3ca   : > { %16144 = vst [vmem:[#allocation266_spill] sm:$0xff] %v12103_v55  ;;  %16145 = vst [vmem:[#allocation267_spill] sm:$0xff] %v12106_v34  ;;  %v4213_v36 = vadd.f32 %v11546_v33, %v4212_v32  ;;  %v2113_v48 = vadd.f32 %v16149_v18, %v10198_v38  ;;  %v4224_v59 = vadd.f32 %v11546_v33, %v8619_v47  ;;  %vm2744_vm14 = vcmp.ge.f32.partialorder %v12076_v26, 0.0  ;;  %v16167_v21 = vld [vmem:[#allocation69_spill] sm:$0xff] }
 0x3cb   : > { %16146 = vst [vmem:[#allocation268_spill] sm:$0xff] %v12109_v45  ;;  %16147 = vst [vmem:[#allocation269_spill] sm:$0xff] %v12111_v30  ;;  %vm4529_vm13 = vcmp.ge.f32.partialorder %v4221_v19, 0.0  ;;  %v4689_v16 = vmul.f32 0.01, %v4221_v19  ;;  %v2119_v42 = vadd.f32 %v16150_v52, %v10198_v38  ;;  %v4216_v17 = vadd.f32 %v11546_v33, %v4215_v5  ;;  %v16155_v30 = vld [vmem:[#allocation63_spill] sm:$0xff] }
 0x3cc   : > { %16148 = vst [vmem:[#allocation270_spill] sm:$0xff] %v12113_v56  ;;  %vm4527_vm15 = vcmp.ge.f32.partialorder %v4213_v36, 0.0  ;;  %v4687_v15 = vmul.f32 0.01, %v4213_v36  ;;  %v2123_v20 = vadd.f32 %v16151_v49, %v10198_v38  ;;  %vm4530_vm0 = vcmp.ge.f32.partialorder %v4224_v59, 0.0  ;;  %v16156_v5 = vld [vmem:[#allocation64_spill] sm:$0xff] }
 0x3cd   : > { %v12129_v32 = vsel %vm4529_vm13, %v4221_v19, %v4689_v16  ;;  %v4690_v18 = vmul.f32 0.01, %v4224_v59  ;;  %v16153_v47 = vmax.f32 %v11402_v1, %v11714_v8  ;;  %vm4528_vm1 = vcmp.ge.f32.partialorder %v4216_v17, 0.0  ;;  %v16159_v1 = vld [vmem:[#allocation65_spill] sm:$0xff] }
 0x3ce   : > { %16152 = vst [vmem:[#allocation60_spill] sm:$0xff] %v12129_v32  ;;  %v12137_v56 = vsel %vm4527_vm15, %v4213_v36, %v4687_v15  ;;  %v4688_v52 = vmul.f32 0.01, %v4216_v17  ;;  %v2129_v33 = vadd.f32 %v16155_v30, %v10198_v38  ;;  %v2133_v49 = vadd.f32 %v16156_v5, %v10198_v38  ;;  %v16160_v15 = vld [vmem:[#allocation66_spill] sm:$0xff] }
 0x3cf   : > { %v12135_v63 = vmax.f32 %v16153_v47, %v12129_v32  ;;  %16154 = vst [vmem:[#allocation61_spill] sm:$0xff] %v12137_v56  ;;  %v16157_v19 = vmax.f32 %v11410_v2, %v11723_v44  ;;  %v12149_v45 = vsel %vm4530_vm0, %v4224_v59, %v4690_v18  ;;  %v2139_v36 = vadd.f32 %v16159_v1, %v10198_v38  ;;  %v16163_v2 = vld [vmem:[#allocation67_spill] sm:$0xff]  ;;  %v16164_v59 = vld [vmem:[#allocation68_spill] sm:$0xff] }
 0x3d0   : > { %16158 = vst [vmem:[#allocation62_spill] sm:$0xff] %v12149_v45  ;;  %v2143_v47 = vadd.f32 %v16160_v15, %v10198_v38  ;;  %v16161_v30 = vmax.f32 %v11420_v39, %v11730_v50  ;;  %v12161_v5 = vsel %vm4528_vm1, %v4216_v17, %v4688_v52  ;;  %vm2746_vm2 = vcmp.ge.f32.partialorder %v2113_v48, 0.0  ;;  %v16198_v50 = vld [vmem:[#allocation90_spill] sm:$0xff] }
 0x3d1   : > { %v12147_v16 = vmax.f32 %v16157_v19, %v12137_v56  ;;  %16162 = vst [vmem:[#allocation63_spill] sm:$0xff] %v12161_v5  ;;  %v2149_v19 = vadd.f32 %v16163_v2, %v10198_v38  ;;  %v2153_v18 = vadd.f32 %v16164_v59, %v10198_v38  ;;  %v16165_v1 = vmax.f32 %v11431_v22, %v11737_v37 }
 0x3d2   : > { %v12159_v34 = vmax.f32 %v16161_v30, %v12149_v45  ;;  %v3066_v55 = vmul.f32 0.01, %v2113_v48  ;;  %vm2748_vm3 = vcmp.ge.f32.partialorder %v2119_v42, 0.0  ;;  %v3068_v39 = vmul.f32 0.01, %v2119_v42 }
 0x3d3   : > { %v12171_v15 = vmax.f32 %v16165_v1, %v12161_v5  ;;  %vm2750_vm4 = vcmp.ge.f32.partialorder %v2123_v20, 0.0  ;;  %v3070_v30 = vmul.f32 0.01, %v2123_v20  ;;  %vm2752_vm5 = vcmp.ge.f32.partialorder %v2129_v33, 0.0 }
 0x3d4   : > { %v3072_v17 = vmul.f32 0.01, %v2129_v33  ;;  %vm2754_vm6 = vcmp.ge.f32.partialorder %v2133_v49, 0.0  ;;  %v3074_v52 = vmul.f32 0.01, %v2133_v49  ;;  %vm2756_vm7 = vcmp.ge.f32.partialorder %v2139_v36, 0.0 }
 0x3d5   : > { %v3076_v2 = vmul.f32 0.01, %v2139_v36  ;;  %vm2758_vm8 = vcmp.ge.f32.partialorder %v2143_v47, 0.0  ;;  %v12176_v59 = vsel %vm2742_vm12, %v12072_v41, %v3062_v29  ;;  %v3078_v22 = vmul.f32 0.01, %v2143_v47 }
 0x3d6   : > { %16166 = vst [vmem:[#allocation64_spill] sm:$0xff] %v12176_v59  ;;  %v3080_v1 = vmul.f32 0.01, %v2149_v19  ;;  %v3082_v9 = vmul.f32 0.01, %v2153_v18  ;;  %vm2760_vm9 = vcmp.ge.f32.partialorder %v2149_v19, 0.0  ;;  %v2159_v13 = vadd.f32 %v16167_v21, %v10198_v38 }
 0x3d7   : > { %vm2762_vm10 = vcmp.ge.f32.partialorder %v2153_v18, 0.0  ;;  %v2163_v54 = vadd.f32 %v16168_v28, %v10198_v38  ;;  %v12185_v5 = vsel %vm2744_vm14, %v12076_v26, %v3064_v31  ;;  %v12188_v37 = vsel %vm2746_vm2, %v2113_v48, %v3066_v55  ;;  %v16176_v26 = vld [vmem:[#allocation71_spill] sm:$0xff]  ;;  %v8622_v55 = vpop.f32.mrb[108].mxu1 }
 0x3d8   : > { %16169 = vst [vmem:[#allocation65_spill] sm:$0xff] %v12185_v5  ;;  %16170 = vst [vmem:[#allocation66_spill] sm:$0xff] %v12188_v37  ;;  %v12191_v41 = vsel %vm2748_vm3, %v2119_v42, %v3068_v39  ;;  %v12194_v29 = vsel %vm2750_vm4, %v2123_v20, %v3070_v30  ;;  %v12197_v59 = vsel %vm2752_vm5, %v2129_v33, %v3072_v17  ;;  %v12217_v33 = vld [vmem:[%s15378_s4] ss:$0 sm:$0xff]  ;;  %vm2764_vm11 = vcmp.ge.f32.partialorder %v2159_v13, 0.0 }
 0x3d9   : > { %16171 = vst [vmem:[#allocation67_spill] sm:$0xff] %v12191_v41  ;;  %16172 = vst [vmem:[#allocation68_spill] sm:$0xff] %v12194_v29  ;;  %v12200_v21 = vsel %vm2754_vm6, %v2133_v49, %v3074_v52  ;;  %v12203_v28 = vsel %vm2756_vm7, %v2139_v36, %v3076_v2  ;;  %v2169_v31 = vadd.f32 %v16176_v26, %v10198_v38  ;;  %v4228_v36 = vpop.f32.mrb[109].mxu1  ;;  %v3084_v39 = vmul.f32 0.01, %v2159_v13 }
 0x3da   : > { %16173 = vst [vmem:[#allocation69_spill] sm:$0xff] %v12197_v59  ;;  %16174 = vst [vmem:[#allocation70_spill] sm:$0xff] %v12200_v21  ;;  %v12208_v48 = vsel %vm2758_vm8, %v2143_v47, %v3078_v22  ;;  %v12210_v42 = vsel %vm2760_vm9, %v2149_v19, %v3080_v1  ;;  %v12212_v20 = vsel %vm2762_vm10, %v2153_v18, %v3082_v9  ;;  %vm2766_vm12 = vcmp.ge.f32.partialorder %v2163_v54, 0.0  ;;  %v8623_v17 = vpop.f32.mrb[110].mxu1  ;;  %v16180_v1 = vld [vmem:[#allocation72_spill] sm:$0xff] }
 0x3db   : > { %16175 = vst [vmem:[#allocation271_spill] sm:$0xff] %v12203_v28  ;;  %16177 = vst [vmem:[#allocation71_spill] sm:$0xff] %v12208_v48  ;;  %v4237_v49 = vadd.f32 %v12217_v33, %v8622_v55  ;;  %v4229_v30 = vadd.f32 %v12217_v33, %v4228_v36  ;;  %v3086_v47 = vmul.f32 0.01, %v2163_v54  ;;  %v4240_v9 = vadd.f32 %v12217_v33, %v8623_v17  ;;  %v4231_v18 = vpop.f32.mrb[111].mxu1  ;;  %v16181_v48 = vld [vmem:[#allocation73_spill] sm:$0xff] }
 0x3dc   : > { %16178 = vst [vmem:[#allocation272_spill] sm:$0xff] %v12210_v42  ;;  %16179 = vst [vmem:[#allocation273_spill] sm:$0xff] %v12212_v20  ;;  %v3088_v52 = vmul.f32 0.01, %v2169_v31  ;;  %v4232_v22 = vadd.f32 %v12217_v33, %v4231_v18  ;;  %v2173_v26 = vadd.f32 %v16180_v1, %v10198_v38  ;;  %vm2768_vm1 = vcmp.ge.f32.partialorder %v2169_v31, 0.0  ;;  %v16193_v18 = vld [vmem:[#allocation80_spill] sm:$0xff] }
 0x3dd   : > { %vm4533_vm13 = vcmp.ge.f32.partialorder %v4237_v49, 0.0  ;;  %v4693_v19 = vmul.f32 0.01, %v4237_v49  ;;  %vm4531_vm14 = vcmp.ge.f32.partialorder %v4229_v30, 0.0  ;;  %v4691_v2 = vmul.f32 0.01, %v4229_v30 }
 0x3de   : > { %vm4534_vm15 = vcmp.ge.f32.partialorder %v4240_v9, 0.0  ;;  %v4694_v20 = vmul.f32 0.01, %v4240_v9  ;;  %vm4532_vm0 = vcmp.ge.f32.partialorder %v4232_v22, 0.0  ;;  %v4692_v17 = vmul.f32 0.01, %v4232_v22 }
 0x3df   : > { %v12225_v55 = vsel %vm4533_vm13, %v4237_v49, %v4693_v19  ;;  %v12229_v42 = vsel %vm4531_vm14, %v4229_v30, %v4691_v2  ;;  %v2179_v28 = vadd.f32 %v16181_v48, %v10198_v38  ;;  %v12238_v49 = vsel %vm2764_vm11, %v2159_v13, %v3084_v39  ;;  %v16184_v19 = vld [vmem:[#allocation74_spill] sm:$0xff]  ;;  %v16187_v48 = vld [vmem:[#allocation75_spill] sm:$0xff] }
 0x3e0   : > { %v12235_v21 = vsel %vm4534_vm15, %v4240_v9, %v4694_v20  ;;  %16183 = vst [vmem:[#allocation73_spill] sm:$0xff] %v12238_v49  ;;  %v2183_v1 = vadd.f32 %v16184_v19, %v10198_v38  ;;  %v12244_v2 = vsel %vm4532_vm0, %v4232_v22, %v4692_v17  ;;  %v12247_v36 = vsel %vm2766_vm12, %v2163_v54, %v3086_v47  ;;  %v16188_v20 = vld [vmem:[#allocation76_spill] sm:$0xff]  ;;  %v16190_v19 = vld [vmem:[#allocation77_spill] sm:$0xff]  ;;  %v16191_v22 = vld [vmem:[#allocation78_spill] sm:$0xff] }
 0x3e1   : > { %16182 = vst [vmem:[#allocation72_spill] sm:$0xff] %v12235_v21  ;;  %16185 = vst [vmem:[#allocation74_spill] sm:$0xff] %v12244_v2  ;;  %v2189_v59 = vadd.f32 %v16187_v48, %v10198_v38  ;;  %v2193_v9 = vadd.f32 %v16188_v20, %v10198_v38  ;;  %v12255_v39 = vsel %vm2768_vm1, %v2169_v31, %v3088_v52  ;;  %vm2770_vm2 = vcmp.ge.f32.partialorder %v2173_v26, 0.0  ;;  %v16192_v47 = vld [vmem:[#allocation79_spill] sm:$0xff]  ;;  %v16194_v31 = vld [vmem:[#allocation81_spill] sm:$0xff] }
 0x3e2   : > { %16186 = vst [vmem:[#allocation274_spill] sm:$0xff] %v12247_v36  ;;  %16189 = vst [vmem:[#allocation75_spill] sm:$0xff] %v12255_v39  ;;  %v2199_v30 = vadd.f32 %v16190_v19, %v10198_v38  ;;  %v2203_v17 = vadd.f32 %v16191_v22, %v10198_v38  ;;  %v3090_v54 = vmul.f32 0.01, %v2173_v26  ;;  %vm2772_vm3 = vcmp.ge.f32.partialorder %v2179_v28, 0.0  ;;  %v16195_v13 = vld [vmem:[#allocation82_spill] sm:$0xff] }
 0x3e3   : > { %v2209_v48 = vadd.f32 %v16192_v47, %v10198_v38  ;;  %v2213_v20 = vadd.f32 %v16193_v18, %v10198_v38  ;;  %v3092_v36 = vmul.f32 0.01, %v2179_v28  ;;  %v3094_v49 = vmul.f32 0.01, %v2183_v1 }
 0x3e4   : > { %v2219_v52 = vadd.f32 %v16194_v31, %v10198_v38  ;;  %v2223_v39 = vadd.f32 %v16195_v13, %v10198_v38  ;;  %vm2774_vm4 = vcmp.ge.f32.partialorder %v2183_v1, 0.0  ;;  %vm2776_vm5 = vcmp.ge.f32.partialorder %v2189_v59, 0.0  ;;  %v16196_v31 = vld [vmem:[#allocation87_spill] sm:$0xff] }
 0x3e5   : > { %v3096_v19 = vmul.f32 0.01, %v2189_v59  ;;  %v3098_v22 = vmul.f32 0.01, %v2193_v9  ;;  %vm2778_vm6 = vcmp.ge.f32.partialorder %v2193_v9, 0.0  ;;  %vm2780_vm7 = vcmp.ge.f32.partialorder %v2199_v30, 0.0 }
 0x3e6   : > { %v3100_v29 = vmul.f32 0.01, %v2199_v30  ;;  %v3102_v41 = vmul.f32 0.01, %v2203_v17  ;;  %vm2782_vm8 = vcmp.ge.f32.partialorder %v2203_v17, 0.0  ;;  %vm2784_vm9 = vcmp.ge.f32.partialorder %v2209_v48, 0.0 }
 0x3e7   : > { %v3104_v47 = vmul.f32 0.01, %v2209_v48  ;;  %v3106_v18 = vmul.f32 0.01, %v2213_v20  ;;  %vm2786_vm10 = vcmp.ge.f32.partialorder %v2213_v20, 0.0  ;;  %v12271_v45 = vadd.f32 %v16196_v31, %v10198_v38 }
 0x3e8   : > { %v3108_v37 = vmul.f32 0.01, %v2219_v52  ;;  %v3110_v5 = vmul.f32 0.01, %v2223_v39  ;;  %v12274_v13 = vsel %vm2770_vm2, %v2173_v26, %v3090_v54  ;;  %vm2788_vm11 = vcmp.ge.f32.partialorder %v2219_v52, 0.0 }
 0x3e9   : > { %16197 = vst [vmem:[#allocation76_spill] sm:$0xff] %v12274_v13  ;;  %vm2790_vm12 = vcmp.ge.f32.partialorder %v2223_v39, 0.0  ;;  %v12278_v56 = vadd.f32 %v16198_v50, %v10198_v38  ;;  %v12281_v44 = vsel %vm2772_vm3, %v2179_v28, %v3092_v36  ;;  %v12284_v32 = vsel %vm2774_vm4, %v2183_v1, %v3094_v49  ;;  %v8626_v36 = vpop.f32.mrb[112].mxu1 }
 0x3ea   : > { %16199 = vst [vmem:[#allocation77_spill] sm:$0xff] %v12281_v44  ;;  %16200 = vst [vmem:[#allocation78_spill] sm:$0xff] %v12284_v32  ;;  %v12287_v8 = vsel %vm2776_vm5, %v2189_v59, %v3096_v19  ;;  %v12290_v31 = vsel %vm2778_vm6, %v2193_v9, %v3098_v22  ;;  %v12293_v26 = vsel %vm2780_vm7, %v2199_v30, %v3100_v29  ;;  %v3112_v59 = vmul.f32 0.01, %v12271_v45  ;;  %v4244_v19 = vpop.f32.mrb[113].mxu1  ;;  %v16209_v29 = vld [vmem:[#allocation93_spill] sm:$0xff] }
 0x3eb   : > { %16201 = vst [vmem:[#allocation79_spill] sm:$0xff] %v12287_v8  ;;  %16202 = vst [vmem:[#allocation80_spill] sm:$0xff] %v12290_v31  ;;  %v12296_v54 = vsel %vm2782_vm8, %v2203_v17, %v3102_v41  ;;  %v12299_v50 = vsel %vm2784_vm9, %v2209_v48, %v3104_v47  ;;  %v12301_v28 = vsel %vm2786_vm10, %v2213_v20, %v3106_v18  ;;  %vm2792_vm13 = vcmp.ge.f32.partialorder %v12271_v45, 0.0  ;;  %v16211_v22 = vld [vmem:[#allocation99_spill] sm:$0xff] }
 0x3ec   : > { %16203 = vst [vmem:[#allocation81_spill] sm:$0xff] %v12293_v26  ;;  %16204 = vst [vmem:[#allocation82_spill] sm:$0xff] %v12296_v54  ;;  %v12303_v49 = vsel %vm2788_vm11, %v2219_v52, %v3108_v37  ;;  %v12305_v1 = vsel %vm2790_vm12, %v2223_v39, %v3110_v5  ;;  %v4253_v9 = vadd.f32 %v12217_v33, %v8626_v36  ;;  %vm2794_vm14 = vcmp.ge.f32.partialorder %v12278_v56, 0.0  ;;  %v8627_v37 = vpop.f32.mrb[114].mxu1  ;;  %v16210_v5 = vld [vmem:[#allocation94_spill] sm:$0xff] }
 0x3ed   : > { %16205 = vst [vmem:[#allocation87_spill] sm:$0xff] %v12299_v50  ;;  %16206 = vst [vmem:[#allocation90_spill] sm:$0xff] %v12301_v28  ;;  %v3114_v41 = vmul.f32 0.01, %v12278_v56  ;;  %v2239_v30 = vadd.f32 %v16209_v29, %v10198_v38  ;;  %v4245_v17 = vadd.f32 %v12217_v33, %v4244_v19  ;;  %v2243_v39 = vadd.f32 %v16210_v5, %v10198_v38  ;;  %v4247_v52 = vpop.f32.mrb[115].mxu1  ;;  %v16212_v29 = vld [vmem:[#allocation102_spill] sm:$0xff] }
 0x3ee   : > { %16207 = vst [vmem:[#allocation275_spill] sm:$0xff] %v12303_v49  ;;  %16208 = vst [vmem:[#allocation276_spill] sm:$0xff] %v12305_v1  ;;  %vm4537_vm15 = vcmp.ge.f32.partialorder %v4253_v9, 0.0  ;;  %v4697_v48 = vmul.f32 0.01, %v4253_v9  ;;  %v4256_v20 = vadd.f32 %v12217_v33, %v8627_v37  ;;  %v2249_v47 = vadd.f32 %v16211_v22, %v10198_v38  ;;  %v16213_v22 = vld [vmem:[#allocation105_spill] sm:$0xff] }
 0x3ef   : > { %vm4535_vm0 = vcmp.ge.f32.partialorder %v4245_v17, 0.0  ;;  %v4695_v18 = vmul.f32 0.01, %v4245_v17  ;;  %v4248_v36 = vadd.f32 %v12217_v33, %v4247_v52  ;;  %v2253_v1 = vadd.f32 %v16212_v29, %v10198_v38  ;;  %v16214_v54 = vld [vmem:[#allocation106_spill] sm:$0xff] }
 0x3f0   : > { %v12323_v19 = vsel %vm4537_vm15, %v4253_v9, %v4697_v48  ;;  %vm4538_vm1 = vcmp.ge.f32.partialorder %v4256_v20, 0.0  ;;  %v4698_v49 = vmul.f32 0.01, %v4256_v20  ;;  %v2259_v50 = vadd.f32 %v16213_v22, %v10198_v38  ;;  %v16215_v48 = vld [vmem:[#allocation111_spill] sm:$0xff]  ;;  %v16216_v5 = vld [vmem:[#allocation114_spill] sm:$0xff] }
 0x3f1   : > { %v12327_v28 = vsel %vm4535_vm0, %v4245_v17, %v4695_v18  ;;  %vm4536_vm2 = vcmp.ge.f32.partialorder %v4248_v36, 0.0  ;;  %v4696_v37 = vmul.f32 0.01, %v4248_v36  ;;  %v2263_v52 = vadd.f32 %v16214_v54, %v10198_v38 }
 0x3f2   : > { %v12335_v9 = vsel %vm4538_vm1, %v4256_v20, %v4698_v49  ;;  %v2269_v26 = vadd.f32 %v16215_v48, %v10198_v38  ;;  %v2273_v17 = vadd.f32 %v16216_v5, %v10198_v38  ;;  %vm2796_vm3 = vcmp.ge.f32.partialorder %v2239_v30, 0.0 }
 0x3f3   : > { %v12343_v31 = vsel %vm4536_vm2, %v4248_v36, %v4696_v37  ;;  %v3116_v22 = vmul.f32 0.01, %v2239_v30  ;;  %v3118_v8 = vmul.f32 0.01, %v2243_v39  ;;  %vm2798_vm4 = vcmp.ge.f32.partialorder %v2243_v39, 0.0  ;;  %v16217_v36 = vld [vmem:[#allocation117_spill] sm:$0xff] }
 0x3f4   : > { %vm2800_vm5 = vcmp.ge.f32.partialorder %v2249_v47, 0.0  ;;  %v3120_v49 = vmul.f32 0.01, %v2249_v47  ;;  %v3122_v20 = vmul.f32 0.01, %v2253_v1  ;;  %vm2802_vm6 = vcmp.ge.f32.partialorder %v2253_v1, 0.0 }
 0x3f5   : > { %vm2804_vm7 = vcmp.ge.f32.partialorder %v2259_v50, 0.0  ;;  %v3124_v48 = vmul.f32 0.01, %v2259_v50  ;;  %v3126_v29 = vmul.f32 0.01, %v2263_v52  ;;  %vm2806_vm8 = vcmp.ge.f32.partialorder %v2263_v52, 0.0 }
 0x3f6   : > { %v3128_v5 = vmul.f32 0.01, %v2269_v26  ;;  %v3130_v32 = vmul.f32 0.01, %v2273_v17  ;;  %v2279_v37 = vadd.f32 %v16217_v36, %v10198_v38  ;;  %v12352_v18 = vsel %vm2792_vm13, %v12271_v45, %v3112_v59  ;;  %v8630_v59 = vpop.f32.mrb[116].mxu1 }
 0x3f7   : > { %16218 = vst [vmem:[#allocation93_spill] sm:$0xff] %v12352_v18  ;;  %v12357_v54 = vsel %vm2794_vm14, %v12278_v56, %v3114_v41  ;;  %vm2808_vm9 = vcmp.ge.f32.partialorder %v2269_v26, 0.0  ;;  %vm2810_vm10 = vcmp.ge.f32.partialorder %v2273_v17, 0.0  ;;  %v12360_v44 = vsel %vm2796_vm3, %v2239_v30, %v3116_v22  ;;  %v4260_v22 = vpop.f32.mrb[117].mxu1 }
 0x3f8   : > { %16219 = vst [vmem:[#allocation94_spill] sm:$0xff] %v12357_v54  ;;  %16220 = vst [vmem:[#allocation99_spill] sm:$0xff] %v12360_v44  ;;  %v12363_v13 = vsel %vm2798_vm4, %v2243_v39, %v3118_v8  ;;  %v12366_v36 = vsel %vm2800_vm5, %v2249_v47, %v3120_v49  ;;  %v2283_v45 = vadd.f32 %v16223_v6, %v10198_v38  ;;  %vm2812_vm11 = vcmp.ge.f32.partialorder %v2279_v37, 0.0  ;;  %v8631_v6 = vpop.f32.mrb[118].mxu1 }
 0x3f9   : > { %16221 = vst [vmem:[#allocation102_spill] sm:$0xff] %v12363_v13  ;;  %16222 = vst [vmem:[#allocation105_spill] sm:$0xff] %v12366_v36  ;;  %v12371_v18 = vsel %vm2802_vm6, %v2253_v1, %v3122_v20  ;;  %v12374_v56 = vsel %vm2804_vm7, %v2259_v50, %v3124_v48  ;;  %v12376_v41 = vsel %vm2806_vm8, %v2263_v52, %v3126_v29  ;;  %v3132_v49 = vmul.f32 0.01, %v2279_v37  ;;  %v4263_v50 = vpop.f32.mrb[119].mxu1  ;;  %v16242_v36 = vld [vmem:[#allocation142_spill] sm:$0xff] }
 0x3fa   : > { %16224 = vst [vmem:[#allocation106_spill] sm:$0xff] %v12371_v18  ;;  %16225 = vst [vmem:[#allocation111_spill] sm:$0xff] %v12374_v56  ;;  %v4269_v30 = vadd.f32 %v12217_v33, %v8630_v59  ;;  %v12379_v8 = vsel %vm2808_vm9, %v2269_v26, %v3128_v5  ;;  %v12381_v39 = vsel %vm2810_vm10, %v2273_v17, %v3130_v32  ;;  %v3134_v48 = vmul.f32 0.01, %v2283_v45  ;;  %v16229_v26 = vld [vmem:[#allocation121_spill] sm:$0xff] }
 0x3fb   : > { %16226 = vst [vmem:[#allocation114_spill] sm:$0xff] %v12376_v41  ;;  %16227 = vst [vmem:[#allocation117_spill] sm:$0xff] %v12379_v8  ;;  %v4261_v47 = vadd.f32 %v12217_v33, %v4260_v22  ;;  %v4272_v20 = vadd.f32 %v12217_v33, %v8631_v6  ;;  %v4264_v29 = vadd.f32 %v12217_v33, %v4263_v50  ;;  %vm2814_vm0 = vcmp.ge.f32.partialorder %v2283_v45, 0.0 }
 0x3fc   : > { %16228 = vst [vmem:[#allocation118_spill] sm:$0xff] %v12381_v39  ;;  %vm4541_vm12 = vcmp.ge.f32.partialorder %v4269_v30, 0.0  ;;  %v4701_v1 = vmul.f32 0.01, %v4269_v30  ;;  %v2289_v5 = vadd.f32 %v16229_v26, %v10198_v38  ;;  %v16230_v39 = vld [vmem:[#allocation125_spill] sm:$0xff]  ;;  %v16233_v26 = vld [vmem:[#allocation130_spill] sm:$0xff]  ;;  %v12409_v59 = vsel %vm2812_vm11, %v2279_v37, %v3132_v49 }
 0x3fd   : > { %vm4539_vm13 = vcmp.ge.f32.partialorder %v4261_v47, 0.0  ;;  %v4699_v52 = vmul.f32 0.01, %v4261_v47  ;;  %vm4542_vm14 = vcmp.ge.f32.partialorder %v4272_v20, 0.0  ;;  %v4702_v17 = vmul.f32 0.01, %v4272_v20 }
 0x3fe   : > { %v12388_v32 = vsel %vm4541_vm12, %v4269_v30, %v4701_v1  ;;  %vm4540_vm15 = vcmp.ge.f32.partialorder %v4264_v29, 0.0  ;;  %v4700_v6 = vmul.f32 0.01, %v4264_v29  ;;  %v2293_v8 = vadd.f32 %v16230_v39, %v10198_v38  ;;  %v16232_v30 = vld [vmem:[#allocation129_spill] sm:$0xff]  ;;  %v16236_v39 = vld [vmem:[#allocation131_spill] sm:$0xff] }
 0x3ff   : > { %v12392_v22 = vsel %vm4539_vm13, %v4261_v47, %v4699_v52  ;;  %v12398_v41 = vsel %vm4542_vm14, %v4272_v20, %v4702_v17  ;;  %v2299_v1 = vadd.f32 %v16232_v30, %v10198_v38  ;;  %v2303_v56 = vadd.f32 %v16233_v26, %v10198_v38  ;;  %16235 = vst [vmem:[#allocation129_spill] sm:$0xff] %v12409_v59  ;;  %v16237_v20 = vld [vmem:[#allocation134_spill] sm:$0xff]  ;;  %v16239_v26 = vld [vmem:[#allocation137_spill] sm:$0xff]  ;;  %v16241_v59 = vld [vmem:[#allocation139_spill] sm:$0xff] }
 0x400   : > { %16231 = vst [vmem:[#allocation121_spill] sm:$0xff] %v12398_v41  ;;  %v12406_v52 = vsel %vm4540_vm15, %v4264_v29, %v4700_v6  ;;  %v2309_v18 = vadd.f32 %v16236_v39, %v10198_v38  ;;  %v2313_v17 = vadd.f32 %v16237_v20, %v10198_v38  ;;  %v12417_v50 = vsel %vm2814_vm0, %v2283_v45, %v3134_v48  ;;  %v16240_v29 = vld [vmem:[#allocation138_spill] sm:$0xff] }
 0x401   : > { %16234 = vst [vmem:[#allocation125_spill] sm:$0xff] %v12406_v52  ;;  %16238 = vst [vmem:[#allocation130_spill] sm:$0xff] %v12417_v50  ;;  %vm2816_vm1 = vcmp.ge.f32.partialorder %v2289_v5, 0.0  ;;  %v2319_v47 = vadd.f32 %v16239_v26, %v10198_v38  ;;  %v2323_v6 = vadd.f32 %v16240_v29, %v10198_v38  ;;  %v3136_v37 = vmul.f32 0.01, %v2289_v5 }
 0x402   : > { %v3138_v49 = vmul.f32 0.01, %v2293_v8  ;;  %v2329_v39 = vadd.f32 %v16241_v59, %v10198_v38  ;;  %v2333_v20 = vadd.f32 %v16242_v36, %v10198_v38  ;;  %vm2818_vm2 = vcmp.ge.f32.partialorder %v2293_v8, 0.0  ;;  %v16243_v59 = vld [vmem:[#allocation145_spill] sm:$0xff]  ;;  %v16244_v36 = vld [vmem:[#allocation146_spill] sm:$0xff] }
 0x403   : > { %vm2820_vm3 = vcmp.ge.f32.partialorder %v2299_v1, 0.0  ;;  %v3140_v30 = vmul.f32 0.01, %v2299_v1  ;;  %v3142_v45 = vmul.f32 0.01, %v2303_v56  ;;  %vm2822_vm4 = vcmp.ge.f32.partialorder %v2303_v56, 0.0 }
 0x404   : > { %vm2824_vm5 = vcmp.ge.f32.partialorder %v2309_v18, 0.0  ;;  %v3144_v48 = vmul.f32 0.01, %v2309_v18  ;;  %v3146_v50 = vmul.f32 0.01, %v2313_v17  ;;  %vm2826_vm6 = vcmp.ge.f32.partialorder %v2313_v17, 0.0 }
 0x405   : > { %vm2828_vm7 = vcmp.ge.f32.partialorder %v2319_v47, 0.0  ;;  %v3148_v26 = vmul.f32 0.01, %v2319_v47  ;;  %v3150_v29 = vmul.f32 0.01, %v2323_v6  ;;  %vm2830_vm8 = vcmp.ge.f32.partialorder %v2323_v6, 0.0 }
 0x406   : > { %v3152_v13 = vmul.f32 0.01, %v2329_v39  ;;  %v3154_v44 = vmul.f32 0.01, %v2333_v20  ;;  %v12429_v54 = vadd.f32 %v16243_v59, %v10198_v38  ;;  %vm2832_vm9 = vcmp.ge.f32.partialorder %v2329_v39, 0.0 }
 0x407   : > { %vm2834_vm10 = vcmp.ge.f32.partialorder %v2333_v20, 0.0  ;;  %v12433_v60 = vadd.f32 %v16244_v36, %v10198_v38  ;;  %v12437_v27 = vadd.f32 %v16245_v62, %v10198_v38  ;;  %v12440_v7 = vsel %vm2816_vm1, %v2289_v5, %v3136_v37  ;;  %v8634_v37 = vpop.f32.mrb[120].mxu1 }
 0x408   : > { %16246 = vst [vmem:[#allocation131_spill] sm:$0xff] %v12440_v7  ;;  %v12443_v57 = vsel %vm2818_vm2, %v2293_v8, %v3138_v49  ;;  %v12446_v40 = vsel %vm2820_vm3, %v2299_v1, %v3140_v30  ;;  %v12449_v59 = vsel %vm2822_vm4, %v2303_v56, %v3142_v45  ;;  %v12452_v58 = vsel %vm2824_vm5, %v2309_v18, %v3144_v48  ;;  %v4276_v30 = vpop.f32.mrb[121].mxu1 }
 0x409   : > { %16247 = vst [vmem:[#allocation134_spill] sm:$0xff] %v12443_v57  ;;  %16248 = vst [vmem:[#allocation137_spill] sm:$0xff] %v12446_v40  ;;  %v12455_v36 = vsel %vm2826_vm6, %v2313_v17, %v3146_v50  ;;  %v12458_v62 = vsel %vm2828_vm7, %v2319_v47, %v3148_v26  ;;  %v12460_v5 = vsel %vm2830_vm8, %v2323_v6, %v3150_v29  ;;  %v3156_v1 = vmul.f32 0.01, %v12429_v54  ;;  %v16256_v47 = vld [vmem:[#allocation150_spill] sm:$0xff]  ;;  %v16257_v6 = vld [vmem:[#allocation153_spill] sm:$0xff] }
 0x40a   : > { %16249 = vst [vmem:[#allocation138_spill] sm:$0xff] %v12449_v59  ;;  %16250 = vst [vmem:[#allocation139_spill] sm:$0xff] %v12452_v58  ;;  %v12462_v8 = vsel %vm2832_vm9, %v2329_v39, %v3152_v13  ;;  %v12464_v49 = vsel %vm2834_vm10, %v2333_v20, %v3154_v44  ;;  %v4285_v56 = vadd.f32 %v12217_v33, %v8634_v37  ;;  %vm2836_vm11 = vcmp.ge.f32.partialorder %v12429_v54, 0.0  ;;  %v8635_v44 = vpop.f32.mrb[122].mxu1  ;;  %v16258_v26 = vld [vmem:[#allocation154_spill] sm:$0xff]  ;;  %v16262_v58 = vld [vmem:[#allocation161_spill] sm:$0xff] }
 0x40b   : > { %16251 = vst [vmem:[#allocation142_spill] sm:$0xff] %v12455_v36  ;;  %16252 = vst [vmem:[#allocation145_spill] sm:$0xff] %v12458_v62  ;;  %vm2838_vm12 = vcmp.ge.f32.partialorder %v12433_v60, 0.0  ;;  %v3158_v18 = vmul.f32 0.01, %v12433_v60  ;;  %v2353_v17 = vadd.f32 %v16256_v47, %v10198_v38  ;;  %v4277_v13 = vadd.f32 %v12217_v33, %v4276_v30  ;;  %v4279_v48 = vpop.f32.mrb[123].mxu1 }
 0x40c   : > { %16253 = vst [vmem:[#allocation146_spill] sm:$0xff] %v12460_v5  ;;  %16254 = vst [vmem:[#allocation147_spill] sm:$0xff] %v12462_v8  ;;  %v3160_v50 = vmul.f32 0.01, %v12437_v27  ;;  %vm2840_vm13 = vcmp.ge.f32.partialorder %v12437_v27, 0.0  ;;  %v2359_v39 = vadd.f32 %v16257_v6, %v10198_v38  ;;  %vm4545_vm14 = vcmp.ge.f32.partialorder %v4285_v56, 0.0 }
 0x40d   : > { %16255 = vst [vmem:[#allocation277_spill] sm:$0xff] %v12464_v49  ;;  %v4705_v20 = vmul.f32 0.01, %v4285_v56  ;;  %v4288_v45 = vadd.f32 %v12217_v33, %v8635_v44  ;;  %v2363_v29 = vadd.f32 %v16258_v26, %v10198_v38  ;;  %vm4543_vm15 = vcmp.ge.f32.partialorder %v4277_v13, 0.0  ;;  %v16259_v30 = vld [vmem:[#allocation155_spill] sm:$0xff]  ;;  %v16261_v26 = vld [vmem:[#allocation158_spill] sm:$0xff] }
 0x40e   : > { %v4703_v37 = vmul.f32 0.01, %v4277_v13  ;;  %v4280_v47 = vadd.f32 %v12217_v33, %v4279_v48  ;;  %v2369_v49 = vadd.f32 %v16259_v30, %v10198_v38  ;;  %v2373_v36 = vadd.f32 %v16261_v26, %v10198_v38  ;;  %v16265_v6 = vld [vmem:[#allocation163_spill] sm:$0xff] }
 0x40f   : > { %v12484_v8 = vsel %vm4545_vm14, %v4285_v56, %v4705_v20  ;;  %vm4546_vm0 = vcmp.ge.f32.partialorder %v4288_v45, 0.0  ;;  %v4706_v5 = vmul.f32 0.01, %v4288_v45  ;;  %v2379_v48 = vadd.f32 %v16262_v58, %v10198_v38  ;;  %v16264_v20 = vld [vmem:[#allocation162_spill] sm:$0xff] }
 0x410   : > { %v12488_v62 = vsel %vm4543_vm15, %v4277_v13, %v4703_v37  ;;  %vm4544_vm1 = vcmp.ge.f32.partialorder %v4280_v47, 0.0  ;;  %v4704_v44 = vmul.f32 0.01, %v4280_v47  ;;  %v2383_v59 = vadd.f32 %v16264_v20, %v10198_v38 }
 0x411   : > { %16260 = vst [vmem:[#allocation150_spill] sm:$0xff] %v12488_v62  ;;  %v12496_v56 = vsel %vm4546_vm0, %v4288_v45, %v4706_v5  ;;  %v2389_v13 = vadd.f32 %v16265_v6, %v10198_v38  ;;  %vm2842_vm2 = vcmp.ge.f32.partialorder %v2353_v17, 0.0  ;;  %v3162_v26 = vmul.f32 0.01, %v2353_v17 }
 0x412   : > { %16263 = vst [vmem:[#allocation153_spill] sm:$0xff] %v12496_v56  ;;  %v12504_v40 = vsel %vm4544_vm1, %v4280_v47, %v4704_v44  ;;  %v3164_v57 = vmul.f32 0.01, %v2359_v39  ;;  %vm2844_vm3 = vcmp.ge.f32.partialorder %v2359_v39, 0.0  ;;  %vm2846_vm4 = vcmp.ge.f32.partialorder %v2363_v29, 0.0  ;;  %v16267_v47 = vld [vmem:[#allocation166_spill] sm:$0xff] }
 0x413   : > { %16266 = vst [vmem:[#allocation154_spill] sm:$0xff] %v12504_v40  ;;  %v3166_v5 = vmul.f32 0.01, %v2363_v29  ;;  %v3168_v45 = vmul.f32 0.01, %v2369_v49  ;;  %vm2848_vm5 = vcmp.ge.f32.partialorder %v2369_v49, 0.0  ;;  %v2393_v44 = vadd.f32 %v16267_v47, %v10198_v38 }
 0x414   : > { %vm2850_vm6 = vcmp.ge.f32.partialorder %v2373_v36, 0.0  ;;  %v3170_v20 = vmul.f32 0.01, %v2373_v36  ;;  %v3172_v30 = vmul.f32 0.01, %v2379_v48  ;;  %vm2852_vm7 = vcmp.ge.f32.partialorder %v2379_v48, 0.0 }
 0x415   : > { %v3174_v6 = vmul.f32 0.01, %v2383_v59  ;;  %v3176_v7 = vmul.f32 0.01, %v2389_v13  ;;  %v12513_v37 = vsel %vm2836_vm11, %v12429_v54, %v3156_v1  ;;  %v12518_v58 = vsel %vm2838_vm12, %v12433_v60, %v3158_v18  ;;  %v8638_v1 = vpop.f32.mrb[124].mxu1 }
 0x416   : > { %16268 = vst [vmem:[#allocation155_spill] sm:$0xff] %v12513_v37  ;;  %16269 = vst [vmem:[#allocation158_spill] sm:$0xff] %v12518_v58  ;;  %vm2854_vm8 = vcmp.ge.f32.partialorder %v2383_v59, 0.0  ;;  %vm2856_vm9 = vcmp.ge.f32.partialorder %v2389_v13, 0.0  ;;  %v12523_v51 = vsel %vm2840_vm13, %v12437_v27, %v3160_v50  ;;  %v12526_v12 = vsel %vm2842_vm2, %v2353_v17, %v3162_v26  ;;  %v4292_v50 = vpop.f32.mrb[125].mxu1 }
 0x417   : > { %16270 = vst [vmem:[#allocation161_spill] sm:$0xff] %v12523_v51  ;;  %16271 = vst [vmem:[#allocation162_spill] sm:$0xff] %v12526_v12  ;;  %v12529_v47 = vsel %vm2844_vm3, %v2359_v39, %v3164_v57  ;;  %v12532_v54 = vsel %vm2846_vm4, %v2363_v29, %v3166_v5  ;;  %v12535_v60 = vsel %vm2848_vm5, %v2369_v49, %v3168_v45  ;;  %vm2858_vm10 = vcmp.ge.f32.partialorder %v2393_v44, 0.0  ;;  %v8639_v39 = vpop.f32.mrb[126].mxu1 }
 0x418   : > { %16272 = vst [vmem:[#allocation163_spill] sm:$0xff] %v12529_v47  ;;  %16273 = vst [vmem:[#allocation166_spill] sm:$0xff] %v12532_v54  ;;  %v12538_v18 = vsel %vm2850_vm6, %v2373_v36, %v3170_v20  ;;  %v12540_v58 = vsel %vm2852_vm7, %v2379_v48, %v3172_v30  ;;  %v4301_v27 = vadd.f32 %v12217_v33, %v8638_v1  ;;  %v3178_v29 = vmul.f32 0.01, %v2393_v44  ;;  %v4295_v36 = vpop.f32.mrb[127].mxu1  ;;  %v16279_v48 = vld [vmem:[#allocation169_spill] sm:$0xff] }
 0x419   : > { %16274 = vst [vmem:[#allocation278_spill] sm:$0xff] %v12535_v60  ;;  %16275 = vst [vmem:[#allocation279_spill] sm:$0xff] %v12538_v18  ;;  %v12543_v17 = vsel %vm2854_vm8, %v2383_v59, %v3174_v6  ;;  %v12545_v26 = vsel %vm2856_vm9, %v2389_v13, %v3176_v7  ;;  %v4293_v57 = vadd.f32 %v12217_v33, %v4292_v50  ;;  %v16280_v7 = vld [vmem:[#allocation170_spill] sm:$0xff] }
 0x41a   : > { %16276 = vst [vmem:[#allocation280_spill] sm:$0xff] %v12540_v58  ;;  %16277 = vst [vmem:[#allocation281_spill] sm:$0xff] %v12543_v17  ;;  %vm4549_vm11 = vcmp.ge.f32.partialorder %v4301_v27, 0.0  ;;  %v4709_v49 = vmul.f32 0.01, %v4301_v27  ;;  %v4304_v5 = vadd.f32 %v12217_v33, %v8639_v39  ;;  %v2399_v30 = vadd.f32 %v16279_v48, %v10198_v38  ;;  %v16297_v18 = vld [vmem:[#allocation186_spill] sm:$0xff] }
 0x41b   : > { %16278 = vst [vmem:[#allocation282_spill] sm:$0xff] %v12545_v26  ;;  %vm4547_vm12 = vcmp.ge.f32.partialorder %v4293_v57, 0.0  ;;  %v4707_v45 = vmul.f32 0.01, %v4293_v57  ;;  %v4296_v59 = vadd.f32 %v12217_v33, %v4295_v36  ;;  %v2403_v13 = vadd.f32 %v16280_v7, %v10198_v38  ;;  %v16283_v36 = vld [vmem:[#allocation171_spill] sm:$0xff] }
 0x41c   : > { %v12554_v20 = vsel %vm4549_vm11, %v4301_v27, %v4709_v49  ;;  %vm4550_vm13 = vcmp.ge.f32.partialorder %v4304_v5, 0.0  ;;  %v4710_v6 = vmul.f32 0.01, %v4304_v5  ;;  %v16281_v1 = vmax.f32 %v11976_v46, %v12225_v55  ;;  %v16286_v46 = vld [vmem:[#allocation174_spill] sm:$0xff] }
 0x41d   : > { %v12562_v39 = vsel %vm4547_vm12, %v4293_v57, %v4707_v45  ;;  %vm4548_vm14 = vcmp.ge.f32.partialorder %v4296_v59, 0.0  ;;  %v4708_v48 = vmul.f32 0.01, %v4296_v59  ;;  %v12565_v26 = vsel %vm2858_vm10, %v2393_v44, %v3178_v29  ;;  %v16287_v45 = vld [vmem:[#allocation177_spill] sm:$0xff] }
 0x41e   : > { %v12560_v50 = vmax.f32 %v16281_v1, %v12554_v20  ;;  %16282 = vst [vmem:[#allocation169_spill] sm:$0xff] %v12565_v26  ;;  %v2409_v7 = vadd.f32 %v16283_v36, %v10198_v38  ;;  %v16284_v27 = vmax.f32 %v11986_v53, %v12229_v42  ;;  %v12575_v17 = vsel %vm4550_vm13, %v4304_v5, %v4710_v6  ;;  %v16291_v53 = vld [vmem:[#allocation178_spill] sm:$0xff]  ;;  %v16292_v5 = vld [vmem:[#allocation179_spill] sm:$0xff] }
 0x41f   : > { %16285 = vst [vmem:[#allocation170_spill] sm:$0xff] %v12575_v17  ;;  %v2413_v57 = vadd.f32 %v16286_v46, %v10198_v38  ;;  %v2419_v1 = vadd.f32 %v16287_v45, %v10198_v38  ;;  %v16288_v44 = vmax.f32 %v11992_v0, %v12235_v21  ;;  %v12587_v36 = vsel %vm4548_vm14, %v4296_v59, %v4708_v48  ;;  %v9321_v0 = vld [vmem:[%s15379_s5 + $0x30] sm:$0xff]  }
 0x420   : > { %v12573_v49 = vmax.f32 %v16284_v27, %v12562_v39  ;;  %16290 = vst [vmem:[#allocation174_spill] sm:$0xff] %v12587_v36  ;;  %vm2860_vm15 = vcmp.ge.f32.partialorder %v2399_v30, 0.0  ;;  %v2423_v27 = vadd.f32 %v16291_v53, %v10198_v38  ;;  %v2429_v6 = vadd.f32 %v16292_v5, %v10198_v38  ;;  %v16295_v59 = vld [vmem:[#allocation181_spill] sm:$0xff]  ;;  %8680 = vmatprep.subr.bf16.mxu1 %v9321_v0 }
 0x421   : > { %v12585_v29 = vmax.f32 %v16288_v44, %v12575_v17  ;;  %v16293_v46 = vmax.f32 %v12013_v10, %v12244_v2  ;;  %v3180_v44 = vmul.f32 0.01, %v2399_v30  ;;  %vm2862_vm0 = vcmp.ge.f32.partialorder %v2403_v13, 0.0  ;;  %v16296_v53 = vld [vmem:[#allocation185_spill] sm:$0xff]  ;;  %v16298_v10 = vld [vmem:[#allocation187_spill] sm:$0xff]  ;;  %8681 = vmatpush3.bf16.msra.mxu1 %v9321_v0 }
 0x422   : > { %v2433_v48 = vadd.f32 %v16295_v59, %v10198_v38  ;;  %v2439_v26 = vadd.f32 %v16296_v53, %v10198_v38  ;;  %v3182_v58 = vmul.f32 0.01, %v2403_v13  ;;  %v3184_v5 = vmul.f32 0.01, %v2409_v7  ;;  %v16301_v0 = vld [vmem:[#allocation193_spill] sm:$0xff] }
 0x423   : > { %16289 = vst [vmem:[#allocation171_spill] sm:$0xff] %v12585_v29  ;;  %v12597_v45 = vmax.f32 %v16293_v46, %v12587_v36  ;;  %v2443_v60 = vadd.f32 %v16297_v18, %v10198_v38  ;;  %v2449_v46 = vadd.f32 %v16298_v10, %v10198_v38  ;;  %vm2864_vm1 = vcmp.ge.f32.partialorder %v2409_v7, 0.0  ;;  %v16299_v36 = vld [vmem:[#allocation189_spill] sm:$0xff] }
 0x424   : > { %vm2866_vm2 = vcmp.ge.f32.partialorder %v2413_v57, 0.0  ;;  %v3186_v54 = vmul.f32 0.01, %v2413_v57  ;;  %v3188_v47 = vmul.f32 0.01, %v2419_v1  ;;  %vm2868_vm3 = vcmp.ge.f32.partialorder %v2419_v1, 0.0 }
 0x425   : > { %16294 = vst [vmem:[#allocation177_spill] sm:$0xff] %v12597_v45  ;;  %vm2870_vm4 = vcmp.ge.f32.partialorder %v2423_v27, 0.0  ;;  %v3190_v59 = vmul.f32 0.01, %v2423_v27  ;;  %v3192_v12 = vmul.f32 0.01, %v2429_v6  ;;  %v12612_v10 = vadd.f32 %v16299_v36, %v10198_v38 }
 0x426   : > { %vm2872_vm5 = vcmp.ge.f32.partialorder %v2429_v6, 0.0  ;;  %vm2874_vm6 = vcmp.ge.f32.partialorder %v2433_v48, 0.0  ;;  %v3194_v53 = vmul.f32 0.01, %v2433_v48  ;;  %v3196_v51 = vmul.f32 0.01, %v2439_v26 }
 0x427   : > { %vm2876_vm7 = vcmp.ge.f32.partialorder %v2439_v26, 0.0  ;;  %v3198_v37 = vmul.f32 0.01, %v2443_v60  ;;  %v3200_v18 = vmul.f32 0.01, %v2449_v46  ;;  %v12615_v2 = vsel %vm2860_vm15, %v2399_v30, %v3180_v44 }
 0x428   : > { %16300 = vst [vmem:[#allocation178_spill] sm:$0xff] %v12615_v2  ;;  %vm2878_vm8 = vcmp.ge.f32.partialorder %v2443_v60, 0.0  ;;  %vm2880_vm9 = vcmp.ge.f32.partialorder %v2449_v46, 0.0  ;;  %v12619_v17 = vadd.f32 %v16301_v0, %v10198_v38  ;;  %v12622_v21 = vsel %vm2862_vm0, %v2403_v13, %v3182_v58  ;;  %v8642_v13 = vpop.f32.mrb[128].mxu1 }
 0x429   : > { %16302 = vst [vmem:[#allocation179_spill] sm:$0xff] %v12622_v21  ;;  %v12625_v45 = vsel %vm2864_vm1, %v2409_v7, %v3184_v5  ;;  %v12628_v29 = vsel %vm2866_vm2, %v2413_v57, %v3186_v54  ;;  %v12631_v36 = vsel %vm2868_vm3, %v2419_v1, %v3188_v47  ;;  %v12634_v30 = vsel %vm2870_vm4, %v2423_v27, %v3190_v59  ;;  %v4308_v57 = vpop.f32.mrb[129].mxu1  ;;  %v16312_v1 = vld [vmem:[#allocation194_spill] sm:$0xff]  ;;  %v16314_v59 = vld [vmem:[#allocation197_spill] sm:$0xff] }
 0x42a   : > { %16303 = vst [vmem:[#allocation181_spill] sm:$0xff] %v12625_v45  ;;  %16304 = vst [vmem:[#allocation185_spill] sm:$0xff] %v12628_v29  ;;  %v12637_v44 = vsel %vm2872_vm5, %v2429_v6, %v3192_v12  ;;  %v12640_v0 = vsel %vm2874_vm6, %v2433_v48, %v3194_v53  ;;  %v12642_v58 = vsel %vm2876_vm7, %v2439_v26, %v3196_v51  ;;  %v3202_v54 = vmul.f32 0.01, %v12612_v10  ;;  %v16325_v29 = vld [vmem:[#allocation210_spill] sm:$0xff] }
 0x42b   : > { %16305 = vst [vmem:[#allocation186_spill] sm:$0xff] %v12631_v36  ;;  %16306 = vst [vmem:[#allocation187_spill] sm:$0xff] %v12634_v30  ;;  %v12644_v7 = vsel %vm2878_vm8, %v2443_v60, %v3198_v37  ;;  %v12646_v5 = vsel %vm2880_vm9, %v2449_v46, %v3200_v18  ;;  %v4317_v47 = vadd.f32 %v12217_v33, %v8642_v13  ;;  %vm2882_vm10 = vcmp.ge.f32.partialorder %v12612_v10, 0.0  ;;  %v8643_v37 = vpop.f32.mrb[130].mxu1  ;;  %v16313_v60 = vld [vmem:[#allocation195_spill] sm:$0xff] }
 0x42c   : > { %16307 = vst [vmem:[#allocation189_spill] sm:$0xff] %v12637_v44  ;;  %16308 = vst [vmem:[#allocation193_spill] sm:$0xff] %v12640_v0  ;;  %vm2884_vm11 = vcmp.ge.f32.partialorder %v12619_v17, 0.0  ;;  %v3204_v12 = vmul.f32 0.01, %v12619_v17  ;;  %v2463_v51 = vadd.f32 %v16312_v1, %v10198_v38  ;;  %v4309_v26 = vadd.f32 %v12217_v33, %v4308_v57  ;;  %v4311_v46 = vpop.f32.mrb[131].mxu1 }
 0x42d   : > { %16309 = vst [vmem:[#allocation283_spill] sm:$0xff] %v12642_v58  ;;  %16310 = vst [vmem:[#allocation284_spill] sm:$0xff] %v12644_v7  ;;  %v2469_v27 = vadd.f32 %v16313_v60, %v10198_v38  ;;  %vm4553_vm12 = vcmp.ge.f32.partialorder %v4317_v47, 0.0  ;;  %v4713_v6 = vmul.f32 0.01, %v4317_v47  ;;  %v4320_v48 = vadd.f32 %v12217_v33, %v8643_v37  ;;  %v16315_v1 = vld [vmem:[#allocation201_spill] sm:$0xff] }
 0x42e   : > { %16311 = vst [vmem:[#allocation285_spill] sm:$0xff] %v12646_v5  ;;  %v2473_v53 = vadd.f32 %v16314_v59, %v10198_v38  ;;  %vm4551_vm13 = vcmp.ge.f32.partialorder %v4309_v26, 0.0  ;;  %v4711_v18 = vmul.f32 0.01, %v4309_v26  ;;  %v4312_v13 = vadd.f32 %v12217_v33, %v4311_v46  ;;  %v16317_v0 = vld [vmem:[#allocation202_spill] sm:$0xff]  ;;  %v16318_v44 = vld [vmem:[#allocation203_spill] sm:$0xff] }
 0x42f   : > { %v2479_v5 = vadd.f32 %v16315_v1, %v10198_v38  ;;  %v12664_v57 = vsel %vm4553_vm12, %v4317_v47, %v4713_v6  ;;  %vm4554_vm14 = vcmp.ge.f32.partialorder %v4320_v48, 0.0  ;;  %v4714_v7 = vmul.f32 0.01, %v4320_v48 }
 0x430   : > { %v16316_v60 = vmax.f32 %v11908_v3, %v12323_v19  ;;  %v12672_v58 = vsel %vm4551_vm13, %v4309_v26, %v4711_v18  ;;  %vm4552_vm15 = vcmp.ge.f32.partialorder %v4312_v13, 0.0  ;;  %v4712_v59 = vmul.f32 0.01, %v4312_v13  ;;  %v16320_v3 = vld [vmem:[#allocation205_spill] sm:$0xff] }
 0x431   : > { %v2483_v46 = vadd.f32 %v16317_v0, %v10198_v38  ;;  %v2489_v1 = vadd.f32 %v16318_v44, %v10198_v38  ;;  %v16319_v47 = vmax.f32 %v11916_v61, %v12327_v28  ;;  %v12684_v30 = vsel %vm4554_vm14, %v4320_v48, %v4714_v7  ;;  %v16321_v18 = vld [vmem:[#allocation209_spill] sm:$0xff] }
 0x432   : > { %v12670_v37 = vmax.f32 %v16316_v60, %v12664_v57  ;;  %v2493_v26 = vadd.f32 %v16320_v3, %v10198_v38  ;;  %v2499_v60 = vadd.f32 %v16321_v18, %v10198_v38  ;;  %v16322_v0 = vmax.f32 %v11930_v43, %v12335_v9 }
 0x433   : > { %v12682_v6 = vmax.f32 %v16319_v47, %v12672_v58  ;;  %v12696_v44 = vsel %vm4552_vm15, %v4312_v13, %v4712_v59  ;;  %vm2886_vm0 = vcmp.ge.f32.partialorder %v2463_v51, 0.0  ;;  %v3206_v61 = vmul.f32 0.01, %v2463_v51 }
 0x434   : > { %v12694_v36 = vmax.f32 %v16322_v0, %v12684_v30  ;;  %16323 = vst [vmem:[#allocation194_spill] sm:$0xff] %v12696_v44  ;;  %v3208_v47 = vmul.f32 0.01, %v2469_v27  ;;  %v16324_v7 = vmax.f32 %v11941_v25, %v12343_v31  ;;  %vm2888_vm1 = vcmp.ge.f32.partialorder %v2469_v27, 0.0 }
 0x435   : > { %vm2890_vm2 = vcmp.ge.f32.partialorder %v2473_v53, 0.0  ;;  %v3210_v3 = vmul.f32 0.01, %v2473_v53  ;;  %v3212_v18 = vmul.f32 0.01, %v2479_v5  ;;  %vm2892_vm3 = vcmp.ge.f32.partialorder %v2479_v5, 0.0 }
 0x436   : > { %v12702_v48 = vmax.f32 %v16324_v7, %v12696_v44  ;;  %vm2894_vm4 = vcmp.ge.f32.partialorder %v2483_v46, 0.0  ;;  %v3214_v43 = vmul.f32 0.01, %v2483_v46  ;;  %v3216_v0 = vmul.f32 0.01, %v2489_v1  ;;  %v16331_v44 = vld [vmem:[#allocation211_spill] sm:$0xff] }
 0x437   : > { %vm2896_vm5 = vcmp.ge.f32.partialorder %v2489_v1, 0.0  ;;  %v3218_v13 = vmul.f32 0.01, %v2493_v26  ;;  %v3220_v59 = vmul.f32 0.01, %v2499_v60  ;;  %v2503_v45 = vadd.f32 %v16325_v29, %v10198_v38 }
 0x438   : > { %v12709_v25 = vsel %vm2882_vm10, %v12612_v10, %v3202_v54  ;;  %v12714_v7 = vsel %vm2884_vm11, %v12619_v17, %v3204_v12  ;;  %vm2898_vm6 = vcmp.ge.f32.partialorder %v2493_v26, 0.0  ;;  %vm2900_vm7 = vcmp.ge.f32.partialorder %v2499_v60, 0.0  ;;  %v8646_v54 = vpop.f32.mrb[132].mxu1 }
 0x439   : > { %16326 = vst [vmem:[#allocation195_spill] sm:$0xff] %v12709_v25  ;;  %16327 = vst [vmem:[#allocation197_spill] sm:$0xff] %v12714_v7  ;;  %v12717_v21 = vsel %vm2886_vm0, %v2463_v51, %v3206_v61  ;;  %v12720_v2 = vsel %vm2888_vm1, %v2469_v27, %v3208_v47  ;;  %v12723_v29 = vsel %vm2890_vm2, %v2473_v53, %v3210_v3  ;;  %v4324_v61 = vpop.f32.mrb[133].mxu1  ;;  %vm2902_vm8 = vcmp.ge.f32.partialorder %v2503_v45, 0.0 }
 0x43a   : > { %16328 = vst [vmem:[#allocation201_spill] sm:$0xff] %v12717_v21  ;;  %16329 = vst [vmem:[#allocation202_spill] sm:$0xff] %v12720_v2  ;;  %v2509_v10 = vadd.f32 %v16331_v44, %v10198_v38  ;;  %v12728_v25 = vsel %vm2892_vm3, %v2479_v5, %v3212_v18  ;;  %v12731_v17 = vsel %vm2894_vm4, %v2483_v46, %v3214_v43  ;;  %v8647_v44 = vpop.f32.mrb[134].mxu1  ;;  %v3222_v3 = vmul.f32 0.01, %v2503_v45 }
 0x43b   : > { %16330 = vst [vmem:[#allocation203_spill] sm:$0xff] %v12723_v29  ;;  %16332 = vst [vmem:[#allocation205_spill] sm:$0xff] %v12728_v25  ;;  %v12733_v12 = vsel %vm2896_vm5, %v2489_v1, %v3216_v0  ;;  %v4333_v51 = vadd.f32 %v12217_v33, %v8646_v54  ;;  %v12736_v27 = vsel %vm2898_vm6, %v2493_v26, %v3218_v13  ;;  %v4327_v46 = vpop.f32.mrb[135].mxu1 }
 0x43c   : > { %16333 = vst [vmem:[#allocation209_spill] sm:$0xff] %v12731_v17  ;;  %16334 = vst [vmem:[#allocation210_spill] sm:$0xff] %v12733_v12  ;;  %v12738_v47 = vsel %vm2900_vm7, %v2499_v60, %v3220_v59  ;;  %v4325_v53 = vadd.f32 %v12217_v33, %v4324_v61  ;;  %v4336_v18 = vadd.f32 %v12217_v33, %v8647_v44  ;;  %vm2904_vm10 = vcmp.ge.f32.partialorder %v2509_v10, 0.0  ;;  %v16338_v44 = vld [vmem:[#allocation213_spill] sm:$0xff] }
 0x43d   : > { %16335 = vst [vmem:[#allocation211_spill] sm:$0xff] %v12736_v27  ;;  %16336 = vst [vmem:[#allocation286_spill] sm:$0xff] %v12738_v47  ;;  %vm4557_vm9 = vcmp.ge.f32.partialorder %v4333_v51, 0.0  ;;  %v4717_v5 = vmul.f32 0.01, %v4333_v51  ;;  %v4328_v43 = vadd.f32 %v12217_v33, %v4327_v46  ;;  %v16337_v13 = vmax.f32 %v12028_v4, %v12388_v32  ;;  %v16339_v46 = vld [vmem:[#allocation8_spill] sm:$0xff] }
 0x43e   : > { %vm4555_vm11 = vcmp.ge.f32.partialorder %v4325_v53, 0.0  ;;  %v4715_v1 = vmul.f32 0.01, %v4325_v53  ;;  %v3224_v0 = vmul.f32 0.01, %v2509_v10  ;;  %vm4558_vm12 = vcmp.ge.f32.partialorder %v4336_v18, 0.0 }
 0x43f   : > { %v12743_v26 = vsel %vm4557_vm9, %v4333_v51, %v4717_v5  ;;  %v4718_v60 = vmul.f32 0.01, %v4336_v18  ;;  %vm4556_vm13 = vcmp.ge.f32.partialorder %v4328_v43, 0.0  ;;  %v4716_v61 = vmul.f32 0.01, %v4328_v43  ;;  %v16342_v4 = vld [vmem:[#allocation216_spill] sm:$0xff] }
 0x440   : > { %v12749_v59 = vmax.f32 %v16337_v13, %v12743_v26  ;;  %v12751_v54 = vsel %vm4555_vm11, %v4325_v53, %v4715_v1  ;;  %v2513_v47 = vadd.f32 %v16338_v44, %v10198_v38  ;;  %v2519_v27 = vadd.f32 %v16339_v46, %v10198_v38  ;;  %v16343_v1 = vld [vmem:[#allocation220_spill] sm:$0xff] }
 0x441   : > { %v16340_v51 = vmax.f32 %v12043_v11, %v12392_v22  ;;  %v12763_v12 = vsel %vm4558_vm12, %v4336_v18, %v4718_v60  ;;  %v2523_v53 = vadd.f32 %v16342_v4, %v10198_v38  ;;  %v2529_v13 = vadd.f32 %v16343_v1, %v10198_v38  ;;  %v16348_v18 = vld [vmem:[#allocation11_spill] sm:$0xff] }
 0x442   : > { %16341 = vst [vmem:[#allocation213_spill] sm:$0xff] %v12763_v12  ;;  %v16344_v44 = vmax.f32 %v12049_v23, %v12398_v41  ;;  %v12775_v46 = vsel %vm4556_vm13, %v4328_v43, %v4716_v61  ;;  %v12778_v11 = vsel %vm2902_vm8, %v2503_v45, %v3222_v3  ;;  %v2533_v60 = vadd.f32 %v16348_v18, %v10198_v38  ;;  %v16353_v43 = vld [vmem:[#allocation14_spill] sm:$0xff]  ;;  %v16354_v45 = vld [vmem:[#allocation17_spill] sm:$0xff]  ;;  %v16361_v41 = vld [vmem:[#allocation24_spill] sm:$0xff] }
 0x443   : > { %v12761_v5 = vmax.f32 %v16340_v51, %v12751_v54  ;;  %16346 = vst [vmem:[#allocation216_spill] sm:$0xff] %v12775_v46  ;;  %16347 = vst [vmem:[#allocation220_spill] sm:$0xff] %v12778_v11  ;;  %v16349_v51 = vld [vmem:[#allocation13_spill] sm:$0xff]  ;;  %v16350_v1 = vmax.f32 %v12062_v24, %v12406_v52  ;;  %v12791_v23 = vsel %vm2904_vm10, %v2509_v10, %v3224_v0  ;;  %vm2906_vm14 = vcmp.ge.f32.partialorder %v2513_v47, 0.0  ;;  %v16360_v52 = vld [vmem:[#allocation234_spill] sm:$0xff] }
 0x444   : > { %v12773_v17 = vmax.f32 %v16344_v44, %v12763_v12  ;;  %v2539_v4 = vadd.f32 %v16349_v51, %v10198_v38  ;;  %16352 = vst [vmem:[#allocation13_spill] sm:$0xff] %v12791_v23  ;;  %v2543_v61 = vadd.f32 %v16353_v43, %v10198_v38  ;;  %v2549_v3 = vadd.f32 %v16354_v45, %v10198_v38  ;;  %v16355_v44 = vld [vmem:[#allocation229_spill] sm:$0xff]  ;;  %v16356_v45 = vld [vmem:[#allocation20_spill] sm:$0xff] }
 0x445   : > { %v12788_v25 = vmax.f32 %v16350_v1, %v12775_v46  ;;  %v2553_v18 = vadd.f32 %v16355_v44, %v10198_v38  ;;  %v3226_v51 = vmul.f32 0.01, %v2513_v47  ;;  %vm2908_vm15 = vcmp.ge.f32.partialorder %v2519_v27, 0.0  ;;  %v16357_v44 = vld [vmem:[#allocation21_spill] sm:$0xff] }
 0x446   : > { %16345 = vst [vmem:[#allocation8_spill] sm:$0xff] %v12773_v17  ;;  %v3228_v11 = vmul.f32 0.01, %v2519_v27  ;;  %vm2910_vm0 = vcmp.ge.f32.partialorder %v2523_v53, 0.0  ;;  %v3230_v24 = vmul.f32 0.01, %v2523_v53  ;;  %v2559_v2 = vadd.f32 %v16356_v45, %v10198_v38 }
 0x447   : > { %16351 = vst [vmem:[#allocation11_spill] sm:$0xff] %v12788_v25  ;;  %vm2912_vm1 = vcmp.ge.f32.partialorder %v2529_v13, 0.0  ;;  %v3232_v1 = vmul.f32 0.01, %v2529_v13  ;;  %vm2914_vm2 = vcmp.ge.f32.partialorder %v2533_v60, 0.0  ;;  %vm2916_vm3 = vcmp.ge.f32.partialorder %v2539_v4, 0.0 }
 0x448   : > { %v3234_v10 = vmul.f32 0.01, %v2533_v60  ;;  %v3236_v0 = vmul.f32 0.01, %v2539_v4  ;;  %v3238_v23 = vmul.f32 0.01, %v2543_v61  ;;  %v2563_v21 = vadd.f32 %v16357_v44, %v10198_v38 }
 0x449   : > { %v3240_v43 = vmul.f32 0.01, %v2549_v3  ;;  %v3242_v29 = vmul.f32 0.01, %v2553_v18  ;;  %vm2918_vm4 = vcmp.ge.f32.partialorder %v2543_v61, 0.0  ;;  %vm2920_vm5 = vcmp.ge.f32.partialorder %v2549_v3, 0.0 }
 0x44a   : > { %vm2922_vm6 = vcmp.ge.f32.partialorder %v2553_v18, 0.0  ;;  %v12804_v7 = vsel %vm2906_vm14, %v2513_v47, %v3226_v51  ;;  %v12807_v46 = vsel %vm2908_vm15, %v2519_v27, %v3228_v11  ;;  %v2569_v12 = vadd.f32 %v16360_v52, %v10198_v38 }
 0x44b   : > { %16358 = vst [vmem:[#allocation14_spill] sm:$0xff] %v12804_v7  ;;  %16359 = vst [vmem:[#allocation17_spill] sm:$0xff] %v12807_v46  ;;  %v2573_v25 = vadd.f32 %v16361_v41, %v10198_v38  ;;  %v12814_v45 = vsel %vm2910_vm0, %v2523_v53, %v3230_v24  ;;  %v12817_v17 = vsel %vm2912_vm1, %v2529_v13, %v3232_v1  ;;  %vm2924_vm7 = vcmp.ge.f32.partialorder %v2559_v2, 0.0  ;;  %v8650_v41 = vpop.f32.mrb[136].mxu1 }
 0x44c   : > { %16362 = vst [vmem:[#allocation229_spill] sm:$0xff] %v12814_v45  ;;  %16363 = vst [vmem:[#allocation20_spill] sm:$0xff] %v12817_v17  ;;  %v12820_v44 = vsel %vm2914_vm2, %v2533_v60, %v3234_v10  ;;  %v12823_v47 = vsel %vm2916_vm3, %v2539_v4, %v3236_v0  ;;  %v12825_v27 = vsel %vm2918_vm4, %v2543_v61, %v3238_v23  ;;  %v3244_v51 = vmul.f32 0.01, %v2559_v2  ;;  %v4340_v24 = vpop.f32.mrb[137].mxu1  ;;  %v16369_v23 = vld [vmem:[#allocation25_spill] sm:$0xff] }
 0x44d   : > { %16364 = vst [vmem:[#allocation21_spill] sm:$0xff] %v12820_v44  ;;  %16365 = vst [vmem:[#allocation234_spill] sm:$0xff] %v12823_v47  ;;  %v12827_v11 = vsel %vm2920_vm5, %v2549_v3, %v3240_v43  ;;  %v12829_v52 = vsel %vm2922_vm6, %v2553_v18, %v3242_v29  ;;  %vm2926_vm8 = vcmp.ge.f32.partialorder %v2563_v21, 0.0  ;;  %v3246_v53 = vmul.f32 0.01, %v2563_v21  ;;  %v8651_v1 = vpop.f32.mrb[138].mxu1 }
 0x44e   : > { %16366 = vst [vmem:[#allocation24_spill] sm:$0xff] %v12825_v27  ;;  %16367 = vst [vmem:[#allocation287_spill] sm:$0xff] %v12827_v11  ;;  %v4349_v13 = vadd.f32 %v12217_v33, %v8650_v41  ;;  %vm2928_vm9 = vcmp.ge.f32.partialorder %v2569_v12, 0.0  ;;  %v3248_v60 = vmul.f32 0.01, %v2569_v12  ;;  %vm2930_vm10 = vcmp.ge.f32.partialorder %v2573_v25, 0.0 }
 0x44f   : > { %16368 = vst [vmem:[#allocation288_spill] sm:$0xff] %v12829_v52  ;;  %v4341_v4 = vadd.f32 %v12217_v33, %v4340_v24  ;;  %v2579_v61 = vadd.f32 %v16369_v23, %v10198_v38  ;;  %v4352_v3 = vadd.f32 %v12217_v33, %v8651_v1  ;;  %v4343_v18 = vpop.f32.mrb[139].mxu1  ;;  %v16370_v10 = vld [vmem:[#allocation26_spill] sm:$0xff]  ;;  %v16371_v52 = vld [vmem:[#allocation29_spill] sm:$0xff]  ;;  %v16373_v23 = vmax.f32 %v12135_v63, %v12484_v8 }
 0x450   : > { %vm4561_vm11 = vcmp.ge.f32.partialorder %v4349_v13, 0.0  ;;  %v4721_v29 = vmul.f32 0.01, %v4349_v13  ;;  %v2583_v0 = vadd.f32 %v16370_v10, %v10198_v38  ;;  %v4344_v41 = vadd.f32 %v12217_v33, %v4343_v18 }
 0x451   : > { %vm4559_vm12 = vcmp.ge.f32.partialorder %v4341_v4, 0.0  ;;  %v4719_v43 = vmul.f32 0.01, %v4341_v4  ;;  %v2589_v11 = vadd.f32 %v16371_v52, %v10198_v38  ;;  %vm4562_vm13 = vcmp.ge.f32.partialorder %v4352_v3, 0.0 }
 0x452   : > { %v12841_v24 = vsel %vm4561_vm11, %v4349_v13, %v4721_v29  ;;  %v4722_v27 = vmul.f32 0.01, %v4352_v3  ;;  %vm4560_vm14 = vcmp.ge.f32.partialorder %v4344_v41, 0.0  ;;  %v4720_v10 = vmul.f32 0.01, %v4344_v41 }
 0x453   : > { %16372 = vst [vmem:[#allocation25_spill] sm:$0xff] %v12841_v24  ;;  %v12847_v1 = vmax.f32 %v16373_v23, %v12841_v24  ;;  %v12849_v47 = vsel %vm4559_vm12, %v4341_v4, %v4719_v43  ;;  %v3250_v44 = vmul.f32 0.01, %v2573_v25  ;;  %vm2932_vm15 = vcmp.ge.f32.partialorder %v2579_v61, 0.0  ;;  %v16381_v23 = vld [vmem:[#allocation242_spill] sm:$0xff] }
 0x454   : > { %16374 = vst [vmem:[#allocation26_spill] sm:$0xff] %v12849_v47  ;;  %v16375_v33 = vmax.f32 %v12147_v16, %v12488_v62  ;;  %v12857_v13 = vsel %vm4562_vm13, %v4352_v3, %v4722_v27  ;;  %v3252_v29 = vmul.f32 0.01, %v2579_v61  ;;  %v3254_v18 = vmul.f32 0.01, %v2583_v0  ;;  %v16382_v16 = vld [vmem:[#allocation246_spill] sm:$0xff] }
 0x455   : > { %16377 = vst [vmem:[#allocation289_spill] sm:$0xff] %v12857_v13  ;;  %v16378_v63 = vmax.f32 %v12159_v34, %v12496_v56  ;;  %v12865_v43 = vsel %vm4560_vm14, %v4344_v41, %v4720_v10  ;;  %vm2934_vm0 = vcmp.ge.f32.partialorder %v2583_v0, 0.0  ;;  %v2593_v17 = vadd.f32 %v16381_v23, %v10198_v38  ;;  %v16387_v10 = vld [vmem:[#allocation34_spill] sm:$0xff] }
 0x456   : > { %v12855_v52 = vmax.f32 %v16375_v33, %v12849_v47  ;;  %16380 = vst [vmem:[#allocation291_spill] sm:$0xff] %v12865_v43  ;;  %v2599_v33 = vadd.f32 %v16382_v16, %v10198_v38  ;;  %v16383_v27 = vmax.f32 %v12171_v15, %v12504_v40  ;;  %v12878_v45 = vsel %vm2924_vm7, %v2559_v2, %v3244_v51  ;;  %v16389_v16 = vld [vmem:[#allocation248_spill] sm:$0xff]  ;;  %v16390_v15 = vld [vmem:[#allocation39_spill] sm:$0xff]  ;;  %v16449_v47 = vld [vmem:[#allocation174_spill] sm:$0xff] }
 0x457   : > { %v12863_v4 = vmax.f32 %v16378_v63, %v12857_v13  ;;  %16385 = vst [vmem:[#allocation246_spill] sm:$0xff] %v12878_v45  ;;  %v12881_v34 = vsel %vm2926_vm8, %v2563_v21, %v3246_v53  ;;  %v3256_v41 = vmul.f32 0.01, %v2589_v11  ;;  %v2603_v63 = vadd.f32 %v16387_v10, %v10198_v38 }
 0x458   : > { %16376 = vst [vmem:[#allocation29_spill] sm:$0xff] %v12855_v52  ;;  %v12875_v3 = vmax.f32 %v16383_v27, %v12865_v43  ;;  %16386 = vst [vmem:[#allocation292_spill] sm:$0xff] %v12881_v34  ;;  %v12886_v23 = vsel %vm2928_vm9, %v2569_v12, %v3248_v60  ;;  %vm2936_vm1 = vcmp.ge.f32.partialorder %v2589_v11, 0.0  ;;  %v2609_v46 = vadd.f32 %v16389_v16, %v10198_v38 }
 0x459   : > { %16379 = vst [vmem:[#allocation290_spill] sm:$0xff] %v12863_v4  ;;  %16388 = vst [vmem:[#allocation34_spill] sm:$0xff] %v12886_v23  ;;  %v2613_v27 = vadd.f32 %v16390_v15, %v10198_v38  ;;  %v12893_v2 = vsel %vm2930_vm10, %v2573_v25, %v3250_v44  ;;  %v12896_v21 = vsel %vm2932_vm15, %v2579_v61, %v3252_v29  ;;  %vm2938_vm2 = vcmp.ge.f32.partialorder %v2593_v17, 0.0  ;;  %v8654_v44 = vpop.f32.mrb[140].mxu1 }
 0x45a   : > { %16384 = vst [vmem:[#allocation242_spill] sm:$0xff] %v12875_v3  ;;  %16391 = vst [vmem:[#allocation248_spill] sm:$0xff] %v12893_v2  ;;  %v12898_v51 = vsel %vm2934_vm0, %v2583_v0, %v3254_v18  ;;  %v2619_v53 = vadd.f32 %v11846_v14, %v10198_v38  ;;  %v3258_v12 = vmul.f32 0.01, %v2593_v17  ;;  %vm2940_vm3 = vcmp.ge.f32.partialorder %v2599_v33, 0.0  ;;  %v4356_v29 = vpop.f32.mrb[141].mxu1 }
 0x45b   : > { %16392 = vst [vmem:[#allocation39_spill] sm:$0xff] %v12896_v21  ;;  %16393 = vst [vmem:[#allocation293_spill] sm:$0xff] %v12898_v51  ;;  %v2623_v60 = vadd.f32 %v11851_v35, %v10198_v38  ;;  %v12904_v10 = vsel %vm2936_vm1, %v2589_v11, %v3256_v41  ;;  %v3260_v16 = vmul.f32 0.01, %v2599_v33  ;;  %vm2942_vm4 = vcmp.ge.f32.partialorder %v2603_v63, 0.0  ;;  %v8655_v41 = vpop.f32.mrb[142].mxu1 }
 0x45c   : > { %16394 = vst [vmem:[#allocation294_spill] sm:$0xff] %v12904_v10  ;;  %v3262_v25 = vmul.f32 0.01, %v2603_v63  ;;  %vm2944_vm5 = vcmp.ge.f32.partialorder %v2609_v46, 0.0  ;;  %v3264_v61 = vmul.f32 0.01, %v2609_v46  ;;  %v12915_v2 = vsel %vm2938_vm2, %v2593_v17, %v3258_v12 }
 0x45d   : > { %vm2946_vm6 = vcmp.ge.f32.partialorder %v2613_v27, 0.0  ;;  %v12909_v0 = vld [vmem:[%s15378_s4] ss:$0 sm:$0xff]  ;;  %v3266_v18 = vmul.f32 0.01, %v2613_v27  ;;  %vm2948_vm7 = vcmp.ge.f32.partialorder %v2619_v53, 0.0 }
 0x45e   : > { %v4365_v14 = vadd.f32 %v12909_v0, %v8654_v44  ;;  %v3268_v35 = vmul.f32 0.01, %v2619_v53  ;;  %v4357_v11 = vadd.f32 %v12909_v0, %v4356_v29  ;;  %v3270_v15 = vmul.f32 0.01, %v2623_v60  ;;  %v4359_v21 = vpop.f32.mrb[143].mxu1  ;;  %16395 = vst [vmem:[#allocation295_spill] sm:$0xff] %v12915_v2 }
 0x45f   : > { %v4368_v51 = vadd.f32 %v12909_v0, %v8655_v41  ;;  %vm2950_vm9 = vcmp.ge.f32.partialorder %v2623_v60, 0.0  ;;  %v12918_v44 = vsel %vm2940_vm3, %v2599_v33, %v3260_v16  ;;  %v12921_v34 = vsel %vm2942_vm4, %v2603_v63, %v3262_v25  ;;  %v16402_v63 = vld [vmem:[#allocation47_spill] sm:$0xff]  ;;  %v16404_v25 = vld [vmem:[#allocation122_spill] sm:$0xff] }
 0x460   : > { %vm4565_vm8 = vcmp.ge.f32.partialorder %v4365_v14, 0.0  ;;  %v4725_v10 = vmul.f32 0.01, %v4365_v14  ;;  %vm4563_vm10 = vcmp.ge.f32.partialorder %v4357_v11, 0.0  ;;  %v4723_v23 = vmul.f32 0.01, %v4357_v11 }
 0x461   : > { %16396 = vst [vmem:[#allocation296_spill] sm:$0xff] %v12918_v44  ;;  %16397 = vst [vmem:[#allocation297_spill] sm:$0xff] %v12921_v34  ;;  %v12924_v29 = vsel %vm2944_vm5, %v2609_v46, %v3264_v61  ;;  %v12927_v7 = vsel %vm2946_vm6, %v2613_v27, %v3266_v18  ;;  %v12930_v41 = vsel %vm2948_vm7, %v2619_v53, %v3268_v35  ;;  %vm4566_vm11 = vcmp.ge.f32.partialorder %v4368_v51, 0.0  ;;  %v16403_v27 = vld [vmem:[#allocation119_spill] sm:$0xff]  ;;  %v16405_v61 = vld [vmem:[#allocation156_spill] sm:$0xff] }
 0x462   : > { %16398 = vst [vmem:[#allocation298_spill] sm:$0xff] %v12924_v29  ;;  %v4885_v45 = vsel %vm4565_vm8, %v4365_v14, %v4725_v10  ;;  %16399 = vst [vmem:[#allocation299_spill] sm:$0xff] %v12927_v7  ;;  %v12933_v12 = vsel %vm4563_vm10, %v4357_v11, %v4723_v23  ;;  %v12935_v2 = vsel %vm2950_vm9, %v2623_v60, %v3270_v15  ;;  %v16407_v18 = vld [vmem:[#allocation10_spill] sm:$0xff]  ;;  %v4726_v29 = vmul.f32 0.01, %v4368_v51 }
 0x463   : > { %16400 = vst [vmem:[#allocation300_spill] sm:$0xff] %v12930_v41  ;;  %v4925_v17 = vmax.f32 %v12560_v50, %v4885_v45  ;;  %16401 = vst [vmem:[#allocation301_spill] sm:$0xff] %v12935_v2  ;;  %v12939_v33 = vmax.f32 %v12573_v49, %v12933_v12  ;;  %v4360_v46 = vadd.f32 %v12909_v0, %v4359_v21  ;;  %v16406_v50 = vld [vmem:[#allocation188_spill] sm:$0xff]  ;;  %v16408_v35 = vld [vmem:[#allocation38_spill] sm:$0xff] }
 0x465   : > { %v5045_v10 = vsub.f32 %v16402_v63, %v4925_v17  ;;  %v5061_v16 = vsub.f32 %v16403_v27, %v4925_v17  ;;  %v5077_v53 = vsub.f32 %v16404_v25, %v4925_v17  ;;  %v5093_v14 = vsub.f32 %v16405_v61, %v4925_v17  ;;  %v16409_v27 = vld [vmem:[#allocation48_spill] sm:$0xff] }
 0x466   : > { %v5109_v23 = vsub.f32 %v16406_v50, %v4925_v17  ;;  %v5125_v60 = vsub.f32 %v16407_v18, %v4925_v17  ;;  %v5141_v11 = vsub.f32 %v16408_v35, %v4925_v17  ;;  %v5157_v49 = vsub.f32 %v12225_v55, %v4925_v17  ;;  %v16410_v55 = vld [vmem:[#allocation120_spill] sm:$0xff] }
 0x467   : > { %v5173_v15 = vsub.f32 %v12554_v20, %v4925_v17  ;;  %v5189_v2 = vsub.f32 %v4885_v45, %v4925_v17  ;;  %v5207_v21 = vmul.f32 1.442695, %v5045_v10  ;;  %v5239_v41 = vmul.f32 1.442695, %v5061_v16  ;;  %v16411_v20 = vld [vmem:[#allocation124_spill] sm:$0xff]  ;;  %v16412_v17 = vld [vmem:[#allocation157_spill] sm:$0xff] }
 0x468   : > { %v5271_v63 = vmul.f32 1.442695, %v5077_v53  ;;  %v5303_v7 = vmul.f32 1.442695, %v5093_v14  ;;  %v5043_v25 = vsub.f32 %v16409_v27, %v12939_v33  ;;  %v5335_v61 = vmul.f32 1.442695, %v5109_v23 }
 0x469   : > { %9395 = vpow2.f32 %v5207_v21  ;;  %v5367_v50 = vmul.f32 1.442695, %v5125_v60  ;;  %v4724_v34 = vmul.f32 0.01, %v4360_v46  ;;  %v5399_v18 = vmul.f32 1.442695, %v5141_v11 }
 0x46a   : > { %9397 = vpow2.f32 %v5239_v41  ;;  %v5431_v35 = vmul.f32 1.442695, %v5157_v49  ;;  %v5059_v44 = vsub.f32 %v16410_v55, %v12939_v33  ;;  %v5075_v45 = vsub.f32 %v16411_v20, %v12939_v33  ;;  %v16413_v16 = vld [vmem:[#allocation190_spill] sm:$0xff]  ;;  %v16414_v14 = vld [vmem:[#allocation221_spill] sm:$0xff]  ;;  %v16415_v41 = vld [vmem:[#allocation40_spill] sm:$0xff] }
 0x46b   : > { %9399 = vpow2.f32 %v5271_v63  ;;  %v5091_v10 = vsub.f32 %v16412_v17, %v12939_v33  ;;  %v5107_v53 = vsub.f32 %v16413_v16, %v12939_v33  ;;  %v5123_v23 = vsub.f32 %v16414_v14, %v12939_v33  ;;  %v16416_v55 = vld [vmem:[#allocation254_spill] sm:$0xff] }
 0x46c   : > { %9401 = vpow2.f32 %v5303_v7  ;;  %v5139_v60 = vsub.f32 %v16415_v41, %v12939_v33  ;;  %v5155_v11 = vsub.f32 %v12229_v42, %v12939_v33  ;;  %v5463_v49 = vmul.f32 1.442695, %v5173_v15  ;;  %v9322_v41 = vld [vmem:[%s15379_s5 + $0x38] sm:$0xff]  }
 0x46d   : > { %9403 = vpow2.f32 %v5335_v61  ;;  %v5171_v21 = vsub.f32 %v12562_v39, %v12939_v33  ;;  %v5187_v63 = vsub.f32 %v12933_v12, %v12939_v33  ;;  %v5495_v27 = vmul.f32 1.442695, %v5189_v2  ;;  %v16418_v12 = vld [vmem:[#allocation171_spill] sm:$0xff]  ;;  %8682 = vmatprep.subr.bf16.mxu1 %v9322_v41 }
 0x46e   : > { %9405 = vpow2.f32 %v5367_v50  ;;  %v12972_v7 = vsel %vm4566_vm11, %v4368_v51, %v4726_v29  ;;  %vm4564_vm12 = vcmp.ge.f32.partialorder %v4360_v46, 0.0  ;;  %v12976_v20 = vadd.f32 %v16416_v55, %v10198_v38  ;;  %v8658_v29 = vpop.f32.mrb[144].mxu1  ;;  %8683 = vmatpush3.bf16.msra.mxu1 %v9322_v41 }
 0x46f   : > { %9407 = vpow2.f32 %v5399_v18  ;;  %v5203_v42 = vmul.f32 1.442695, %v5043_v25  ;;  %v5235_v61 = vmul.f32 1.442695, %v5059_v44  ;;  %v5267_v15 = vmul.f32 1.442695, %v5075_v45 }
 0x470   : > { %16417 = vst [vmem:[#allocation47_spill] sm:$0xff] %v12976_v20  ;;  %9409 = vpow2.f32 %v5431_v35  ;;  %v5299_v17 = vmul.f32 1.442695, %v5091_v10  ;;  %v5331_v39 = vmul.f32 1.442695, %v5107_v53  ;;  %v12980_v2 = vmax.f32 %v16418_v12, %v12972_v7  ;;  %v16419_v18 = vld [vmem:[#allocation177_spill] sm:$0xff] }
 0x471   : > { %9411 = vpow2.f32 %v5463_v49  ;;  %v5363_v16 = vmul.f32 1.442695, %v5123_v23  ;;  %v12982_v51 = vsel %vm4564_vm12, %v4360_v46, %v4724_v34  ;;  %v5395_v33 = vmul.f32 1.442695, %v5139_v60  ;;  %v12988_v44 = vpop.f32.mrb[145].mxu1  ;;  %v16421_v45 = vld [vmem:[#allocation49_spill] sm:$0xff] }
 0x472   : > { %9413 = vpow2.f32 %v5495_v27  ;;  %v5427_v50 = vmul.f32 1.442695, %v5155_v11  ;;  %v12986_v25 = vmax.f32 %v16419_v18, %v12982_v51  ;;  %v5046_v10 = vsub.f32 %v16421_v45, %v12980_v2  ;;  %v16422_v53 = vld [vmem:[#allocation123_spill] sm:$0xff]  ;;  %v16423_v46 = vld [vmem:[#allocation126_spill] sm:$0xff]  ;;  %v12998_v23 = vpop.f32.mrb[146].mxu1  ;;  %v16430_v20 = vld [vmem:[#allocation72_spill] sm:$0xff] }
 0x473   : > { %v12990_v35 = vpop.eup %9395  ;;  %9415 = vpow2.f32 %v5203_v42  ;;  %v5062_v34 = vsub.f32 %v16422_v53, %v12980_v2  ;;  %v5078_v14 = vsub.f32 %v16423_v46, %v12980_v2  ;;  %v16425_v11 = vld [vmem:[#allocation159_spill] sm:$0xff]  ;;  %v16427_v42 = vld [vmem:[#allocation222_spill] sm:$0xff]  ;;  %v13011_v18 = vpop.f32.mrb[147].mxu1  ;;  %v5190_v3 = vsub.f32 %v12972_v7, %v12980_v2 }
 0x474   : > { %16420 = vst [vmem:[#allocation119_spill] sm:$0xff] %v12990_v35  ;;  %v13003_v60 = vpop.eup %9397  ;;  %9417 = vpow2.f32 %v5235_v61  ;;  %v5094_v49 = vsub.f32 %v16425_v11, %v12980_v2  ;;  %v16426_v27 = vld [vmem:[#allocation191_spill] sm:$0xff]  ;;  %v5126_v12 = vsub.f32 %v16427_v42, %v12980_v2  ;;  %v16429_v46 = vld [vmem:[#allocation250_spill] sm:$0xff]  ;;  %v5158_v11 = vsub.f32 %v16430_v20, %v12980_v2 }
 0x475   : > { %16424 = vst [vmem:[#allocation122_spill] sm:$0xff] %v13003_v60  ;;  %v5110_v55 = vsub.f32 %v16426_v27, %v12980_v2  ;;  %v13013_v45 = vpop.eup %9399  ;;  %v5541_v53 = vadd.f32 %v13003_v60, %v12990_v35  ;;  %9419 = vpow2.f32 %v5267_v15  ;;  %v5142_v61 = vsub.f32 %v16429_v46, %v12980_v2  ;;  %v16432_v42 = vld [vmem:[#allocation170_spill] sm:$0xff] }
 0x476   : > { %16428 = vst [vmem:[#allocation156_spill] sm:$0xff] %v13013_v45  ;;  %v13021_v43 = vpop.eup %9401  ;;  %9421 = vpow2.f32 %v5299_v17  ;;  %v5459_v27 = vmul.f32 1.442695, %v5171_v21  ;;  %v5174_v40 = vsub.f32 %v16432_v42, %v12980_v2  ;;  %v5491_v46 = vmul.f32 1.442695, %v5187_v63 }
 0x477   : > { %16431 = vst [vmem:[#allocation188_spill] sm:$0xff] %v13021_v43  ;;  %v13027_v60 = vpop.eup %9403  ;;  %v5542_v15 = vadd.f32 %v13013_v45, %v5541_v53  ;;  %9423 = vpow2.f32 %v5331_v39  ;;  %v13031_v20 = vadd.f32 %v12909_v0, %v8658_v29  ;;  %v5209_v21 = vmul.f32 1.442695, %v5046_v10  ;;  %v16437_v29 = vld [vmem:[#allocation50_spill] sm:$0xff]  ;;  %v16439_v10 = vld [vmem:[#allocation127_spill] sm:$0xff] }
 0x478   : > { %16433 = vst [vmem:[#allocation10_spill] sm:$0xff] %v13027_v60  ;;  %v13033_v35 = vpop.eup %9405  ;;  %9425 = vpow2.f32 %v5363_v16  ;;  %v5241_v17 = vmul.f32 1.442695, %v5062_v34  ;;  %v5273_v13 = vmul.f32 1.442695, %v5078_v14  ;;  %v5044_v53 = vsub.f32 %v16437_v29, %v12986_v25 }
 0x479   : > { %16434 = vst [vmem:[#allocation38_spill] sm:$0xff] %v13033_v35  ;;  %v13035_v42 = vpop.eup %9407  ;;  %v5543_v7 = vadd.f32 %v13021_v43, %v5542_v15  ;;  %9427 = vpow2.f32 %v5395_v33  ;;  %v5305_v2 = vmul.f32 1.442695, %v5094_v49  ;;  %v5337_v41 = vmul.f32 1.442695, %v5110_v55  ;;  %v16440_v33 = vld [vmem:[#allocation128_spill] sm:$0xff] }
 0x47a   : > { %16435 = vst [vmem:[#allocation48_spill] sm:$0xff] %v13035_v42  ;;  %v13038_v56 = vpop.eup %9409  ;;  %9429 = vpow2.f32 %v5427_v50  ;;  %v5369_v63 = vmul.f32 1.442695, %v5126_v12  ;;  %v5401_v39 = vmul.f32 1.442695, %v5142_v61  ;;  %v5060_v34 = vsub.f32 %v16439_v10, %v12986_v25  ;;  %v16442_v50 = vld [vmem:[#allocation160_spill] sm:$0xff] }
 0x47b   : > { %16436 = vst [vmem:[#allocation120_spill] sm:$0xff] %v13038_v56  ;;  %v13042_v45 = vpop.eup %9411  ;;  %v5544_v16 = vadd.f32 %v13027_v60, %v5543_v7  ;;  %9431 = vpow2.f32 %v5459_v27  ;;  %v5076_v14 = vsub.f32 %v16440_v33, %v12986_v25  ;;  %v5092_v55 = vsub.f32 %v16442_v50, %v12986_v25  ;;  %v16443_v12 = vld [vmem:[#allocation192_spill] sm:$0xff]  ;;  %v16446_v10 = vld [vmem:[#allocation251_spill] sm:$0xff]  ;;  %v16447_v60 = vld [vmem:[#allocation74_spill] sm:$0xff]  ;;  %v13064_v43 = vpop.f32.mrb[148].mxu1 }
 0x47c   : > { %16438 = vst [vmem:[#allocation124_spill] sm:$0xff] %v13042_v45  ;;  %v13049_v49 = vpop.eup %9413  ;;  %9433 = vpow2.f32 %v5491_v46  ;;  %v5108_v61 = vsub.f32 %v16443_v12, %v12986_v25  ;;  %v16444_v15 = vld [vmem:[#allocation12_spill] sm:$0xff]  ;;  %v5140_v33 = vsub.f32 %v16446_v10, %v12986_v25  ;;  %v5156_v46 = vsub.f32 %v16447_v60, %v12986_v25 }
 0x47d   : > { %16441 = vst [vmem:[#allocation157_spill] sm:$0xff] %v13049_v49  ;;  %v5124_v29 = vsub.f32 %v16444_v15, %v12986_v25  ;;  %v13057_v7 = vpop.eup %9415  ;;  %v5545_v27 = vadd.f32 %v13033_v35, %v5544_v16  ;;  %9435 = vpow2.f32 %v5209_v21  ;;  %v5433_v12 = vmul.f32 1.442695, %v5158_v11  ;;  %v13072_v16 = vpop.f32.mrb[149].mxu1 }
 0x47e   : > { %16445 = vst [vmem:[#allocation190_spill] sm:$0xff] %v13057_v7  ;;  %v13066_v50 = vpop.eup %9417  ;;  %9437 = vpow2.f32 %v5241_v17  ;;  %v5172_v15 = vsub.f32 %v16449_v47, %v12986_v25  ;;  %v5188_v62 = vsub.f32 %v12982_v51, %v12986_v25  ;;  %v5465_v35 = vmul.f32 1.442695, %v5174_v40  ;;  %v13079_v4 = vpop.f32.mrb[150].mxu1 }
 0x47f   : > { %16448 = vst [vmem:[#allocation221_spill] sm:$0xff] %v13066_v50  ;;  %v13074_v21 = vpop.eup %9419  ;;  %v5546_v10 = vadd.f32 %v13035_v42, %v5545_v27  ;;  %v5523_v60 = vadd.f32 %v13066_v50, %v13057_v7  ;;  %9439 = vpow2.f32 %v5273_v13  ;;  %v5497_v47 = vmul.f32 1.442695, %v5190_v3  ;;  %v13087_v42 = vpop.f32.mrb[151].mxu1 }
 0x480   : > { %16450 = vst [vmem:[#allocation40_spill] sm:$0xff] %v13074_v21  ;;  %v13081_v11 = vpop.eup %9421  ;;  %9441 = vpow2.f32 %v5305_v2  ;;  %v5205_v17 = vmul.f32 1.442695, %v5044_v53  ;;  %v5237_v52 = vmul.f32 1.442695, %v5060_v34  ;;  %vm4569_vm13 = vcmp.ge.f32.partialorder %v13031_v20, 0.0 }
 0x481   : > { %16451 = vst [vmem:[#allocation254_spill] sm:$0xff] %v13081_v11  ;;  %v13083_v51 = vpop.eup %9423  ;;  %v5547_v25 = vadd.f32 %v13038_v56, %v5546_v10  ;;  %v5524_v24 = vadd.f32 %v13074_v21, %v5523_v60  ;;  %9443 = vpow2.f32 %v5337_v41  ;;  %v5269_v27 = vmul.f32 1.442695, %v5076_v14  ;;  %v16482_v21 = vld [vmem:[#allocation18_spill] sm:$0xff] }
 0x482   : > { %16452 = vst [vmem:[#allocation171_spill] sm:$0xff] %v13083_v51  ;;  %v13089_v13 = vpop.eup %9425  ;;  %9445 = vpow2.f32 %v5369_v63  ;;  %v5301_v40 = vmul.f32 1.442695, %v5092_v55  ;;  %v5333_v50 = vmul.f32 1.442695, %v5108_v61  ;;  %v4373_v63 = vadd.f32 %v12909_v0, %v12988_v44 }
 0x483   : > { %16453 = vst [vmem:[#allocation177_spill] sm:$0xff] %v13089_v13  ;;  %v5365_v7 = vmul.f32 1.442695, %v5124_v29  ;;  %v13091_v2 = vpop.eup %9427  ;;  %v5548_v3 = vadd.f32 %v13042_v45, %v5547_v25  ;;  %v5525_v53 = vadd.f32 %v13081_v11, %v5524_v24  ;;  %9447 = vpow2.f32 %v5401_v39 }
 0x484   : > { %16454 = vst [vmem:[#allocation49_spill] sm:$0xff] %v13091_v2  ;;  %v5397_v34 = vmul.f32 1.442695, %v5140_v33  ;;  %v13095_v10 = vpop.eup %9429  ;;  %9449 = vpow2.f32 %v5433_v12  ;;  %v4729_v41 = vmul.f32 0.01, %v13031_v20  ;;  %vm4567_vm14 = vcmp.ge.f32.partialorder %v4373_v63, 0.0 }
 0x485   : > { %16455 = vst [vmem:[#allocation123_spill] sm:$0xff] %v13095_v10  ;;  %v13101_v14 = vpop.eup %9431  ;;  %v5549_v55 = vadd.f32 %v13049_v49, %v5548_v3  ;;  %v5526_v61 = vadd.f32 %v13083_v51, %v5525_v53  ;;  %9451 = vpow2.f32 %v5465_v35  ;;  %v5429_v24 = vmul.f32 1.442695, %v5156_v46 }
 0x486   : > { %16456 = vst [vmem:[#allocation126_spill] sm:$0xff] %v13101_v14  ;;  %v13105_v39 = vpop.eup %9433  ;;  %9453 = vpow2.f32 %v5497_v47  ;;  %v13108_v29 = vsel %vm4569_vm13, %v13031_v20, %v4729_v41  ;;  %v4727_v33 = vmul.f32 0.01, %v4373_v63  ;;  %v5461_v60 = vmul.f32 1.442695, %v5172_v15 }
 0x487   : > { %16457 = vst [vmem:[#allocation159_spill] sm:$0xff] %v13105_v39  ;;  %v13110_v12 = vpop.eup %9435  ;;  %9455 = vrcp.f32 %v5549_v55  ;;  %v5527_v44 = vadd.f32 %v13089_v13, %v5526_v61  ;;  %v13115_v25 = vmax.f32 %v12670_v37, %v13108_v29  ;;  %v5493_v46 = vmul.f32 1.442695, %v5188_v62  ;;  %v16460_v37 = vld [vmem:[#allocation83_spill] sm:$0xff]  ;;  %v16462_v62 = vld [vmem:[#allocation88_spill] sm:$0xff] }
 0x488   : > { %v13117_v35 = vpop.eup %9437  ;;  %9457 = vpow2.f32 %v5205_v17  ;;  %v13119_v47 = vsel %vm4567_vm14, %v4373_v63, %v4727_v33  ;;  %v13123_v20 = vadd.f32 %v12909_v0, %v12998_v23  ;;  %v16463_v23 = vld [vmem:[#allocation132_spill] sm:$0xff] }
 0x489   : > { %16458 = vst [vmem:[#allocation191_spill] sm:$0xff] %v13117_v35  ;;  %v13125_v3 = vpop.eup %9439  ;;  %v5528_v53 = vadd.f32 %v13091_v2, %v5527_v44  ;;  %v5550_v15 = vadd.f32 %v13117_v35, %v13110_v12  ;;  %9459 = vpow2.f32 %v5237_v52  ;;  %v5049_v41 = vsub.f32 %v16460_v37, %v13115_v25  ;;  %v16464_v61 = vld [vmem:[#allocation164_spill] sm:$0xff] }
 0x48a   : > { %16459 = vst [vmem:[#allocation222_spill] sm:$0xff] %v13125_v3  ;;  %v13132_v55 = vpop.eup %9441  ;;  %9461 = vpow2.f32 %v5269_v27  ;;  %v5065_v17 = vsub.f32 %v16462_v62, %v13115_v25  ;;  %v5081_v63 = vsub.f32 %v16463_v23, %v13115_v25  ;;  %v5097_v33 = vsub.f32 %v16464_v61, %v13115_v25  ;;  %v16466_v37 = vld [vmem:[#allocation196_spill] sm:$0xff]  ;;  %v16469_v23 = vld [vmem:[#allocation45_spill] sm:$0xff] }
 0x48b   : > { %16461 = vst [vmem:[#allocation250_spill] sm:$0xff] %v13132_v55  ;;  %v13140_v44 = vpop.eup %9443  ;;  %v5529_v49 = vadd.f32 %v13095_v10, %v5528_v53  ;;  %v5551_v52 = vadd.f32 %v13125_v3, %v5550_v15  ;;  %9463 = vpow2.f32 %v5301_v40  ;;  %v5113_v45 = vsub.f32 %v16466_v37, %v13115_v25  ;;  %v16468_v62 = vld [vmem:[#allocation228_spill] sm:$0xff]  ;;  %v16481_v3 = vld [vmem:[#allocation198_spill] sm:$0xff] }
 0x48c   : > { %16465 = vst [vmem:[#allocation72_spill] sm:$0xff] %v13140_v44  ;;  %v13146_v27 = vpop.eup %9445  ;;  %9465 = vpow2.f32 %v5333_v50  ;;  %v5129_v56 = vsub.f32 %v16468_v62, %v13115_v25  ;;  %v5145_v2 = vsub.f32 %v16469_v23, %v13115_v25  ;;  %v5161_v61 = vsub.f32 %v12323_v19, %v13115_v25 }
 0x48d   : > { %16467 = vst [vmem:[#allocation170_spill] sm:$0xff] %v13146_v27  ;;  %v13154_v13 = vpop.eup %9447  ;;  %v5530_v53 = vadd.f32 %v13101_v14, %v5529_v49  ;;  %v5552_v40 = vadd.f32 %v13132_v55, %v5551_v52  ;;  %9467 = vpow2.f32 %v5365_v7  ;;  %v5177_v15 = vsub.f32 %v12664_v57, %v13115_v25 }
 0x48e   : > { %16470 = vst [vmem:[#allocation50_spill] sm:$0xff] %v13154_v13  ;;  %v13160_v50 = vpop.eup %9449  ;;  %9469 = vpow2.f32 %v5397_v34  ;;  %v5193_v37 = vsub.f32 %v13108_v29, %v13115_v25  ;;  %vm4570_vm15 = vcmp.ge.f32.partialorder %v13123_v20, 0.0  ;;  %v4730_v19 = vmul.f32 0.01, %v13123_v20  ;;  %v13174_v34 = vpop.f32.mrb[152].mxu1 }
 0x48f   : > { %16471 = vst [vmem:[#allocation127_spill] sm:$0xff] %v13160_v50  ;;  %v13168_v62 = vadd.f32 %v12909_v0, %v13011_v18  ;;  %v13170_v49 = vpop.eup %9451  ;;  %v5531_v7 = vadd.f32 %v13105_v39, %v5530_v53  ;;  %v5553_v57 = vadd.f32 %v13140_v44, %v5552_v40  ;;  %9471 = vpow2.f32 %v5429_v24  ;;  %v13181_v53 = vpop.f32.mrb[153].mxu1 }
 0x490   : > { %16472 = vst [vmem:[#allocation128_spill] sm:$0xff] %v13170_v49  ;;  %v5215_v52 = vmul.f32 1.442695, %v5049_v41  ;;  %v13176_v23 = vpop.eup %9453  ;;  %9473 = vpow2.f32 %v5461_v60  ;;  %v5247_v29 = vmul.f32 1.442695, %v5065_v17  ;;  %v4943_v60 = vmax.f32 %v12682_v6, %v13119_v47  ;;  %v13187_v17 = vpop.f32.mrb[154].mxu1 }
 0x491   : > { %16473 = vst [vmem:[#allocation160_spill] sm:$0xff] %v13176_v23  ;;  %v5279_v25 = vmul.f32 1.442695, %v5081_v63  ;;  %v5311_v14 = vmul.f32 1.442695, %v5097_v33  ;;  %v13178_v10 = vpop.eup %9455  ;;  %9475 = vrcp.f32 %v5531_v7  ;;  %v5554_v18 = vadd.f32 %v13146_v27, %v5553_v57  ;;  %v16476_v6 = vld [vmem:[#allocation89_spill] sm:$0xff] }
 0x492   : > { %v5343_v51 = vmul.f32 1.442695, %v5113_v45  ;;  %v5375_v55 = vmul.f32 1.442695, %v5129_v56  ;;  %v13183_v40 = vpop.eup %9457  ;;  %9477 = vpow2.f32 %v5493_v46  ;;  %v5407_v24 = vmul.f32 1.442695, %v5145_v2 }
 0x493   : > { %v5439_v41 = vmul.f32 1.442695, %v5161_v61  ;;  %v13189_v63 = vpop.eup %9459  ;;  %v5555_v33 = vadd.f32 %v13154_v13, %v5554_v18  ;;  %9479 = vpow2.f32 %v5215_v52  ;;  %v5471_v7 = vmul.f32 1.442695, %v5177_v15  ;;  %v13192_v56 = vpop.f32.mrb[155].mxu1  ;;  %v16475_v46 = vld [vmem:[#allocation84_spill] sm:$0xff] }
 0x494   : > { %v5503_v45 = vmul.f32 1.442695, %v5193_v37  ;;  %v13194_v57 = vpop.eup %9461  ;;  %v5532_v2 = vadd.f32 %v13189_v63, %v13183_v40  ;;  %9481 = vpow2.f32 %v5247_v29  ;;  %v5047_v61 = vsub.f32 %v16475_v46, %v4943_v60  ;;  %v16478_v52 = vld [vmem:[#allocation133_spill] sm:$0xff] }
 0x495   : > { %16474 = vst [vmem:[#allocation192_spill] sm:$0xff] %v13194_v57  ;;  %v5063_v39 = vsub.f32 %v16476_v6, %v4943_v60  ;;  %v13200_v27 = vpop.eup %9463  ;;  %v5556_v44 = vadd.f32 %v13160_v50, %v5555_v33  ;;  %9483 = vpow2.f32 %v5279_v25  ;;  %v5079_v15 = vsub.f32 %v16478_v52, %v4943_v60  ;;  %v16479_v37 = vld [vmem:[#allocation165_spill] sm:$0xff]  ;;  %v16484_v33 = vld [vmem:[#allocation258_spill] sm:$0xff] }
 0x496   : > { %16477 = vst [vmem:[#allocation12_spill] sm:$0xff] %v13200_v27  ;;  %v5095_v18 = vsub.f32 %v16479_v37, %v4943_v60  ;;  %v13205_v13 = vpop.eup %9465  ;;  %v5533_v11 = vadd.f32 %v13194_v57, %v5532_v2  ;;  %9485 = vpow2.f32 %v5311_v14  ;;  %v5111_v29 = vsub.f32 %v16481_v3, %v4943_v60 }
 0x497   : > { %16480 = vst [vmem:[#allocation251_spill] sm:$0xff] %v13205_v13  ;;  %v5127_v46 = vsub.f32 %v16482_v21, %v4943_v60  ;;  %v13210_v35 = vpop.eup %9467  ;;  %v5557_v6 = vadd.f32 %v13170_v49, %v5556_v44  ;;  %9487 = vpow2.f32 %v5343_v51  ;;  %v5143_v25 = vsub.f32 %v16484_v33, %v4943_v60 }
 0x498   : > { %16483 = vst [vmem:[#allocation74_spill] sm:$0xff] %v13210_v35  ;;  %v5159_v52 = vsub.f32 %v12327_v28, %v4943_v60  ;;  %v13215_v50 = vpop.eup %9469  ;;  %v5534_v37 = vadd.f32 %v13200_v27, %v5533_v11  ;;  %9489 = vpow2.f32 %v5375_v55  ;;  %v5175_v14 = vsub.f32 %v12672_v58, %v4943_v60 }
 0x499   : > { %16485 = vst [vmem:[#allocation174_spill] sm:$0xff] %v13215_v50  ;;  %v5191_v3 = vsub.f32 %v13119_v47, %v4943_v60  ;;  %v13220_v2 = vpop.eup %9471  ;;  %v5558_v21 = vadd.f32 %v13176_v23, %v5557_v6  ;;  %9491 = vpow2.f32 %v5407_v24  ;;  %v5211_v44 = vmul.f32 1.442695, %v5047_v61 }
 0x49a   : > { %16486 = vst [vmem:[#allocation83_spill] sm:$0xff] %v13220_v2  ;;  %v13226_v51 = vsel %vm4570_vm15, %v13123_v20, %v4730_v19  ;;  %v13228_v28 = vpop.eup %9473  ;;  %v5535_v11 = vadd.f32 %v13205_v13, %v5534_v37  ;;  %9493 = vpow2.f32 %v5439_v41  ;;  %v5243_v55 = vmul.f32 1.442695, %v5063_v39  ;;  %v16497_v13 = vld [vmem:[#allocation230_spill] sm:$0xff] }
 0x49b   : > { %16487 = vst [vmem:[#allocation88_spill] sm:$0xff] %v13228_v28  ;;  %v5275_v58 = vmul.f32 1.442695, %v5079_v15  ;;  %v13231_v33 = vpop.eup %9475  ;;  %9495 = vrcp.f32 %v5558_v21  ;;  %v5307_v47 = vmul.f32 1.442695, %v5095_v18  ;;  %v4970_v39 = vmax.f32 %v12694_v36, %v13226_v51  ;;  %v16490_v36 = vld [vmem:[#allocation85_spill] sm:$0xff] }
 0x49c   : > { %v5339_v60 = vmul.f32 1.442695, %v5111_v29  ;;  %v5371_v6 = vmul.f32 1.442695, %v5127_v46  ;;  %v13233_v24 = vpop.eup %9477  ;;  %v5536_v61 = vadd.f32 %v13210_v35, %v5535_v11  ;;  %9497 = vpow2.f32 %v5471_v7  ;;  %v16496_v35 = vld [vmem:[#allocation199_spill] sm:$0xff] }
 0x49d   : > { %16488 = vst [vmem:[#allocation132_spill] sm:$0xff] %v13233_v24  ;;  %v5403_v20 = vmul.f32 1.442695, %v5143_v25  ;;  %v5435_v19 = vmul.f32 1.442695, %v5159_v52  ;;  %v13236_v23 = vpop.eup %9479  ;;  %9499 = vpow2.f32 %v5503_v45  ;;  %vm4568_vm0 = vcmp.ge.f32.partialorder %v13168_v62, 0.0 }
 0x49e   : > { %v5467_v37 = vmul.f32 1.442695, %v5175_v14  ;;  %v5499_v41 = vmul.f32 1.442695, %v5191_v3  ;;  %v13241_v15 = vpop.eup %9481  ;;  %v5537_v18 = vadd.f32 %v13215_v50, %v5536_v61  ;;  %9501 = vpow2.f32 %v5211_v44  ;;  %v16491_v52 = vld [vmem:[#allocation91_spill] sm:$0xff] }
 0x49f   : > { %v4728_v29 = vmul.f32 0.01, %v13168_v62  ;;  %v13247_v7 = vadd.f32 %v12909_v0, %v13064_v43  ;;  %v13249_v46 = vpop.eup %9483  ;;  %v5577_v45 = vadd.f32 %v13241_v15, %v13236_v23  ;;  %9503 = vpow2.f32 %v5243_v55  ;;  %v16493_v44 = vld [vmem:[#allocation135_spill] sm:$0xff] }
 0x4a0   : > { %16489 = vst [vmem:[#allocation164_spill] sm:$0xff] %v13249_v46  ;;  %v5050_v25 = vsub.f32 %v16490_v36, %v4970_v39  ;;  %v5066_v14 = vsub.f32 %v16491_v52, %v4970_v39  ;;  %v13255_v3 = vpop.eup %9485  ;;  %v5538_v21 = vadd.f32 %v13220_v2, %v5537_v18  ;;  %9505 = vpow2.f32 %v5275_v58  ;;  %v16494_v61 = vld [vmem:[#allocation167_spill] sm:$0xff] }
 0x4a1   : > { %16492 = vst [vmem:[#allocation196_spill] sm:$0xff] %v13255_v3  ;;  %v5082_v11 = vsub.f32 %v16493_v44, %v4970_v39  ;;  %v5098_v43 = vsub.f32 %v16494_v61, %v4970_v39  ;;  %v13260_v49 = vpop.eup %9487  ;;  %v5578_v50 = vadd.f32 %v13249_v46, %v5577_v45  ;;  %9507 = vpow2.f32 %v5307_v47  ;;  %v16499_v18 = vld [vmem:[#allocation259_spill] sm:$0xff] }
 0x4a2   : > { %16495 = vst [vmem:[#allocation228_spill] sm:$0xff] %v13260_v49  ;;  %v5114_v55 = vsub.f32 %v16496_v35, %v4970_v39  ;;  %v5130_v36 = vsub.f32 %v16497_v13, %v4970_v39  ;;  %v13265_v27 = vpop.eup %9489  ;;  %v5539_v52 = vadd.f32 %v13228_v28, %v5538_v21  ;;  %9509 = vpow2.f32 %v5339_v60 }
 0x4a3   : > { %16498 = vst [vmem:[#allocation45_spill] sm:$0xff] %v13265_v27  ;;  %v5146_v58 = vsub.f32 %v16499_v18, %v4970_v39  ;;  %v5162_v44 = vsub.f32 %v12335_v9, %v4970_v39  ;;  %v13270_v2 = vpop.eup %9491  ;;  %v5579_v61 = vadd.f32 %v13255_v3, %v5578_v50  ;;  %9511 = vpow2.f32 %v5371_v6 }
 0x4a4   : > { %16500 = vst [vmem:[#allocation84_spill] sm:$0xff] %v13270_v2  ;;  %v5178_v47 = vsub.f32 %v12684_v30, %v4970_v39  ;;  %v5194_v35 = vsub.f32 %v13226_v51, %v4970_v39  ;;  %v13275_v45 = vpop.eup %9493  ;;  %v5540_v13 = vadd.f32 %v13233_v24, %v5539_v52  ;;  %9513 = vpow2.f32 %v5403_v20 }
 0x4a5   : > { %16501 = vst [vmem:[#allocation89_spill] sm:$0xff] %v13275_v45  ;;  %v5217_v21 = vmul.f32 1.442695, %v5050_v25  ;;  %v13280_v60 = vadd.f32 %v12909_v0, %v13072_v16  ;;  %v13282_v9 = vpop.eup %9495  ;;  %v5580_v18 = vadd.f32 %v13260_v49, %v5579_v61  ;;  %9515 = vpow2.f32 %v5435_v19 }
 0x4a6   : > { %v5249_v50 = vmul.f32 1.442695, %v5066_v14  ;;  %v5281_v6 = vmul.f32 1.442695, %v5082_v11  ;;  %v13285_v30 = vpop.eup %9497  ;;  %9517 = vrcp.f32 %v5540_v13  ;;  %v5313_v51 = vmul.f32 1.442695, %v5098_v43 }
 0x4a7   : > { %16502 = vst [vmem:[#allocation133_spill] sm:$0xff] %v13285_v30  ;;  %v5345_v39 = vmul.f32 1.442695, %v5114_v55  ;;  %v5377_v28 = vmul.f32 1.442695, %v5130_v36  ;;  %v13287_v52 = vpop.eup %9499  ;;  %v5581_v20 = vadd.f32 %v13265_v27, %v5580_v18  ;;  %9519 = vpow2.f32 %v5467_v37  ;;  %v16509_v18 = vld [vmem:[#allocation136_spill] sm:$0xff] }
 0x4a8   : > { %16503 = vst [vmem:[#allocation165_spill] sm:$0xff] %v13287_v52  ;;  %v5409_v16 = vmul.f32 1.442695, %v5146_v58  ;;  %v5441_v25 = vmul.f32 1.442695, %v5162_v44  ;;  %v13290_v24 = vpop.eup %9501  ;;  %9521 = vpow2.f32 %v5499_v41  ;;  %v13295_v14 = vsel %vm4568_vm0, %v13168_v62, %v4728_v29  ;;  %v16507_v44 = vld [vmem:[#allocation92_spill] sm:$0xff] }
 0x4a9   : > { %v5473_v61 = vmul.f32 1.442695, %v5178_v47  ;;  %v5505_v19 = vmul.f32 1.442695, %v5194_v35  ;;  %v13297_v11 = vpop.eup %9503  ;;  %v5582_v43 = vadd.f32 %v13270_v2, %v5581_v20  ;;  %9523 = vpow2.f32 %v5217_v21  ;;  %v9323_v35 = vld [vmem:[%s15379_s5 + $0x40] sm:$0xff]  }
 0x4aa   : > { %v13302_v37 = vmax.f32 %v12702_v48, %v13295_v14  ;;  %vm4573_vm1 = vcmp.ge.f32.partialorder %v13247_v7, 0.0  ;;  %v13305_v55 = vpop.eup %9505  ;;  %v5559_v41 = vadd.f32 %v13297_v11, %v13290_v24  ;;  %9525 = vpow2.f32 %v5249_v50  ;;  %v16506_v48 = vld [vmem:[#allocation86_spill] sm:$0xff]  ;;  %v16513_v2 = vld [vmem:[#allocation19_spill] sm:$0xff]  ;;  %8700 = vmatprep.subr.bf16.mxu1 %v9323_v35 }
 0x4ab   : > { %16504 = vst [vmem:[#allocation198_spill] sm:$0xff] %v13305_v55  ;;  %v4733_v62 = vmul.f32 0.01, %v13247_v7  ;;  %vm4571_vm2 = vcmp.ge.f32.partialorder %v13280_v60, 0.0  ;;  %v13311_v29 = vpop.eup %9507  ;;  %v5583_v36 = vadd.f32 %v13275_v45, %v5582_v43  ;;  %9527 = vpow2.f32 %v5281_v6  ;;  %v16510_v6 = vld [vmem:[#allocation168_spill] sm:$0xff] }
 0x4ac   : > { %16505 = vst [vmem:[#allocation18_spill] sm:$0xff] %v13311_v29  ;;  %v5048_v58 = vsub.f32 %v16506_v48, %v13302_v37  ;;  %v5064_v47 = vsub.f32 %v16507_v44, %v13302_v37  ;;  %v13321_v13 = vpop.eup %9509  ;;  %v5560_v21 = vadd.f32 %v13305_v55, %v5559_v41  ;;  %9529 = vpow2.f32 %v5313_v51  ;;  %v16512_v44 = vld [vmem:[#allocation200_spill] sm:$0xff] }
 0x4ad   : > { %16508 = vst [vmem:[#allocation258_spill] sm:$0xff] %v13321_v13  ;;  %v5080_v50 = vsub.f32 %v16509_v18, %v13302_v37  ;;  %v5096_v20 = vsub.f32 %v16510_v6, %v13302_v37  ;;  %v13328_v43 = vpop.eup %9511  ;;  %v5584_v48 = vadd.f32 %v13285_v30, %v5583_v36  ;;  %9531 = vpow2.f32 %v5345_v39  ;;  %v16515_v18 = vld [vmem:[#allocation263_spill] sm:$0xff] }
 0x4ae   : > { %16511 = vst [vmem:[#allocation85_spill] sm:$0xff] %v13328_v43  ;;  %v5112_v45 = vsub.f32 %v16512_v44, %v13302_v37  ;;  %v5128_v27 = vsub.f32 %v16513_v2, %v13302_v37  ;;  %v13335_v41 = vpop.eup %9513  ;;  %v5561_v51 = vadd.f32 %v13311_v29, %v5560_v21  ;;  %9533 = vpow2.f32 %v5377_v28  ;;  %v16517_v44 = vld [vmem:[#allocation194_spill] sm:$0xff] }
 0x4af   : > { %16514 = vst [vmem:[#allocation91_spill] sm:$0xff] %v13335_v41  ;;  %v5144_v6 = vsub.f32 %v16515_v18, %v13302_v37  ;;  %v5160_v49 = vsub.f32 %v12343_v31, %v13302_v37  ;;  %v13342_v36 = vpop.eup %9515  ;;  %v5585_v39 = vadd.f32 %v13287_v52, %v5584_v48  ;;  %9535 = vpow2.f32 %v5409_v16 }
 0x4b0   : > { %16516 = vst [vmem:[#allocation135_spill] sm:$0xff] %v13342_v36  ;;  %v5176_v2 = vsub.f32 %v16517_v44, %v13302_v37  ;;  %v5192_v35 = vsub.f32 %v13295_v14, %v13302_v37  ;;  %v13349_v30 = vpop.eup %9517  ;;  %v5562_v28 = vadd.f32 %v13321_v13, %v5561_v51  ;;  %9537 = vpow2.f32 %v5441_v25 }
 0x4b1   : > { %v5213_v21 = vmul.f32 1.442695, %v5048_v58  ;;  %v4731_v18 = vmul.f32 0.01, %v13280_v60  ;;  %v13353_v31 = vpop.eup %9519  ;;  %9539 = vrcp.f32 %v5585_v39  ;;  %v5245_v3 = vmul.f32 1.442695, %v5064_v47 }
 0x4b2   : > { %16518 = vst [vmem:[#allocation167_spill] sm:$0xff] %v13353_v31  ;;  %v5277_v48 = vmul.f32 1.442695, %v5080_v50  ;;  %v5309_v16 = vmul.f32 1.442695, %v5096_v20  ;;  %v13355_v52 = vpop.eup %9521  ;;  %v5563_v44 = vadd.f32 %v13328_v43, %v5562_v28  ;;  %9541 = vpow2.f32 %v5473_v61 }
 0x4b3   : > { %16519 = vst [vmem:[#allocation199_spill] sm:$0xff] %v13355_v52  ;;  %v5341_v14 = vmul.f32 1.442695, %v5112_v45  ;;  %v5373_v37 = vmul.f32 1.442695, %v5128_v27  ;;  %v13358_v29 = vpop.eup %9523  ;;  %9543 = vpow2.f32 %v5505_v19  ;;  %v13366_v47 = vsel %vm4573_vm1, %v13247_v7, %v4733_v62 }
 0x4b4   : > { %v5405_v25 = vmul.f32 1.442695, %v5144_v6  ;;  %v5437_v58 = vmul.f32 1.442695, %v5160_v49  ;;  %v5469_v51 = vmul.f32 1.442695, %v5176_v2  ;;  %v13360_v13 = vpop.eup %9525  ;;  %v5564_v39 = vadd.f32 %v13335_v41, %v5563_v44 }
 0x4b5   : > { %9545 = vpow2.f32 %v5213_v21  ;;  %v13371_v27 = vsel %vm4571_vm2, %v13280_v60, %v4731_v18  ;;  %v13373_v45 = vpop.eup %9527  ;;  %v5586_v49 = vadd.f32 %v13360_v13, %v13358_v29  ;;  %v13379_v61 = vmax.f32 %v12749_v59, %v13366_v47  ;;  %v16523_v59 = vld [vmem:[#allocation95_spill] sm:$0xff]  ;;  %v16527_v18 = vld [vmem:[#allocation172_spill] sm:$0xff] }
 0x4b6   : > { %16520 = vst [vmem:[#allocation230_spill] sm:$0xff] %v13373_v45  ;;  %9547 = vpow2.f32 %v5245_v3  ;;  %v13383_v19 = vmax.f32 %v12761_v5, %v13371_v27  ;;  %v13385_v7 = vpop.eup %9529  ;;  %v5565_v62 = vadd.f32 %v13342_v36, %v5564_v39  ;;  %v5501_v60 = vmul.f32 1.442695, %v5192_v35  ;;  %v16524_v5 = vld [vmem:[#allocation100_spill] sm:$0xff] }
 0x4b7   : > { %16521 = vst [vmem:[#allocation259_spill] sm:$0xff] %v13385_v7  ;;  %9549 = vpow2.f32 %v5277_v48  ;;  %v13390_v50 = vadd.f32 %v12909_v0, %v13079_v4  ;;  %v13392_v20 = vpop.eup %9531  ;;  %v5587_v3 = vadd.f32 %v13373_v45, %v5586_v49  ;;  %v5053_v6 = vsub.f32 %v16523_v59, %v13379_v61  ;;  %v16526_v35 = vld [vmem:[#allocation140_spill] sm:$0xff]  ;;  %v16530_v59 = vld [vmem:[#allocation23_spill] sm:$0xff] }
 0x4b8   : > { %16522 = vst [vmem:[#allocation86_spill] sm:$0xff] %v13392_v20  ;;  %9551 = vpow2.f32 %v5309_v16  ;;  %v5069_v2 = vsub.f32 %v16524_v5, %v13379_v61  ;;  %v13399_v28 = vpop.eup %9533  ;;  %v5566_v21 = vadd.f32 %v13353_v31, %v5565_v62  ;;  %v5085_v4 = vsub.f32 %v16526_v35, %v13379_v61  ;;  %v16529_v39 = vld [vmem:[#allocation204_spill] sm:$0xff]  ;;  %v16532_v62 = vld [vmem:[#allocation51_spill] sm:$0xff] }
 0x4b9   : > { %16525 = vst [vmem:[#allocation92_spill] sm:$0xff] %v13399_v28  ;;  %9553 = vpow2.f32 %v5341_v14  ;;  %v5101_v48 = vsub.f32 %v16527_v18, %v13379_v61  ;;  %v13406_v44 = vpop.eup %9535  ;;  %v5588_v16 = vadd.f32 %v13385_v7, %v5587_v3  ;;  %v5117_v49 = vsub.f32 %v16529_v39, %v13379_v61 }
 0x4ba   : > { %16528 = vst [vmem:[#allocation136_spill] sm:$0xff] %v13406_v44  ;;  %9555 = vpow2.f32 %v5373_v37  ;;  %v5133_v5 = vsub.f32 %v16530_v59, %v13379_v61  ;;  %v13413_v36 = vpop.eup %9537  ;;  %v5567_v14 = vadd.f32 %v13355_v52, %v5566_v21  ;;  %v5149_v35 = vsub.f32 %v16532_v62, %v13379_v61 }
 0x4bb   : > { %16531 = vst [vmem:[#allocation168_spill] sm:$0xff] %v13413_v36  ;;  %9557 = vpow2.f32 %v5405_v25  ;;  %v5165_v18 = vsub.f32 %v12388_v32, %v13379_v61  ;;  %v13420_v31 = vpop.eup %9539  ;;  %v5589_v37 = vadd.f32 %v13392_v20, %v5588_v16  ;;  %v5181_v3 = vsub.f32 %v12743_v26, %v13379_v61 }
 0x4bc   : > { %9559 = vpow2.f32 %v5437_v58  ;;  %v5197_v39 = vsub.f32 %v13366_v47, %v13379_v61  ;;  %v13427_v59 = vpop.eup %9541  ;;  %v5223_v25 = vmul.f32 1.442695, %v5053_v6  ;;  %v5255_v21 = vmul.f32 1.442695, %v5069_v2 }
 0x4bd   : > { %16533 = vst [vmem:[#allocation200_spill] sm:$0xff] %v13427_v59  ;;  %9561 = vrcp.f32 %v5567_v14  ;;  %v13431_v62 = vadd.f32 %v12909_v0, %v13087_v42  ;;  %v13433_v32 = vpop.eup %9543  ;;  %v5590_v16 = vadd.f32 %v13399_v28, %v5589_v37  ;;  %v5287_v58 = vmul.f32 1.442695, %v5085_v4  ;;  %v16536_v4 = vld [vmem:[#allocation96_spill] sm:$0xff] }
 0x4be   : > { %16534 = vst [vmem:[#allocation19_spill] sm:$0xff] %v13433_v32  ;;  %9563 = vpow2.f32 %v5469_v51  ;;  %v5319_v52 = vmul.f32 1.442695, %v5101_v48  ;;  %v5351_v47 = vmul.f32 1.442695, %v5117_v49  ;;  %v5051_v48 = vsub.f32 %v16536_v4, %v13383_v19  ;;  %v16542_v4 = vld [vmem:[#allocation206_spill] sm:$0xff] }
 0x4bf   : > { %v13436_v26 = vpop.eup %9545  ;;  %9565 = vpow2.f32 %v5501_v60  ;;  %v5383_v61 = vmul.f32 1.442695, %v5133_v5  ;;  %v5415_v41 = vmul.f32 1.442695, %v5149_v35  ;;  %v5591_v6 = vadd.f32 %v13406_v44, %v5590_v16  ;;  %v16537_v60 = vld [vmem:[#allocation101_spill] sm:$0xff] }
 0x4c0   : > { %v13438_v14 = vpop.eup %9547  ;;  %9567 = vpow2.f32 %v5223_v25  ;;  %v5447_v0 = vmul.f32 1.442695, %v5165_v18  ;;  %v5479_v42 = vmul.f32 1.442695, %v5181_v3  ;;  %v5067_v49 = vsub.f32 %v16537_v60, %v13383_v19  ;;  %v16539_v18 = vld [vmem:[#allocation141_spill] sm:$0xff]  ;;  %v16543_v60 = vld [vmem:[#allocation238_spill] sm:$0xff] }
 0x4c1   : > { %v13441_v2 = vpop.eup %9549  ;;  %v5568_v51 = vadd.f32 %v13438_v14, %v13436_v26  ;;  %9569 = vpow2.f32 %v5255_v21  ;;  %v5592_v35 = vadd.f32 %v13413_v36, %v5591_v6  ;;  %v5083_v37 = vsub.f32 %v16539_v18, %v13383_v19  ;;  %v16540_v3 = vld [vmem:[#allocation173_spill] sm:$0xff]  ;;  %v16545_v6 = vld [vmem:[#allocation52_spill] sm:$0xff] }
 0x4c2   : > { %16535 = vst [vmem:[#allocation263_spill] sm:$0xff] %v13441_v2  ;;  %v13449_v5 = vpop.eup %9551  ;;  %9571 = vpow2.f32 %v5287_v58  ;;  %v5099_v25 = vsub.f32 %v16540_v3, %v13383_v19  ;;  %v5115_v44 = vsub.f32 %v16542_v4, %v13383_v19  ;;  %v5131_v28 = vsub.f32 %v16543_v60, %v13383_v19 }
 0x4c3   : > { %16538 = vst [vmem:[#allocation194_spill] sm:$0xff] %v13449_v5  ;;  %v13456_v16 = vpop.eup %9553  ;;  %v5569_v21 = vadd.f32 %v13441_v2, %v5568_v51  ;;  %9573 = vpow2.f32 %v5319_v52  ;;  %v5593_v58 = vadd.f32 %v13427_v59, %v5592_v35  ;;  %v5147_v18 = vsub.f32 %v16545_v6, %v13383_v19 }
 0x4c4   : > { %16541 = vst [vmem:[#allocation95_spill] sm:$0xff] %v13456_v16  ;;  %v13463_v43 = vpop.eup %9555  ;;  %9575 = vpow2.f32 %v5351_v47  ;;  %v5163_v3 = vsub.f32 %v12392_v22, %v13383_v19  ;;  %v5179_v51 = vsub.f32 %v12751_v54, %v13383_v19  ;;  %v5195_v4 = vsub.f32 %v13371_v27, %v13383_v19 }
 0x4c5   : > { %16544 = vst [vmem:[#allocation100_spill] sm:$0xff] %v13463_v43  ;;  %v13470_v36 = vpop.eup %9557  ;;  %v5570_v52 = vadd.f32 %v13449_v5, %v5569_v21  ;;  %9577 = vpow2.f32 %v5383_v61  ;;  %v5594_v47 = vadd.f32 %v13433_v32, %v5593_v58  ;;  %v5511_v35 = vmul.f32 1.442695, %v5197_v39  ;;  %v16559_v32 = vld [vmem:[#allocation143_spill] sm:$0xff] }
 0x4c6   : > { %16546 = vst [vmem:[#allocation140_spill] sm:$0xff] %v13470_v36  ;;  %v13477_v60 = vpop.eup %9559  ;;  %9579 = vpow2.f32 %v5415_v41  ;;  %v5219_v6 = vmul.f32 1.442695, %v5051_v48  ;;  %v5251_v21 = vmul.f32 1.442695, %v5067_v49  ;;  %vm4574_vm3 = vcmp.ge.f32.partialorder %v13390_v50, 0.0 }
 0x4c7   : > { %16547 = vst [vmem:[#allocation172_spill] sm:$0xff] %v13477_v60  ;;  %v13480_v59 = vpop.eup %9561  ;;  %v5571_v22 = vadd.f32 %v13456_v16, %v5570_v52  ;;  %9581 = vpow2.f32 %v5447_v0  ;;  %v5283_v61 = vmul.f32 1.442695, %v5083_v37  ;;  %v5315_v54 = vmul.f32 1.442695, %v5099_v25 }
 0x4c8   : > { %v13483_v20 = vpop.eup %9563  ;;  %9583 = vrcp.f32 %v5594_v47  ;;  %v5347_v7 = vmul.f32 1.442695, %v5115_v44  ;;  %v5379_v27 = vmul.f32 1.442695, %v5131_v28  ;;  %v5411_v41 = vmul.f32 1.442695, %v5147_v18 }
 0x4c9   : > { %16548 = vst [vmem:[#allocation204_spill] sm:$0xff] %v13483_v20  ;;  %v13485_v19 = vpop.eup %9565  ;;  %v5572_v58 = vadd.f32 %v13463_v43, %v5571_v22  ;;  %9585 = vpow2.f32 %v5479_v42  ;;  %v5443_v39 = vmul.f32 1.442695, %v5163_v3  ;;  %v5475_v52 = vmul.f32 1.442695, %v5179_v51  ;;  %v16552_v47 = vld [vmem:[#allocation8_spill] sm:$0xff] }
 0x4ca   : > { %16549 = vst [vmem:[#allocation23_spill] sm:$0xff] %v13485_v19  ;;  %v13488_v48 = vpop.eup %9567  ;;  %9587 = vpow2.f32 %v5511_v35  ;;  %v4734_v0 = vmul.f32 0.01, %v13390_v50  ;;  %vm4572_vm4 = vcmp.ge.f32.partialorder %v13431_v62, 0.0  ;;  %v4732_v28 = vmul.f32 0.01, %v13431_v62 }
 0x4cb   : > { %v13492_v49 = vpop.eup %9569  ;;  %v5573_v44 = vadd.f32 %v13470_v36, %v5572_v58  ;;  %9589 = vpow2.f32 %v5219_v6  ;;  %v5507_v25 = vmul.f32 1.442695, %v5195_v4  ;;  %v16560_v36 = vld [vmem:[#allocation175_spill] sm:$0xff] }
 0x4cc   : > { %v13497_v42 = vpop.eup %9571  ;;  %v5613_v37 = vadd.f32 %v13492_v49, %v13488_v48  ;;  %9591 = vpow2.f32 %v5251_v21  ;;  %v4894_v18 = vsel %vm4574_vm3, %v13390_v50, %v4734_v0  ;;  %v13507_v6 = vsel %vm4572_vm4, %v13431_v62, %v4732_v28  ;;  %v16554_v21 = vld [vmem:[#allocation11_spill] sm:$0xff] }
 0x4cd   : > { %16550 = vst [vmem:[#allocation51_spill] sm:$0xff] %v13497_v42  ;;  %v13502_v3 = vpop.eup %9573  ;;  %v5574_v51 = vadd.f32 %v13477_v60, %v5573_v44  ;;  %9593 = vpow2.f32 %v5283_v61  ;;  %v5006_v35 = vmax.f32 %v16552_v47, %v4894_v18  ;;  %v13514_v4 = vmax.f32 %v16554_v21, %v13507_v6  ;;  %v13519_v50 = vld [vmem:[%s15378_s4] ss:$0 sm:$0xff]  ;;  %v16556_v44 = vld [vmem:[#allocation97_spill] sm:$0xff] }
 0x4ce   : > { %16551 = vst [vmem:[#allocation96_spill] sm:$0xff] %v13502_v3  ;;  %v13509_v22 = vpop.eup %9575  ;;  %v5614_v58 = vadd.f32 %v13497_v42, %v5613_v37  ;;  %9595 = vpow2.f32 %v5315_v54  ;;  %v13523_v61 = vadd.f32 %v13519_v50, %v13174_v34  ;;  %v16557_v28 = vld [vmem:[#allocation103_spill] sm:$0xff] }
 0x4cf   : > { %16553 = vst [vmem:[#allocation101_spill] sm:$0xff] %v13509_v22  ;;  %v13525_v62 = vpop.eup %9577  ;;  %v5575_v0 = vadd.f32 %v13483_v20, %v5574_v51  ;;  %9597 = vpow2.f32 %v5347_v7  ;;  %v5054_v54 = vsub.f32 %v16556_v44, %v5006_v35  ;;  %v5070_v37 = vsub.f32 %v16557_v28, %v5006_v35  ;;  %v16562_v51 = vld [vmem:[#allocation207_spill] sm:$0xff] }
 0x4d0   : > { %16555 = vst [vmem:[#allocation141_spill] sm:$0xff] %v13525_v62  ;;  %v13530_v47 = vpop.eup %9579  ;;  %v5615_v21 = vadd.f32 %v13502_v3, %v5614_v58  ;;  %9599 = vpow2.f32 %v5379_v27  ;;  %v5086_v60 = vsub.f32 %v16559_v32, %v5006_v35  ;;  %v5102_v43 = vsub.f32 %v16560_v36, %v5006_v35  ;;  %v16563_v20 = vld [vmem:[#allocation239_spill] sm:$0xff]  ;;  %v16564_v58 = vld [vmem:[#allocation53_spill] sm:$0xff] }
 0x4d1   : > { %16558 = vst [vmem:[#allocation173_spill] sm:$0xff] %v13530_v47  ;;  %v13535_v34 = vpop.eup %9581  ;;  %v5576_v16 = vadd.f32 %v13485_v19, %v5575_v0  ;;  %9601 = vpow2.f32 %v5411_v41  ;;  %v5118_v7 = vsub.f32 %v16562_v51, %v5006_v35  ;;  %v5134_v44 = vsub.f32 %v16563_v20, %v5006_v35  ;;  %v16565_v3 = vld [vmem:[#allocation121_spill] sm:$0xff] }
 0x4d2   : > { %16561 = vst [vmem:[#allocation206_spill] sm:$0xff] %v13535_v34  ;;  %v13540_v5 = vpop.eup %9583  ;;  %v5616_v28 = vadd.f32 %v13509_v22, %v5615_v21  ;;  %9603 = vpow2.f32 %v5443_v39  ;;  %v5150_v27 = vsub.f32 %v16564_v58, %v5006_v35  ;;  %v5166_v32 = vsub.f32 %v16565_v3, %v5006_v35  ;;  %v16567_v36 = vld [vmem:[#allocation213_spill] sm:$0xff] }
 0x4d3   : > { %v13545_v42 = vpop.eup %9585  ;;  %9605 = vrcp.f32 %v5576_v16  ;;  %v5182_v45 = vsub.f32 %v16567_v36, %v5006_v35  ;;  %v5198_v0 = vsub.f32 %v4894_v18, %v5006_v35  ;;  %v5225_v41 = vmul.f32 1.442695, %v5054_v54 }
 0x4d4   : > { %16566 = vst [vmem:[#allocation238_spill] sm:$0xff] %v13545_v42  ;;  %v13548_v19 = vpop.eup %9587  ;;  %v5617_v20 = vadd.f32 %v13525_v62, %v5616_v28  ;;  %9607 = vpow2.f32 %v5475_v52  ;;  %v5257_v51 = vmul.f32 1.442695, %v5070_v37  ;;  %v5289_v46 = vmul.f32 1.442695, %v5086_v60 }
 0x4d5   : > { %16568 = vst [vmem:[#allocation52_spill] sm:$0xff] %v13548_v19  ;;  %v13551_v21 = vpop.eup %9589  ;;  %9609 = vpow2.f32 %v5507_v25  ;;  %v5321_v39 = vmul.f32 1.442695, %v5102_v43  ;;  %v5353_v58 = vmul.f32 1.442695, %v5118_v7  ;;  %v16571_v25 = vld [vmem:[#allocation98_spill] sm:$0xff] }
 0x4d6   : > { %v5385_v3 = vmul.f32 1.442695, %v5134_v44  ;;  %v13553_v22 = vpop.eup %9591  ;;  %v5618_v16 = vadd.f32 %v13530_v47, %v5617_v20  ;;  %9611 = vpow2.f32 %v5225_v41  ;;  %v5417_v18 = vmul.f32 1.442695, %v5150_v27  ;;  %v16572_v44 = vld [vmem:[#allocation104_spill] sm:$0xff] }
 0x4d7   : > { %v5449_v35 = vmul.f32 1.442695, %v5166_v32  ;;  %v13556_v54 = vpop.eup %9593  ;;  %v5595_v52 = vadd.f32 %v13553_v22, %v13551_v21  ;;  %9613 = vpow2.f32 %v5257_v51  ;;  %v5481_v60 = vmul.f32 1.442695, %v5182_v45  ;;  %v16574_v41 = vld [vmem:[#allocation144_spill] sm:$0xff] }
 0x4d8   : > { %16569 = vst [vmem:[#allocation8_spill] sm:$0xff] %v13556_v54  ;;  %v5513_v37 = vmul.f32 1.442695, %v5198_v0  ;;  %v13560_v28 = vpop.eup %9595  ;;  %v5619_v43 = vadd.f32 %v13535_v34, %v5618_v16  ;;  %9615 = vpow2.f32 %v5289_v46  ;;  %v5052_v7 = vsub.f32 %v16571_v25, %v13514_v4  ;;  %v16575_v0 = vld [vmem:[#allocation176_spill] sm:$0xff] }
 0x4d9   : > { %16570 = vst [vmem:[#allocation11_spill] sm:$0xff] %v13560_v28  ;;  %v5068_v27 = vsub.f32 %v16572_v44, %v13514_v4  ;;  %v13567_v32 = vpop.eup %9597  ;;  %v5596_v36 = vadd.f32 %v13556_v54, %v5595_v52  ;;  %9617 = vpow2.f32 %v5321_v39  ;;  %v5084_v45 = vsub.f32 %v16574_v41, %v13514_v4  ;;  %v16577_v16 = vld [vmem:[#allocation208_spill] sm:$0xff]  ;;  %v16580_v52 = vld [vmem:[#allocation54_spill] sm:$0xff] }
 0x4da   : > { %16573 = vst [vmem:[#allocation97_spill] sm:$0xff] %v13567_v32  ;;  %v5100_v20 = vsub.f32 %v16575_v0, %v13514_v4  ;;  %v13574_v51 = vpop.eup %9599  ;;  %v5620_v46 = vadd.f32 %v13545_v42, %v5619_v43  ;;  %9619 = vpow2.f32 %v5353_v58  ;;  %v5116_v25 = vsub.f32 %v16577_v16, %v13514_v4  ;;  %v16578_v44 = vld [vmem:[#allocation240_spill] sm:$0xff]  ;;  %v16581_v0 = vld [vmem:[#allocation125_spill] sm:$0xff] }
 0x4db   : > { %16576 = vst [vmem:[#allocation103_spill] sm:$0xff] %v13574_v51  ;;  %v5132_v34 = vsub.f32 %v16578_v44, %v13514_v4  ;;  %v13581_v47 = vpop.eup %9601  ;;  %v5597_v39 = vadd.f32 %v13560_v28, %v5596_v36  ;;  %9621 = vpow2.f32 %v5385_v3  ;;  %v5148_v41 = vsub.f32 %v16580_v52, %v13514_v4  ;;  %v16583_v43 = vld [vmem:[#allocation216_spill] sm:$0xff] }
 0x4dc   : > { %16579 = vst [vmem:[#allocation143_spill] sm:$0xff] %v13581_v47  ;;  %v5164_v62 = vsub.f32 %v16581_v0, %v13514_v4  ;;  %v13588_v54 = vpop.eup %9603  ;;  %v5621_v58 = vadd.f32 %v13548_v19, %v5620_v46  ;;  %9623 = vpow2.f32 %v5417_v18  ;;  %v5180_v16 = vsub.f32 %v16583_v43, %v13514_v4  ;;  %v16584_v3 = vld [vmem:[#allocation256_spill] sm:$0xff] }
 0x4dd   : > { %16582 = vst [vmem:[#allocation175_spill] sm:$0xff] %v13588_v54  ;;  %v5196_v44 = vsub.f32 %v13507_v6, %v13514_v4  ;;  %v13595_v42 = vpop.eup %9605  ;;  %v13599_v36 = vadd.f32 %v16584_v3, %v10198_v38  ;;  %v5598_v52 = vadd.f32 %v13567_v32, %v5597_v39  ;;  %9625 = vpow2.f32 %v5449_v35 }
 0x4de   : > { %v5221_v0 = vmul.f32 1.442695, %v5052_v7  ;;  %v13602_v28 = vpop.eup %9607  ;;  %9627 = vrcp.f32 %v5621_v58  ;;  %v5253_v18 = vmul.f32 1.442695, %v5068_v27  ;;  %v5285_v46 = vmul.f32 1.442695, %v5084_v45 }
 0x4df   : > { %16585 = vst [vmem:[#allocation207_spill] sm:$0xff] %v13599_v36  ;;  %16586 = vst [vmem:[#allocation239_spill] sm:$0xff] %v13602_v28  ;;  %vm4577_vm5 = vcmp.ge.f32.partialorder %v13523_v61, 0.0  ;;  %v13605_v43 = vpop.eup %9609  ;;  %v5599_v6 = vadd.f32 %v13574_v51, %v5598_v52  ;;  %9629 = vpow2.f32 %v5481_v60  ;;  %v5317_v4 = vmul.f32 1.442695, %v5100_v20 }
 0x4e0   : > { %16587 = vst [vmem:[#allocation53_spill] sm:$0xff] %v13605_v43  ;;  %v5349_v19 = vmul.f32 1.442695, %v5116_v25  ;;  %v13608_v38 = vpop.eup %9611  ;;  %9631 = vpow2.f32 %v5513_v37  ;;  %v5381_v39 = vmul.f32 1.442695, %v5132_v34  ;;  %v13616_v58 = vadd.f32 %v13519_v50, %v13181_v53 }
 0x4e1   : > { %v5413_v35 = vmul.f32 1.442695, %v5148_v41  ;;  %v5445_v7 = vmul.f32 1.442695, %v5164_v62  ;;  %v13610_v3 = vpop.eup %9613  ;;  %v5600_v27 = vadd.f32 %v13581_v47, %v5599_v6  ;;  %9633 = vpow2.f32 %v5221_v0 }
 0x4e2   : > { %16588 = vst [vmem:[#allocation121_spill] sm:$0xff] %v13610_v3  ;;  %v4737_v45 = vmul.f32 0.01, %v13523_v61  ;;  %v13618_v60 = vpop.eup %9615  ;;  %v5622_v20 = vadd.f32 %v13610_v3, %v13608_v38  ;;  %9635 = vpow2.f32 %v5253_v18  ;;  %v5477_v34 = vmul.f32 1.442695, %v5180_v16 }
 0x4e3   : > { %16589 = vst [vmem:[#allocation213_spill] sm:$0xff] %v13618_v60  ;;  %v13624_v62 = vadd.f32 %v13519_v50, %v13187_v17  ;;  %v13626_v37 = vpop.eup %9617  ;;  %v5601_v25 = vadd.f32 %v13588_v54, %v5600_v27  ;;  %9637 = vpow2.f32 %v5285_v46  ;;  %v5509_v41 = vmul.f32 1.442695, %v5196_v44  ;;  %v16595_v27 = vld [vmem:[#allocation112_spill] sm:$0xff] }
 0x4e4   : > { %16590 = vst [vmem:[#allocation98_spill] sm:$0xff] %v13626_v37  ;;  %v13632_v53 = vsel %vm4577_vm5, %v13523_v61, %v4737_v45  ;;  %v13634_v52 = vpop.eup %9619  ;;  %v5623_v0 = vadd.f32 %v13618_v60, %v5622_v20  ;;  %9639 = vpow2.f32 %v5317_v4  ;;  %vm4575_vm6 = vcmp.ge.f32.partialorder %v13616_v58, 0.0  ;;  %v16594_v4 = vld [vmem:[#allocation107_spill] sm:$0xff] }
 0x4e5   : > { %16591 = vst [vmem:[#allocation104_spill] sm:$0xff] %v13634_v52  ;;  %v13639_v17 = vmax.f32 %v12847_v1, %v13632_v53  ;;  %v13642_v16 = vpop.eup %9621  ;;  %v5602_v44 = vadd.f32 %v13602_v28, %v5601_v25  ;;  %9641 = vpow2.f32 %v5349_v19  ;;  %v4735_v18 = vmul.f32 0.01, %v13616_v58  ;;  %v16597_v19 = vld [vmem:[#allocation148_spill] sm:$0xff] }
 0x4e6   : > { %16592 = vst [vmem:[#allocation144_spill] sm:$0xff] %v13642_v16  ;;  %v4738_v61 = vmul.f32 0.01, %v13624_v62  ;;  %v13647_v46 = vpop.eup %9623  ;;  %v5624_v6 = vadd.f32 %v13626_v37, %v5623_v0  ;;  %9643 = vpow2.f32 %v5381_v39  ;;  %v16598_v28 = vld [vmem:[#allocation180_spill] sm:$0xff]  ;;  %vm4578_vm7 = vcmp.ge.f32.partialorder %v13624_v62, 0.0 }
 0x4e7   : > { %16593 = vst [vmem:[#allocation176_spill] sm:$0xff] %v13647_v46  ;;  %v5057_v1 = vsub.f32 %v16594_v4, %v13639_v17  ;;  %v5073_v45 = vsub.f32 %v16595_v27, %v13639_v17  ;;  %v13654_v20 = vpop.eup %9625  ;;  %v5603_v25 = vadd.f32 %v13605_v43, %v5602_v44  ;;  %9645 = vpow2.f32 %v5413_v35  ;;  %v16599_v0 = vld [vmem:[#allocation212_spill] sm:$0xff]  ;;  %v16600_v27 = vld [vmem:[#allocation31_spill] sm:$0xff] }
 0x4e8   : > { %16596 = vst [vmem:[#allocation208_spill] sm:$0xff] %v13654_v20  ;;  %v5089_v36 = vsub.f32 %v16597_v19, %v13639_v17  ;;  %v5105_v54 = vsub.f32 %v16598_v28, %v13639_v17  ;;  %v13661_v47 = vpop.eup %9627  ;;  %v5625_v39 = vadd.f32 %v13634_v52, %v5624_v6  ;;  %9647 = vpow2.f32 %v5445_v7  ;;  %v16602_v35 = vld [vmem:[#allocation60_spill] sm:$0xff]  ;;  %v16603_v19 = vld [vmem:[#allocation25_spill] sm:$0xff] }
 0x4e9   : > { %v5121_v4 = vsub.f32 %v16599_v0, %v13639_v17  ;;  %v5137_v51 = vsub.f32 %v16600_v27, %v13639_v17  ;;  %v13668_v32 = vpop.eup %9629  ;;  %9649 = vrcp.f32 %v5603_v25  ;;  %v5153_v44 = vsub.f32 %v16602_v35, %v13639_v17 }
 0x4ea   : > { %16601 = vst [vmem:[#allocation240_spill] sm:$0xff] %v13668_v32  ;;  %v5169_v28 = vsub.f32 %v12484_v8, %v13639_v17  ;;  %v5185_v43 = vsub.f32 %v16603_v19, %v13639_v17  ;;  %v13676_v6 = vpop.eup %9631  ;;  %v5626_v7 = vadd.f32 %v13642_v16, %v5625_v39  ;;  %9651 = vpow2.f32 %v5477_v34 }
 0x4eb   : > { %16604 = vst [vmem:[#allocation54_spill] sm:$0xff] %v13676_v6  ;;  %v5201_v0 = vsub.f32 %v13632_v53, %v13639_v17  ;;  %v5231_v27 = vmul.f32 1.442695, %v5057_v1  ;;  %v13681_v52 = vpop.eup %9633  ;;  %9653 = vpow2.f32 %v5509_v41  ;;  %v5263_v25 = vmul.f32 1.442695, %v5073_v45 }
 0x4ec   : > { %v5295_v35 = vmul.f32 1.442695, %v5089_v36  ;;  %v5327_v37 = vmul.f32 1.442695, %v5105_v54  ;;  %v13683_v60 = vpop.eup %9635  ;;  %v5627_v8 = vadd.f32 %v13647_v46, %v5626_v7  ;;  %v5359_v19 = vmul.f32 1.442695, %v5121_v4 }
 0x4ed   : > { %9655 = vpow2.f32 %v5231_v27  ;;  %v13687_v39 = vpop.eup %9637  ;;  %v5604_v34 = vadd.f32 %v13683_v60, %v13681_v52  ;;  %v5391_v53 = vmul.f32 1.442695, %v5137_v51  ;;  %v13693_v41 = vadd.f32 %v13519_v50, %v13192_v56  ;;  %v16609_v27 = vld [vmem:[#allocation29_spill] sm:$0xff] }
 0x4ee   : > { %16605 = vst [vmem:[#allocation125_spill] sm:$0xff] %v13687_v39  ;;  %9657 = vpow2.f32 %v5263_v25  ;;  %v13695_v54 = vpop.eup %9639  ;;  %v5628_v36 = vadd.f32 %v13654_v20, %v5627_v8  ;;  %v5423_v17 = vmul.f32 1.442695, %v5153_v44  ;;  %v5455_v1 = vmul.f32 1.442695, %v5169_v28  ;;  %v16610_v28 = vld [vmem:[#allocation290_spill] sm:$0xff] }
 0x4ef   : > { %16606 = vst [vmem:[#allocation216_spill] sm:$0xff] %v13695_v54  ;;  %9659 = vpow2.f32 %v5295_v35  ;;  %v13698_v45 = vpop.eup %9641  ;;  %v5605_v4 = vadd.f32 %v13687_v39, %v5604_v34  ;;  %v4895_v51 = vsel %vm4575_vm6, %v13616_v58, %v4735_v18  ;;  %v13705_v7 = vsel %vm4578_vm7, %v13624_v62, %v4738_v61  ;;  %v16613_v8 = vld [vmem:[#allocation108_spill] sm:$0xff]  ;;  %v16614_v34 = vld [vmem:[#allocation113_spill] sm:$0xff] }
 0x4f0   : > { %16607 = vst [vmem:[#allocation256_spill] sm:$0xff] %v13698_v45  ;;  %9661 = vpow2.f32 %v5327_v37  ;;  %v13707_v56 = vpop.eup %9643  ;;  %v5629_v50 = vadd.f32 %v13668_v32, %v5628_v36  ;;  %v5015_v44 = vmax.f32 %v16609_v27, %v4895_v51  ;;  %v13713_v25 = vmax.f32 %v16610_v28, %v13705_v7  ;;  %v16615_v32 = vld [vmem:[#allocation149_spill] sm:$0xff] }
 0x4f1   : > { %16608 = vst [vmem:[#allocation107_spill] sm:$0xff] %v13707_v56  ;;  %9663 = vpow2.f32 %v5359_v19  ;;  %v13715_v35 = vpop.eup %9645  ;;  %v5606_v37 = vadd.f32 %v13695_v54, %v5605_v4  ;;  %v5487_v58 = vmul.f32 1.442695, %v5185_v43  ;;  %v5519_v18 = vmul.f32 1.442695, %v5201_v0  ;;  %v16616_v4 = vld [vmem:[#allocation182_spill] sm:$0xff] }
 0x4f2   : > { %16611 = vst [vmem:[#allocation112_spill] sm:$0xff] %v13715_v35  ;;  %9665 = vpow2.f32 %v5391_v53  ;;  %v13718_v62 = vpop.eup %9647  ;;  %v5630_v61 = vadd.f32 %v13676_v6, %v5629_v50  ;;  %v5055_v19 = vsub.f32 %v16613_v8, %v5015_v44  ;;  %v5071_v36 = vsub.f32 %v16614_v34, %v5015_v44  ;;  %v16618_v0 = vld [vmem:[#allocation214_spill] sm:$0xff]  ;;  %v16619_v50 = vld [vmem:[#allocation32_spill] sm:$0xff]  ;;  %v16620_v6 = vld [vmem:[#allocation61_spill] sm:$0xff] }
 0x4f3   : > { %16612 = vst [vmem:[#allocation148_spill] sm:$0xff] %v13718_v62  ;;  %9667 = vpow2.f32 %v5423_v17  ;;  %v13723_v27 = vpop.eup %9649  ;;  %v5607_v28 = vadd.f32 %v13698_v45, %v5606_v37  ;;  %v5087_v20 = vsub.f32 %v16615_v32, %v5015_v44  ;;  %v5103_v53 = vsub.f32 %v16616_v4, %v5015_v44  ;;  %v16622_v37 = vld [vmem:[#allocation150_spill] sm:$0xff] }
 0x4f4   : > { %9669 = vpow2.f32 %v5455_v1  ;;  %v13728_v43 = vpop.eup %9651  ;;  %v5119_v46 = vsub.f32 %v16618_v0, %v5015_v44  ;;  %v5135_v17 = vsub.f32 %v16619_v50, %v5015_v44  ;;  %v5151_v8 = vsub.f32 %v16620_v6, %v5015_v44  ;;  %v16623_v45 = vld [vmem:[#allocation26_spill] sm:$0xff] }
 0x4f5   : > { %16617 = vst [vmem:[#allocation180_spill] sm:$0xff] %v13728_v43  ;;  %9671 = vrcp.f32 %v5630_v61  ;;  %v13733_v16 = vpop.eup %9653  ;;  %v5608_v34 = vadd.f32 %v13707_v56, %v5607_v28  ;;  %v5167_v1 = vsub.f32 %v16622_v37, %v5015_v44  ;;  %v5183_v32 = vsub.f32 %v16623_v45, %v5015_v44  ;;  %v16630_v37 = vld [vmem:[#allocation115_spill] sm:$0xff] }
 0x4f6   : > { %16621 = vst [vmem:[#allocation212_spill] sm:$0xff] %v13733_v16  ;;  %9673 = vpow2.f32 %v5487_v58  ;;  %v5199_v4 = vsub.f32 %v4895_v51, %v5015_v44  ;;  %v5227_v61 = vmul.f32 1.442695, %v5055_v19  ;;  %v5259_v39 = vmul.f32 1.442695, %v5071_v36 }
 0x4f7   : > { %v13738_v54 = vpop.eup %9655  ;;  %9675 = vpow2.f32 %v5519_v18  ;;  %v5609_v50 = vadd.f32 %v13715_v35, %v5608_v34  ;;  %v5291_v6 = vmul.f32 1.442695, %v5087_v20  ;;  %v5323_v2 = vmul.f32 1.442695, %v5103_v53  ;;  %v16628_v53 = vld [vmem:[#allocation109_spill] sm:$0xff] }
 0x4f8   : > { %v13740_v0 = vpop.eup %9657  ;;  %v5355_v55 = vmul.f32 1.442695, %v5119_v46  ;;  %9677 = vpow2.f32 %v5227_v61  ;;  %v5387_v45 = vmul.f32 1.442695, %v5135_v17  ;;  %v5419_v28 = vmul.f32 1.442695, %v5151_v8 }
 0x4f9   : > { %16624 = vst [vmem:[#allocation31_spill] sm:$0xff] %v13740_v0  ;;  %v13743_v57 = vpop.eup %9659  ;;  %v5649_v58 = vadd.f32 %v13740_v0, %v13738_v54  ;;  %vm4576_vm8 = vcmp.ge.f32.partialorder %v13693_v41, 0.0  ;;  %v5610_v44 = vadd.f32 %v13718_v62, %v5609_v50  ;;  %9679 = vpow2.f32 %v5259_v39  ;;  %v16631_v39 = vld [vmem:[#allocation151_spill] sm:$0xff] }
 0x4fa   : > { %16625 = vst [vmem:[#allocation60_spill] sm:$0xff] %v13743_v57  ;;  %v13748_v51 = vpop.eup %9661  ;;  %v5451_v18 = vmul.f32 1.442695, %v5167_v1  ;;  %v5483_v19 = vmul.f32 1.442695, %v5183_v32  ;;  %9681 = vpow2.f32 %v5291_v6  ;;  %v5058_v34 = vsub.f32 %v16628_v53, %v13713_v25 }
 0x4fb   : > { %16626 = vst [vmem:[#allocation25_spill] sm:$0xff] %v13748_v51  ;;  %v13751_v20 = vpop.eup %9663  ;;  %v5650_v46 = vadd.f32 %v13743_v57, %v5649_v58  ;;  %v5515_v36 = vmul.f32 1.442695, %v5199_v4  ;;  %v5611_v8 = vadd.f32 %v13728_v43, %v5610_v44  ;;  %9683 = vpow2.f32 %v5323_v2  ;;  %v16633_v4 = vld [vmem:[#allocation183_spill] sm:$0xff]  ;;  %v16636_v44 = vld [vmem:[#allocation244_spill] sm:$0xff] }
 0x4fc   : > { %16627 = vst [vmem:[#allocation29_spill] sm:$0xff] %v13751_v20  ;;  %v13756_v17 = vpop.eup %9665  ;;  %v5074_v61 = vsub.f32 %v16630_v37, %v13713_v25  ;;  %v5090_v1 = vsub.f32 %v16631_v39, %v13713_v25  ;;  %9685 = vpow2.f32 %v5355_v55  ;;  %v5106_v6 = vsub.f32 %v16633_v4, %v13713_v25  ;;  %v16634_v58 = vld [vmem:[#allocation215_spill] sm:$0xff]  ;;  %v16637_v39 = vld [vmem:[#allocation62_spill] sm:$0xff] }
 0x4fd   : > { %16629 = vst [vmem:[#allocation290_spill] sm:$0xff] %v13756_v17  ;;  %v13763_v32 = vpop.eup %9667  ;;  %v5651_v50 = vadd.f32 %v13748_v51, %v5650_v46  ;;  %v5122_v53 = vsub.f32 %v16634_v58, %v13713_v25  ;;  %v5612_v2 = vadd.f32 %v13733_v16, %v5611_v8  ;;  %9687 = vpow2.f32 %v5387_v45  ;;  %v16638_v46 = vld [vmem:[#allocation153_spill] sm:$0xff] }
 0x4fe   : > { %16632 = vst [vmem:[#allocation108_spill] sm:$0xff] %v13763_v32  ;;  %v13770_v62 = vpop.eup %9669  ;;  %v5138_v37 = vsub.f32 %v16636_v44, %v13713_v25  ;;  %v5154_v43 = vsub.f32 %v16637_v39, %v13713_v25  ;;  %9689 = vpow2.f32 %v5419_v28  ;;  %v5170_v4 = vsub.f32 %v16638_v46, %v13713_v25  ;;  %v16639_v58 = vld [vmem:[#allocation289_spill] sm:$0xff] }
 0x4ff   : > { %16635 = vst [vmem:[#allocation113_spill] sm:$0xff] %v13770_v62  ;;  %v13777_v35 = vpop.eup %9671  ;;  %v5652_v55 = vadd.f32 %v13751_v20, %v5651_v50  ;;  %v5186_v56 = vsub.f32 %v16639_v58, %v13713_v25  ;;  %9691 = vrcp.f32 %v5612_v2  ;;  %v5202_v45 = vsub.f32 %v13705_v7, %v13713_v25 }
 0x500   : > { %v13784_v51 = vpop.eup %9673  ;;  %v5233_v8 = vmul.f32 1.442695, %v5058_v34  ;;  %v4736_v44 = vmul.f32 0.01, %v13693_v41  ;;  %9693 = vpow2.f32 %v5451_v18  ;;  %v5265_v28 = vmul.f32 1.442695, %v5074_v61 }
 0x501   : > { %16640 = vst [vmem:[#allocation149_spill] sm:$0xff] %v13784_v51  ;;  %v13789_v39 = vpop.eup %9675  ;;  %v5653_v50 = vadd.f32 %v13756_v17, %v5652_v55  ;;  %v5297_v16 = vmul.f32 1.442695, %v5090_v1  ;;  %9695 = vpow2.f32 %v5483_v19  ;;  %v5329_v46 = vmul.f32 1.442695, %v5106_v6  ;;  %v16643_v19 = vld [vmem:[#allocation190_spill] sm:$0xff] }
 0x502   : > { %16641 = vst [vmem:[#allocation182_spill] sm:$0xff] %v13789_v39  ;;  %v5361_v20 = vmul.f32 1.442695, %v5122_v53  ;;  %v5393_v58 = vmul.f32 1.442695, %v5138_v37  ;;  %v13792_v57 = vpop.eup %9677  ;;  %9697 = vpow2.f32 %v5515_v36  ;;  %v13800_v18 = vsel %vm4576_vm8, %v13693_v41, %v4736_v44  ;;  %v16645_v36 = vld [vmem:[#allocation242_spill] sm:$0xff] }
 0x503   : > { %v5654_v2 = vadd.f32 %v13763_v32, %v5653_v50  ;;  %v5425_v7 = vmul.f32 1.442695, %v5154_v43  ;;  %v5457_v25 = vmul.f32 1.442695, %v5170_v4  ;;  %v13795_v34 = vpop.eup %9679  ;;  %9699 = vpow2.f32 %v5233_v8  ;;  %v16647_v55 = vld [vmem:[#allocation9_spill] sm:$0xff]  ;;  %v16656_v17 = vld [vmem:[#allocation63_spill] sm:$0xff] }
 0x504   : > { %16642 = vst [vmem:[#allocation214_spill] sm:$0xff] %v13795_v34  ;;  %v5489_v0 = vmul.f32 1.442695, %v5186_v56  ;;  %v5683_v61 = vmul.f32 %v13231_v33, %v16643_v19  ;;  %v13804_v1 = vpop.eup %9681  ;;  %v5631_v43 = vadd.f32 %v13795_v34, %v13792_v57  ;;  %9701 = vpow2.f32 %v5265_v28  ;;  %v16649_v28 = vld [vmem:[#allocation110_spill] sm:$0xff] }
 0x505   : > { %16644 = vst [vmem:[#allocation32_spill] sm:$0xff] %v13804_v1  ;;  %v5655_v6 = vadd.f32 %v13770_v62, %v5654_v2  ;;  %v5024_v53 = vmax.f32 %v16645_v36, %v13800_v18  ;;  %v13811_v56 = vpop.eup %9683  ;;  %9703 = vpow2.f32 %v5297_v16  ;;  %v5521_v37 = vmul.f32 1.442695, %v5202_v45  ;;  %v16650_v16 = vld [vmem:[#allocation116_spill] sm:$0xff] }
 0x506   : > { %16646 = vst [vmem:[#allocation61_spill] sm:$0xff] %v13811_v56  ;;  %v5684_v41 = vmul.f32 %v13349_v30, %v13183_v40  ;;  %v13816_v4 = vmul.f32 %v5683_v61, %v16647_v55  ;;  %v13818_v8 = vpop.eup %9685  ;;  %v5632_v50 = vadd.f32 %v13804_v1, %v5631_v43  ;;  %9705 = vpow2.f32 %v5329_v46  ;;  %v16651_v36 = vld [vmem:[#allocation152_spill] sm:$0xff]  ;;  %v16654_v43 = vld [vmem:[#allocation7_spill] sm:$0xff]  ;;  %v16657_v1 = vld [vmem:[#allocation154_spill] sm:$0xff] }
 0x507   : > { %16648 = vst [vmem:[#allocation150_spill] sm:$0xff] %v13818_v8  ;;  %v5656_v44 = vadd.f32 %v13784_v51, %v5655_v6  ;;  %v5056_v2 = vsub.f32 %v16649_v28, %v5024_v53  ;;  %v13823_v19 = vpop.eup %9687  ;;  %9707 = vpow2.f32 %v5361_v20  ;;  %v5072_v45 = vsub.f32 %v16650_v16, %v5024_v53  ;;  %v16652_v40 = vld [vmem:[#allocation184_spill] sm:$0xff]  ;;  %v16655_v28 = vld [vmem:[#allocation33_spill] sm:$0xff] }
 0x508   : > { %v5088_v62 = vsub.f32 %v16651_v36, %v5024_v53  ;;  %v5104_v32 = vsub.f32 %v16652_v40, %v5024_v53  ;;  %v13828_v61 = vpop.eup %9689  ;;  %v5633_v6 = vadd.f32 %v13811_v56, %v5632_v50  ;;  %9709 = vpow2.f32 %v5393_v58  ;;  %v16661_v56 = vld [vmem:[#allocation119_spill] sm:$0xff] }
 0x509   : > { %16653 = vst [vmem:[#allocation26_spill] sm:$0xff] %v13828_v61  ;;  %v5657_v55 = vadd.f32 %v13789_v39, %v5656_v44  ;;  %v5120_v46 = vsub.f32 %v16654_v43, %v5024_v53  ;;  %v13833_v51 = vpop.eup %9691  ;;  %9711 = vpow2.f32 %v5425_v7  ;;  %v5136_v20 = vsub.f32 %v16655_v28, %v5024_v53  ;;  %v16659_v44 = vld [vmem:[#allocation291_spill] sm:$0xff] }
 0x50a   : > { %v5152_v16 = vsub.f32 %v16656_v17, %v5024_v53  ;;  %v5168_v36 = vsub.f32 %v16657_v1, %v5024_v53  ;;  %v13838_v34 = vpop.eup %9693  ;;  %v5634_v40 = vadd.f32 %v13818_v8, %v5633_v6  ;;  %v5184_v39 = vsub.f32 %v16659_v44, %v5024_v53 }
 0x50b   : > { %16658 = vst [vmem:[#allocation109_spill] sm:$0xff] %v13838_v34  ;;  %9713 = vrcp.f32 %v5657_v55  ;;  %v5200_v58 = vsub.f32 %v13800_v18, %v5024_v53  ;;  %v13843_v50 = vpop.eup %9695  ;;  %v5229_v43 = vmul.f32 1.442695, %v5056_v2  ;;  %v5261_v7 = vmul.f32 1.442695, %v5072_v45 }
 0x50c   : > { %16660 = vst [vmem:[#allocation115_spill] sm:$0xff] %v13843_v50  ;;  %9715 = vpow2.f32 %v5457_v25  ;;  %v5685_v28 = vmul.f32 %v13178_v10, %v16661_v56  ;;  %v13847_v17 = vpop.eup %9697  ;;  %v5635_v1 = vadd.f32 %v13823_v19, %v5634_v40  ;;  %v5293_v55 = vmul.f32 1.442695, %v5088_v62  ;;  %v16663_v62 = vld [vmem:[#allocation218_spill] sm:$0xff]  ;;  %v16664_v40 = vld [vmem:[#allocation217_spill] sm:$0xff] }
 0x50d   : > { %16662 = vst [vmem:[#allocation151_spill] sm:$0xff] %v13847_v17  ;;  %9717 = vpow2.f32 %v5489_v0  ;;  %v5325_v3 = vmul.f32 1.442695, %v5104_v32  ;;  %v13850_v6 = vpop.eup %9699  ;;  %v5357_v44 = vmul.f32 1.442695, %v5120_v46  ;;  %v5844_v32 = vmul.f32 %v5684_v41, %v16663_v62 }
 0x50e   : > { %9719 = vpow2.f32 %v5521_v37  ;;  %v5389_v18 = vmul.f32 1.442695, %v5136_v20  ;;  %v5421_v53 = vmul.f32 1.442695, %v5152_v16  ;;  %v13852_v8 = vpop.eup %9701  ;;  %v5636_v25 = vadd.f32 %v13828_v61, %v5635_v1  ;;  %v16665_v1 = vld [vmem:[#allocation219_spill] sm:$0xff] }
 0x50f   : > { %9721 = vpow2.f32 %v5229_v43  ;;  %v5453_v2 = vmul.f32 1.442695, %v5168_v36  ;;  %v5485_v56 = vmul.f32 1.442695, %v5184_v39  ;;  %v13855_v45 = vpop.eup %9703  ;;  %v5658_v0 = vadd.f32 %v13852_v8, %v13850_v6 }
 0x510   : > { %9723 = vpow2.f32 %v5261_v7  ;;  %v5686_v37 = vmul.f32 %v13282_v9, %v13110_v12  ;;  %v13862_v46 = vpop.eup %9705  ;;  %v5637_v20 = vadd.f32 %v13838_v34, %v5636_v25  ;;  %v13865_v16 = vmul.f32 1.442695, %v5200_v58 }
 0x511   : > { %v5845_v36 = vmul.f32 %v5685_v28, %v16664_v40  ;;  %v5687_v39 = vmul.f32 %v13480_v59, %v13290_v24  ;;  %v13870_v43 = vpop.eup %9707  ;;  %v5659_v7 = vadd.f32 %v13855_v45, %v5658_v0  ;;  %9725 = vpow2.f32 %v5293_v55  ;;  %v16666_v28 = vld [vmem:[#allocation15_spill] sm:$0xff]  ;;  %v9324_v0 = vld [vmem:[%s15379_s5 + $0x48] sm:$0xff]  }
 0x512   : > { %v6003_v41 = vpack.c.bf16 %v5844_v32, %v13816_v4  ;;  %v5846_v12 = vmul.f32 %v5686_v37, %v16665_v1  ;;  %v13875_v62 = vpop.eup %9709  ;;  %v5638_v25 = vadd.f32 %v13843_v50, %v5637_v20  ;;  %9727 = vpow2.f32 %v5325_v3  ;;  %v16668_v32 = vld [vmem:[#allocation16_spill] sm:$0xff]  ;;  %v16703_v50 = vld [vmem:[#allocation249_spill] sm:$0xff] }
 0x513   : > { %v5688_v58 = vmul.f32 %v13595_v42, %v13436_v26  ;;  %v5847_v40 = vmul.f32 %v5687_v39, %v16666_v28  ;;  %v13881_v24 = vpop.eup %9711  ;;  %v5660_v34 = vadd.f32 %v13862_v46, %v5659_v7  ;;  %9729 = vpow2.f32 %v5357_v44  ;;  %v16672_v1 = vld [vmem:[#allocation224_spill] sm:$0xff]  ;;  %v9325_v28 = vld [vmem:[%s15379_s5 + $0x50] sm:$0xff]  }
 0x514   : > { %16667 = vst [vmem:[#allocation183_spill] sm:$0xff] %v13881_v24  ;;  %8684 = vmatprep.mubr.bf16.mxu1 %v6003_v41  ;;  %v6004_v55 = vpack.c.bf16 %v5846_v12, %v5845_v36  ;;  %v5689_v4 = vmul.f32 %v13420_v31, %v13236_v23  ;;  %v5639_v26 = vadd.f32 %v13847_v17, %v5638_v25  ;;  %9731 = vpow2.f32 %v5389_v18  ;;  %v16670_v23 = vld [vmem:[#allocation223_spill] sm:$0xff] }
 0x515   : > { %v13889_v3 = vpop.eup %9713  ;;  %v5848_v37 = vmul.f32 %v5688_v58, %v16668_v32  ;;  %v5690_v20 = vmul.f32 %v13540_v5, %v13358_v29  ;;  %v5661_v36 = vadd.f32 %v13870_v43, %v5660_v34  ;;  %9733 = vpow2.f32 %v5421_v53  ;;  %v9752_v29 = vld [vmem:[%s15379_s5 + $0x40] sm:$0xff]  }
 0x516   : > { %v13895_v44 = vpop.eup %9715  ;;  %8685 = vmatmul.mubr.bf16.vlgmr.msra.gmra.mrb[156].mxu1 %v6004_v55  ;;  %v5849_v39 = vmul.f32 %v5689_v4, %v16670_v23  ;;  %v5691_v7 = vmul.f32 %v13723_v27, %v13551_v21  ;;  %9735 = vrcp.f32 %v5639_v26  ;;  %v5692_v34 = vmul.f32 %v13833_v51, %v13681_v52  ;;  %v16674_v21 = vld [vmem:[#allocation225_spill] sm:$0xff]  ;;  %v16675_v4 = vld [vmem:[#allocation226_spill] sm:$0xff]  ;;  %v16698_v17 = vld [vmem:[#allocation31_spill] sm:$0xff] }
 0x517   : > { %16669 = vst [vmem:[#allocation215_spill] sm:$0xff] %v13895_v44  ;;  %v13901_v41 = vpop.eup %9717  ;;  %v6005_v18 = vpack.c.bf16 %v5848_v37, %v5847_v40  ;;  %v5850_v12 = vmul.f32 %v5690_v20, %v16672_v1  ;;  %8701 = vmatpush3.bf16.msra.mxu1 %v9752_v29  ;;  %v5662_v25 = vadd.f32 %v13875_v62, %v5661_v36  ;;  %9737 = vpow2.f32 %v5453_v2  ;;  %v16676_v20 = vld [vmem:[#allocation227_spill] sm:$0xff]  ;;  %v16677_v23 = vld [vmem:[#allocation221_spill] sm:$0xff] }
 0x518   : > { %16671 = vst [vmem:[#allocation244_spill] sm:$0xff] %v13901_v41  ;;  %v13909_v53 = vpop.eup %9719  ;;  %8702 = vmatprep.subr.bf16.mxu1 %v9324_v0  ;;  %v5851_v58 = vmul.f32 %v5691_v7, %v16674_v21  ;;  %v5693_v40 = vmul.f32 %v13661_v47, %v13488_v48  ;;  %9739 = vpow2.f32 %v5485_v56  ;;  %v5852_v26 = vmul.f32 %v5692_v34, %v16675_v4  ;;  %v16679_v34 = vld [vmem:[#allocation233_spill] sm:$0xff]  ;;  %v16680_v21 = vld [vmem:[#allocation236_spill] sm:$0xff] }
 0x519   : > { %16673 = vst [vmem:[#allocation62_spill] sm:$0xff] %v13909_v53  ;;  %v13918_v55 = vpop.eup %9721  ;;  %8688 = vmatprep.mubr.bf16.mxu1 %v6005_v18  ;;  %v6006_v52 = vpack.c.bf16 %v5850_v12, %v5849_v39  ;;  %v5694_v2 = vmul.f32 %v13777_v35, %v13608_v38  ;;  %v5663_v37 = vadd.f32 %v13881_v24, %v5662_v25  ;;  %v16678_v18 = vld [vmem:[#allocation22_spill] sm:$0xff]  ;;  %9741 = vpow2.f32 %v13865_v16 }
 0x51a   : > { %v13923_v32 = vpop.eup %9723  ;;  %v13927_v36 = vmul.f32 %v5693_v40, %v16676_v20  ;;  %v5697_v48 = vmul.f32 %v13889_v3, %v13738_v54  ;;  %v5699_v56 = vmul.f32 %v13231_v33, %v16677_v23  ;;  %v6007_v7 = vpack.c.bf16 %v5852_v26, %v5851_v58  ;;  %v9326_v54 = vld [vmem:[%s15379_s5 + $0x58] sm:$0xff]   ;;  %v16683_v20 = vld [vmem:[#allocation191_spill] sm:$0xff] }
 0x51b   : > { %v5640_v39 = vadd.f32 %v13923_v32, %v13918_v55  ;;  %8703 = vmatpush3.bf16.msra.mxu1 %v9324_v0  ;;  %v5854_v38 = vmul.f32 %v5694_v2, %v16678_v18  ;;  %v5700_v1 = vmul.f32 %v13349_v30, %v13189_v63  ;;  %v13938_v12 = vpop.eup %9725  ;;  %v5664_v29 = vadd.f32 %v13895_v44, %v5663_v37  ;;  %v16681_v58 = vld [vmem:[#allocation122_spill] sm:$0xff]  ;;  %v16682_v2 = vld [vmem:[#allocation237_spill] sm:$0xff]  ;;  %v16684_v18 = vld [vmem:[#allocation27_spill] sm:$0xff] }
 0x51c   : > { %8704 = vmatprep.subr.bf16.mxu1 %v9325_v28  ;;  %v13945_v25 = vmul.f32 %v5697_v48, %v16679_v34  ;;  %v13948_v0 = vmul.f32 %v5699_v56, %v16680_v21  ;;  %v5701_v40 = vmul.f32 %v13178_v10, %v16681_v58  ;;  %v13952_v4 = vpop.eup %9727  ;;  %v5702_v23 = vmul.f32 %v13282_v9, %v16683_v20  ;;  %v16687_v16 = vld [vmem:[#allocation30_spill] sm:$0xff] }
 0x51d   : > { %v5641_v63 = vadd.f32 %v13938_v12, %v5640_v39  ;;  %v6008_v26 = vpack.c.bf16 %v5854_v38, %v13927_v36  ;;  %v13957_v37 = vmul.f32 %v5700_v1, %v16682_v2  ;;  %v13961_v48 = vpop.eup %9729  ;;  %v5665_v56 = vadd.f32 %v13901_v41, %v5664_v29  ;;  %v16685_v1 = vld [vmem:[#allocation28_spill] sm:$0xff]  ;;  %v16701_v41 = vld [vmem:[#allocation37_spill] sm:$0xff] }
 0x51e   : > { %8689 = vmatmul.mubr.bf16.gmra.mrb[160].mxu1 %v6006_v52  ;;  %v13965_v34 = vmul.f32 %v5701_v40, %v16684_v18  ;;  %v5703_v21 = vmul.f32 %v13480_v59, %v13297_v11  ;;  %v5704_v36 = vmul.f32 %v13595_v42, %v13438_v14  ;;  %v13971_v39 = vpop.eup %9731  ;;  %v13978_v29 = vmul.f32 %v5702_v23, %v16685_v1  ;;  %v9327_v14 = vld [vmem:[%s15379_s5 + $0x60] sm:$0xff]  }
 0x51f   : > { %v5642_v38 = vadd.f32 %v13952_v4, %v5641_v63  ;;  %8692 = vmatprep.mubr.bf16.mxu1 %v6007_v7  ;;  %8705 = vmatpush3.bf16.msra.mxu1 %v9325_v28  ;;  %v13980_v58 = vpop.eup %9733  ;;  %v5666_v11 = vadd.f32 %v13909_v53, %v5665_v56  ;;  %v16688_v7 = vld [vmem:[#allocation241_spill] sm:$0xff]  ;;  %v5705_v63 = vmul.f32 %v13420_v31, %v13241_v15  ;;  %v16690_v1 = vld [vmem:[#allocation243_spill] sm:$0xff] }
 0x520   : > { %16686 = vst [vmem:[#allocation153_spill] sm:$0xff] %v13980_v58  ;;  %8706 = vmatprep.subr.bf16.mxu1 %v9326_v54  ;;  %v13987_v40 = vmul.f32 %v5703_v21, %v16687_v16  ;;  %v13990_v28 = vmul.f32 %v5704_v36, %v16688_v7  ;;  %v13994_v2 = vpop.eup %9735  ;;  %v5706_v56 = vmul.f32 %v13540_v5, %v13360_v13  ;;  %v16692_v13 = vld [vmem:[#allocation245_spill] sm:$0xff]  ;;  %v16697_v15 = vld [vmem:[#allocation35_spill] sm:$0xff] }
 0x521   : > { %v5643_v20 = vadd.f32 %v13961_v48, %v5642_v38  ;;  %v5707_v18 = vmul.f32 %v13723_v27, %v13553_v22  ;;  %v14003_v21 = vpop.eup %9737  ;;  %9743 = vrcp.f32 %v5666_v11  ;;  %v5695_v36 = vmul.f32 %v13994_v2, %v13792_v57  ;;  %v16693_v11 = vld [vmem:[#allocation247_spill] sm:$0xff]  ;;  %v9328_v57 = vld [vmem:[%s15379_s5 + $0x68] sm:$0xff]  }
 0x522   : > { %16689 = vst [vmem:[#allocation289_spill] sm:$0xff] %v14003_v21  ;;  %v14010_v38 = vmul.f32 %v5705_v63, %v16690_v1  ;;  %v14012_v16 = vpop.eup %9739  ;;  %v14016_v23 = vmul.f32 %v5706_v56, %v16692_v13  ;;  %v5708_v22 = vmul.f32 %v13833_v51, %v13683_v60  ;;  %v16694_v63 = vld [vmem:[#allocation231_spill] sm:$0xff]  ;;  %v16696_v13 = vld [vmem:[#allocation214_spill] sm:$0xff] }
 0x523   : > { %16691 = vst [vmem:[#allocation190_spill] sm:$0xff] %v14012_v16  ;;  %v5644_v7 = vadd.f32 %v13971_v39, %v5643_v20  ;;  %8707 = vmatpush3.bf16.msra.mxu1 %v9326_v54  ;;  %v14021_v52 = vmul.f32 %v5707_v18, %v16693_v11  ;;  %v14027_v1 = vmul.f32 %v5695_v36, %v16694_v63  ;;  %v16695_v20 = vld [vmem:[#allocation121_spill] sm:$0xff]  ;;  %v16699_v63 = vld [vmem:[#allocation36_spill] sm:$0xff] }
 0x524   : > { %8708 = vmatprep.subr.bf16.mxu1 %v9327_v14  ;;  %v5709_v54 = vmul.f32 %v13661_v47, %v13492_v49  ;;  %v5710_v56 = vmul.f32 %v13777_v35, %v16695_v20  ;;  %v5711_v60 = vmul.f32 %v13994_v2, %v16696_v13  ;;  %v14039_v53 = vmul.f32 %v5708_v22, %v16697_v15  ;;  %v16706_v22 = vld [vmem:[#allocation192_spill] sm:$0xff] }
 0x525   : > { %v5645_v18 = vadd.f32 %v13980_v58, %v5644_v7  ;;  %v5713_v36 = vmul.f32 %v13889_v3, %v16698_v17  ;;  %v16704_v7 = vld [vmem:[#allocation40_spill] sm:$0xff]  ;;  %v16705_v17 = vld [vmem:[#allocation41_spill] sm:$0xff] }
 0x526   : > { %8693 = vmatmul.mubr.bf16.gmra.mrb[164].mxu1 %v6008_v26  ;;  %v14044_v49 = vmul.f32 %v5709_v54, %v16699_v63  ;;  %v14047_v20 = vmul.f32 %v5710_v56, %v16701_v41  ;;  %v14050_v13 = vmul.f32 %v5711_v60, %v16703_v50  ;;  %v5715_v44 = vmul.f32 %v13231_v33, %v16704_v7  ;;  %v9329_v50 = vld [vmem:[%s15379_s5 + $0x70] sm:$0xff]   ;;  %v16710_v63 = vld [vmem:[#allocation222_spill] sm:$0xff]  ;;  %v14074_v7 = vpop.eup %9741  ;;  %v16715_v41 = vld [vmem:[#allocation263_spill] sm:$0xff] }
 0x527   : > { %v5646_v11 = vadd.f32 %v14003_v21, %v5645_v18  ;;  %8709 = vmatpush3.bf16.msra.mxu1 %v9327_v14  ;;  %v14058_v26 = vmul.f32 %v5713_v36, %v16705_v17  ;;  %v5716_v54 = vmul.f32 %v13349_v30, %v16706_v22  ;;  %v16707_v56 = vld [vmem:[#allocation253_spill] sm:$0xff]  ;;  %v16709_v14 = vld [vmem:[#allocation156_spill] sm:$0xff]  ;;  %v5718_v36 = vmul.f32 %v13282_v9, %v16710_v63  ;;  %v16712_v22 = vld [vmem:[#allocation255_spill] sm:$0xff] }
 0x528   : > { %16700 = vst [vmem:[#allocation242_spill] sm:$0xff] %v14044_v49  ;;  %16702 = vst [vmem:[#allocation9_spill] sm:$0xff] %v14047_v20  ;;  %8710 = vmatprep.subr.bf16.mxu1 %v9328_v57  ;;  %v14068_v60 = vmul.f32 %v5715_v44, %v16707_v56  ;;  %v5717_v18 = vmul.f32 %v13178_v10, %v16709_v14  ;;  %v16714_v21 = vld [vmem:[#allocation198_spill] sm:$0xff]  ;;  %v5720_v44 = vmul.f32 %v13595_v42, %v16715_v41  ;;  %v16718_v14 = vld [vmem:[#allocation43_spill] sm:$0xff] }
 0x529   : > { %16711 = vst [vmem:[#allocation116_spill] sm:$0xff] %v14074_v7  ;;  %v5647_v17 = vadd.f32 %v14012_v16, %v5646_v11  ;;  %v14078_v15 = vmul.f32 %v5716_v54, %v16712_v22  ;;  %v5719_v24 = vmul.f32 %v13480_v59, %v16714_v21  ;;  %v16716_v56 = vld [vmem:[#allocation42_spill] sm:$0xff]  ;;  %v14088_v61 = vmul.f32 %v5718_v36, %v16718_v14  ;;  %v16720_v63 = vld [vmem:[#allocation164_spill] sm:$0xff]  ;;  %v16722_v22 = vld [vmem:[#allocation257_spill] sm:$0xff] }
 0x52a   : > { %16708 = vst [vmem:[#allocation110_spill] sm:$0xff] %v14068_v60  ;;  %v14085_v58 = vmul.f32 %v5717_v18, %v16716_v56  ;;  %v5721_v49 = vmul.f32 %v13420_v31, %v16720_v63  ;;  %v16721_v20 = vld [vmem:[#allocation230_spill] sm:$0xff]  ;;  %v16724_v18 = vld [vmem:[#allocation260_spill] sm:$0xff]  ;;  %v16735_v16 = vld [vmem:[#allocation235_spill] sm:$0xff] }
 0x52b   : > { %16713 = vst [vmem:[#allocation152_spill] sm:$0xff] %v14078_v15  ;;  %16719 = vst [vmem:[#allocation7_spill] sm:$0xff] %v14088_v61  ;;  %v5722_v11 = vmul.f32 %v13540_v5, %v16721_v20  ;;  %v5648_v54 = vadd.f32 %v14074_v7, %v5647_v17  ;;  %8711 = vmatpush3.bf16.msra.mxu1 %v9328_v57  ;;  %v14098_v41 = vmul.f32 %v5719_v24, %v16722_v22  ;;  %v14103_v36 = vpop.eup %9743  ;;  %v9330_v14 = vld [vmem:[%s15379_s5 + $0x78] sm:$0xff]   ;;  %v16726_v57 = vld [vmem:[#allocation261_spill] sm:$0xff] }
 0x52c   : > { %16717 = vst [vmem:[#allocation184_spill] sm:$0xff] %v14085_v58  ;;  %v14101_v56 = vmul.f32 %v5720_v44, %v16724_v18  ;;  %8712 = vmatprep.subr.bf16.mxu1 %v9329_v50  ;;  %v14111_v17 = vmul.f32 %v5721_v49, %v16726_v57  ;;  %v16728_v63 = vld [vmem:[#allocation262_spill] sm:$0xff]  ;;  %v16730_v24 = vld [vmem:[#allocation8_spill] sm:$0xff]  ;;  %v5698_v22 = vmul.f32 %v14103_v36, %v13850_v6  ;;  %v16731_v57 = vld [vmem:[#allocation125_spill] sm:$0xff] }
 0x52d   : > { %16723 = vst [vmem:[#allocation33_spill] sm:$0xff] %v14098_v41  ;;  %v14114_v21 = vmul.f32 %v5722_v11, %v16728_v63  ;;  %v5723_v44 = vmul.f32 %v13723_v27, %v16730_v24  ;;  %9745 = vrcp.f32 %v5648_v54  ;;  %v5714_v18 = vmul.f32 %v14103_v36, %v13852_v8  ;;  %v16732_v63 = vld [vmem:[#allocation46_spill] sm:$0xff]  ;;  %v16734_v24 = vld [vmem:[#allocation51_spill] sm:$0xff]  ;;  %v16736_v8 = vld [vmem:[#allocation44_spill] sm:$0xff] }
 0x52e   : > { %16725 = vst [vmem:[#allocation63_spill] sm:$0xff] %v14101_v56  ;;  %16727 = vst [vmem:[#allocation154_spill] sm:$0xff] %v14111_v17  ;;  %v5724_v11 = vmul.f32 %v13833_v51, %v16731_v57  ;;  %v5725_v54 = vmul.f32 %v13661_v47, %v16734_v24  ;;  %v14134_v6 = vmul.f32 %v5698_v22, %v16735_v16  ;;  %v16737_v7 = vld [vmem:[#allocation213_spill] sm:$0xff]  ;;  %v16738_v49 = vld [vmem:[#allocation32_spill] sm:$0xff] }
 0x52f   : > { %16729 = vst [vmem:[#allocation291_spill] sm:$0xff] %v14114_v21  ;;  %v14129_v20 = vmul.f32 %v5723_v44, %v16732_v63  ;;  %8713 = vmatpush3.bf16.msra.mxu1 %v9329_v50  ;;  %v14137_v58 = vmul.f32 %v5714_v18, %v16736_v8  ;;  %v5726_v41 = vmul.f32 %v13777_v35, %v16737_v7  ;;  %v14146_v44 = vld [vmem:[%s15379_s5 + $0x80] sm:$0xff]   ;;  %v16741_v16 = vld [vmem:[#allocation56_spill] sm:$0xff]  ;;  %v16744_v8 = vld [vmem:[#allocation57_spill] sm:$0xff] }
 0x530   : > { %v5727_v17 = vmul.f32 %v13994_v2, %v16738_v49  ;;  %8714 = vmatprep.subr.bf16.mxu1 %v9330_v14  ;;  %v16739_v57 = vld [vmem:[#allocation55_spill] sm:$0xff]  ;;  %v14152_v50 = vmul.f32 %v5725_v54, %v16741_v16  ;;  %v16743_v22 = vld [vmem:[#allocation60_spill] sm:$0xff]  ;;  %v5730_v7 = vmul.f32 %v14103_v36, %v13855_v45  ;;  %v6010_v49 = vpack.c.bf16 %v14134_v6, %v13945_v25  ;;  %v16749_v56 = vld [vmem:[#allocation265_spill] sm:$0xff] }
 0x531   : > { %16733 = vst [vmem:[#allocation119_spill] sm:$0xff] %v14129_v20  ;;  %v14149_v63 = vmul.f32 %v5724_v11, %v16739_v57  ;;  %v5729_v18 = vmul.f32 %v13889_v3, %v16743_v22  ;;  %v14163_v21 = vmul.f32 %v5726_v41, %v16744_v8  ;;  %v16746_v11 = vld [vmem:[#allocation58_spill] sm:$0xff]  ;;  %v16747_v16 = vld [vmem:[#allocation264_spill] sm:$0xff]  ;;  %v16759_v24 = vld [vmem:[#allocation267_spill] sm:$0xff] }
 0x532   : > { %16742 = vst [vmem:[#allocation217_spill] sm:$0xff] %v14152_v50  ;;  %v14166_v57 = vmul.f32 %v5727_v17, %v16746_v11  ;;  %v14174_v45 = vmul.f32 %v5730_v7, %v16749_v56  ;;  %v16751_v61 = vld [vmem:[#allocation254_spill] sm:$0xff]  ;;  %v16752_v6 = vld [vmem:[#allocation12_spill] sm:$0xff] }
 0x533   : > { %16740 = vst [vmem:[#allocation218_spill] sm:$0xff] %v14149_v63  ;;  %16745 = vst [vmem:[#allocation219_spill] sm:$0xff] %v14163_v21  ;;  %v14171_v22 = vmul.f32 %v5729_v18, %v16747_v16  ;;  %v5731_v25 = vmul.f32 %v13231_v33, %v16751_v61  ;;  %8715 = vmatpush3.bf16.msra.mxu1 %v9330_v14  ;;  %v5732_v17 = vmul.f32 %v13349_v30, %v16752_v6  ;;  %v16753_v8 = vld [vmem:[#allocation188_spill] sm:$0xff]  ;;  %v16754_v54 = vld [vmem:[#allocation250_spill] sm:$0xff] }
 0x534   : > { %16750 = vst [vmem:[#allocation16_spill] sm:$0xff] %v14174_v45  ;;  %v5733_v11 = vmul.f32 %v13178_v10, %v16753_v8  ;;  %v5734_v18 = vmul.f32 %v13282_v9, %v16754_v54  ;;  %8732 = vmatprep.subr.bf16.mxu1 %v14146_v44  ;;  %v16755_v7 = vld [vmem:[#allocation266_spill] sm:$0xff]  ;;  %v16761_v8 = vld [vmem:[#allocation268_spill] sm:$0xff]  ;;  %v16763_v54 = vld [vmem:[#allocation269_spill] sm:$0xff] }
 0x535   : > { %16748 = vst [vmem:[#allocation15_spill] sm:$0xff] %v14171_v22  ;;  %v14190_v61 = vmul.f32 %v5731_v25, %v16755_v7  ;;  %v16757_v14 = vld [vmem:[#allocation18_spill] sm:$0xff]  ;;  %v14197_v50 = vmul.f32 %v5732_v17, %v16759_v24  ;;  %v16765_v63 = vld [vmem:[#allocation196_spill] sm:$0xff]  ;;  %v16768_v45 = vld [vmem:[#allocation259_spill] sm:$0xff] }
 0x536   : > { %v5735_v16 = vmul.f32 %v13480_v59, %v16757_v14  ;;  %v16758_v41 = vld [vmem:[#allocation194_spill] sm:$0xff]  ;;  %v14200_v21 = vmul.f32 %v5733_v11, %v16761_v8  ;;  %v14203_v20 = vmul.f32 %v5734_v18, %v16763_v54  ;;  %v5737_v56 = vmul.f32 %v13420_v31, %v16765_v63  ;;  %v16767_v22 = vld [vmem:[#allocation64_spill] sm:$0xff]  ;;  %v16769_v24 = vld [vmem:[#allocation11_spill] sm:$0xff] }
 0x537   : > { %16756 = vst [vmem:[#allocation223_spill] sm:$0xff] %v14190_v61  ;;  %v5736_v6 = vmul.f32 %v13595_v42, %v16758_v41  ;;  %16760 = vst [vmem:[#allocation224_spill] sm:$0xff] %v14197_v50  ;;  %v16766_v25 = vld [vmem:[#allocation270_spill] sm:$0xff]  ;;  %v5738_v41 = vmul.f32 %v13540_v5, %v16768_v45  ;;  %v5739_v17 = vmul.f32 %v13723_v27, %v16769_v24  ;;  %v14217_v11 = vpop.eup %9745  ;;  %v16770_v8 = vld [vmem:[#allocation65_spill] sm:$0xff] }
 0x538   : > { %16762 = vst [vmem:[#allocation225_spill] sm:$0xff] %v14200_v21  ;;  %16764 = vst [vmem:[#allocation226_spill] sm:$0xff] %v14203_v20  ;;  %v14208_v7 = vmul.f32 %v5735_v16, %v16766_v25  ;;  %v14224_v16 = vmul.f32 %v5737_v56, %v16770_v8  ;;  %v16771_v54 = vld [vmem:[#allocation216_spill] sm:$0xff]  ;;  %v5696_v45 = vmul.f32 %v14217_v11, %v13918_v55  ;;  %v16772_v18 = vld [vmem:[#allocation66_spill] sm:$0xff] }
 0x539   : > { %v14211_v14 = vmul.f32 %v5736_v6, %v16767_v22  ;;  %v5740_v22 = vmul.f32 %v13833_v51, %v16771_v54  ;;  %v5712_v6 = vmul.f32 %v14217_v11, %v13923_v32  ;;  %v5728_v25 = vmul.f32 %v14217_v11, %v13938_v12  ;;  %v16773_v56 = vld [vmem:[#allocation67_spill] sm:$0xff]  ;;  %v16774_v21 = vld [vmem:[#allocation68_spill] sm:$0xff]  ;;  %v16779_v24 = vld [vmem:[#allocation98_spill] sm:$0xff] }
 0x53a   : > { %v14237_v63 = vmul.f32 %v5738_v41, %v16772_v18  ;;  %v14240_v8 = vmul.f32 %v5739_v17, %v16773_v56  ;;  %v16775_v20 = vld [vmem:[#allocation96_spill] sm:$0xff]  ;;  %v16778_v12 = vld [vmem:[#allocation59_spill] sm:$0xff]  ;;  %v5742_v41 = vmul.f32 %v13777_v35, %v16779_v24  ;;  %v16780_v18 = vld [vmem:[#allocation69_spill] sm:$0xff]  ;;  %v5744_v56 = vmul.f32 %v14217_v11, %v13952_v4 }
 0x53b   : > { %v14243_v54 = vmul.f32 %v5740_v22, %v16774_v21  ;;  %v5741_v55 = vmul.f32 %v13661_v47, %v16775_v20  ;;  %v16776_v61 = vld [vmem:[#allocation232_spill] sm:$0xff]  ;;  %v14252_v15 = vmul.f32 %v5728_v25, %v16778_v12  ;;  %v16782_v20 = vld [vmem:[#allocation61_spill] sm:$0xff]  ;;  %v16783_v25 = vld [vmem:[#allocation70_spill] sm:$0xff] }
 0x53c   : > { %v5856_v32 = vmul.f32 %v5696_v45, %v16776_v61  ;;  %v16777_v50 = vld [vmem:[#allocation252_spill] sm:$0xff]  ;;  %v5743_v61 = vmul.f32 %v13994_v2, %v16782_v20  ;;  %v14271_v24 = vmul.f32 %v5742_v41, %v16783_v25  ;;  %v16785_v12 = vld [vmem:[#allocation271_spill] sm:$0xff]  ;;  %v16790_v4 = vld [vmem:[#allocation10_spill] sm:$0xff] }
 0x53d   : > { %v14249_v60 = vmul.f32 %v5712_v6, %v16777_v50  ;;  %v14261_v22 = vmul.f32 %v5741_v55, %v16780_v18  ;;  %v16787_v18 = vld [vmem:[#allocation25_spill] sm:$0xff]  ;;  %v16788_v21 = vld [vmem:[#allocation171_spill] sm:$0xff] }
 0x53e   : > { %v6009_v50 = vpack.c.bf16 %v5856_v32, %v14027_v1  ;;  %16784 = vst [vmem:[#allocation221_spill] sm:$0xff] %v14271_v24  ;;  %v14276_v55 = vmul.f32 %v5743_v61, %v16785_v12  ;;  %v5745_v20 = vmul.f32 %v13889_v3, %v16787_v18  ;;  %v5746_v1 = vmul.f32 %v14103_v36, %v13862_v46  ;;  %v16789_v25 = vld [vmem:[#allocation251_spill] sm:$0xff]  ;;  %v16792_v18 = vld [vmem:[#allocation272_spill] sm:$0xff]  ;;  %v16794_v46 = vld [vmem:[#allocation273_spill] sm:$0xff] }
 0x53f   : > { %16781 = vst [vmem:[#allocation227_spill] sm:$0xff] %v14261_v22  ;;  %v5747_v41 = vmul.f32 %v13231_v33, %v16788_v21  ;;  %v5748_v17 = vmul.f32 %v13349_v30, %v16789_v25  ;;  %v5749_v61 = vmul.f32 %v13178_v10, %v16790_v4  ;;  %v16791_v12 = vld [vmem:[#allocation71_spill] sm:$0xff]  ;;  %v16796_v32 = vld [vmem:[#allocation72_spill] sm:$0xff]  ;;  %v16797_v21 = vpack.c.bf16 %v13957_v37, %v13948_v0  ;;  %v16798_v25 = vld [vmem:[#allocation73_spill] sm:$0xff] }
 0x540   : > { %16786 = vst [vmem:[#allocation22_spill] sm:$0xff] %v14276_v55  ;;  %8696 = vmatprep.mubr.bf16.mxu1 %v6009_v50  ;;  %v14291_v6 = vmul.f32 %v5744_v56, %v16791_v12  ;;  %v14294_v45 = vmul.f32 %v5745_v20, %v16792_v18  ;;  %v14297_v50 = vmul.f32 %v5746_v1, %v16794_v46  ;;  %v16802_v56 = vld [vmem:[#allocation75_spill] sm:$0xff]  ;;  %v16804_v20 = vld [vmem:[#allocation258_spill] sm:$0xff]  ;;  %v16805_v0 = vld [vmem:[#allocation76_spill] sm:$0xff] }
 0x541   : > { %8697 = vmatmul.mubr.bf16.gmra.mrb[168].mxu1 %v6010_v49  ;;  %v5750_v22 = vmul.f32 %v13282_v9, %v16796_v32  ;;  %v14305_v24 = vmul.f32 %v5747_v41, %v16798_v25  ;;  %v16800_v49 = vld [vmem:[#allocation274_spill] sm:$0xff]  ;;  %v14311_v12 = vmul.f32 %v5749_v61, %v16802_v56  ;;  %v5751_v1 = vmul.f32 %v13480_v59, %v16804_v20  ;;  %v16807_v41 = vld [vmem:[#allocation95_spill] sm:$0xff]  ;;  %v16808_v61 = vld [vmem:[#allocation77_spill] sm:$0xff] }
 0x542   : > { %16793 = vst [vmem:[#allocation233_spill] sm:$0xff] %v14294_v45  ;;  %16795 = vst [vmem:[#allocation236_spill] sm:$0xff] %v14297_v50  ;;  %8716 = vmatprep.mubr.bf16.mxu1 %v16797_v21  ;;  %v14308_v4 = vmul.f32 %v5748_v17, %v16800_v49  ;;  %v5752_v46 = vmul.f32 %v13595_v42, %v16807_v41  ;;  %v16809_v25 = vld [vmem:[#allocation228_spill] sm:$0xff]  ;;  %v16810_v56 = vld [vmem:[#allocation86_spill] sm:$0xff] }
 0x543   : > { %16799 = vst [vmem:[#allocation122_spill] sm:$0xff] %v14305_v24  ;;  %16803 = vst [vmem:[#allocation191_spill] sm:$0xff] %v14311_v12  ;;  %v14320_v37 = vmul.f32 %v5750_v22, %v16805_v0  ;;  %v14327_v21 = vmul.f32 %v5751_v1, %v16808_v61  ;;  %v5753_v49 = vmul.f32 %v13420_v31, %v16809_v25  ;;  %v16811_v22 = vld [vmem:[#allocation78_spill] sm:$0xff]  ;;  %v16812_v18 = vld [vmem:[#allocation97_spill] sm:$0xff] }
 0x544   : > { %16801 = vst [vmem:[#allocation237_spill] sm:$0xff] %v14308_v4  ;;  %v5754_v20 = vmul.f32 %v13540_v5, %v16810_v56  ;;  %v14336_v0 = vmul.f32 %v5752_v46, %v16811_v22  ;;  %v5755_v41 = vmul.f32 %v13723_v27, %v16812_v18  ;;  %v16813_v45 = vld [vmem:[#allocation256_spill] sm:$0xff]  ;;  %v16814_v1 = vld [vmem:[#allocation79_spill] sm:$0xff]  ;;  %v16816_v4 = vld [vmem:[#allocation101_spill] sm:$0xff]  ;;  %v5760_v18 = vmul.f32 %v14217_v11, %v13961_v48 }
 0x545   : > { %16806 = vst [vmem:[#allocation27_spill] sm:$0xff] %v14320_v37  ;;  %v5756_v17 = vmul.f32 %v13833_v51, %v16813_v45  ;;  %v14343_v61 = vmul.f32 %v5753_v49, %v16814_v1  ;;  %v16815_v24 = vld [vmem:[#allocation80_spill] sm:$0xff]  ;;  %v5757_v56 = vmul.f32 %v13661_v47, %v16816_v4  ;;  %v16818_v45 = vld [vmem:[#allocation81_spill] sm:$0xff]  ;;  %v16820_v49 = vld [vmem:[#allocation82_spill] sm:$0xff]  ;;  %v16830_v48 = vpack.c.bf16 %v13990_v28, %v13987_v40 }
 0x546   : > { %v14346_v25 = vmul.f32 %v5754_v20, %v16815_v24  ;;  %v16817_v50 = vld [vmem:[#allocation104_spill] sm:$0xff]  ;;  %v14358_v22 = vmul.f32 %v5755_v41, %v16818_v45  ;;  %v16821_v24 = vld [vmem:[#allocation150_spill] sm:$0xff]  ;;  %v16826_v41 = vpack.c.bf16 %v13978_v29, %v13965_v34  ;;  %v16827_v45 = vld [vmem:[#allocation275_spill] sm:$0xff] }
 0x547   : > { %v5758_v32 = vmul.f32 %v13777_v35, %v16817_v50  ;;  %v9332_v46 = vld [vmem:[%s15379_s5 + $0x88] sm:$0xff]   ;;  %v14361_v1 = vmul.f32 %v5756_v17, %v16820_v49  ;;  %v5759_v20 = vmul.f32 %v13994_v2, %v16821_v24  ;;  %v16822_v50 = vld [vmem:[#allocation87_spill] sm:$0xff]  ;;  %v16824_v37 = vld [vmem:[#allocation90_spill] sm:$0xff] }
 0x548   : > { %16819 = vst [vmem:[#allocation28_spill] sm:$0xff] %v14358_v22  ;;  %v14368_v12 = vmul.f32 %v5757_v56, %v16822_v50  ;;  %v16829_v24 = vld [vmem:[#allocation29_spill] sm:$0xff]  ;;  %v16831_v29 = vld [vmem:[#allocation276_spill] sm:$0xff]  ;;  %v16838_v28 = vld [vmem:[#allocation74_spill] sm:$0xff] }
 0x549   : > { %v14371_v55 = vmul.f32 %v5758_v32, %v16824_v37  ;;  %8717 = vmatmul.mubr.bf16.vlgmr.msra.gmra.mrb[156].mxu1 %v16826_v41  ;;  %v14381_v49 = vmul.f32 %v5759_v20, %v16827_v45  ;;  %v5761_v56 = vmul.f32 %v13889_v3, %v16829_v24  ;;  %v5762_v32 = vmul.f32 %v14103_v36, %v13870_v43  ;;  %v16833_v20 = vld [vmem:[#allocation177_spill] sm:$0xff]  ;;  %v16836_v45 = vld [vmem:[#allocation94_spill] sm:$0xff] }
 0x54a   : > { %16823 = vst [vmem:[#allocation30_spill] sm:$0xff] %v14368_v12  ;;  %8733 = vmatpush3.bf16.msra.mxu1 %v14146_v44  ;;  %8720 = vmatprep.mubr.bf16.mxu1 %v16830_v48  ;;  %v14394_v37 = vmul.f32 %v5760_v18, %v16831_v29  ;;  %v5763_v50 = vmul.f32 %v13231_v33, %v16833_v20  ;;  %v9333_v43 = vld [vmem:[%s15379_s5 + $0x90] sm:$0xff]   ;;  %v16839_v48 = vld [vmem:[#allocation38_spill] sm:$0xff]  ;;  %v16840_v20 = vld [vmem:[#allocation99_spill] sm:$0xff] }
 0x54b   : > { %16825 = vst [vmem:[#allocation241_spill] sm:$0xff] %v14371_v55  ;;  %16828 = vst [vmem:[#allocation243_spill] sm:$0xff] %v14381_v49  ;;  %8734 = vmatprep.subr.bf16.mxu1 %v9332_v46  ;;  %v16834_v41 = vld [vmem:[#allocation93_spill] sm:$0xff]  ;;  %v14405_v40 = vmul.f32 %v5762_v32, %v16836_v45  ;;  %v5764_v24 = vmul.f32 %v13349_v30, %v16838_v28  ;;  %v5765_v18 = vmul.f32 %v13178_v10, %v16839_v48  ;;  %v16841_v17 = vld [vmem:[#allocation170_spill] sm:$0xff] }
 0x54c   : > { %16832 = vst [vmem:[#allocation245_spill] sm:$0xff] %v14394_v37  ;;  %v14402_v44 = vmul.f32 %v5761_v56, %v16834_v41  ;;  %v14414_v34 = vmul.f32 %v5763_v50, %v16840_v20  ;;  %v5766_v4 = vmul.f32 %v13282_v9, %v16841_v17  ;;  %v16842_v56 = vld [vmem:[#allocation85_spill] sm:$0xff]  ;;  %v16843_v45 = vld [vmem:[#allocation102_spill] sm:$0xff]  ;;  %v16846_v55 = vld [vmem:[#allocation100_spill] sm:$0xff] }
 0x54d   : > { %16837 = vst [vmem:[#allocation231_spill] sm:$0xff] %v14405_v40  ;;  %v5767_v41 = vmul.f32 %v13480_v59, %v16842_v56  ;;  %v14423_v28 = vmul.f32 %v5764_v24, %v16843_v45  ;;  %v16844_v12 = vld [vmem:[#allocation105_spill] sm:$0xff]  ;;  %v5768_v29 = vmul.f32 %v13595_v42, %v16846_v55  ;;  %v16847_v50 = vld [vmem:[#allocation106_spill] sm:$0xff]  ;;  %v16848_v17 = vld [vmem:[#allocation111_spill] sm:$0xff] }
 0x54e   : > { %16835 = vst [vmem:[#allocation247_spill] sm:$0xff] %v14402_v44  ;;  %v14426_v48 = vmul.f32 %v5765_v18, %v16844_v12  ;;  %8735 = vmatpush3.bf16.msra.mxu1 %v9332_v46  ;;  %v14431_v20 = vmul.f32 %v5766_v4, %v16847_v50  ;;  %v16849_v56 = vld [vmem:[#allocation45_spill] sm:$0xff]  ;;  %v16850_v32 = vld [vmem:[#allocation92_spill] sm:$0xff]  ;;  %v9334_v12 = vld [vmem:[%s15379_s5 + $0x98] sm:$0xff]  }
 0x54f   : > { %v14434_v49 = vmul.f32 %v5767_v41, %v16848_v17  ;;  %v5769_v37 = vmul.f32 %v13420_v31, %v16849_v56  ;;  %v5770_v24 = vmul.f32 %v13540_v5, %v16850_v32  ;;  %8736 = vmatprep.subr.bf16.mxu1 %v9333_v43  ;;  %v16851_v46 = vld [vmem:[#allocation114_spill] sm:$0xff]  ;;  %v16852_v18 = vld [vmem:[#allocation103_spill] sm:$0xff]  ;;  %v16854_v17 = vld [vmem:[#allocation117_spill] sm:$0xff] }
 0x550   : > { %16845 = vst [vmem:[#allocation121_spill] sm:$0xff] %v14426_v48  ;;  %v14446_v4 = vmul.f32 %v5768_v29, %v16851_v46  ;;  %v5771_v41 = vmul.f32 %v13723_v27, %v16852_v18  ;;  %v16853_v45 = vld [vmem:[#allocation107_spill] sm:$0xff]  ;;  %v16855_v44 = vld [vmem:[#allocation118_spill] sm:$0xff]  ;;  %v16856_v22 = vld [vmem:[#allocation141_spill] sm:$0xff]  ;;  %v16857_v29 = vpack.c.bf16 %v14016_v23, %v14010_v38 }
 0x551   : > { %v5772_v50 = vmul.f32 %v13833_v51, %v16853_v45  ;;  %v14455_v56 = vmul.f32 %v5769_v37, %v16854_v17  ;;  %v14458_v40 = vmul.f32 %v5770_v24, %v16855_v44  ;;  %v5773_v55 = vmul.f32 %v13661_v47, %v16856_v22  ;;  %v16858_v18 = vld [vmem:[#allocation129_spill] sm:$0xff]  ;;  %v16860_v32 = vld [vmem:[#allocation130_spill] sm:$0xff]  ;;  %v16862_v37 = vld [vmem:[#allocation144_spill] sm:$0xff] }
 0x552   : > { %8721 = vmatmul.mubr.bf16.gmra.mrb[160].mxu1 %v16857_v29  ;;  %v14468_v45 = vmul.f32 %v5771_v41, %v16858_v18  ;;  %v5774_v44 = vmul.f32 %v13777_v35, %v16862_v37  ;;  %v16863_v22 = vpack.c.bf16 %v14039_v53, %v14021_v52  ;;  %v16864_v38 = vld [vmem:[#allocation131_spill] sm:$0xff]  ;;  %v5775_v41 = vmul.f32 %v13994_v2, %v13823_v19  ;;  %v16868_v17 = vld [vmem:[#allocation290_spill] sm:$0xff]  ;;  %v16869_v29 = vld [vmem:[#allocation137_spill] sm:$0xff] }
 0x553   : > { %v14471_v48 = vmul.f32 %v5772_v50, %v16860_v32  ;;  %8737 = vmatpush3.bf16.msra.mxu1 %v9333_v43  ;;  %v14481_v24 = vmul.f32 %v5773_v55, %v16864_v38  ;;  %v9335_v50 = vld [vmem:[%s15379_s5 + $0xa0] sm:$0xff]   ;;  %v16866_v32 = vld [vmem:[#allocation134_spill] sm:$0xff]  ;;  %v5776_v52 = vmul.f32 %v14217_v11, %v13971_v39  ;;  %v5777_v55 = vmul.f32 %v13889_v3, %v16868_v17  ;;  %v16871_v37 = vld [vmem:[#allocation49_spill] sm:$0xff] }
 0x554   : > { %16859 = vst [vmem:[#allocation214_spill] sm:$0xff] %v14468_v45  ;;  %8724 = vmatprep.mubr.bf16.mxu1 %v16863_v22  ;;  %8738 = vmatprep.subr.bf16.mxu1 %v9334_v12  ;;  %v14491_v53 = vmul.f32 %v5774_v44, %v16866_v32  ;;  %v14498_v18 = vmul.f32 %v5775_v41, %v16869_v29  ;;  %v16872_v38 = vld [vmem:[#allocation174_spill] sm:$0xff]  ;;  %v16875_v23 = vld [vmem:[#allocation139_spill] sm:$0xff]  ;;  %v16877_v41 = vld [vmem:[#allocation48_spill] sm:$0xff] }
 0x555   : > { %16861 = vst [vmem:[#allocation35_spill] sm:$0xff] %v14471_v48  ;;  %16865 = vst [vmem:[#allocation31_spill] sm:$0xff] %v14481_v24  ;;  %v5778_v19 = vmul.f32 %v14103_v36, %v13875_v62  ;;  %v5779_v22 = vmul.f32 %v13231_v33, %v16871_v37  ;;  %v5780_v43 = vmul.f32 %v13349_v30, %v16872_v38  ;;  %v16873_v32 = vld [vmem:[#allocation138_spill] sm:$0xff]  ;;  %v16879_v37 = vld [vmem:[#allocation145_spill] sm:$0xff] }
 0x556   : > { %16867 = vst [vmem:[#allocation36_spill] sm:$0xff] %v14491_v53  ;;  %16870 = vst [vmem:[#allocation37_spill] sm:$0xff] %v14498_v18  ;;  %v14509_v39 = vmul.f32 %v5776_v52, %v16873_v32  ;;  %v14512_v17 = vmul.f32 %v5777_v55, %v16875_v23  ;;  %v5781_v29 = vmul.f32 %v13178_v10, %v16877_v41  ;;  %v16878_v62 = vld [vmem:[#allocation142_spill] sm:$0xff]  ;;  %v9336_v23 = vld [vmem:[%s15379_s5 + $0xa8] sm:$0xff]  }
 0x557   : > { %8739 = vmatpush3.bf16.msra.mxu1 %v9334_v12  ;;  %v14517_v46 = vmul.f32 %v5778_v19, %v16878_v62  ;;  %v14520_v45 = vmul.f32 %v5779_v22, %v16879_v37  ;;  %v16881_v38 = vld [vmem:[#allocation146_spill] sm:$0xff]  ;;  %v16883_v55 = vld [vmem:[#allocation147_spill] sm:$0xff]  ;;  %v16886_v41 = vld [vmem:[#allocation140_spill] sm:$0xff] }
 0x558   : > { %16874 = vst [vmem:[#allocation249_spill] sm:$0xff] %v14509_v39  ;;  %16876 = vst [vmem:[#allocation40_spill] sm:$0xff] %v14512_v17  ;;  %v14523_v48 = vmul.f32 %v5780_v43, %v16881_v38  ;;  %v16882_v44 = vld [vmem:[#allocation50_spill] sm:$0xff]  ;;  %8740 = vmatprep.subr.bf16.mxu1 %v9335_v50  ;;  %v14533_v19 = vmul.f32 %v5781_v29, %v16883_v55  ;;  %v16885_v32 = vld [vmem:[#allocation91_spill] sm:$0xff]  ;;  %v5784_v43 = vmul.f32 %v13595_v42, %v16886_v41 }
 0x559   : > { %16880 = vst [vmem:[#allocation41_spill] sm:$0xff] %v14520_v45  ;;  %v5782_v52 = vmul.f32 %v13282_v9, %v16882_v44  ;;  %v5783_v22 = vmul.f32 %v13480_v59, %v16885_v32  ;;  %v16887_v37 = vld [vmem:[#allocation277_spill] sm:$0xff]  ;;  %v16889_v24 = vld [vmem:[#allocation84_spill] sm:$0xff]  ;;  %v16891_v55 = vld [vmem:[#allocation242_spill] sm:$0xff] }
 0x55a   : > { %16884 = vst [vmem:[#allocation192_spill] sm:$0xff] %v14533_v19  ;;  %v5785_v12 = vmul.f32 %v13420_v31, %v16889_v24  ;;  %v16890_v29 = vld [vmem:[#allocation9_spill] sm:$0xff]  ;;  %v16893_v32 = vld [vmem:[#allocation155_spill] sm:$0xff]  ;;  %v16895_v41 = vld [vmem:[#allocation158_spill] sm:$0xff]  ;;  %v16899_v24 = vpack.c.bf16 %v14249_v60, %v14050_v13 }
 0x55b   : > { %v14544_v38 = vmul.f32 %v5782_v52, %v16887_v37  ;;  %v16892_v18 = vpack.c.bf16 %v16890_v29, %v16891_v55  ;;  %v14552_v39 = vmul.f32 %v5783_v22, %v16893_v32  ;;  %v14555_v53 = vmul.f32 %v5784_v43, %v16895_v41  ;;  %v16897_v44 = vld [vmem:[#allocation136_spill] sm:$0xff]  ;;  %v16898_v62 = vld [vmem:[#allocation143_spill] sm:$0xff]  ;;  %8741 = vmatpush3.bf16.msra.mxu1 %v9335_v50  ;;  %v16900_v37 = vld [vmem:[#allocation161_spill] sm:$0xff] }
 0x55c   : > { %v5786_v17 = vmul.f32 %v13540_v5, %v16897_v44  ;;  %v5787_v52 = vmul.f32 %v13723_v27, %v16898_v62  ;;  %v14567_v22 = vmul.f32 %v5785_v12, %v16900_v37  ;;  %v16902_v29 = vld [vmem:[#allocation112_spill] sm:$0xff]  ;;  %8742 = vmatprep.subr.bf16.mxu1 %v9336_v23  ;;  %v9337_v44 = vld [vmem:[%s15379_s5 + $0xb0] sm:$0xff]   ;;  %v16903_v62 = vld [vmem:[#allocation162_spill] sm:$0xff] }
 0x55d   : > { %16888 = vst [vmem:[#allocation253_spill] sm:$0xff] %v14544_v38  ;;  %8725 = vmatmul.mubr.bf16.gmra.mrb[164].mxu1 %v16892_v18  ;;  %16894 = vst [vmem:[#allocation156_spill] sm:$0xff] %v14552_v39  ;;  %v5788_v43 = vmul.f32 %v13833_v51, %v16902_v29  ;;  %v16905_v60 = vld [vmem:[#allocation163_spill] sm:$0xff]  ;;  %v16907_v32 = vld [vmem:[#allocation173_spill] sm:$0xff] }
 0x55e   : > { %16896 = vst [vmem:[#allocation222_spill] sm:$0xff] %v14555_v53  ;;  %8728 = vmatprep.mubr.bf16.mxu1 %v16899_v24  ;;  %16901 = vst [vmem:[#allocation255_spill] sm:$0xff] %v14567_v22  ;;  %v14577_v13 = vmul.f32 %v5786_v17, %v16903_v62  ;;  %v14580_v55 = vmul.f32 %v5787_v52, %v16905_v60  ;;  %v5789_v12 = vmul.f32 %v13661_v47, %v16907_v32  ;;  %v16908_v41 = vld [vmem:[#allocation166_spill] sm:$0xff]  ;;  %v16910_v37 = vld [vmem:[#allocation176_spill] sm:$0xff] }
 0x55f   : > { %v14585_v24 = vmul.f32 %v5788_v43, %v16908_v41  ;;  %v5790_v29 = vmul.f32 %v13777_v35, %v16910_v37  ;;  %v16911_v18 = vld [vmem:[#allocation26_spill] sm:$0xff]  ;;  %v16912_v38 = vld [vmem:[#allocation153_spill] sm:$0xff]  ;;  %v16915_v60 = vld [vmem:[#allocation108_spill] sm:$0xff]  ;;  %8743 = vmatpush3.bf16.msra.mxu1 %v9336_v23 }
 0x560   : > { %16904 = vst [vmem:[#allocation198_spill] sm:$0xff] %v14577_v13  ;;  %16906 = vst [vmem:[#allocation263_spill] sm:$0xff] %v14580_v55  ;;  %v5791_v19 = vmul.f32 %v13994_v2, %v16911_v18  ;;  %v5792_v50 = vmul.f32 %v14217_v11, %v16912_v38  ;;  %v16913_v52 = vld [vmem:[#allocation278_spill] sm:$0xff]  ;;  %v5793_v32 = vmul.f32 %v13889_v3, %v16915_v60  ;;  %v16916_v43 = vld [vmem:[#allocation183_spill] sm:$0xff]  ;;  %8744 = vmatprep.subr.bf16.mxu1 %v9337_v44 }
 0x561   : > { %16909 = vst [vmem:[#allocation42_spill] sm:$0xff] %v14585_v24  ;;  %v14596_v62 = vmul.f32 %v5789_v12, %v16913_v52  ;;  %v5794_v41 = vmul.f32 %v14103_v36, %v16916_v43  ;;  %v16917_v18 = vld [vmem:[#allocation279_spill] sm:$0xff]  ;;  %v16919_v38 = vld [vmem:[#allocation280_spill] sm:$0xff]  ;;  %v16921_v17 = vld [vmem:[#allocation281_spill] sm:$0xff] }
 0x562   : > { %v14605_v39 = vmul.f32 %v5790_v29, %v16917_v18  ;;  %v14608_v53 = vmul.f32 %v5791_v19, %v16919_v38  ;;  %v14611_v22 = vmul.f32 %v5792_v50, %v16921_v17  ;;  %v9338_v12 = vld [vmem:[%s15379_s5 + $0xb8] sm:$0xff]   ;;  %v16925_v23 = vld [vmem:[#allocation169_spill] sm:$0xff]  ;;  %v16927_v37 = vld [vmem:[#allocation123_spill] sm:$0xff] }
 0x563   : > { %16914 = vst [vmem:[#allocation43_spill] sm:$0xff] %v14596_v62  ;;  %v16923_v52 = vld [vmem:[#allocation282_spill] sm:$0xff]  ;;  %v14620_v43 = vmul.f32 %v5794_v41, %v16925_v23  ;;  %v5795_v29 = vmul.f32 %v13231_v33, %v16927_v37  ;;  %v16928_v18 = vld [vmem:[#allocation83_spill] sm:$0xff]  ;;  %v16929_v38 = vld [vmem:[#allocation120_spill] sm:$0xff]  ;;  %v16931_v41 = vpack.c.bf16 %v14137_v58, %v14058_v26  ;;  %8745 = vmatpush3.bf16.msra.mxu1 %v9337_v44 }
 0x564   : > { %16918 = vst [vmem:[#allocation164_spill] sm:$0xff] %v14605_v39  ;;  %16920 = vst [vmem:[#allocation230_spill] sm:$0xff] %v14608_v53  ;;  %v14617_v60 = vmul.f32 %v5793_v32, %v16923_v52  ;;  %v5796_v19 = vmul.f32 %v13349_v30, %v16928_v18  ;;  %v5797_v55 = vmul.f32 %v13178_v10, %v16929_v38  ;;  %v16930_v32 = vld [vmem:[#allocation127_spill] sm:$0xff]  ;;  %v16932_v23 = vld [vmem:[#allocation178_spill] sm:$0xff]  ;;  %8746 = vmatprep.subr.bf16.mxu1 %v9338_v12 }
 0x565   : > { %16922 = vst [vmem:[#allocation257_spill] sm:$0xff] %v14611_v22  ;;  %16926 = vst [vmem:[#allocation261_spill] sm:$0xff] %v14620_v43  ;;  %v5798_v52 = vmul.f32 %v13282_v9, %v16930_v32  ;;  %8729 = vmatmul.mubr.bf16.gmra.mrb[168].mxu1 %v16931_v41  ;;  %v14640_v18 = vmul.f32 %v5795_v29, %v16932_v23  ;;  %v16934_v50 = vld [vmem:[#allocation179_spill] sm:$0xff]  ;;  %v16937_v38 = vld [vmem:[#allocation152_spill] sm:$0xff] }
 0x566   : > { %16924 = vst [vmem:[#allocation260_spill] sm:$0xff] %v14617_v60  ;;  %v14643_v62 = vmul.f32 %v5796_v19, %v16934_v50  ;;  %v16936_v17 = vld [vmem:[#allocation135_spill] sm:$0xff]  ;;  %v16938_v22 = vld [vmem:[#allocation110_spill] sm:$0xff]  ;;  %v16940_v39 = vld [vmem:[#allocation181_spill] sm:$0xff] }
 0x567   : > { %16933 = vst [vmem:[#allocation262_spill] sm:$0xff] %v14640_v18  ;;  %v5799_v53 = vmul.f32 %v13480_v59, %v16936_v17  ;;  %v16939_v32 = vpack.c.bf16 %v16937_v38, %v16938_v22  ;;  %v14651_v58 = vmul.f32 %v5797_v55, %v16940_v39  ;;  %v16942_v26 = vld [vmem:[#allocation185_spill] sm:$0xff]  ;;  %v16944_v37 = vld [vmem:[#allocation172_spill] sm:$0xff]  ;;  %v9339_v19 = vld [vmem:[%s15379_s5 + $0xc0] sm:$0xff]   ;;  %8747 = vmatpush3.bf16.msra.mxu1 %v9338_v12 }
 0x568   : > { %16935 = vst [vmem:[#allocation8_spill] sm:$0xff] %v14643_v62  ;;  %v14654_v41 = vmul.f32 %v5798_v52, %v16942_v26  ;;  %v5800_v29 = vmul.f32 %v13595_v42, %v16944_v37  ;;  %v16945_v50 = vld [vmem:[#allocation186_spill] sm:$0xff]  ;;  %v16947_v17 = vld [vmem:[#allocation89_spill] sm:$0xff]  ;;  %v16948_v55 = vld [vmem:[#allocation168_spill] sm:$0xff]  ;;  %8764 = vmatprep.subr.bf16.mxu1 %v9339_v19 }
 0x569   : > { %8748 = vmatprep.mubr.bf16.mxu1 %v16939_v32  ;;  %16941 = vst [vmem:[#allocation125_spill] sm:$0xff] %v14651_v58  ;;  %v14664_v22 = vmul.f32 %v5799_v53, %v16945_v50  ;;  %v5801_v39 = vmul.f32 %v13420_v31, %v16947_v17  ;;  %v5802_v52 = vmul.f32 %v13540_v5, %v16948_v55  ;;  %v16949_v23 = vld [vmem:[#allocation187_spill] sm:$0xff]  ;;  %v16952_v60 = vld [vmem:[#allocation148_spill] sm:$0xff]  ;;  %v16953_v53 = vld [vmem:[#allocation189_spill] sm:$0xff] }
 0x56a   : > { %16943 = vst [vmem:[#allocation46_spill] sm:$0xff] %v14654_v41  ;;  %v14673_v38 = vmul.f32 %v5800_v29, %v16949_v23  ;;  %v16951_v32 = vld [vmem:[#allocation175_spill] sm:$0xff]  ;;  %v5804_v44 = vmul.f32 %v13833_v51, %v16952_v60  ;;  %v16955_v18 = vld [vmem:[#allocation193_spill] sm:$0xff]  ;;  %v16957_v62 = vld [vmem:[#allocation206_spill] sm:$0xff] }
 0x56b   : > { %16946 = vst [vmem:[#allocation51_spill] sm:$0xff] %v14664_v22  ;;  %v5803_v26 = vmul.f32 %v13723_v27, %v16951_v32  ;;  %v14680_v50 = vmul.f32 %v5801_v39, %v16953_v53  ;;  %v14683_v17 = vmul.f32 %v5802_v52, %v16955_v18  ;;  %v5805_v55 = vmul.f32 %v13661_v47, %v16957_v62  ;;  %v16958_v43 = vld [vmem:[#allocation208_spill] sm:$0xff]  ;;  %v16959_v23 = vld [vmem:[#allocation283_spill] sm:$0xff]  ;;  %v16963_v39 = vld [vmem:[#allocation109_spill] sm:$0xff] }
 0x56c   : > { %16950 = vst [vmem:[#allocation235_spill] sm:$0xff] %v14673_v38  ;;  %v5806_v37 = vmul.f32 %v13777_v35, %v16958_v43  ;;  %v16961_v60 = vld [vmem:[#allocation284_spill] sm:$0xff]  ;;  %v5807_v18 = vmul.f32 %v13994_v2, %v16963_v39  ;;  %v16964_v43 = vld [vmem:[#allocation285_spill] sm:$0xff]  ;;  %v16966_v53 = vld [vmem:[#allocation195_spill] sm:$0xff] }
 0x56d   : > { %16954 = vst [vmem:[#allocation44_spill] sm:$0xff] %v14680_v50  ;;  %16956 = vst [vmem:[#allocation213_spill] sm:$0xff] %v14683_v17  ;;  %v14692_v32 = vmul.f32 %v5803_v26, %v16959_v23  ;;  %v14695_v58 = vmul.f32 %v5804_v44, %v16961_v60  ;;  %v9340_v62 = vld [vmem:[%s15379_s5 + $0xc8] sm:$0xff]   ;;  %v14705_v52 = vmul.f32 %v5805_v55, %v16964_v43  ;;  %v16968_v23 = vld [vmem:[#allocation289_spill] sm:$0xff] }
 0x56e   : > { %v14708_v26 = vmul.f32 %v5806_v37, %v16966_v53  ;;  %v5808_v44 = vmul.f32 %v14217_v11, %v16968_v23  ;;  %v16969_v39 = vld [vmem:[#allocation197_spill] sm:$0xff]  ;;  %v16972_v41 = vld [vmem:[#allocation215_spill] sm:$0xff]  ;;  %v16974_v43 = vld [vmem:[#allocation184_spill] sm:$0xff] }
 0x56f   : > { %16960 = vst [vmem:[#allocation32_spill] sm:$0xff] %v14692_v32  ;;  %16962 = vst [vmem:[#allocation55_spill] sm:$0xff] %v14695_v58  ;;  %v14715_v29 = vmul.f32 %v5807_v18, %v16969_v39  ;;  %v16971_v22 = vld [vmem:[#allocation113_spill] sm:$0xff]  ;;  %v5810_v12 = vmul.f32 %v14103_v36, %v16972_v41  ;;  %v16973_v55 = vld [vmem:[#allocation7_spill] sm:$0xff] }
 0x570   : > { %16965 = vst [vmem:[#allocation56_spill] sm:$0xff] %v14705_v52  ;;  %16967 = vst [vmem:[#allocation60_spill] sm:$0xff] %v14708_v26  ;;  %v5809_v38 = vmul.f32 %v13889_v3, %v16971_v22  ;;  %v16975_v50 = vpack.c.bf16 %v16973_v55, %v16974_v43  ;;  %v16976_v53 = vld [vmem:[#allocation201_spill] sm:$0xff]  ;;  %v16978_v60 = vld [vmem:[#allocation126_spill] sm:$0xff] }
 0x571   : > { %16970 = vst [vmem:[#allocation57_spill] sm:$0xff] %v14715_v29  ;;  %v14727_v23 = vmul.f32 %v5808_v44, %v16976_v53  ;;  %v5811_v18 = vmul.f32 %v13231_v33, %v16978_v60  ;;  %v16979_v39 = vld [vmem:[#allocation88_spill] sm:$0xff]  ;;  %v16980_v22 = vld [vmem:[#allocation47_spill] sm:$0xff]  ;;  %v16982_v17 = vld [vmem:[#allocation33_spill] sm:$0xff] }
 0x572   : > { %8749 = vmatmul.mubr.bf16.vlgmr.msra.gmra.mrb[156].mxu1 %v16975_v50  ;;  %v5812_v32 = vmul.f32 %v13349_v30, %v16979_v39  ;;  %v14734_v58 = vmul.f32 0.01, %v16980_v22  ;;  %v16981_v41 = vld [vmem:[#allocation63_spill] sm:$0xff]  ;;  %v16984_v50 = vld [vmem:[#allocation202_spill] sm:$0xff]  ;;  %v16988_v53 = vld [vmem:[#allocation124_spill] sm:$0xff]  ;;  %vm2952_vm9 = vcmp.ge.f32.partialorder %v16980_v22, 0.0 }
 0x573   : > { %16977 = vst [vmem:[#allocation58_spill] sm:$0xff] %v14727_v23  ;;  %8765 = vmatpush3.bf16.msra.mxu1 %v9339_v19  ;;  %v16983_v55 = vpack.c.bf16 %v16981_v41, %v16982_v17  ;;  %v14740_v43 = vmul.f32 %v5809_v38, %v16984_v50  ;;  %v16986_v37 = vld [vmem:[#allocation203_spill] sm:$0xff]  ;;  %v5813_v60 = vmul.f32 %v13178_v10, %v16988_v53  ;;  %v9341_v39 = vld [vmem:[%s15379_s5 + $0xd0] sm:$0xff]   ;;  %v16994_v50 = vld [vmem:[#allocation210_spill] sm:$0xff] }
 0x574   : > { %v14743_v44 = vmul.f32 %v5810_v12, %v16986_v37  ;;  %8766 = vmatprep.subr.bf16.mxu1 %v9340_v62  ;;  %v16989_v52 = vld [vmem:[#allocation205_spill] sm:$0xff]  ;;  %v16996_v26 = vld [vmem:[#allocation167_spill] sm:$0xff]  ;;  %v16997_v13 = vld [vmem:[#allocation204_spill] sm:$0xff] }
 0x575   : > { %8752 = vmatprep.mubr.bf16.mxu1 %v16983_v55  ;;  %16985 = vst [vmem:[#allocation264_spill] sm:$0xff] %v14740_v43  ;;  %v14753_v17 = vmul.f32 %v5811_v18, %v16989_v52  ;;  %v16991_v41 = vld [vmem:[#allocation209_spill] sm:$0xff]  ;;  %v16993_v55 = vld [vmem:[#allocation128_spill] sm:$0xff]  ;;  %v14763_v53 = vmul.f32 %v5813_v60, %v16994_v50  ;;  %v5815_v24 = vmul.f32 %v13480_v59, %v16996_v26  ;;  %v17002_v60 = vld [vmem:[#allocation286_spill] sm:$0xff] }
 0x576   : > { %16987 = vst [vmem:[#allocation265_spill] sm:$0xff] %v14743_v44  ;;  %v14756_v38 = vmul.f32 %v5812_v32, %v16991_v41  ;;  %v5814_v12 = vmul.f32 %v13282_v9, %v16993_v55  ;;  %v5816_v19 = vmul.f32 %v13595_v42, %v16997_v13  ;;  %v16998_v32 = vld [vmem:[#allocation211_spill] sm:$0xff]  ;;  %v17000_v41 = vld [vmem:[#allocation133_spill] sm:$0xff]  ;;  %v17001_v29 = vld [vmem:[#allocation200_spill] sm:$0xff] }
 0x577   : > { %16990 = vst [vmem:[#allocation254_spill] sm:$0xff] %v14753_v17  ;;  %16995 = vst [vmem:[#allocation188_spill] sm:$0xff] %v14763_v53  ;;  %v5817_v55 = vmul.f32 %v13420_v31, %v17000_v41  ;;  %v5818_v37 = vmul.f32 %v13540_v5, %v17001_v29  ;;  %8767 = vmatpush3.bf16.msra.mxu1 %v9340_v62  ;;  %v14779_v50 = vmul.f32 %v5815_v24, %v17002_v60  ;;  %v17004_v26 = vld [vmem:[#allocation220_spill] sm:$0xff]  ;;  %v17006_v13 = vld [vmem:[#allocation239_spill] sm:$0xff] }
 0x578   : > { %16992 = vst [vmem:[#allocation12_spill] sm:$0xff] %v14756_v38  ;;  %v14772_v18 = vmul.f32 %v5814_v12, %v16998_v32  ;;  %v14782_v43 = vmul.f32 %v5816_v19, %v17004_v26  ;;  %v5819_v44 = vmul.f32 %v13723_v27, %v17006_v13  ;;  %v17007_v52 = vld [vmem:[#allocation180_spill] sm:$0xff]  ;;  %8768 = vmatprep.subr.bf16.mxu1 %v9341_v39  ;;  %v9342_v32 = vld [vmem:[%s15379_s5 + $0xd8] sm:$0xff]   ;;  %v17008_v62 = vld [vmem:[#allocation13_spill] sm:$0xff] }
 0x579   : > { %17003 = vst [vmem:[#allocation266_spill] sm:$0xff] %v14779_v50  ;;  %v5820_v12 = vmul.f32 %v13833_v51, %v17007_v52  ;;  %v14794_v24 = vmul.f32 %v5817_v55, %v17008_v62  ;;  %v17010_v41 = vld [vmem:[#allocation14_spill] sm:$0xff]  ;;  %v17013_v13 = vld [vmem:[#allocation17_spill] sm:$0xff]  ;;  %v17017_v45 = vld [vmem:[#allocation240_spill] sm:$0xff] }
 0x57a   : > { %16999 = vst [vmem:[#allocation250_spill] sm:$0xff] %v14772_v18  ;;  %17005 = vst [vmem:[#allocation18_spill] sm:$0xff] %v14782_v43  ;;  %v14797_v19 = vmul.f32 %v5818_v37, %v17010_v41  ;;  %v17012_v60 = vld [vmem:[#allocation238_spill] sm:$0xff]  ;;  %v14804_v17 = vmul.f32 %v5819_v44, %v17013_v13  ;;  %v17015_v38 = vld [vmem:[#allocation229_spill] sm:$0xff]  ;;  %v5822_v29 = vmul.f32 %v13777_v35, %v17017_v45 }
 0x57b   : > { %17009 = vst [vmem:[#allocation194_spill] sm:$0xff] %v14794_v24  ;;  %v5821_v26 = vmul.f32 %v13661_v47, %v17012_v60  ;;  %v14807_v23 = vmul.f32 %v5820_v12, %v17015_v38  ;;  %v17018_v55 = vld [vmem:[#allocation291_spill] sm:$0xff]  ;;  %v17019_v37 = vld [vmem:[#allocation154_spill] sm:$0xff]  ;;  %v17021_v60 = vld [vmem:[#allocation20_spill] sm:$0xff]  ;;  %8769 = vmatpush3.bf16.msra.mxu1 %v9341_v39 }
 0x57c   : > { %17011 = vst [vmem:[#allocation267_spill] sm:$0xff] %v14797_v19  ;;  %17014 = vst [vmem:[#allocation268_spill] sm:$0xff] %v14804_v17  ;;  %v17020_v62 = vpack.c.bf16 %v17018_v55, %v17019_v37  ;;  %v17022_v44 = vld [vmem:[#allocation115_spill] sm:$0xff]  ;;  %v17023_v38 = vld [vmem:[#allocation190_spill] sm:$0xff]  ;;  %8770 = vmatprep.subr.bf16.mxu1 %v9342_v32 }
 0x57d   : > { %17016 = vst [vmem:[#allocation269_spill] sm:$0xff] %v14807_v23  ;;  %v14818_v52 = vmul.f32 %v5821_v26, %v17021_v60  ;;  %v5823_v13 = vmul.f32 %v13994_v2, %v17022_v44  ;;  %v5824_v12 = vmul.f32 %v14217_v11, %v17023_v38  ;;  %v17024_v50 = vld [vmem:[#allocation207_spill] sm:$0xff]  ;;  %v17025_v43 = vld [vmem:[#allocation218_spill] sm:$0xff]  ;;  %v17028_v37 = vld [vmem:[#allocation21_spill] sm:$0xff] }
 0x57e   : > { %8753 = vmatmul.mubr.bf16.gmra.mrb[160].mxu1 %v17020_v62  ;;  %v3274_v45 = vmul.f32 0.01, %v17024_v50  ;;  %v17026_v53 = vld [vmem:[#allocation119_spill] sm:$0xff]  ;;  %v14831_v62 = vmul.f32 %v5822_v29, %v17028_v37  ;;  %v17029_v26 = vld [vmem:[#allocation149_spill] sm:$0xff]  ;;  %v17030_v38 = vld [vmem:[#allocation234_spill] sm:$0xff]  ;;  %vm2954_vm10 = vcmp.ge.f32.partialorder %v17024_v50, 0.0 }
 0x57f   : > { %v17027_v18 = vpack.c.bf16 %v17025_v43, %v17026_v53  ;;  %v5825_v60 = vmul.f32 %v13889_v3, %v17029_v26  ;;  %v9343_v44 = vld [vmem:[%s15379_s5 + $0xe0] sm:$0xff]   ;;  %v14839_v39 = vmul.f32 %v5823_v13, %v17030_v38  ;;  %v17031_v41 = vld [vmem:[#allocation24_spill] sm:$0xff]  ;;  %v17037_v13 = vld [vmem:[#allocation157_spill] sm:$0xff]  ;;  %8771 = vmatpush3.bf16.msra.mxu1 %v9342_v32 }
 0x580   : > { %v14842_v43 = vmul.f32 %v5824_v12, %v17031_v41  ;;  %v17032_v53 = vld [vmem:[#allocation244_spill] sm:$0xff]  ;;  %v17033_v55 = vld [vmem:[#allocation159_spill] sm:$0xff]  ;;  %v5829_v38 = vmul.f32 %v13178_v10, %v17037_v13  ;;  %v17039_v19 = vld [vmem:[#allocation246_spill] sm:$0xff]  ;;  %8772 = vmatprep.subr.bf16.mxu1 %v9343_v44 }
 0x581   : > { %8756 = vmatprep.mubr.bf16.mxu1 %v17027_v18  ;;  %v5826_v18 = vmul.f32 %v14103_v36, %v17032_v53  ;;  %v5827_v29 = vmul.f32 %v13231_v33, %v17033_v55  ;;  %v17034_v26 = vld [vmem:[#allocation287_spill] sm:$0xff]  ;;  %v17036_v23 = vld [vmem:[#allocation132_spill] sm:$0xff] }
 0x582   : > { %v14851_v17 = vmul.f32 %v5825_v60, %v17034_v26  ;;  %v5828_v24 = vmul.f32 %v13349_v30, %v17036_v23  ;;  %v17038_v12 = vld [vmem:[#allocation288_spill] sm:$0xff]  ;;  %v17042_v30 = vld [vmem:[#allocation34_spill] sm:$0xff]  ;;  %v17043_v10 = vld [vmem:[#allocation199_spill] sm:$0xff] }
 0x583   : > { %v14860_v53 = vmul.f32 %v5826_v18, %v17038_v12  ;;  %v14863_v33 = vmul.f32 %v5827_v29, %v17039_v19  ;;  %v17040_v55 = vld [vmem:[#allocation160_spill] sm:$0xff]  ;;  %v14871_v23 = vmul.f32 %v5829_v38, %v17042_v30  ;;  %v5831_v13 = vmul.f32 %v13480_v59, %v17043_v10  ;;  %v17044_v41 = vld [vmem:[#allocation23_spill] sm:$0xff]  ;;  %v17046_v29 = vld [vmem:[#allocation165_spill] sm:$0xff]  ;;  %8773 = vmatpush3.bf16.msra.mxu1 %v9343_v44 }
 0x584   : > { %17035 = vst [vmem:[#allocation196_spill] sm:$0xff] %v14851_v17  ;;  %v5830_v37 = vmul.f32 %v13282_v9, %v17040_v55  ;;  %v17041_v60 = vld [vmem:[#allocation292_spill] sm:$0xff]  ;;  %v5832_v18 = vmul.f32 %v13595_v42, %v17044_v41  ;;  %v5833_v38 = vmul.f32 %v13420_v31, %v17046_v29  ;;  %v17047_v12 = vld [vmem:[#allocation19_spill] sm:$0xff]  ;;  %v17050_v10 = vld [vmem:[#allocation53_spill] sm:$0xff] }
 0x585   : > { %v14868_v26 = vmul.f32 %v5828_v24, %v17041_v60  ;;  %v9344_v19 = vld [vmem:[%s15379_s5 + $0xe8] sm:$0xff]   ;;  %v5834_v59 = vmul.f32 %v13540_v5, %v17047_v12  ;;  %v17048_v41 = vld [vmem:[#allocation39_spill] sm:$0xff]  ;;  %v17049_v60 = vld [vmem:[#allocation293_spill] sm:$0xff]  ;;  %v5835_v9 = vmul.f32 %v13723_v27, %v17050_v10  ;;  %v17057_v27 = vpack.c.bf16 %v14252_v15, %v14166_v57 }
 0x586   : > { %v17045_v32 = vld [vmem:[#allocation248_spill] sm:$0xff]  ;;  %v14892_v55 = vmul.f32 %v5831_v13, %v17048_v41  ;;  %v14895_v30 = vmul.f32 %v5832_v18, %v17049_v60  ;;  %v17054_v5 = vld [vmem:[#allocation294_spill] sm:$0xff]  ;;  %v17055_v12 = vld [vmem:[#allocation295_spill] sm:$0xff]  ;;  %8774 = vmatprep.subr.bf16.mxu1 %v9344_v19 }
 0x587   : > { %v14883_v24 = vmul.f32 %v5830_v37, %v17045_v32  ;;  %v17051_v37 = vld [vmem:[#allocation219_spill] sm:$0xff]  ;;  %v17052_v32 = vld [vmem:[#allocation217_spill] sm:$0xff]  ;;  %v14905_v29 = vmul.f32 %v5833_v38, %v17054_v5  ;;  %v14908_v42 = vmul.f32 %v5834_v59, %v17055_v12  ;;  %v17056_v13 = vld [vmem:[#allocation212_spill] sm:$0xff]  ;;  %8775 = vmatpush3.bf16.msra.mxu1 %v9344_v19 }
 0x588   : > { %v17053_v17 = vpack.c.bf16 %v17051_v37, %v17052_v32  ;;  %v5836_v18 = vmul.f32 %v13833_v51, %v17056_v13  ;;  %v17058_v41 = vld [vmem:[#allocation296_spill] sm:$0xff]  ;;  %v9345_v51 = vld [vmem:[%s15379_s5 + $0xf0] sm:$0xff]   ;;  %v17061_v57 = vld [vmem:[#allocation54_spill] sm:$0xff] }
 0x589   : > { %v6076_v31 = vpack.c.bf16 %v14883_v24, %v14871_v23  ;;  %v14919_v60 = vmul.f32 %v5835_v9, %v17058_v41  ;;  %v17059_v38 = vld [vmem:[#allocation52_spill] sm:$0xff]  ;;  %v6078_v44 = vpack.c.bf16 %v14908_v42, %v14905_v29  ;;  %v17060_v10 = vld [vmem:[#allocation297_spill] sm:$0xff]  ;;  %v5838_v37 = vmul.f32 %v13777_v35, %v17061_v57  ;;  %v17062_v32 = vld [vmem:[#allocation151_spill] sm:$0xff]  ;;  %8776 = vmatprep.subr.bf16.mxu1 %v9345_v51 }
 0x58a   : > { %8757 = vmatmul.mubr.bf16.gmra.mrb[164].mxu1 %v17053_v17  ;;  %v6077_v17 = vpack.c.bf16 %v14895_v30, %v14892_v55  ;;  %v5837_v59 = vmul.f32 %v13661_v47, %v17059_v38  ;;  %v14929_v15 = vmul.f32 %v5836_v18, %v17060_v10  ;;  %v5839_v9 = vmul.f32 %v13994_v2, %v17062_v32  ;;  %v17063_v5 = vld [vmem:[#allocation116_spill] sm:$0xff]  ;;  %v17064_v13 = vld [vmem:[#allocation182_spill] sm:$0xff] }
 0x58b   : > { %8760 = vmatprep.mubr.bf16.mxu1 %v17057_v27  ;;  %v3592_v47 = vsel %vm2952_vm9, %v16980_v22, %v14734_v58  ;;  %v5840_v12 = vmul.f32 %v14217_v11, %v17063_v5  ;;  %v5841_v27 = vmul.f32 %v13889_v3, %v17064_v13  ;;  %v17065_v41 = vld [vmem:[#allocation62_spill] sm:$0xff]  ;;  %v3594_v35 = vsel %vm2954_vm10, %v17024_v50, %v3274_v45  ;;  %v17067_v58 = vld [vmem:[#allocation299_spill] sm:$0xff]  ;;  %v17068_v11 = vld [vmem:[#allocation300_spill] sm:$0xff] }
 0x58c   : > { %v5842_v18 = vmul.f32 %v14103_v36, %v17065_v41  ;;  %v6079_v2 = vpack.c.bf16 %v14929_v15, %v14919_v60  ;;  %v17066_v38 = vld [vmem:[#allocation298_spill] sm:$0xff]  ;;  %v14954_v22 = vmul.f32 %v5838_v37, %v17067_v58  ;;  %v14957_v57 = vmul.f32 %v5839_v9, %v17068_v11  ;;  %v17069_v3 = vld [vmem:[#allocation301_spill] sm:$0xff]  ;;  %v17070_v37 = vld [vmem:[#allocation16_spill] sm:$0xff]  ;;  %8777 = vmatpush3.bf16.msra.mxu1 %v9345_v51 }
 0x58d   : > { %v14951_v10 = vmul.f32 %v5837_v59, %v17066_v38  ;;  %v14960_v32 = vmul.f32 %v5840_v12, %v17069_v3  ;;  %v14962_v36 = vmul.f32 %v5841_v27, %v3592_v47  ;;  %v9346_v50 = vld [vmem:[%s15379_s5 + $0xf8] sm:$0xff]   ;;  %v17071_v9 = vld [vmem:[#allocation15_spill] sm:$0xff]  ;;  %v17073_v12 = vld [vmem:[#allocation224_spill] sm:$0xff]  ;;  %v17079_v51 = vpack.c.bf16 %v14211_v14, %v14208_v7 }
 0x58e   : > { %v14964_v5 = vmul.f32 %v5842_v18, %v3594_v35  ;;  %v17072_v47 = vpack.c.bf16 %v17070_v37, %v17071_v9  ;;  %v17074_v13 = vld [vmem:[#allocation223_spill] sm:$0xff]  ;;  %8778 = vmatprep.subr.bf16.mxu1 %v9346_v50  ;;  %v9348_v18 = vld [vmem:[%s15379_s5 + $0x108] sm:$0xff]   ;;  %v17076_v35 = vld [vmem:[#allocation226_spill] sm:$0xff]  ;;  %v17081_v7 = vpack.c.bf16 %v14243_v54, %v14240_v8 }
 0x58f   : > { %v6080_v45 = vpack.c.bf16 %v14954_v22, %v14951_v10  ;;  %v6081_v19 = vpack.c.bf16 %v14960_v32, %v14957_v57  ;;  %v17075_v27 = vpack.c.bf16 %v17073_v12, %v17074_v13  ;;  %v9347_v41 = vld [vmem:[%s15379_s5 + $0x100] sm:$0xff]   ;;  %v17077_v38 = vld [vmem:[#allocation225_spill] sm:$0xff]  ;;  %v9350_v3 = vld [vmem:[%s15379_s5 + $0x118] sm:$0xff]  }
 0x590   : > { %v6082_v59 = vpack.c.bf16 %v14964_v5, %v14962_v36  ;;  %8779 = vmatpush3.bf16.msra.mxu1 %v9346_v50  ;;  %v17078_v58 = vpack.c.bf16 %v17076_v35, %v17077_v38  ;;  %v9349_v11 = vld [vmem:[%s15379_s5 + $0x110] sm:$0xff]   ;;  %v17080_v50 = vpack.c.bf16 %v14237_v63, %v14224_v16  ;;  %v9351_v14 = vld [vmem:[%s15379_s5 + $0x120] sm:$0xff]   ;;  %v9352_v37 = vld [vmem:[%s15379_s5 + $0x128] sm:$0xff]  }
 0x591   : > { %8796 = vmatprep.subr.bf16.mxu1 %v9347_v41  ;;  %v17082_v9 = vld [vmem:[#allocation221_spill] sm:$0xff]  ;;  %v17085_v16 = vld [vmem:[#allocation22_spill] sm:$0xff]  ;;  %v17087_v13 = vld [vmem:[#allocation236_spill] sm:$0xff] }
 0x592   : > { %8761 = vmatmul.mubr.bf16.gmra.mrb[168].mxu1 %v17072_v47  ;;  %v17083_v47 = vld [vmem:[#allocation227_spill] sm:$0xff]  ;;  %v17086_v8 = vpack.c.bf16 %v14291_v6, %v17085_v16  ;;  %v9353_v54 = vld [vmem:[%s15379_s5 + $0x130] sm:$0xff]   ;;  %v9354_v12 = vld [vmem:[%s15379_s5 + $0x138] sm:$0xff]  }
 0x593   : > { %8780 = vmatprep.mubr.bf16.mxu1 %v17075_v27  ;;  %v17084_v63 = vpack.c.bf16 %v17082_v9, %v17083_v47  ;;  %v17088_v27 = vld [vmem:[#allocation233_spill] sm:$0xff]  ;;  %v17091_v35 = vld [vmem:[#allocation122_spill] sm:$0xff]  ;;  %v9355_v38 = vld [vmem:[%s15379_s5 + $0x140] sm:$0xff]  }
 0x594   : > { %v17098_v9 = vld [vmem:[#allocation28_spill] sm:$0xff]  ;;  %v17101_v16 = vld [vmem:[#allocation30_spill] sm:$0xff] }
 0x595   : > { %v9360_v47 = vld [vmem:[%s15379_s5 + $0x168] sm:$0xff]  }
 0x59a   : > { %8781 = vmatmul.mubr.bf16.vlgmr.msra.gmra.mrb[156].mxu1 %v17078_v58  ;;  %v9356_v58 = vld [vmem:[%s15379_s5 + $0x148] sm:$0xff]  }
 0x59b   : > { %8797 = vmatpush3.bf16.msra.mxu1 %v9347_v41  ;;  %8784 = vmatprep.mubr.bf16.mxu1 %v17079_v51  ;;  %v17089_v41 = vpack.c.bf16 %v17087_v13, %v17088_v27  ;;  %v17093_v51 = vld [vmem:[#allocation27_spill] sm:$0xff] }
 0x59c   : > { %8798 = vmatprep.subr.bf16.mxu1 %v9348_v18  ;;  %v17106_v13 = vld [vmem:[#allocation231_spill] sm:$0xff] }
 0x59d   : > { %v17107_v27 = vld [vmem:[#allocation247_spill] sm:$0xff] }
 0x59f   : > { %8799 = vmatpush3.bf16.msra.mxu1 %v9348_v18  ;;  %v17090_v18 = vld [vmem:[#allocation237_spill] sm:$0xff] }
 0x5a0   : > { %8800 = vmatprep.subr.bf16.mxu1 %v9349_v11  ;;  %v17092_v6 = vpack.c.bf16 %v17090_v18, %v17091_v35  ;;  %v17109_v18 = vpack.c.bf16 %v14423_v28, %v14414_v34  ;;  %v9363_v35 = vld [vmem:[%s15379_s5 + $0x180] sm:$0xff]   ;;  %v17112_v34 = vpack.c.bf16 %v14446_v4, %v14434_v49  ;;  %v9365_v28 = vld [vmem:[%s15379_s5 + $0x190] sm:$0xff]  }
 0x5a1   : > { %v9367_v4 = vld [vmem:[%s15379_s5 + $0x1a0] sm:$0xff]  }
 0x5a2   : > { %8785 = vmatmul.mubr.bf16.gmra.mrb[160].mxu1 %v17080_v50  ;;  %v17096_v50 = vpack.c.bf16 %v14336_v0, %v14327_v21  ;;  %v17099_v21 = vpack.c.bf16 %v14361_v1, %v17098_v9  ;;  %v9359_v0 = vld [vmem:[%s15379_s5 + $0x160] sm:$0xff]  }
 0x5a3   : > { %8801 = vmatpush3.bf16.msra.mxu1 %v9349_v11  ;;  %8788 = vmatprep.mubr.bf16.mxu1 %v17081_v7  ;;  %v17094_v11 = vld [vmem:[#allocation191_spill] sm:$0xff]  ;;  %v9357_v7 = vld [vmem:[%s15379_s5 + $0x150] sm:$0xff]  }
 0x5a4   : > { %8802 = vmatprep.subr.bf16.mxu1 %v9350_v3 }
 0x5a7   : > { %8803 = vmatpush3.bf16.msra.mxu1 %v9350_v3  ;;  %v17095_v3 = vpack.c.bf16 %v17093_v51, %v17094_v11  ;;  %v9366_v51 = vld [vmem:[%s15379_s5 + $0x198] sm:$0xff]   ;;  %v17114_v11 = vld [vmem:[#allocation35_spill] sm:$0xff] }
 0x5a8   : > { %8804 = vmatprep.subr.bf16.mxu1 %v9351_v14 }
 0x5aa   : > { %8789 = vmatmul.mubr.bf16.gmra.mrb[164].mxu1 %v17084_v63  ;;  %v17100_v63 = vld [vmem:[#allocation241_spill] sm:$0xff] }
 0x5ab   : > { %8805 = vmatpush3.bf16.msra.mxu1 %v9351_v14  ;;  %8792 = vmatprep.mubr.bf16.mxu1 %v17086_v8  ;;  %v9358_v14 = vld [vmem:[%s15379_s5 + $0x158] sm:$0xff]   ;;  %v17104_v8 = vld [vmem:[#allocation243_spill] sm:$0xff] }
 0x5ac   : > { %8806 = vmatprep.subr.bf16.mxu1 %v9352_v37 }
 0x5af   : > { %8807 = vmatpush3.bf16.msra.mxu1 %v9352_v37  ;;  %v17097_v37 = vpack.c.bf16 %v14346_v25, %v14343_v61  ;;  %v17102_v61 = vpack.c.bf16 %v17100_v63, %v17101_v16  ;;  %v17103_v25 = vld [vmem:[#allocation245_spill] sm:$0xff] }
 0x5b0   : > { %8808 = vmatprep.subr.bf16.mxu1 %v9353_v54  ;;  %v17105_v1 = vpack.c.bf16 %v17103_v25, %v17104_v8  ;;  %v17125_v16 = vld [vmem:[#allocation41_spill] sm:$0xff]  ;;  %v9371_v25 = vld [vmem:[%s15379_s5 + $0x1c0] sm:$0xff]   ;;  %v9372_v8 = vld [vmem:[%s15379_s5 + $0x1c8] sm:$0xff]  }
 0x5b2   : > { %8793 = vmatmul.mubr.bf16.gmra.mrb[168].mxu1 %v17089_v41  ;;  %v17108_v41 = vpack.c.bf16 %v17106_v13, %v17107_v27  ;;  %v17131_v13 = vld [vmem:[#allocation156_spill] sm:$0xff]  ;;  %v9373_v27 = vld [vmem:[%s15379_s5 + $0x1d0] sm:$0xff]  }
 0x5b3   : > { %8809 = vmatpush3.bf16.msra.mxu1 %v9353_v54  ;;  %8812 = vmatprep.mubr.bf16.mxu1 %v17092_v6  ;;  %v9361_v54 = vld [vmem:[%s15379_s5 + $0x170] sm:$0xff]   ;;  %v9364_v6 = vld [vmem:[%s15379_s5 + $0x188] sm:$0xff]  }
 0x5b4   : > { %8810 = vmatprep.subr.bf16.mxu1 %v9354_v12 }
 0x5b7   : > { %8811 = vmatpush3.bf16.msra.mxu1 %v9354_v12  ;;  %v9362_v12 = vld [vmem:[%s15379_s5 + $0x178] sm:$0xff]  }
 0x5b8   : > { %8828 = vmatprep.subr.bf16.mxu1 %v9355_v38 }
 0x5ba   : > { %8813 = vmatmul.mubr.bf16.vlgmr.msra.gmra.mrb[156].mxu1 %v17095_v3  ;;  %v17115_v3 = vld [vmem:[#allocation214_spill] sm:$0xff] }
 0x5bb   : > { %8829 = vmatpush3.bf16.msra.mxu1 %v9355_v38  ;;  %8816 = vmatprep.mubr.bf16.mxu1 %v17096_v50  ;;  %v17110_v38 = vld [vmem:[#allocation121_spill] sm:$0xff]  ;;  %v17116_v49 = vpack.c.bf16 %v17114_v11, %v17115_v3  ;;  %v9368_v50 = vld [vmem:[%s15379_s5 + $0x1a8] sm:$0xff]   ;;  %v17140_v11 = vld [vmem:[#allocation43_spill] sm:$0xff] }
 0x5bc   : > { %8830 = vmatprep.subr.bf16.mxu1 %v9356_v58 }
 0x5bf   : > { %8831 = vmatpush3.bf16.msra.mxu1 %v9356_v58  ;;  %v17111_v58 = vpack.c.bf16 %v14431_v20, %v17110_v38  ;;  %v17113_v20 = vpack.c.bf16 %v14458_v40, %v14455_v56  ;;  %v17120_v56 = vld [vmem:[#allocation249_spill] sm:$0xff]  ;;  %v17136_v38 = vld [vmem:[#allocation42_spill] sm:$0xff] }
 0x5c0   : > { %8832 = vmatprep.subr.bf16.mxu1 %v9357_v7 }
 0x5c2   : > { %8817 = vmatmul.mubr.bf16.gmra.mrb[160].mxu1 %v17097_v37  ;;  %v17121_v37 = vld [vmem:[#allocation37_spill] sm:$0xff] }
 0x5c3   : > { %8833 = vmatpush3.bf16.msra.mxu1 %v9357_v7  ;;  %8820 = vmatprep.mubr.bf16.mxu1 %v17099_v21  ;;  %v17117_v7 = vld [vmem:[#allocation36_spill] sm:$0xff]  ;;  %v17122_v9 = vpack.c.bf16 %v17120_v56, %v17121_v37  ;;  %v9369_v21 = vld [vmem:[%s15379_s5 + $0x1b0] sm:$0xff]  }
 0x5c4   : > { %8834 = vmatprep.subr.bf16.mxu1 %v9358_v14  ;;  %v17146_v56 = vld [vmem:[#allocation260_spill] sm:$0xff] }
 0x5c7   : > { %8835 = vmatpush3.bf16.msra.mxu1 %v9358_v14  ;;  %v17118_v14 = vld [vmem:[#allocation31_spill] sm:$0xff] }
 0x5c8   : > { %8836 = vmatprep.subr.bf16.mxu1 %v9359_v0  ;;  %v17119_v40 = vpack.c.bf16 %v17117_v7, %v17118_v14  ;;  %v9377_v7 = vld [vmem:[%s15379_s5 + $0x1f0] sm:$0xff]   ;;  %v9378_v14 = vld [vmem:[%s15379_s5 + $0x1f8] sm:$0xff]  }
 0x5ca   : > { %8821 = vmatmul.mubr.bf16.gmra.mrb[164].mxu1 %v17102_v61  ;;  %v17126_v61 = vpack.c.bf16 %v14523_v48, %v17125_v16  ;;  %v17151_v16 = vld [vmem:[#allocation46_spill] sm:$0xff] }
 0x5cb   : > { %8837 = vmatpush3.bf16.msra.mxu1 %v9359_v0  ;;  %8824 = vmatprep.mubr.bf16.mxu1 %v17105_v1  ;;  %v9370_v0 = vld [vmem:[%s15379_s5 + $0x1b8] sm:$0xff]   ;;  %v17127_v1 = vld [vmem:[#allocation253_spill] sm:$0xff] }
 0x5cc   : > { %8838 = vmatprep.subr.bf16.mxu1 %v9360_v47 }
 0x5cf   : > { %8839 = vmatpush3.bf16.msra.mxu1 %v9360_v47  ;;  %v17123_v47 = vld [vmem:[#allocation40_spill] sm:$0xff] }
 0x5d0   : > { %8840 = vmatprep.subr.bf16.mxu1 %v9361_v54  ;;  %v17124_v63 = vpack.c.bf16 %v14517_v46, %v17123_v47  ;;  %v9379_v47 = vld [vmem:[%s15379_s5 + $0x200] sm:$0xff]  }
 0x5d2   : > { %8825 = vmatmul.mubr.bf16.gmra.mrb[168].mxu1 %v17108_v41  ;;  %v9374_v41 = vld [vmem:[%s15379_s5 + $0x1d8] sm:$0xff]  }
 0x5d3   : > { %8841 = vmatpush3.bf16.msra.mxu1 %v9361_v54  ;;  %8844 = vmatprep.mubr.bf16.mxu1 %v17109_v18  ;;  %v17128_v54 = vld [vmem:[#allocation192_spill] sm:$0xff]  ;;  %v17133_v18 = vld [vmem:[#allocation198_spill] sm:$0xff] }
 0x5d4   : > { %8842 = vmatprep.subr.bf16.mxu1 %v9362_v12  ;;  %v17129_v46 = vpack.c.bf16 %v17127_v1, %v17128_v54  ;;  %v17155_v1 = vld [vmem:[#allocation51_spill] sm:$0xff] }
 0x5d7   : > { %8843 = vmatpush3.bf16.msra.mxu1 %v9362_v12  ;;  %v17130_v12 = vld [vmem:[#allocation222_spill] sm:$0xff] }
 0x5d8   : > { %8860 = vmatprep.subr.bf16.mxu1 %v9363_v35  ;;  %v17132_v48 = vpack.c.bf16 %v17130_v12, %v17131_v13  ;;  %v9382_v12 = vld [vmem:[%s15379_s5 + $0x218] sm:$0xff]   ;;  %v17157_v13 = vld [vmem:[#allocation213_spill] sm:$0xff] }
 0x5da   : > { %8845 = vmatmul.mubr.bf16.vlgmr.msra.gmra.mrb[156].mxu1 %v17111_v58  ;;  %v17137_v58 = vld [vmem:[#allocation263_spill] sm:$0xff] }
 0x5db   : > { %8861 = vmatpush3.bf16.msra.mxu1 %v9363_v35  ;;  %8848 = vmatprep.mubr.bf16.mxu1 %v17112_v34  ;;  %v17134_v35 = vld [vmem:[#allocation255_spill] sm:$0xff]  ;;  %v17138_v34 = vpack.c.bf16 %v17136_v38, %v17137_v58  ;;  %v9384_v38 = vld [vmem:[%s15379_s5 + $0x228] sm:$0xff]  }
 0x5dc   : > { %8862 = vmatprep.subr.bf16.mxu1 %v9364_v6  ;;  %v17163_v58 = vld [vmem:[#allocation60_spill] sm:$0xff] }
 0x5df   : > { %8863 = vmatpush3.bf16.msra.mxu1 %v9364_v6  ;;  %v17135_v6 = vpack.c.bf16 %v17133_v18, %v17134_v35  ;;  %v17161_v18 = vld [vmem:[#allocation32_spill] sm:$0xff] }
 0x5e0   : > { %8864 = vmatprep.subr.bf16.mxu1 %v9365_v28 }
 0x5e2   : > { %8849 = vmatmul.mubr.bf16.gmra.mrb[160].mxu1 %v17113_v20  ;;  %v17139_v20 = vld [vmem:[#allocation164_spill] sm:$0xff] }
 0x5e3   : > { %8865 = vmatpush3.bf16.msra.mxu1 %v9365_v28  ;;  %8852 = vmatprep.mubr.bf16.mxu1 %v17116_v49  ;;  %v9375_v28 = vld [vmem:[%s15379_s5 + $0x1e0] sm:$0xff]   ;;  %v17141_v3 = vpack.c.bf16 %v17139_v20, %v17140_v11  ;;  %v17142_v49 = vld [vmem:[#allocation257_spill] sm:$0xff] }
 0x5e4   : > { %8866 = vmatprep.subr.bf16.mxu1 %v9366_v51  ;;  %v17167_v20 = vld [vmem:[#allocation57_spill] sm:$0xff] }
 0x5e7   : > { %8867 = vmatpush3.bf16.msra.mxu1 %v9366_v51  ;;  %v9376_v51 = vld [vmem:[%s15379_s5 + $0x1e8] sm:$0xff]  }
 0x5e8   : > { %8868 = vmatprep.subr.bf16.mxu1 %v9367_v4 }
 0x5ea   : > { %8853 = vmatmul.mubr.bf16.gmra.mrb[164].mxu1 %v17119_v40  ;;  %v17145_v40 = vld [vmem:[#allocation261_spill] sm:$0xff] }
 0x5eb   : > { %8869 = vmatpush3.bf16.msra.mxu1 %v9367_v4  ;;  %8856 = vmatprep.mubr.bf16.mxu1 %v17122_v9  ;;  %v17143_v4 = vld [vmem:[#allocation230_spill] sm:$0xff]  ;;  %v17147_v37 = vpack.c.bf16 %v17145_v40, %v17146_v56  ;;  %v17148_v9 = vld [vmem:[#allocation8_spill] sm:$0xff] }
 0x5ec   : > { %8870 = vmatprep.subr.bf16.mxu1 %v9368_v50  ;;  %v17173_v40 = vld [vmem:[#allocation254_spill] sm:$0xff] }
 0x5ef   : > { %8871 = vmatpush3.bf16.msra.mxu1 %v9368_v50  ;;  %v17144_v50 = vpack.c.bf16 %v17142_v49, %v17143_v4  ;;  %v9386_v49 = vld [vmem:[%s15379_s5 + $0x238] sm:$0xff]   ;;  %v17169_v4 = vld [vmem:[#allocation265_spill] sm:$0xff] }
 0x5f0   : > { %8872 = vmatprep.subr.bf16.mxu1 %v9369_v21 }
 0x5f2   : > { %8857 = vmatmul.mubr.bf16.gmra.mrb[168].mxu1 %v17124_v63  ;;  %v9380_v63 = vld [vmem:[%s15379_s5 + $0x208] sm:$0xff]  }
 0x5f3   : > { %8873 = vmatpush3.bf16.msra.mxu1 %v9369_v21  ;;  %8876 = vmatprep.mubr.bf16.mxu1 %v17126_v61  ;;  %v17149_v21 = vld [vmem:[#allocation262_spill] sm:$0xff]  ;;  %v17152_v61 = vld [vmem:[#allocation125_spill] sm:$0xff] }
 0x5f4   : > { %8874 = vmatprep.subr.bf16.mxu1 %v9370_v0 }
 0x5f7   : > { %8875 = vmatpush3.bf16.msra.mxu1 %v9370_v0  ;;  %v17150_v0 = vpack.c.bf16 %v17148_v9, %v17149_v21  ;;  %v9388_v9 = vld [vmem:[%s15379_s5 + $0x248] sm:$0xff]   ;;  %v17175_v21 = vld [vmem:[#allocation250_spill] sm:$0xff] }
 0x5f8   : > { %8892 = vmatprep.subr.bf16.mxu1 %v9371_v25 }
 0x5fa   : > { %8877 = vmatmul.mubr.bf16.vlgmr.msra.gmra.mrb[156].mxu1 %v17129_v46  ;;  %v9381_v46 = vld [vmem:[%s15379_s5 + $0x210] sm:$0xff]  }
 0x5fb   : > { %8893 = vmatpush3.bf16.msra.mxu1 %v9371_v25  ;;  %8880 = vmatprep.mubr.bf16.mxu1 %v17132_v48  ;;  %v17153_v25 = vpack.c.bf16 %v17151_v16, %v17152_v61  ;;  %v17158_v48 = vld [vmem:[#allocation44_spill] sm:$0xff]  ;;  %v17179_v16 = vld [vmem:[#allocation266_spill] sm:$0xff] }
 0x5fc   : > { %8894 = vmatprep.subr.bf16.mxu1 %v9372_v8 }
 0x5ff   : > { %8895 = vmatpush3.bf16.msra.mxu1 %v9372_v8  ;;  %v17154_v8 = vld [vmem:[#allocation235_spill] sm:$0xff] }
 0x600   : > { %8896 = vmatprep.subr.bf16.mxu1 %v9373_v27  ;;  %v17156_v54 = vpack.c.bf16 %v17154_v8, %v17155_v1  ;;  %v9390_v8 = vld [vmem:[%s15379_s5 + $0x258] sm:$0xff]   ;;  %v17181_v1 = vld [vmem:[#allocation267_spill] sm:$0xff] }
 0x602   : > { %8881 = vmatmul.mubr.bf16.gmra.mrb[160].mxu1 %v17135_v6  ;;  %v9383_v6 = vld [vmem:[%s15379_s5 + $0x220] sm:$0xff]  }
 0x603   : > { %8897 = vmatpush3.bf16.msra.mxu1 %v9373_v27  ;;  %8884 = vmatprep.mubr.bf16.mxu1 %v17138_v34  ;;  %v17159_v27 = vpack.c.bf16 %v17157_v13, %v17158_v48  ;;  %v17164_v34 = vld [vmem:[#allocation56_spill] sm:$0xff] }
 0x604   : > { %8898 = vmatprep.subr.bf16.mxu1 %v9374_v41  ;;  %v17185_v13 = vld [vmem:[#allocation268_spill] sm:$0xff] }
 0x607   : > { %8899 = vmatpush3.bf16.msra.mxu1 %v9374_v41  ;;  %v17160_v41 = vld [vmem:[#allocation55_spill] sm:$0xff] }
 0x608   : > { %8900 = vmatprep.subr.bf16.mxu1 %v9375_v28  ;;  %v17162_v35 = vpack.c.bf16 %v17160_v41, %v17161_v18  ;;  %v9392_v41 = vld [vmem:[%s15379_s5 + $0x268] sm:$0xff]   ;;  %v17187_v18 = vpack.c.bf16 %v14831_v62, %v14818_v52 }
 0x609   : > { %v17189_v52 = vld [vmem:[#allocation196_spill] sm:$0xff] }
 0x60a   : > { %8885 = vmatmul.mubr.bf16.gmra.mrb[164].mxu1 %v17141_v3  ;;  %v9385_v3 = vld [vmem:[%s15379_s5 + $0x230] sm:$0xff]   ;;  %v17190_v62 = vpack.c.bf16 %v14860_v53, %v17189_v52 }
 0x60b   : > { %8901 = vmatpush3.bf16.msra.mxu1 %v9375_v28  ;;  %8888 = vmatprep.mubr.bf16.mxu1 %v17144_v50  ;;  %v17165_v28 = vpack.c.bf16 %v17163_v58, %v17164_v34  ;;  %v17170_v50 = vld [vmem:[#allocation264_spill] sm:$0xff] }
 0x60c   : > { %8902 = vmatprep.subr.bf16.mxu1 %v9376_v51 }
 0x60f   : > { %8903 = vmatpush3.bf16.msra.mxu1 %v9376_v51  ;;  %v17166_v51 = vld [vmem:[#allocation58_spill] sm:$0xff] }
 0x610   : > { %8904 = vmatprep.subr.bf16.mxu1 %v9377_v7  ;;  %v17168_v11 = vpack.c.bf16 %v17166_v51, %v17167_v20 }
 0x612   : > { %8889 = vmatmul.mubr.bf16.gmra.mrb[168].mxu1 %v17147_v37  ;;  %v9387_v37 = vld [vmem:[%s15379_s5 + $0x240] sm:$0xff]  }
 0x613   : > { %8905 = vmatpush3.bf16.msra.mxu1 %v9377_v7  ;;  %8908 = vmatprep.mubr.bf16.mxu1 %v17150_v0  ;;  %v17171_v7 = vpack.c.bf16 %v17169_v4, %v17170_v50  ;;  %v17176_v0 = vld [vmem:[#allocation188_spill] sm:$0xff] }
 0x614   : > { %8906 = vmatprep.subr.bf16.mxu1 %v9378_v14 }
 0x617   : > { %8907 = vmatpush3.bf16.msra.mxu1 %v9378_v14  ;;  %v17172_v14 = vld [vmem:[#allocation12_spill] sm:$0xff] }
 0x618   : > { %8924 = vmatprep.subr.bf16.mxu1 %v9379_v47  ;;  %v17174_v56 = vpack.c.bf16 %v17172_v14, %v17173_v40 }
 0x61a   : > { %8909 = vmatmul.mubr.bf16.vlgmr.msra.gmra.mrb[156].mxu1 %v17153_v25  ;;  %v9389_v25 = vld [vmem:[%s15379_s5 + $0x250] sm:$0xff]  }
 0x61b   : > { %8925 = vmatpush3.bf16.msra.mxu1 %v9379_v47  ;;  %8912 = vmatprep.mubr.bf16.mxu1 %v17156_v54  ;;  %v17177_v47 = vpack.c.bf16 %v17175_v21, %v17176_v0  ;;  %v17182_v54 = vld [vmem:[#allocation194_spill] sm:$0xff] }
 0x61c   : > { %8926 = vmatprep.subr.bf16.mxu1 %v9380_v63 }
 0x61f   : > { %8927 = vmatpush3.bf16.msra.mxu1 %v9380_v63  ;;  %v17178_v63 = vld [vmem:[#allocation18_spill] sm:$0xff] }
 0x620   : > { %8928 = vmatprep.subr.bf16.mxu1 %v9381_v46  ;;  %v17180_v61 = vpack.c.bf16 %v17178_v63, %v17179_v16 }
 0x622   : > { %8913 = vmatmul.mubr.bf16.gmra.mrb[160].mxu1 %v17159_v27  ;;  %v9391_v27 = vld [vmem:[%s15379_s5 + $0x260] sm:$0xff]  }
 0x623   : > { %8929 = vmatpush3.bf16.msra.mxu1 %v9381_v46  ;;  %8916 = vmatprep.mubr.bf16.mxu1 %v17162_v35  ;;  %v17183_v46 = vpack.c.bf16 %v17181_v1, %v17182_v54  ;;  %v17188_v35 = vpack.c.bf16 %v14842_v43, %v14839_v39  ;;  %v17191_v39 = vpack.c.bf16 %v14868_v26, %v14863_v33  ;;  %v8237_v43 = vld [vmem:[%s15380_s6] ss:$0 sm:$0xff] }
 0x624   : > { %8930 = vmatprep.subr.bf16.mxu1 %v9382_v12 }
 0x627   : > { %8931 = vmatpush3.bf16.msra.mxu1 %v9382_v12  ;;  %v17184_v12 = vld [vmem:[#allocation269_spill] sm:$0xff] }
 0x628   : > { %8932 = vmatprep.subr.bf16.mxu1 %v9383_v6  ;;  %v17186_v48 = vpack.c.bf16 %v17184_v12, %v17185_v13 }
 0x62a   : > { %8917 = vmatmul.mubr.bf16.gmra.mrb[164].mxu1 %v17165_v28 }
 0x62b   : > { %8933 = vmatpush3.bf16.msra.mxu1 %v9383_v6  ;;  %8920 = vmatprep.mubr.bf16.mxu1 %v17168_v11  ;;  %v9393_v6 = vld [vmem:[%s15379_s5 + $0x270] sm:$0xff]  }
 0x62c   : > { %8934 = vmatprep.subr.bf16.mxu1 %v9384_v38 }
 0x62f   : > { %8935 = vmatpush3.bf16.msra.mxu1 %v9384_v38  ;;  %v9394_v38 = vld [vmem:[%s15379_s5 + $0x278] sm:$0xff]  }
 0x630   : > { %8936 = vmatprep.subr.bf16.mxu1 %v9385_v3 }
 0x632   : > { %8921 = vmatmul.mubr.bf16.gmra.mrb[168].mxu1 %v17171_v7 }
 0x633   : > { %8937 = vmatpush3.bf16.msra.mxu1 %v9385_v3  ;;  %8940 = vmatprep.mubr.bf16.mxu1 %v17174_v56 }
 0x634   : > { %8938 = vmatprep.subr.bf16.mxu1 %v9386_v49 }
 0x637   : > { %8939 = vmatpush3.bf16.msra.mxu1 %v9386_v49 }
 0x638   : > { %8956 = vmatprep.subr.bf16.mxu1 %v9387_v37 }
 0x63a   : > { %8941 = vmatmul.mubr.bf16.vlgmr.msra.gmra.mrb[156].mxu1 %v17177_v47 }
 0x63b   : > { %8957 = vmatpush3.bf16.msra.mxu1 %v9387_v37  ;;  %8944 = vmatprep.mubr.bf16.mxu1 %v17180_v61 }
 0x63c   : > { %8958 = vmatprep.subr.bf16.mxu1 %v9388_v9 }
 0x63f   : > { %8959 = vmatpush3.bf16.msra.mxu1 %v9388_v9 }
 0x640   : > { %8960 = vmatprep.subr.bf16.mxu1 %v9389_v25 }
 0x642   : > { %8945 = vmatmul.mubr.bf16.gmra.mrb[160].mxu1 %v17183_v46 }
 0x643   : > { %8961 = vmatpush3.bf16.msra.mxu1 %v9389_v25  ;;  %8948 = vmatprep.mubr.bf16.mxu1 %v17186_v48 }
 0x644   : > { %8962 = vmatprep.subr.bf16.mxu1 %v9390_v8 }
 0x647   : > { %8963 = vmatpush3.bf16.msra.mxu1 %v9390_v8 }
 0x648   : > { %8964 = vmatprep.subr.bf16.mxu1 %v9391_v27 }
 0x64a   : > { %8949 = vmatmul.mubr.bf16.gmra.mrb[164].mxu1 %v17187_v18 }
 0x64b   : > { %8965 = vmatpush3.bf16.msra.mxu1 %v9391_v27  ;;  %8952 = vmatprep.mubr.bf16.mxu1 %v17188_v35 }
 0x64c   : > { %8966 = vmatprep.subr.bf16.mxu1 %v9392_v41 }
 0x64f   : > { %8967 = vmatpush3.bf16.msra.mxu1 %v9392_v41 }
 0x650   : > { %8968 = vmatprep.subr.bf16.mxu1 %v9393_v6 }
 0x652   : > { %8953 = vmatmul.mubr.bf16.gmra.mrb[168].mxu1 %v17190_v62 }
 0x653   : > { %8969 = vmatpush3.bf16.msra.mxu1 %v9393_v6  ;;  %8972 = vmatprep.mubr.bf16.mxu1 %v17191_v39 }
 0x654   : > { %8970 = vmatprep.subr.bf16.mxu1 %v9394_v38 }
 0x657   : > { %8971 = vmatpush3.bf16.msra.mxu1 %v9394_v38 }
 0x65a   : > { %8973 = vmatmul.mubr.bf16.vlgmr.msra.gmra.mrb[156].mxu1 %v6076_v31 }
 0x65b   : > { %8976 = vmatprep.mubr.bf16.mxu1 %v6077_v17 }
 0x662   : > { %8977 = vmatmul.mubr.bf16.gmra.mrb[160].mxu1 %v6078_v44 }
 0x663   : > { %8980 = vmatprep.mubr.bf16.mxu1 %v6079_v2 }
 0x66a   : > { %8981 = vmatmul.mubr.bf16.gmra.mrb[164].mxu1 %v6080_v45 }
 0x66b   : > { %8984 = vmatprep.mubr.bf16.mxu1 %v6081_v19 }
 0x672   : > { %8985 = vmatmul.mubr.bf16.gmra.mrb[168].mxu1 %v6082_v59 }
 0x72d   : > { %v8974_v53 = vpop.f32.mrb[156].mxu1 }
 0x72e   : > { %v7846_v33 = vadd.f32 %v8974_v53, %v8237_v43  ;;  %v7630_v26 = vpop.f32.mrb[157].mxu1 }
 0x72f   : > { %v7844_v23 = vadd.f32 %v8237_v43, %v7630_v26  ;;  %v8975_v24 = vpop.f32.mrb[158].mxu1 }
 0x730   : > { %7862 = vst [vmem:[%s15294_s12 + $0x10] sm:$0xff] %v7846_v33  ;;  %v7847_v42 = vadd.f32 %v8975_v24, %v8237_v43  ;;  %v7633_v55 = vpop.f32.mrb[159].mxu1 }
 0x731   : > { %7860 = vst [vmem:[%s15294_s12] sm:$0xff] %v7844_v23  ;;  %v7845_v30 = vadd.f32 %v8237_v43, %v7633_v55 }
 0x732   : > { %7863 = vst [vmem:[%s15294_s12 + $0x18] sm:$0xff] %v7847_v42 }
 0x733   : > { %7861 = vst [vmem:[%s15294_s12 + $0x8] sm:$0xff] %v7845_v30 }
 0x735   : > { %v8978_v31 = vpop.f32.mrb[160].mxu1 }
 0x736   : > { %v7850_v29 = vadd.f32 %v8978_v31, %v8237_v43  ;;  %v7646_v17 = vpop.f32.mrb[161].mxu1 }
 0x737   : > { %v7848_v60 = vadd.f32 %v8237_v43, %v7646_v17  ;;  %v8979_v44 = vpop.f32.mrb[162].mxu1 }
 0x738   : > { %7866 = vst [vmem:[%s15294_s12 + $0x30] sm:$0xff] %v7850_v29  ;;  %v7851_v15 = vadd.f32 %v8979_v44, %v8237_v43  ;;  %v7649_v2 = vpop.f32.mrb[163].mxu1 }
 0x739   : > { %7864 = vst [vmem:[%s15294_s12 + $0x20] sm:$0xff] %v7848_v60  ;;  %v7849_v10 = vadd.f32 %v8237_v43, %v7649_v2 }
 0x73a   : > { %7867 = vst [vmem:[%s15294_s12 + $0x38] sm:$0xff] %v7851_v15 }
 0x73b   : > { %7865 = vst [vmem:[%s15294_s12 + $0x28] sm:$0xff] %v7849_v10 }
 0x73d   : > { %v8982_v22 = vpop.f32.mrb[164].mxu1 }
 0x73e   : > { %v7854_v57 = vadd.f32 %v8982_v22, %v8237_v43  ;;  %v7662_v32 = vpop.f32.mrb[165].mxu1 }
 0x73f   : > { %v7852_v36 = vadd.f32 %v8237_v43, %v7662_v32  ;;  %v8983_v5 = vpop.f32.mrb[166].mxu1 }
 0x740   : > { %7870 = vst [vmem:[%s15294_s12 + $0x50] sm:$0xff] %v7854_v57  ;;  %v7855_v45 = vadd.f32 %v8983_v5, %v8237_v43  ;;  %v7665_v19 = vpop.f32.mrb[167].mxu1 }
 0x741   : > { %7868 = vst [vmem:[%s15294_s12 + $0x40] sm:$0xff] %v7852_v36  ;;  %v7853_v59 = vadd.f32 %v8237_v43, %v7665_v19 }
 0x742   : > { %7871 = vst [vmem:[%s15294_s12 + $0x58] sm:$0xff] %v7855_v45 }
 0x743   : > { %7869 = vst [vmem:[%s15294_s12 + $0x48] sm:$0xff] %v7853_v59 }
 0x745   : > { %v8986_v58 = vpop.f32.mrb[168].mxu1 }
 0x746   : > { %v7858_v34 = vadd.f32 %v8986_v58, %v8237_v43  ;;  %v7678_v28 = vpop.f32.mrb[169].mxu1 }
 0x747   : > { %v7856_v51 = vadd.f32 %v8237_v43, %v7678_v28  ;;  %v8987_v20 = vpop.f32.mrb[170].mxu1 }
 0x748   : > { %7874 = vst [vmem:[%s15294_s12 + $0x70] sm:$0xff] %v7858_v34  ;;  %v7859_v11 = vadd.f32 %v8987_v20, %v8237_v43  ;;  %v7681_v3 = vpop.f32.mrb[171].mxu1 }
 0x749   : > { %7872 = vst [vmem:[%s15294_s12 + $0x60] sm:$0xff] %v7856_v51  ;;  %v7857_v49 = vadd.f32 %v8237_v43, %v7681_v3 }
 0x74a   : > { %7875 = vst [vmem:[%s15294_s12 + $0x78] sm:$0xff] %v7859_v11 }
 0x74b   : > { %7873 = vst [vmem:[%s15294_s12 + $0x68] sm:$0xff] %v7857_v49 }
 0x74c   : > { %9766 = shalt.err (!%p9763_p7)
}
 0x74d   : > { %s9767_s12 = scalar_lea.hbm %s15318_s13, 2048  ;;  %s9771_s27 = scalar_lea.hbm %s15381_s7, 8192 }
 0x74e   : > { %p9768_p10 = scmp.ne.s32.totalorder %s15318_s13, %s9767_s12  ;;  %p9772_p13 = scmp.lt.u32.totalorder %s15318_s13, %s15381_s7 }
 0x74f   : > { %p9773_p0 = scmp.lt.u32.totalorder %s9771_s27, %s9767_s12  ;;  %p9775_p2 = scmp.lt.u32.totalorder %s9767_s12, %s15318_s13 }
 0x750   : > { %p9769_p11 = pnand %p9768_p10, %p9953_p8 }
 0x751   : > { %p9774_p1 = por %p9773_p0, %p9772_p13 }
 0x752   : > { %p9770_p12 = pneg %p9769_p11 }
 0x753   : > { %p9776_p3 = por %p9775_p2, %p9774_p1 }
 0x755   : > { %p9777_p4 = pnand %p9776_p3, %p9770_p12 }
 0x757   : > { %9780 = shalt.err (!%p9777_p4)
}
 0x758   : > { %s9851_s18 = smov 128   ;;  %s9852_s19 = smov 8  }
 0x759   : > { %9151 = dma.vmem_to_hbm [thread:$0]  (%p9953_p8), %s15312_s10, 2048, %s15318_s13, %s7877_s17, %s9851_s18, %s9851_s18, %s9852_s19  }
 0x75a PF: > { %p9157_p5 = scmp.ge.s32.totalorder %s9847_s8, 2  ;;  %s7907_s22 = sand.u32 1, %s9819_s24  }
 0x75b   : > { %s7908_s12 = scalar_lea.sflag [#allocation4], %s7907_s22 }
 0x75c   : > { %p9154_p6 = pnand %p9157_p5, %p9957_p9 }
 0x75e   : > { %9814 = dma.done.wait (!%p9154_p6), %s7908_s12, 2048  }
 0x75f   : > { %9816 = vsyncadd (!%p9154_p6), %s7908_s12, 4294965248  ;;  %s20_s8 = sadd.s32 1, %s9847_s8   ;;  %s17192_s15 = sld [smem:[#allocation6_spill]] }
 0x760   : > { %p17_p7 = scmp.ge.s32.totalorder %s20_s8, 6   ;;  %s17193_s24 = smov %s9823_s25 }
 0x761   : > { %s17194_s25 = smov %s9827_s26  ;;  %s17195_s26 = smov %s9965_s20 }
 0x762   : > { %s17196_s27 = smov %s9839_s29  ;;  %s17197_s28 = smov %s9843_s30 }
 0x763   : > { %s17198_s29 = smov %s17201_s11  ;;  %19 = sbr.rel (!%p17_p7) target bundleno = 5 (0x5), region = 129 }
 0x765   : > { %s17199_s30 = smov %s17192_s15 }
 0x76a   :  { %7913 = vsyncpa [#allocation4], 1 }
 0x76b   :  { %7915 = vsyncpa [#allocation4 + $0x1], 1 }

</bundles_post_ra>
